<compile_context>
chip_gen: v7x
topology: tpu7x:2x2x1
jax: 0.10.0
libtpu: 0.0.40
codegen_flags: <defaults>
</compile_context>

<pallas_src>
import jax
import jax.numpy as jnp
from jax.experimental import pallas as pl
from jax.experimental.pallas import tpu as pltpu


_EPS = 1e-5
_NEG_SLOPE = 0.01


# ------------------- fused conv (im2col matmul) + BN + LeakyReLU -------------

def _conv_bn_lrelu_kernel(x_ref, w_ref, b_ref, g_ref, be_ref, o_ref,
                          sum_ref, sq_ref):
    i = pl.program_id(0)
    tile_m = x_ref.shape[0]
    m_total = o_ref.shape[0]

    @pl.when(i == 0)
    def _():
        sum_ref[...] = jnp.zeros_like(sum_ref)
        sq_ref[...] = jnp.zeros_like(sq_ref)

    # matmul + bias for this row tile (MXU, f32 accumulate)
    y = (jnp.dot(x_ref[...], w_ref[...], preferred_element_type=jnp.float32)
         + b_ref[...])

    # one-pass BN statistics (sum, sum of squares) accumulated across tiles
    sum_ref[...] += jnp.sum(y, axis=0, keepdims=True)
    sq_ref[...] += jnp.sum(y * y, axis=0, keepdims=True)

    row0 = pl.multiple_of(i * tile_m, 8)
    o_ref[pl.ds(row0, tile_m), :] = y

    # epilogue on the last grid step: normalize + scale/shift + LeakyReLU
    @pl.when(i == pl.num_programs(0) - 1)
    def _():
        inv_m = 1.0 / m_total
        mean = sum_ref[...] * inv_m
        var = sq_ref[...] * inv_m - mean * mean        # biased variance
        inv = jax.lax.rsqrt(var + _EPS)
        z = (o_ref[...] - mean) * (inv * g_ref[...]) + be_ref[...]
        o_ref[...] = jnp.where(z >= 0.0, z, _NEG_SLOPE * z)


def _pick_tile_m(m, target=512):
    """Largest multiple-of-8 divisor of m that is <= target (or m itself)."""
    if m <= target:
        return m
    for t in range(target, 7, -8):
        if m % t == 0:
            return t
    return m


def conv_matmul_bn_lrelu(patches, w, b, gamma, beta):
    """patches: (M, K), w: (K, C), b/gamma/beta: (C,) -> (M, C) f32."""
    M, K = patches.shape
    _, C = w.shape
    tile_m = _pick_tile_m(M)
    grid = (M // tile_m,)

    def row_vec(v):
        return v.reshape(1, C).astype(jnp.float32)

    return pl.pallas_call(
        _conv_bn_lrelu_kernel,
        out_shape=jax.ShapeDtypeStruct((M, C), jnp.float32),
        grid_spec=pltpu.PrefetchScalarGridSpec(
            num_scalar_prefetch=0,
            grid=grid,
            in_specs=[
                pl.BlockSpec((tile_m, K), lambda i: (i, 0)),   # patch tiles (pipelined)
                pl.BlockSpec((K, C), lambda i: (0, 0)),        # weights (resident)
                pl.BlockSpec((1, C), lambda i: (0, 0)),        # bias
                pl.BlockSpec((1, C), lambda i: (0, 0)),        # gamma
                pl.BlockSpec((1, C), lambda i: (0, 0)),        # beta
            ],
            out_specs=pl.BlockSpec((M, C), lambda i: (0, 0)),  # VMEM-resident output
            scratch_shapes=[pltpu.VMEM((1, C), jnp.float32),   # column sums
                            pltpu.VMEM((1, C), jnp.float32)],  # column sum-of-squares
        ),
        compiler_params=pltpu.CompilerParams(
            dimension_semantics=("arbitrary",)),
    )(patches.astype(jnp.float32), w.astype(jnp.float32),
      row_vec(b), row_vec(gamma), row_vec(beta))


# ------------------------------ fused FC tail --------------------------------

def _bn_lrelu(y, gamma, beta):
    """Training-mode BN over rows (one-pass biased stats) + LeakyReLU(0.01)."""
    inv_m = 1.0 / y.shape[0]
    mean = jnp.sum(y, axis=0, keepdims=True) * inv_m
    var = jnp.sum(y * y, axis=0, keepdims=True) * inv_m - mean * mean
    inv = jax.lax.rsqrt(var + _EPS)
    z = (y - mean) * (inv * gamma) + beta
    return jnp.where(z >= 0.0, z, _NEG_SLOPE * z)


def _fc_tail_kernel(x_ref, w1_ref, b1_ref, g1_ref, be1_ref,
                    w2_ref, b2_ref, g2_ref, be2_ref,
                    w3_ref, b3_ref, o_ref):
    h = (jnp.dot(x_ref[...], w1_ref[...], preferred_element_type=jnp.float32)
         + b1_ref[...])
    h = _bn_lrelu(h, g1_ref[...], be1_ref[...])
    h = (jnp.dot(h, w2_ref[...], preferred_element_type=jnp.float32)
         + b2_ref[...])
    h = _bn_lrelu(h, g2_ref[...], be2_ref[...])
    o_ref[...] = (jnp.dot(h, w3_ref[...], preferred_element_type=jnp.float32)
                  + b3_ref[...])


def fc_tail(x, w1, b1, g1, be1, w2, b2, g2, be2, w3, b3):
    """One kernel for fc1+bn3+lrelu -> fc2+bn4+lrelu -> fc3.  All VMEM-resident."""
    N = x.shape[0]

    def rv(v):
        return v.reshape(1, -1).astype(jnp.float32)

    args = [x.astype(jnp.float32),
            w1.astype(jnp.float32), rv(b1), rv(g1), rv(be1),
            w2.astype(jnp.float32), rv(b2), rv(g2), rv(be2),
            w3.astype(jnp.float32), rv(b3)]
    return pl.pallas_call(
        _fc_tail_kernel,
        out_shape=jax.ShapeDtypeStruct((N, w3.shape[1]), jnp.float32),
        in_specs=[pl.BlockSpec(memory_space=pltpu.MemorySpace.VMEM)] * len(args),
        out_specs=pl.BlockSpec(memory_space=pltpu.MemorySpace.VMEM),
    )(*args)


# --------------------------------- glue (NHWC) --------------------------------

def im2col_nhwc(x, k, pad):
    """x: (N, H, W, C) NHWC -> patches (N*Ho*Wo, C*k*k) flattened in
    (Cin, kh, kw) order (matches PyTorch Conv2d weight.reshape(Cout, -1))."""
    N, H, W, C = x.shape
    if pad:
        x = jnp.pad(x, ((0, 0), (pad, pad), (pad, pad), (0, 0)))
    Ho = H + 2 * pad - k + 1
    Wo = W + 2 * pad - k + 1
    cols = [x[:, di:di + Ho, dj:dj + Wo, :] for di in range(k) for dj in range(k)]
    p = jnp.stack(cols, axis=-1)                      # (N, Ho, Wo, C, k*k)
    return p.reshape(N * Ho * Wo, C * k * k), Ho, Wo


def maxpool2x2_nhwc(x):
    N, H, W, C = x.shape
    return jnp.max(x.reshape(N, H // 2, 2, W // 2, 2, C), axis=(2, 4))


# ------------------------------ parameters ------------------------------------

def init_params(key):
    def uni(key, shape, fan_in):
        bound = 1.0 / jnp.sqrt(float(fan_in))
        return jax.random.uniform(key, shape, jnp.float32, -bound, bound)

    ks = jax.random.split(key, 10)
    p = {}
    p["conv1_w"] = uni(ks[0], (6, 1, 5, 5), 1 * 5 * 5)
    p["conv1_b"] = uni(ks[1], (6,), 1 * 5 * 5)
    p["conv2_w"] = uni(ks[2], (16, 6, 5, 5), 6 * 5 * 5)
    p["conv2_b"] = uni(ks[3], (16,), 6 * 5 * 5)
    p["fc1_w"] = uni(ks[4], (120, 576), 576)
    p["fc1_b"] = uni(ks[5], (120,), 576)
    p["fc2_w"] = uni(ks[6], (84, 120), 120)
    p["fc2_b"] = uni(ks[7], (84,), 120)
    p["fc3_w"] = uni(ks[8], (1, 84), 84)
    p["fc3_b"] = uni(ks[9], (1,), 84)
    # BatchNorm affine params: PyTorch default init (gamma=1, beta=0).
    p["bn1_g"], p["bn1_b"] = jnp.ones((6,)), jnp.zeros((6,))
    p["bn2_g"], p["bn2_b"] = jnp.ones((16,)), jnp.zeros((16,))
    p["bn3_g"], p["bn3_b"] = jnp.ones((120,)), jnp.zeros((120,))
    p["bn4_g"], p["bn4_b"] = jnp.ones((84,)), jnp.zeros((84,))
    return p


# --------------------------------- forward ------------------------------------

def lenet5_forward(params, x):
    """x: (N, 1, 32, 32) float32 (NCHW, like PyTorch) -> (N, 1)."""
    N = x.shape[0]
    x = jnp.transpose(x, (0, 2, 3, 1))                       # NCHW -> NHWC (once)

    # conv1 (1->6, k5, pad2) + bn1 + leaky_relu   [one fused kernel]
    patches, Ho, Wo = im2col_nhwc(x, 5, 2)                   # (N*32*32, 25)
    w1 = params["conv1_w"].reshape(6, -1).T                  # (25, 6)
    y = conv_matmul_bn_lrelu(patches, w1, params["conv1_b"],
                             params["bn1_g"], params["bn1_b"])
    y = y.reshape(N, Ho, Wo, 6)
    y = maxpool2x2_nhwc(y)                                   # (N, 16, 16, 6)

    # conv2 (6->16, k5, no pad) + bn2 + leaky_relu   [one fused kernel]
    patches, Ho, Wo = im2col_nhwc(y, 5, 0)                   # (N*144, 150)
    w2 = params["conv2_w"].reshape(16, -1).T                 # (150, 16)
    y = conv_matmul_bn_lrelu(patches, w2, params["conv2_b"],
                             params["bn2_g"], params["bn2_b"])
    y = y.reshape(N, Ho, Wo, 16)
    y = maxpool2x2_nhwc(y)                                   # (N, 6, 6, 16)

    # Flatten NHWC and permute fc1 weight columns from PyTorch's (C,H,W)
    # flatten order to (H,W,C) so activations never transpose back to NCHW.
    y = y.reshape(N, 6 * 6 * 16)
    w_fc1 = (params["fc1_w"].reshape(120, 16, 6, 6)
             .transpose(2, 3, 1, 0).reshape(576, 120))

    # fc1+bn3+lrelu -> fc2+bn4+lrelu -> fc3   [one fused kernel]
    out = fc_tail(y,
                  w_fc1, params["fc1_b"], params["bn3_g"], params["bn3_b"],
                  params["fc2_w"].T, params["fc2_b"],
                  params["bn4_g"], params["bn4_b"],
                  params["fc3_w"].T, params["fc3_b"])
    return out


if __name__ == "__main__":
    key = jax.random.PRNGKey(0)
    k_x, k_p = jax.random.split(key)

    # LeNet5 with fc1 = Linear(16*6*6, ...) requires 32x32 single-channel input.
    x = jax.random.normal(k_x, (2, 1, 32, 32), dtype=jnp.float32)
    params = init_params(k_p)

    fwd = jax.jit(lenet5_forward)
    out = jax.block_until_ready(fwd(params, x))

    assert out.shape == (2, 1), out.shape
    print("KERNEL_OK")
</pallas_src>

<mosaic_0001>
module attributes {stable_mosaic.version = 11 : i64} {
  func.func @_conv_bn_lrelu_kernel(%arg0: i32, %arg1: memref<512x25xf32, #tpu.memory_space<vmem>>, %arg2: memref<25x6xf32, #tpu.memory_space<vmem>>, %arg3: memref<1x6xf32, #tpu.memory_space<vmem>>, %arg4: memref<1x6xf32, #tpu.memory_space<vmem>>, %arg5: memref<1x6xf32, #tpu.memory_space<vmem>>, %arg6: memref<2048x6xf32, #tpu.memory_space<vmem>>, %arg7: memref<1x6xf32, #tpu.memory_space<vmem>>, %arg8: memref<1x6xf32, #tpu.memory_space<vmem>>) attributes {dimension_semantics = [#tpu.dimension_semantics<arbitrary>], iteration_bounds = array<i64: 4>, scalar_prefetch = 0 : i64, scratch_operands = 2 : i64, tpu.core_type = #tpu.core_type<tc>, window_params = [{transform_indices = @transform_0, window_bounds = array<i64: 512, 25>}, {pipeline_mode = #tpu.pipeline_mode<synchronous>, transform_indices = @transform_1, window_bounds = array<i64: 25, 6>}, {pipeline_mode = #tpu.pipeline_mode<synchronous>, transform_indices = @transform_2, window_bounds = array<i64: 1, 6>}, {pipeline_mode = #tpu.pipeline_mode<synchronous>, transform_indices = @transform_3, window_bounds = array<i64: 1, 6>}, {pipeline_mode = #tpu.pipeline_mode<synchronous>, transform_indices = @transform_4, window_bounds = array<i64: 1, 6>}, {pipeline_mode = #tpu.pipeline_mode<synchronous>, transform_indices = @transform_5, window_bounds = array<i64: 2048, 6>}]} {
    %c0_i32 = arith.constant 0 : i32
    %0 = arith.cmpi eq, %arg0, %c0_i32 : i32
    %1 = arith.extui %0 : i1 to i32
    %c0_i32_0 = arith.constant 0 : i32
    %2 = arith.cmpi ne, %1, %c0_i32_0 : i32
    scf.if %2 {
      %cst_18 = arith.constant 0.000000e+00 : f32
      %27 = vector.broadcast %cst_18 : f32 to vector<1x6xf32>
      %c0_19 = arith.constant 0 : index
      %c0_20 = arith.constant 0 : index
      %28 = vector.load %arg7[%c0_19, %c0_20] : memref<1x6xf32, #tpu.memory_space<vmem>>, vector<1x6xf32>
      tpu.vector_store %arg7[%c0_19, %c0_20], %27 {strides = array<i32>} : memref<1x6xf32, #tpu.memory_space<vmem>>, vector<1x6xf32>,
      %cst_21 = arith.constant 0.000000e+00 : f32
      %29 = vector.broadcast %cst_21 : f32 to vector<1x6xf32>
      %c0_22 = arith.constant 0 : index
      %c0_23 = arith.constant 0 : index
      %30 = vector.load %arg8[%c0_22, %c0_23] : memref<1x6xf32, #tpu.memory_space<vmem>>, vector<1x6xf32>
      tpu.vector_store %arg8[%c0_22, %c0_23], %29 {strides = array<i32>} : memref<1x6xf32, #tpu.memory_space<vmem>>, vector<1x6xf32>,
    } else {
    }
    %c0 = arith.constant 0 : index
    %c0_1 = arith.constant 0 : index
    %3 = vector.load %arg1[%c0, %c0_1] : memref<512x25xf32, #tpu.memory_space<vmem>>, vector<512x25xf32>
    %c0_2 = arith.constant 0 : index
    %c0_3 = arith.constant 0 : index
    %4 = vector.load %arg2[%c0_2, %c0_3] : memref<25x6xf32, #tpu.memory_space<vmem>>, vector<25x6xf32>
    %cst = arith.constant dense<0.000000e+00> : vector<512x6xf32>
    %5 = tpu.matmul %3, %4, %cst {dimension_numbers = #tpu.dot_dimension_numbers<[1], [0], [0], [1], [0, 0, 1, 1], [], []>} : vector<512x25xf32>, vector<25x6xf32>, vector<512x6xf32> -> vector<512x6xf32>
    %c0_4 = arith.constant 0 : index
    %c0_5 = arith.constant 0 : index
    %6 = vector.load %arg3[%c0_4, %c0_5] : memref<1x6xf32, #tpu.memory_space<vmem>>, vector<1x6xf32>
    %7 = vector.broadcast %6 : vector<1x6xf32> to vector<512x6xf32>
    %8 = arith.addf %5, %7 : vector<512x6xf32>
    %c0_6 = arith.constant 0 : index
    %c0_7 = arith.constant 0 : index
    %9 = vector.load %arg7[%c0_6, %c0_7] : memref<1x6xf32, #tpu.memory_space<vmem>>, vector<1x6xf32>
    %cst_8 = arith.constant dense<0.000000e+00> : vector<6xf32>
    %10 = vector.multi_reduction <add>, %8, %cst_8 [0] : vector<512x6xf32> to vector<6xf32>
    %11 = vector.shape_cast %10 : vector<6xf32> to vector<1x6xf32>
    %12 = arith.addf %9, %11 : vector<1x6xf32>
    %c0_9 = arith.constant 0 : index
    %c0_10 = arith.constant 0 : index
    %13 = vector.load %arg7[%c0_9, %c0_10] : memref<1x6xf32, #tpu.memory_space<vmem>>, vector<1x6xf32>
    tpu.vector_store %arg7[%c0_9, %c0_10], %12 {strides = array<i32>} : memref<1x6xf32, #tpu.memory_space<vmem>>, vector<1x6xf32>,
    %c0_11 = arith.constant 0 : index
    %c0_12 = arith.constant 0 : index
    %14 = vector.load %arg8[%c0_11, %c0_12] : memref<1x6xf32, #tpu.memory_space<vmem>>, vector<1x6xf32>
    %15 = arith.mulf %8, %8 : vector<512x6xf32>
    %cst_13 = arith.constant dense<0.000000e+00> : vector<6xf32>
    %16 = vector.multi_reduction <add>, %15, %cst_13 [0] : vector<512x6xf32> to vector<6xf32>
    %17 = vector.shape_cast %16 : vector<6xf32> to vector<1x6xf32>
    %18 = arith.addf %14, %17 : vector<1x6xf32>
    %c0_14 = arith.constant 0 : index
    %c0_15 = arith.constant 0 : index
    %19 = vector.load %arg8[%c0_14, %c0_15] : memref<1x6xf32, #tpu.memory_space<vmem>>, vector<1x6xf32>
    tpu.vector_store %arg8[%c0_14, %c0_15], %18 {strides = array<i32>} : memref<1x6xf32, #tpu.memory_space<vmem>>, vector<1x6xf32>,
    %c512_i32 = arith.constant 512 : i32
    %20 = arith.muli %arg0, %c512_i32 : i32
    %21 = tpu.assume_multiple %20, 8 : i32
    %22 = arith.index_cast %21 : i32 to index
    %c0_16 = arith.constant 0 : index
    %23 = vector.load %arg6[%22, %c0_16] : memref<2048x6xf32, #tpu.memory_space<vmem>>, vector<512x6xf32>
    tpu.vector_store %arg6[%22, %c0_16], %8 {strides = array<i32>} : memref<2048x6xf32, #tpu.memory_space<vmem>>, vector<512x6xf32>,
    %c3_i32 = arith.constant 3 : i32
    %24 = arith.cmpi eq, %arg0, %c3_i32 : i32
    %25 = arith.extui %24 : i1 to i32
    %c0_i32_17 = arith.constant 0 : i32
    %26 = arith.cmpi ne, %25, %c0_i32_17 : i32
    scf.if %26 {
      %c0_18 = arith.constant 0 : index
      %c0_19 = arith.constant 0 : index
      %27 = vector.load %arg7[%c0_18, %c0_19] : memref<1x6xf32, #tpu.memory_space<vmem>>, vector<1x6xf32>
      %cst_20 = arith.constant 4.8828125E-4 : f32
      %28 = vector.broadcast %cst_20 : f32 to vector<1x6xf32>
      %29 = arith.mulf %27, %28 : vector<1x6xf32>
      %c0_21 = arith.constant 0 : index
      %c0_22 = arith.constant 0 : index
      %30 = vector.load %arg8[%c0_21, %c0_22] : memref<1x6xf32, #tpu.memory_space<vmem>>, vector<1x6xf32>
      %cst_23 = arith.constant 4.8828125E-4 : f32
      %31 = vector.broadcast %cst_23 : f32 to vector<1x6xf32>
      %32 = arith.mulf %30, %31 : vector<1x6xf32>
      %33 = arith.mulf %29, %29 : vector<1x6xf32>
      %34 = arith.subf %32, %33 : vector<1x6xf32>
      %cst_24 = arith.constant 9.99999974E-6 : f32
      %35 = vector.broadcast %cst_24 : f32 to vector<1x6xf32>
      %36 = arith.addf %34, %35 : vector<1x6xf32>
      %37 = math.rsqrt %36 : vector<1x6xf32>
      %c0_25 = arith.constant 0 : index
      %c0_26 = arith.constant 0 : index
      %38 = vector.load %arg6[%c0_25, %c0_26] : memref<2048x6xf32, #tpu.memory_space<vmem>>, vector<2048x6xf32>
      %39 = vector.broadcast %29 : vector<1x6xf32> to vector<2048x6xf32>
      %40 = arith.subf %38, %39 : vector<2048x6xf32>
      %c0_27 = arith.constant 0 : index
      %c0_28 = arith.constant 0 : index
      %41 = vector.load %arg4[%c0_27, %c0_28] : memref<1x6xf32, #tpu.memory_space<vmem>>, vector<1x6xf32>
      %42 = arith.mulf %37, %41 : vector<1x6xf32>
      %43 = vector.broadcast %42 : vector<1x6xf32> to vector<2048x6xf32>
      %44 = arith.mulf %40, %43 : vector<2048x6xf32>
      %c0_29 = arith.constant 0 : index
      %c0_30 = arith.constant 0 : index
      %45 = vector.load %arg5[%c0_29, %c0_30] : memref<1x6xf32, #tpu.memory_space<vmem>>, vector<1x6xf32>
      %46 = vector.broadcast %45 : vector<1x6xf32> to vector<2048x6xf32>
      %47 = arith.addf %44, %46 : vector<2048x6xf32>
      %cst_31 = arith.constant 0.000000e+00 : f32
      %48 = vector.broadcast %cst_31 : f32 to vector<2048x6xf32>
      %49 = arith.cmpf oge, %47, %48 : vector<2048x6xf32>
      %cst_32 = arith.constant 0.00999999977 : f32
      %50 = vector.broadcast %cst_32 : f32 to vector<2048x6xf32>
      %51 = arith.mulf %50, %47 : vector<2048x6xf32>
      %52 = arith.select %49, %47, %51 : vector<2048x6xi1>, vector<2048x6xf32>
      %c0_33 = arith.constant 0 : index
      %c0_34 = arith.constant 0 : index
      %53 = vector.load %arg6[%c0_33, %c0_34] : memref<2048x6xf32, #tpu.memory_space<vmem>>, vector<2048x6xf32>
      tpu.vector_store %arg6[%c0_33, %c0_34], %52 {strides = array<i32>} : memref<2048x6xf32, #tpu.memory_space<vmem>>, vector<2048x6xf32>,
    } else {
    }
    return
  }
  func.func @transform_0(%arg0: i32) -> (i32, i32) {
    %c0_i32 = arith.constant 0 : i32
    %c0_i32_0 = arith.constant 0 : i32
    return %arg0, %c0_i32 : i32, i32
  }
  func.func @transform_1(%arg0: i32) -> (i32, i32) {
    %c0_i32 = arith.constant 0 : i32
    %c0_i32_0 = arith.constant 0 : i32
    %c0_i32_1 = arith.constant 0 : i32
    return %c0_i32, %c0_i32_0 : i32, i32
  }
  func.func @transform_2(%arg0: i32) -> (i32, i32) {
    %c0_i32 = arith.constant 0 : i32
    %c0_i32_0 = arith.constant 0 : i32
    %c0_i32_1 = arith.constant 0 : i32
    return %c0_i32, %c0_i32_0 : i32, i32
  }
  func.func @transform_3(%arg0: i32) -> (i32, i32) {
    %c0_i32 = arith.constant 0 : i32
    %c0_i32_0 = arith.constant 0 : i32
    %c0_i32_1 = arith.constant 0 : i32
    return %c0_i32, %c0_i32_0 : i32, i32
  }
  func.func @transform_4(%arg0: i32) -> (i32, i32) {
    %c0_i32 = arith.constant 0 : i32
    %c0_i32_0 = arith.constant 0 : i32
    %c0_i32_1 = arith.constant 0 : i32
    return %c0_i32, %c0_i32_0 : i32, i32
  }
  func.func @transform_5(%arg0: i32) -> (i32, i32) {
    %c0_i32 = arith.constant 0 : i32
    %c0_i32_0 = arith.constant 0 : i32
    %c0_i32_1 = arith.constant 0 : i32
    return %c0_i32, %c0_i32_0 : i32, i32
  }
}

module attributes {stable_mosaic.version = 11 : i64} {
  func.func @_conv_bn_lrelu_kernel(%arg0: i32, %arg1: memref<288x150xf32, #tpu.memory_space<vmem>>, %arg2: memref<150x16xf32, #tpu.memory_space<vmem>>, %arg3: memref<1x16xf32, #tpu.memory_space<vmem>>, %arg4: memref<1x16xf32, #tpu.memory_space<vmem>>, %arg5: memref<1x16xf32, #tpu.memory_space<vmem>>, %arg6: memref<288x16xf32, #tpu.memory_space<vmem>>, %arg7: memref<1x16xf32, #tpu.memory_space<vmem>>, %arg8: memref<1x16xf32, #tpu.memory_space<vmem>>) attributes {dimension_semantics = [#tpu.dimension_semantics<arbitrary>], iteration_bounds = array<i64: 1>, scalar_prefetch = 0 : i64, scratch_operands = 2 : i64, tpu.core_type = #tpu.core_type<tc>, window_params = [{transform_indices = @transform_0, window_bounds = array<i64: 288, 150>}, {pipeline_mode = #tpu.pipeline_mode<synchronous>, transform_indices = @transform_1, window_bounds = array<i64: 150, 16>}, {pipeline_mode = #tpu.pipeline_mode<synchronous>, transform_indices = @transform_2, window_bounds = array<i64: 1, 16>}, {pipeline_mode = #tpu.pipeline_mode<synchronous>, transform_indices = @transform_3, window_bounds = array<i64: 1, 16>}, {pipeline_mode = #tpu.pipeline_mode<synchronous>, transform_indices = @transform_4, window_bounds = array<i64: 1, 16>}, {pipeline_mode = #tpu.pipeline_mode<synchronous>, transform_indices = @transform_5, window_bounds = array<i64: 288, 16>}]} {
    %c0_i32 = arith.constant 0 : i32
    %0 = arith.cmpi eq, %arg0, %c0_i32 : i32
    %1 = arith.extui %0 : i1 to i32
    %c0_i32_0 = arith.constant 0 : i32
    %2 = arith.cmpi ne, %1, %c0_i32_0 : i32
    scf.if %2 {
      %cst_19 = arith.constant 0.000000e+00 : f32
      %27 = vector.broadcast %cst_19 : f32 to vector<1x16xf32>
      %c0_20 = arith.constant 0 : index
      %c0_21 = arith.constant 0 : index
      %28 = vector.load %arg7[%c0_20, %c0_21] : memref<1x16xf32, #tpu.memory_space<vmem>>, vector<1x16xf32>
      tpu.vector_store %arg7[%c0_20, %c0_21], %27 {strides = array<i32>} : memref<1x16xf32, #tpu.memory_space<vmem>>, vector<1x16xf32>,
      %cst_22 = arith.constant 0.000000e+00 : f32
      %29 = vector.broadcast %cst_22 : f32 to vector<1x16xf32>
      %c0_23 = arith.constant 0 : index
      %c0_24 = arith.constant 0 : index
      %30 = vector.load %arg8[%c0_23, %c0_24] : memref<1x16xf32, #tpu.memory_space<vmem>>, vector<1x16xf32>
      tpu.vector_store %arg8[%c0_23, %c0_24], %29 {strides = array<i32>} : memref<1x16xf32, #tpu.memory_space<vmem>>, vector<1x16xf32>,
    } else {
    }
    %c0 = arith.constant 0 : index
    %c0_1 = arith.constant 0 : index
    %3 = vector.load %arg1[%c0, %c0_1] : memref<288x150xf32, #tpu.memory_space<vmem>>, vector<288x150xf32>
    %c0_2 = arith.constant 0 : index
    %c0_3 = arith.constant 0 : index
    %4 = vector.load %arg2[%c0_2, %c0_3] : memref<150x16xf32, #tpu.memory_space<vmem>>, vector<150x16xf32>
    %cst = arith.constant dense<0.000000e+00> : vector<288x16xf32>
    %5 = tpu.matmul %3, %4, %cst {dimension_numbers = #tpu.dot_dimension_numbers<[1], [0], [0], [1], [0, 0, 1, 1], [], []>} : vector<288x150xf32>, vector<150x16xf32>, vector<288x16xf32> -> vector<288x16xf32>
    %c0_4 = arith.constant 0 : index
    %c0_5 = arith.constant 0 : index
    %6 = vector.load %arg3[%c0_4, %c0_5] : memref<1x16xf32, #tpu.memory_space<vmem>>, vector<1x16xf32>
    %7 = vector.broadcast %6 : vector<1x16xf32> to vector<288x16xf32>
    %8 = arith.addf %5, %7 : vector<288x16xf32>
    %c0_6 = arith.constant 0 : index
    %c0_7 = arith.constant 0 : index
    %9 = vector.load %arg7[%c0_6, %c0_7] : memref<1x16xf32, #tpu.memory_space<vmem>>, vector<1x16xf32>
    %cst_8 = arith.constant dense<0.000000e+00> : vector<16xf32>
    %10 = vector.multi_reduction <add>, %8, %cst_8 [0] : vector<288x16xf32> to vector<16xf32>
    %11 = vector.shape_cast %10 : vector<16xf32> to vector<1x16xf32>
    %12 = arith.addf %9, %11 : vector<1x16xf32>
    %c0_9 = arith.constant 0 : index
    %c0_10 = arith.constant 0 : index
    %13 = vector.load %arg7[%c0_9, %c0_10] : memref<1x16xf32, #tpu.memory_space<vmem>>, vector<1x16xf32>
    tpu.vector_store %arg7[%c0_9, %c0_10], %12 {strides = array<i32>} : memref<1x16xf32, #tpu.memory_space<vmem>>, vector<1x16xf32>,
    %c0_11 = arith.constant 0 : index
    %c0_12 = arith.constant 0 : index
    %14 = vector.load %arg8[%c0_11, %c0_12] : memref<1x16xf32, #tpu.memory_space<vmem>>, vector<1x16xf32>
    %15 = arith.mulf %8, %8 : vector<288x16xf32>
    %cst_13 = arith.constant dense<0.000000e+00> : vector<16xf32>
    %16 = vector.multi_reduction <add>, %15, %cst_13 [0] : vector<288x16xf32> to vector<16xf32>
    %17 = vector.shape_cast %16 : vector<16xf32> to vector<1x16xf32>
    %18 = arith.addf %14, %17 : vector<1x16xf32>
    %c0_14 = arith.constant 0 : index
    %c0_15 = arith.constant 0 : index
    %19 = vector.load %arg8[%c0_14, %c0_15] : memref<1x16xf32, #tpu.memory_space<vmem>>, vector<1x16xf32>
    tpu.vector_store %arg8[%c0_14, %c0_15], %18 {strides = array<i32>} : memref<1x16xf32, #tpu.memory_space<vmem>>, vector<1x16xf32>,
    %c288_i32 = arith.constant 288 : i32
    %20 = arith.muli %arg0, %c288_i32 : i32
    %21 = tpu.assume_multiple %20, 8 : i32
    %22 = arith.index_cast %21 : i32 to index
    %c0_16 = arith.constant 0 : index
    %23 = vector.load %arg6[%22, %c0_16] : memref<288x16xf32, #tpu.memory_space<vmem>>, vector<288x16xf32>
    tpu.vector_store %arg6[%22, %c0_16], %8 {strides = array<i32>} : memref<288x16xf32, #tpu.memory_space<vmem>>, vector<288x16xf32>,
    %c0_i32_17 = arith.constant 0 : i32
    %24 = arith.cmpi eq, %arg0, %c0_i32_17 : i32
    %25 = arith.extui %24 : i1 to i32
    %c0_i32_18 = arith.constant 0 : i32
    %26 = arith.cmpi ne, %25, %c0_i32_18 : i32
    scf.if %26 {
      %c0_19 = arith.constant 0 : index
      %c0_20 = arith.constant 0 : index
      %27 = vector.load %arg7[%c0_19, %c0_20] : memref<1x16xf32, #tpu.memory_space<vmem>>, vector<1x16xf32>
      %cst_21 = arith.constant 0.00347222225 : f32
      %28 = vector.broadcast %cst_21 : f32 to vector<1x16xf32>
      %29 = arith.mulf %27, %28 : vector<1x16xf32>
      %c0_22 = arith.constant 0 : index
      %c0_23 = arith.constant 0 : index
      %30 = vector.load %arg8[%c0_22, %c0_23] : memref<1x16xf32, #tpu.memory_space<vmem>>, vector<1x16xf32>
      %cst_24 = arith.constant 0.00347222225 : f32
      %31 = vector.broadcast %cst_24 : f32 to vector<1x16xf32>
      %32 = arith.mulf %30, %31 : vector<1x16xf32>
      %33 = arith.mulf %29, %29 : vector<1x16xf32>
      %34 = arith.subf %32, %33 : vector<1x16xf32>
      %cst_25 = arith.constant 9.99999974E-6 : f32
      %35 = vector.broadcast %cst_25 : f32 to vector<1x16xf32>
      %36 = arith.addf %34, %35 : vector<1x16xf32>
      %37 = math.rsqrt %36 : vector<1x16xf32>
      %c0_26 = arith.constant 0 : index
      %c0_27 = arith.constant 0 : index
      %38 = vector.load %arg6[%c0_26, %c0_27] : memref<288x16xf32, #tpu.memory_space<vmem>>, vector<288x16xf32>
      %39 = vector.broadcast %29 : vector<1x16xf32> to vector<288x16xf32>
      %40 = arith.subf %38, %39 : vector<288x16xf32>
      %c0_28 = arith.constant 0 : index
      %c0_29 = arith.constant 0 : index
      %41 = vector.load %arg4[%c0_28, %c0_29] : memref<1x16xf32, #tpu.memory_space<vmem>>, vector<1x16xf32>
      %42 = arith.mulf %37, %41 : vector<1x16xf32>
      %43 = vector.broadcast %42 : vector<1x16xf32> to vector<288x16xf32>
      %44 = arith.mulf %40, %43 : vector<288x16xf32>
      %c0_30 = arith.constant 0 : index
      %c0_31 = arith.constant 0 : index
      %45 = vector.load %arg5[%c0_30, %c0_31] : memref<1x16xf32, #tpu.memory_space<vmem>>, vector<1x16xf32>
      %46 = vector.broadcast %45 : vector<1x16xf32> to vector<288x16xf32>
      %47 = arith.addf %44, %46 : vector<288x16xf32>
      %cst_32 = arith.constant 0.000000e+00 : f32
      %48 = vector.broadcast %cst_32 : f32 to vector<288x16xf32>
      %49 = arith.cmpf oge, %47, %48 : vector<288x16xf32>
      %cst_33 = arith.constant 0.00999999977 : f32
      %50 = vector.broadcast %cst_33 : f32 to vector<288x16xf32>
      %51 = arith.mulf %50, %47 : vector<288x16xf32>
      %52 = arith.select %49, %47, %51 : vector<288x16xi1>, vector<288x16xf32>
      %c0_34 = arith.constant 0 : index
      %c0_35 = arith.constant 0 : index
      %53 = vector.load %arg6[%c0_34, %c0_35] : memref<288x16xf32, #tpu.memory_space<vmem>>, vector<288x16xf32>
      tpu.vector_store %arg6[%c0_34, %c0_35], %52 {strides = array<i32>} : memref<288x16xf32, #tpu.memory_space<vmem>>, vector<288x16xf32>,
    } else {
    }
    return
  }
  func.func @transform_0(%arg0: i32) -> (i32, i32) {
    %c0_i32 = arith.constant 0 : i32
    %c0_i32_0 = arith.constant 0 : i32
    return %arg0, %c0_i32 : i32, i32
  }
  func.func @transform_1(%arg0: i32) -> (i32, i32) {
    %c0_i32 = arith.constant 0 : i32
    %c0_i32_0 = arith.constant 0 : i32
    %c0_i32_1 = arith.constant 0 : i32
    return %c0_i32, %c0_i32_0 : i32, i32
  }
  func.func @transform_2(%arg0: i32) -> (i32, i32) {
    %c0_i32 = arith.constant 0 : i32
    %c0_i32_0 = arith.constant 0 : i32
    %c0_i32_1 = arith.constant 0 : i32
    return %c0_i32, %c0_i32_0 : i32, i32
  }
  func.func @transform_3(%arg0: i32) -> (i32, i32) {
    %c0_i32 = arith.constant 0 : i32
    %c0_i32_0 = arith.constant 0 : i32
    %c0_i32_1 = arith.constant 0 : i32
    return %c0_i32, %c0_i32_0 : i32, i32
  }
  func.func @transform_4(%arg0: i32) -> (i32, i32) {
    %c0_i32 = arith.constant 0 : i32
    %c0_i32_0 = arith.constant 0 : i32
    %c0_i32_1 = arith.constant 0 : i32
    return %c0_i32, %c0_i32_0 : i32, i32
  }
  func.func @transform_5(%arg0: i32) -> (i32, i32) {
    %c0_i32 = arith.constant 0 : i32
    %c0_i32_0 = arith.constant 0 : i32
    %c0_i32_1 = arith.constant 0 : i32
    return %c0_i32, %c0_i32_0 : i32, i32
  }
}

module attributes {stable_mosaic.version = 11 : i64} {
  func.func @_fc_tail_kernel(%arg0: memref<2x576xf32, #tpu.memory_space<vmem>>, %arg1: memref<576x120xf32, #tpu.memory_space<vmem>>, %arg2: memref<1x120xf32, #tpu.memory_space<vmem>>, %arg3: memref<1x120xf32, #tpu.memory_space<vmem>>, %arg4: memref<1x120xf32, #tpu.memory_space<vmem>>, %arg5: memref<120x84xf32, #tpu.memory_space<vmem>>, %arg6: memref<1x84xf32, #tpu.memory_space<vmem>>, %arg7: memref<1x84xf32, #tpu.memory_space<vmem>>, %arg8: memref<1x84xf32, #tpu.memory_space<vmem>>, %arg9: memref<84x1xf32, #tpu.memory_space<vmem>>, %arg10: memref<1x1xf32, #tpu.memory_space<vmem>>, %arg11: memref<2x1xf32, #tpu.memory_space<vmem>>) attributes {dimension_semantics = [], scalar_prefetch = 0 : i64, scratch_operands = 0 : i64, tpu.core_type = #tpu.core_type<tc>} {
    %c0 = arith.constant 0 : index
    %c0_0 = arith.constant 0 : index
    %0 = vector.load %arg0[%c0, %c0_0] : memref<2x576xf32, #tpu.memory_space<vmem>>, vector<2x576xf32>
    %c0_1 = arith.constant 0 : index
    %c0_2 = arith.constant 0 : index
    %1 = vector.load %arg1[%c0_1, %c0_2] : memref<576x120xf32, #tpu.memory_space<vmem>>, vector<576x120xf32>
    %cst = arith.constant dense<0.000000e+00> : vector<2x120xf32>
    %2 = tpu.matmul %0, %1, %cst {dimension_numbers = #tpu.dot_dimension_numbers<[1], [0], [0], [1], [0, 0, 1, 1], [], []>} : vector<2x576xf32>, vector<576x120xf32>, vector<2x120xf32> -> vector<2x120xf32>
    %c0_3 = arith.constant 0 : index
    %c0_4 = arith.constant 0 : index
    %3 = vector.load %arg2[%c0_3, %c0_4] : memref<1x120xf32, #tpu.memory_space<vmem>>, vector<1x120xf32>
    %4 = vector.broadcast %3 : vector<1x120xf32> to vector<2x120xf32>
    %5 = arith.addf %2, %4 : vector<2x120xf32>
    %c0_5 = arith.constant 0 : index
    %c0_6 = arith.constant 0 : index
    %6 = vector.load %arg3[%c0_5, %c0_6] : memref<1x120xf32, #tpu.memory_space<vmem>>, vector<1x120xf32>
    %c0_7 = arith.constant 0 : index
    %c0_8 = arith.constant 0 : index
    %7 = vector.load %arg4[%c0_7, %c0_8] : memref<1x120xf32, #tpu.memory_space<vmem>>, vector<1x120xf32>
    %cst_9 = arith.constant dense<0.000000e+00> : vector<120xf32>
    %8 = vector.multi_reduction <add>, %5, %cst_9 [0] : vector<2x120xf32> to vector<120xf32>
    %9 = vector.shape_cast %8 : vector<120xf32> to vector<1x120xf32>
    %cst_10 = arith.constant 5.000000e-01 : f32
    %10 = vector.broadcast %cst_10 : f32 to vector<1x120xf32>
    %11 = arith.mulf %9, %10 : vector<1x120xf32>
    %12 = arith.mulf %5, %5 : vector<2x120xf32>
    %cst_11 = arith.constant dense<0.000000e+00> : vector<120xf32>
    %13 = vector.multi_reduction <add>, %12, %cst_11 [0] : vector<2x120xf32> to vector<120xf32>
    %14 = vector.shape_cast %13 : vector<120xf32> to vector<1x120xf32>
    %cst_12 = arith.constant 5.000000e-01 : f32
    %15 = vector.broadcast %cst_12 : f32 to vector<1x120xf32>
    %16 = arith.mulf %14, %15 : vector<1x120xf32>
    %17 = arith.mulf %11, %11 : vector<1x120xf32>
    %18 = arith.subf %16, %17 : vector<1x120xf32>
    %cst_13 = arith.constant 9.99999974E-6 : f32
    %19 = vector.broadcast %cst_13 : f32 to vector<1x120xf32>
    %20 = arith.addf %18, %19 : vector<1x120xf32>
    %21 = math.rsqrt %20 : vector<1x120xf32>
    %22 = vector.broadcast %11 : vector<1x120xf32> to vector<2x120xf32>
    %23 = arith.subf %5, %22 : vector<2x120xf32>
    %24 = arith.mulf %21, %6 : vector<1x120xf32>
    %25 = vector.broadcast %24 : vector<1x120xf32> to vector<2x120xf32>
    %26 = arith.mulf %23, %25 : vector<2x120xf32>
    %27 = vector.broadcast %7 : vector<1x120xf32> to vector<2x120xf32>
    %28 = arith.addf %26, %27 : vector<2x120xf32>
    %cst_14 = arith.constant 0.000000e+00 : f32
    %29 = vector.broadcast %cst_14 : f32 to vector<2x120xf32>
    %30 = arith.cmpf oge, %28, %29 : vector<2x120xf32>
    %cst_15 = arith.constant 0.00999999977 : f32
    %31 = vector.broadcast %cst_15 : f32 to vector<2x120xf32>
    %32 = arith.mulf %31, %28 : vector<2x120xf32>
    %33 = arith.select %30, %28, %32 : vector<2x120xi1>, vector<2x120xf32>
    %c0_16 = arith.constant 0 : index
    %c0_17 = arith.constant 0 : index
    %34 = vector.load %arg5[%c0_16, %c0_17] : memref<120x84xf32, #tpu.memory_space<vmem>>, vector<120x84xf32>
    %cst_18 = arith.constant dense<0.000000e+00> : vector<2x84xf32>
    %35 = tpu.matmul %33, %34, %cst_18 {dimension_numbers = #tpu.dot_dimension_numbers<[1], [0], [0], [1], [0, 0, 1, 1], [], []>} : vector<2x120xf32>, vector<120x84xf32>, vector<2x84xf32> -> vector<2x84xf32>
    %c0_19 = arith.constant 0 : index
    %c0_20 = arith.constant 0 : index
    %36 = vector.load %arg6[%c0_19, %c0_20] : memref<1x84xf32, #tpu.memory_space<vmem>>, vector<1x84xf32>
    %37 = vector.broadcast %36 : vector<1x84xf32> to vector<2x84xf32>
    %38 = arith.addf %35, %37 : vector<2x84xf32>
    %c0_21 = arith.constant 0 : index
    %c0_22 = arith.constant 0 : index
    %39 = vector.load %arg7[%c0_21, %c0_22] : memref<1x84xf32, #tpu.memory_space<vmem>>, vector<1x84xf32>
    %c0_23 = arith.constant 0 : index
    %c0_24 = arith.constant 0 : index
    %40 = vector.load %arg8[%c0_23, %c0_24] : memref<1x84xf32, #tpu.memory_space<vmem>>, vector<1x84xf32>
    %cst_25 = arith.constant dense<0.000000e+00> : vector<84xf32>
    %41 = vector.multi_reduction <add>, %38, %cst_25 [0] : vector<2x84xf32> to vector<84xf32>
    %42 = vector.shape_cast %41 : vector<84xf32> to vector<1x84xf32>
    %cst_26 = arith.constant 5.000000e-01 : f32
    %43 = vector.broadcast %cst_26 : f32 to vector<1x84xf32>
    %44 = arith.mulf %42, %43 : vector<1x84xf32>
    %45 = arith.mulf %38, %38 : vector<2x84xf32>
    %cst_27 = arith.constant dense<0.000000e+00> : vector<84xf32>
    %46 = vector.multi_reduction <add>, %45, %cst_27 [0] : vector<2x84xf32> to vector<84xf32>
    %47 = vector.shape_cast %46 : vector<84xf32> to vector<1x84xf32>
    %cst_28 = arith.constant 5.000000e-01 : f32
    %48 = vector.broadcast %cst_28 : f32 to vector<1x84xf32>
    %49 = arith.mulf %47, %48 : vector<1x84xf32>
    %50 = arith.mulf %44, %44 : vector<1x84xf32>
    %51 = arith.subf %49, %50 : vector<1x84xf32>
    %cst_29 = arith.constant 9.99999974E-6 : f32
    %52 = vector.broadcast %cst_29 : f32 to vector<1x84xf32>
    %53 = arith.addf %51, %52 : vector<1x84xf32>
    %54 = math.rsqrt %53 : vector<1x84xf32>
    %55 = vector.broadcast %44 : vector<1x84xf32> to vector<2x84xf32>
    %56 = arith.subf %38, %55 : vector<2x84xf32>
    %57 = arith.mulf %54, %39 : vector<1x84xf32>
    %58 = vector.broadcast %57 : vector<1x84xf32> to vector<2x84xf32>
    %59 = arith.mulf %56, %58 : vector<2x84xf32>
    %60 = vector.broadcast %40 : vector<1x84xf32> to vector<2x84xf32>
    %61 = arith.addf %59, %60 : vector<2x84xf32>
    %cst_30 = arith.constant 0.000000e+00 : f32
    %62 = vector.broadcast %cst_30 : f32 to vector<2x84xf32>
    %63 = arith.cmpf oge, %61, %62 : vector<2x84xf32>
    %cst_31 = arith.constant 0.00999999977 : f32
    %64 = vector.broadcast %cst_31 : f32 to vector<2x84xf32>
    %65 = arith.mulf %64, %61 : vector<2x84xf32>
    %66 = arith.select %63, %61, %65 : vector<2x84xi1>, vector<2x84xf32>
    %c0_32 = arith.constant 0 : index
    %c0_33 = arith.constant 0 : index
    %67 = vector.load %arg9[%c0_32, %c0_33] : memref<84x1xf32, #tpu.memory_space<vmem>>, vector<84x1xf32>
    %cst_34 = arith.constant dense<0.000000e+00> : vector<2x1xf32>
    %68 = tpu.matmul %66, %67, %cst_34 {dimension_numbers = #tpu.dot_dimension_numbers<[1], [0], [0], [1], [0, 0, 1, 1], [], []>} : vector<2x84xf32>, vector<84x1xf32>, vector<2x1xf32> -> vector<2x1xf32>
    %c0_35 = arith.constant 0 : index
    %c0_36 = arith.constant 0 : index
    %69 = vector.load %arg10[%c0_35, %c0_36] : memref<1x1xf32, #tpu.memory_space<vmem>>, vector<1x1xf32>
    %70 = vector.broadcast %69 : vector<1x1xf32> to vector<2x1xf32>
    %71 = arith.addf %68, %70 : vector<2x1xf32>
    %c0_37 = arith.constant 0 : index
    %c0_38 = arith.constant 0 : index
    %72 = vector.load %arg11[%c0_37, %c0_38] : memref<2x1xf32, #tpu.memory_space<vmem>>, vector<2x1xf32>
    tpu.vector_store %arg11[%c0_37, %c0_38], %71 {strides = array<i32>} : memref<2x1xf32, #tpu.memory_space<vmem>>, vector<2x1xf32>,
    return
  }
}

</mosaic_0001>

<bundles_post_ra>
// kernel: lenet5_forward.3
= control target key start
LH: loop header
LB: loop body
LE: loop exit
PB: predicated region body
PF: predicated region fallthrough
CT: control target
= control target key end

     0   :  { %10 = vsyncpa [#allocation5], 0  ;;  %s7712_s0 = inlined_call_operand.vmem [shape: f32[2048,25], index: 0, kind: input, shape index: {}]   ;;  %s7713_s1 = inlined_call_operand.vmem [shape: f32[25,6], index: 1, kind: input, shape index: {}]   ;;  %s7714_s2 = inlined_call_operand.hbm [shape: f32[1,6], index: 2, kind: input, shape index: {}]   ;;  %s7715_s3 = inlined_call_operand.hbm [shape: f32[1,6], index: 3, kind: input, shape index: {}]   ;;  %s7716_s4 = inlined_call_operand.hbm [shape: f32[1,6], index: 4, kind: input, shape index: {}]   ;;  %s7717_s5 = inlined_call_operand.vmem [shape: f32[2048,6], index: 5, kind: output, shape index: {}]  }
   0x1   :  { %11 = vsyncpa [#allocation7], 0  ;;  %s3911_s18 = smov 0  }
   0x2 LB: > { %s3917_s19 = sadd.s32 4294967295, %s3874_s18   ;;  %p3461_p0 = scmp.ge.s32.totalorder %s3874_s18, 1  ;;  %s3874_s18 = sphi %s3911_s18, %s17_s18  }
   0x3   : > { %p153_p1 = scmp.lt.s32.totalorder %s3874_s18, 5  ;;  %p7718_p3 = scmp.eq.s32.totalorder %s3917_s19, 0 }
   0x4   : > { %s3876_s21 = smov [#allocation6]   ;;  %s3877_s23 = smov [#allocation4]  }
   0x5   : > { %p3923_p4 = pnand %p3461_p0, %p153_p1  ;;  %s180_s22 = sshll.u32 %s3876_s21, 4  ;;  %s181_s22 = int_to_ptr.vmem [resolvable:$true] %s180_s22 }
   0x6   : > { %s169_s24 = sshll.u32 %s3877_s23, 4  ;;  %s3878_s25 = smov [#allocation8]   ;;  %s3935_s24 = int_to_ptr.vmem [resolvable:$true] %s169_s24 }
   0x7   : > { %s7732_s20 = scalar_select %p3923_p4, 1, 0 }
   0x8   : > { %p3742_p5 = pneg %p3923_p4  ;;  %s191_s26 = sshll.u32 %s3878_s25, 4  ;;  %s3937_s26 = int_to_ptr.vmem [resolvable:$true] %s191_s26 }
   0x9   : > { %s3776_s30 = scalar_lea.hbm %s7715_s3, 16 }
   0xa   : > { %p3931_p6 = pnand %p7718_p3, %p3742_p5  ;;  %p3777_p7 = scmp.ne.s32.totalorder %s7715_s3, %s3776_s30 }
   0xb   : > { %p3783_p11 = scmp.lt.u32.totalorder %s3776_s30, %s7715_s3 }
   0xc   : > { %p3947_p8 = pneg %p3931_p6 }
   0xe   : > { %p3779_p9 = pnand %p3947_p8, %p3777_p7 }
  0x10   : > { %p3780_p10 = pneg %p3779_p9 }
  0x12   : > { %p3785_p12 = pnand %p3783_p11, %p3780_p10 }
  0x14   : > { %3788 = shalt.err (!%p3785_p12)
}
  0x15   : > { %s3789_s11 = scalar_lea.vmem %s181_s22, 16  ;;  %s3796_s12 = scalar_lea.vmem %s181_s22, 32 }
  0x16   : > { %p3790_p13 = scmp.ne.s32.totalorder %s181_s22, %s3789_s11  ;;  %p3797_p5 = scmp.lt.s32.totalorder %s181_s22, %s181_s22 }
  0x17   : > { %p3798_p2 = scmp.lt.s32.totalorder %s3796_s12, %s3789_s11 }
  0x18   : > { %p3792_p0 = pnand %p3790_p13, %p3947_p8 }
  0x19   : > { %p3799_p3 = por %p3798_p2, %p3797_p5 }
  0x1a   : > { %p3793_p1 = pneg %p3792_p0 }
  0x1c   : > { %p3800_p4 = pnand %p3799_p3, %p3793_p1 }
  0x1e   : > { %3803 = shalt.err (!%p3800_p4)
}
  0x1f   : > { %3748 = dma.hbm_to_vmem [thread:$0]  (!%p3931_p6), %s7715_s3, 16, %s181_s22, [#allocation7]  }
  0x20   : > { %s3804_s17 = scalar_lea.hbm %s7714_s2, 16 }
  0x21   : > { %p3805_p7 = scmp.ne.s32.totalorder %s7714_s2, %s3804_s17  ;;  %p3811_p3 = scmp.lt.u32.totalorder %s3804_s17, %s7714_s2 }
  0x23   : > { %p3807_p9 = pnand %p3805_p7, %p3947_p8 }
  0x25   : > { %p3808_p2 = pneg %p3807_p9 }
  0x27   : > { %p3813_p4 = pnand %p3811_p3, %p3808_p2 }
  0x29   : > { %3816 = shalt.err (!%p3813_p4)
}
  0x2a   : > { %s3817_s22 = scalar_lea.vmem %s3935_s24, 16  ;;  %s3824_s29 = scalar_lea.vmem %s3935_s24, 32 }
  0x2b   : > { %p3818_p10 = scmp.ne.s32.totalorder %s3935_s24, %s3817_s22  ;;  %p3825_p13 = scmp.lt.s32.totalorder %s3935_s24, %s3935_s24 }
  0x2c   : > { %p3826_p0 = scmp.lt.s32.totalorder %s3824_s29, %s3817_s22 }
  0x2d   : > { %p3820_p11 = pnand %p3818_p10, %p3947_p8 }
  0x2e   : > { %p3827_p1 = por %p3826_p0, %p3825_p13 }
  0x2f   : > { %p3821_p12 = pneg %p3820_p11 }
  0x31   : > { %p3828_p5 = pnand %p3827_p1, %p3821_p12 }
  0x33   : > { %3831 = shalt.err (!%p3828_p5)
}
  0x34   : > { %3745 = dma.hbm_to_vmem [thread:$0]  (!%p3931_p6), %s7714_s2, 16, %s3935_s24, [#allocation5]  }
  0x35   : > { %s3832_s10 = scalar_lea.hbm %s7716_s4, 16 }
  0x36   : > { %p3833_p7 = scmp.ne.s32.totalorder %s7716_s4, %s3832_s10  ;;  %p3839_p3 = scmp.lt.u32.totalorder %s3832_s10, %s7716_s4 }
  0x38   : > { %p3835_p9 = pnand %p3833_p7, %p3947_p8 }
  0x3a   : > { %p3836_p2 = pneg %p3835_p9 }
  0x3c   : > { %p3841_p4 = pnand %p3839_p3, %p3836_p2 }
  0x3e   : > { %3844 = shalt.err (!%p3841_p4)
}
  0x3f   : > { %s3845_s24 = scalar_lea.vmem %s3937_s26, 16  ;;  %s3852_s15 = scalar_lea.vmem %s3937_s26, 32 }
  0x40   : > { %p3846_p10 = scmp.ne.s32.totalorder %s3937_s26, %s3845_s24  ;;  %p3853_p13 = scmp.lt.s32.totalorder %s3937_s26, %s3937_s26 }
  0x41   : > { %p3854_p0 = scmp.lt.s32.totalorder %s3852_s15, %s3845_s24 }
  0x42   : > { %p3848_p11 = pnand %p3846_p10, %p3947_p8 }
  0x43   : > { %p3855_p1 = por %p3854_p0, %p3853_p13 }
  0x44   : > { %p3849_p12 = pneg %p3848_p11 }
  0x46   : > { %p3856_p5 = pnand %p3855_p1, %p3849_p12 }
  0x48   : > { %3859 = shalt.err (!%p3856_p5)
}
  0x49   : > { %3751 = dma.hbm_to_vmem [thread:$0]  (!%p3931_p6), %s7716_s4, 16, %s3937_s26, [#allocation7]  }
  0x4a   : > { %p7735_p7 = scmp.ne.s32.totalorder %s7732_s20, 0 }
  0x4b   : > { %p7736_p8 = scmp.eq.s32.totalorder (!%p7735_p7), %s3917_s19, 0 }
  0x4c   : > { %213 = sbr.rel (%p7735_p7) target bundleno = 885 (0x375), region = 40 }
  0x53   : > { %3865 = dma.done.wait (%p7736_p8), [#allocation5], 16   ;;  %p7737_p9 = pmov %p7736_p8 }
  0x54   : > { %p7738_p2 = pmov %p7736_p8 }
  0x55   : > { %3867 = vsyncadd (%p7737_p9), [#allocation5], 4294967280 }
  0x56   : > { %3869 = dma.done.wait (%p7738_p2), [#allocation7], 32   ;;  %p7739_p3 = pmov %p7738_p2 }
  0x57   : > { %s3470_s27 = sshll.u32 %s3917_s19, 6  ;;  %p7740_p6 = scmp.ne.s32.totalorder %s3917_s19, 0 }
  0x58   : > { %3871 = vsyncadd (%p7739_p3), [#allocation7], 4294967264  ;;  %p245_p4 = scmp.lt.s32.totalorder %s3470_s27, 255  ;;  %vm254_vm0 = vcmask (!%p7740_p6), 40960   ;;  %v3879_v0 = vmov (!%p7740_p6), 0.0  }
  0x59   : > { %253 = sbr.rel (%p7740_p6) target bundleno = 96 (0x60), region = 56  ;;  %255 = vst.msk [vmem:[#allocation2] sm:$0x1] (!%p7740_p6), %vm254_vm0, %v3879_v0  ;;  %256 = vst.msk [vmem:[#allocation3] sm:$0x1] (!%p7740_p6), %vm254_vm0, %v3879_v0 }
  0x5a   : > { %s7826_s27 = smov (!%p245_p4, %s3470_s27), 255 }
  0x5b   : > { %s3471_s26 = sshll.u32 %s7826_s27, 3 }
  0x5c   : > { %s4025_s21 = scalar_lea.vmem %s7712_s0, %s3471_s26 }
  0x60 PF: > { %v321_v1 = vld [vmem:[%s7713_s1] sm:$0xff]  ;;  %v322_v2 = vld [vmem:[%s7713_s1 + $0x8] sm:$0xff]  ;;  %v323_v3 = vld [vmem:[%s7713_s1 + $0x10] sm:$0xff]  ;;  %vm525_vm1 = vcmask 1040384   ;;  %vm332_vm2 = vcmask 203776   ;;  %vm3880_vm3 = vmmov 1  }
  0x61   : > { %v3716_v4 = vpack.c.bf16 %v322_v2, %v321_v1  ;;  %v324_v5 = vld [vmem:[%s7713_s1 + $0x18] sm:$0x1]  ;;  %v257_v6 = vld [vmem:[%s4025_s21] sm:$0xff]  ;;  %vm3721_vm4 = vmpackc.low %vm525_vm1, %vm3880_vm3  ;;  %s3539_s9 = sshll.u32 %s3917_s19, 9  ;;  %vm915_vm5 = vcmask 48128   ;;  %vm1050_vm6 = vcmask 40960  }
  0x62   : > { %v3720_v7 = vpack.c.bf16 %v324_v5, %v323_v3  ;;  %3620 = vmatprep.mubr.msk.f32.mxu0 %vm332_vm2, %v257_v6  ;;  %v258_v8 = vld [vmem:[%s4025_s21 + $0x8] sm:$0xff]  ;;  %v259_v9 = vld [vmem:[%s4025_s21 + $0x10] sm:$0xff]  ;;  %v260_v10 = vld [vmem:[%s4025_s21 + $0x18] sm:$0xff]  ;;  %s4175_s12 = scalar_lea.vmem %s7717_s5, %s3539_s9  ;;  %p3540_p10 = scmp.ne.s32.totalorder %s3917_s19, 3 }
  0x63   : > { %3717 = vmatprep.subr.bf16.mxu0 %v3716_v4  ;;  %3726 = vmatprep.subr.bf16.mxu1 %v3716_v4  ;;  %v289_v11 = vld [vmem:[%s4025_s21 + $0x100] sm:$0xff]  ;;  %v290_v12 = vld [vmem:[%s4025_s21 + $0x108] sm:$0xff]  ;;  %v291_v14 = vld [vmem:[%s4025_s21 + $0x110] sm:$0xff] }
  0x64   : > { %3719 = vmatpush3.bf16.msra.mxu0 %v3716_v4  ;;  %3728 = vmatpush3.bf16.msra.mxu1 %v3716_v4  ;;  %v261_v13 = vld [vmem:[%s4025_s21 + $0x20] sm:$0xff]  ;;  %v292_v15 = vld [vmem:[%s4025_s21 + $0x118] sm:$0xff]  ;;  %v262_v16 = vld [vmem:[%s4025_s21 + $0x28] sm:$0xff] }
  0x65   : > { %3722 = vmatprep.subr.msk.bf16.mxu0 %vm3721_vm4, %v3720_v7  ;;  %3727 = vmatprep.subr.msk.bf16.mxu1 %vm3721_vm4, %v3720_v7  ;;  %v293_v17 = vld [vmem:[%s4025_s21 + $0x120] sm:$0xff]  ;;  %v263_v18 = vld [vmem:[%s4025_s21 + $0x30] sm:$0xff]  ;;  %v294_v19 = vld [vmem:[%s4025_s21 + $0x128] sm:$0xff] }
  0x66   : > { %3668 = vmatprep.mubr.msk.f32.mxu1 %vm332_vm2, %v289_v11  ;;  %v264_v20 = vld [vmem:[%s4025_s21 + $0x38] sm:$0xff]  ;;  %v295_v21 = vld [vmem:[%s4025_s21 + $0x130] sm:$0xff]  ;;  %v265_v22 = vld [vmem:[%s4025_s21 + $0x40] sm:$0xff] }
  0x67   : > { %v296_v23 = vld [vmem:[%s4025_s21 + $0x138] sm:$0xff]  ;;  %v266_v24 = vld [vmem:[%s4025_s21 + $0x48] sm:$0xff]  ;;  %v297_v25 = vld [vmem:[%s4025_s21 + $0x140] sm:$0xff] }
  0x68   : > { %3725 = vmatpush3.bf16.msk.msra.mxu0 %vm3721_vm4, %v3720_v7  ;;  %3729 = vmatpush3.bf16.msk.msra.mxu1 %vm3721_vm4, %v3720_v7  ;;  %v267_v26 = vld [vmem:[%s4025_s21 + $0x50] sm:$0xff]  ;;  %v298_v27 = vld [vmem:[%s4025_s21 + $0x148] sm:$0xff]  ;;  %v268_v28 = vld [vmem:[%s4025_s21 + $0x58] sm:$0xff] }
  0x69   : > { %v299_v29 = vld [vmem:[%s4025_s21 + $0x150] sm:$0xff]  ;;  %v269_v30 = vld [vmem:[%s4025_s21 + $0x60] sm:$0xff]  ;;  %v300_v31 = vld [vmem:[%s4025_s21 + $0x158] sm:$0xff] }
  0x6a   : > { %v270_v32 = vld [vmem:[%s4025_s21 + $0x68] sm:$0xff]  ;;  %v301_v33 = vld [vmem:[%s4025_s21 + $0x160] sm:$0xff]  ;;  %v271_v34 = vld [vmem:[%s4025_s21 + $0x70] sm:$0xff] }
  0x6b   : > { %3621 = vmatmul.mubr.msk.f32.vlgmr.msra.gmra.mrb[0].mxu0 %vm332_vm2, %v258_v8  ;;  %3669 = vmatmul.mubr.msk.f32.vlgmr.msra.gmra.mrb[0].mxu1 %vm332_vm2, %v290_v12  ;;  %v302_v35 = vld [vmem:[%s4025_s21 + $0x168] sm:$0xff]  ;;  %v272_v36 = vld [vmem:[%s4025_s21 + $0x78] sm:$0xff]  ;;  %v303_v37 = vld [vmem:[%s4025_s21 + $0x170] sm:$0xff] }
  0x6c   : > { %3623 = vmatprep.mubr.msk.f32.mxu0 %vm332_vm2, %v259_v9  ;;  %3671 = vmatprep.mubr.msk.f32.mxu1 %vm332_vm2, %v291_v14  ;;  %v273_v38 = vld [vmem:[%s4025_s21 + $0x80] sm:$0xff]  ;;  %v304_v39 = vld [vmem:[%s4025_s21 + $0x178] sm:$0xff]  ;;  %v274_v40 = vld [vmem:[%s4025_s21 + $0x88] sm:$0xff] }
  0x6d   : > { %v305_v41 = vld [vmem:[%s4025_s21 + $0x180] sm:$0xff]  ;;  %v275_v42 = vld [vmem:[%s4025_s21 + $0x90] sm:$0xff]  ;;  %v306_v43 = vld [vmem:[%s4025_s21 + $0x188] sm:$0xff] }
  0x6e   : > { %v276_v44 = vld [vmem:[%s4025_s21 + $0x98] sm:$0xff]  ;;  %v307_v45 = vld [vmem:[%s4025_s21 + $0x190] sm:$0xff]  ;;  %v277_v46 = vld [vmem:[%s4025_s21 + $0xa0] sm:$0xff] }
  0x6f   : > { %3624 = vmatmul.mubr.msk.f32.gmra.mrb[2].mxu0 %vm332_vm2, %v260_v10  ;;  %3672 = vmatmul.mubr.msk.f32.gmra.mrb[2].mxu1 %vm332_vm2, %v292_v15  ;;  %v308_v47 = vld [vmem:[%s4025_s21 + $0x198] sm:$0xff]  ;;  %v278_v48 = vld [vmem:[%s4025_s21 + $0xa8] sm:$0xff]  ;;  %v309_v49 = vld [vmem:[%s4025_s21 + $0x1a0] sm:$0xff] }
  0x70   : > { %3626 = vmatprep.mubr.msk.f32.mxu0 %vm332_vm2, %v261_v13  ;;  %3674 = vmatprep.mubr.msk.f32.mxu1 %vm332_vm2, %v293_v17  ;;  %v279_v50 = vld [vmem:[%s4025_s21 + $0xb0] sm:$0xff]  ;;  %v310_v51 = vld [vmem:[%s4025_s21 + $0x1a8] sm:$0xff]  ;;  %v280_v52 = vld [vmem:[%s4025_s21 + $0xb8] sm:$0xff] }
  0x71   : > { %v311_v53 = vld [vmem:[%s4025_s21 + $0x1b0] sm:$0xff]  ;;  %v281_v54 = vld [vmem:[%s4025_s21 + $0xc0] sm:$0xff]  ;;  %v312_v55 = vld [vmem:[%s4025_s21 + $0x1b8] sm:$0xff] }
  0x72   : > { %v282_v56 = vld [vmem:[%s4025_s21 + $0xc8] sm:$0xff]  ;;  %v313_v57 = vld [vmem:[%s4025_s21 + $0x1c0] sm:$0xff]  ;;  %v283_v58 = vld [vmem:[%s4025_s21 + $0xd0] sm:$0xff] }
  0x73   : > { %3627 = vmatmul.mubr.msk.f32.gmra.mrb[4].mxu0 %vm332_vm2, %v262_v16  ;;  %3675 = vmatmul.mubr.msk.f32.gmra.mrb[4].mxu1 %vm332_vm2, %v294_v19  ;;  %v314_v59 = vld [vmem:[%s4025_s21 + $0x1c8] sm:$0xff]  ;;  %v284_v60 = vld [vmem:[%s4025_s21 + $0xd8] sm:$0xff]  ;;  %v315_v61 = vld [vmem:[%s4025_s21 + $0x1d0] sm:$0xff] }
  0x74   : > { %3629 = vmatprep.mubr.msk.f32.mxu0 %vm332_vm2, %v263_v18  ;;  %3677 = vmatprep.mubr.msk.f32.mxu1 %vm332_vm2, %v295_v21  ;;  %v285_v62 = vld [vmem:[%s4025_s21 + $0xe0] sm:$0xff]  ;;  %v316_v63 = vld [vmem:[%s4025_s21 + $0x1d8] sm:$0xff]  ;;  %v286_v0 = vld [vmem:[%s4025_s21 + $0xe8] sm:$0xff] }
  0x75   : > { %v317_v1 = vld [vmem:[%s4025_s21 + $0x1e0] sm:$0xff]  ;;  %v287_v2 = vld [vmem:[%s4025_s21 + $0xf0] sm:$0xff]  ;;  %v318_v3 = vld [vmem:[%s4025_s21 + $0x1e8] sm:$0xff] }
  0x76   : > { %v288_v4 = vld [vmem:[%s4025_s21 + $0xf8] sm:$0xff]  ;;  %v319_v5 = vld [vmem:[%s4025_s21 + $0x1f0] sm:$0xff]  ;;  %v4170_v7 = vld [vmem:[#allocation4] ss:$0 sm:$0xff] }
  0x77   : > { %3630 = vmatmul.mubr.msk.f32.gmra.mrb[6].mxu0 %vm332_vm2, %v264_v20  ;;  %3678 = vmatmul.mubr.msk.f32.gmra.mrb[6].mxu1 %vm332_vm2, %v296_v23  ;;  %v320_v6 = vld [vmem:[%s4025_s21 + $0x1f8] sm:$0xff] }
  0x78   : > { %3632 = vmatprep.mubr.msk.f32.mxu0 %vm332_vm2, %v265_v22  ;;  %3680 = vmatprep.mubr.msk.f32.mxu1 %vm332_vm2, %v297_v25 }
  0x7b   : > { %3633 = vmatmul.mubr.msk.f32.gmra.mrb[8].mxu0 %vm332_vm2, %v266_v24  ;;  %3681 = vmatmul.mubr.msk.f32.gmra.mrb[8].mxu1 %vm332_vm2, %v298_v27 }
  0x7c   : > { %3635 = vmatprep.mubr.msk.f32.mxu0 %vm332_vm2, %v267_v26  ;;  %3683 = vmatprep.mubr.msk.f32.mxu1 %vm332_vm2, %v299_v29 }
  0x7f   : > { %3636 = vmatmul.mubr.msk.f32.gmra.mrb[10].mxu0 %vm332_vm2, %v268_v28  ;;  %3684 = vmatmul.mubr.msk.f32.gmra.mrb[10].mxu1 %vm332_vm2, %v300_v31 }
  0x80   : > { %3638 = vmatprep.mubr.msk.f32.mxu0 %vm332_vm2, %v269_v30  ;;  %3686 = vmatprep.mubr.msk.f32.mxu1 %vm332_vm2, %v301_v33 }
  0x83   : > { %3639 = vmatmul.mubr.msk.f32.gmra.mrb[12].mxu0 %vm332_vm2, %v270_v32  ;;  %3687 = vmatmul.mubr.msk.f32.gmra.mrb[12].mxu1 %vm332_vm2, %v302_v35 }
  0x84   : > { %3641 = vmatprep.mubr.msk.f32.mxu0 %vm332_vm2, %v271_v34  ;;  %3689 = vmatprep.mubr.msk.f32.mxu1 %vm332_vm2, %v303_v37 }
  0x87   : > { %3642 = vmatmul.mubr.msk.f32.gmra.mrb[14].mxu0 %vm332_vm2, %v272_v36  ;;  %3690 = vmatmul.mubr.msk.f32.gmra.mrb[14].mxu1 %vm332_vm2, %v304_v39 }
  0x88   : > { %3644 = vmatprep.mubr.msk.f32.mxu0 %vm332_vm2, %v273_v38  ;;  %3692 = vmatprep.mubr.msk.f32.mxu1 %vm332_vm2, %v305_v41 }
  0x8b   : > { %3645 = vmatmul.mubr.msk.f32.gmra.mrb[16].mxu0 %vm332_vm2, %v274_v40  ;;  %3693 = vmatmul.mubr.msk.f32.gmra.mrb[16].mxu1 %vm332_vm2, %v306_v43 }
  0x8c   : > { %3647 = vmatprep.mubr.msk.f32.mxu0 %vm332_vm2, %v275_v42  ;;  %3695 = vmatprep.mubr.msk.f32.mxu1 %vm332_vm2, %v307_v45 }
  0x8f   : > { %3648 = vmatmul.mubr.msk.f32.gmra.mrb[18].mxu0 %vm332_vm2, %v276_v44  ;;  %3696 = vmatmul.mubr.msk.f32.gmra.mrb[18].mxu1 %vm332_vm2, %v308_v47 }
  0x90   : > { %3650 = vmatprep.mubr.msk.f32.mxu0 %vm332_vm2, %v277_v46  ;;  %3698 = vmatprep.mubr.msk.f32.mxu1 %vm332_vm2, %v309_v49 }
  0x93   : > { %3651 = vmatmul.mubr.msk.f32.gmra.mrb[20].mxu0 %vm332_vm2, %v278_v48  ;;  %3699 = vmatmul.mubr.msk.f32.gmra.mrb[20].mxu1 %vm332_vm2, %v310_v51 }
  0x94   : > { %3653 = vmatprep.mubr.msk.f32.mxu0 %vm332_vm2, %v279_v50  ;;  %3701 = vmatprep.mubr.msk.f32.mxu1 %vm332_vm2, %v311_v53 }
  0x97   : > { %3654 = vmatmul.mubr.msk.f32.gmra.mrb[22].mxu0 %vm332_vm2, %v280_v52  ;;  %3702 = vmatmul.mubr.msk.f32.gmra.mrb[22].mxu1 %vm332_vm2, %v312_v55 }
  0x98   : > { %3656 = vmatprep.mubr.msk.f32.mxu0 %vm332_vm2, %v281_v54  ;;  %3704 = vmatprep.mubr.msk.f32.mxu1 %vm332_vm2, %v313_v57 }
  0x9b   : > { %3657 = vmatmul.mubr.msk.f32.gmra.mrb[24].mxu0 %vm332_vm2, %v282_v56  ;;  %3705 = vmatmul.mubr.msk.f32.gmra.mrb[24].mxu1 %vm332_vm2, %v314_v59 }
  0x9c   : > { %3659 = vmatprep.mubr.msk.f32.mxu0 %vm332_vm2, %v283_v58  ;;  %3707 = vmatprep.mubr.msk.f32.mxu1 %vm332_vm2, %v315_v61 }
  0x9f   : > { %3660 = vmatmul.mubr.msk.f32.gmra.mrb[26].mxu0 %vm332_vm2, %v284_v60  ;;  %3708 = vmatmul.mubr.msk.f32.gmra.mrb[26].mxu1 %vm332_vm2, %v316_v63 }
  0xa0   : > { %3662 = vmatprep.mubr.msk.f32.mxu0 %vm332_vm2, %v285_v62  ;;  %3710 = vmatprep.mubr.msk.f32.mxu1 %vm332_vm2, %v317_v1 }
  0xa3   : > { %3663 = vmatmul.mubr.msk.f32.gmra.mrb[28].mxu0 %vm332_vm2, %v286_v0  ;;  %3711 = vmatmul.mubr.msk.f32.gmra.mrb[28].mxu1 %vm332_vm2, %v318_v3 }
  0xa4   : > { %3665 = vmatprep.mubr.msk.f32.mxu0 %vm332_vm2, %v287_v2  ;;  %3713 = vmatprep.mubr.msk.f32.mxu1 %vm332_vm2, %v319_v5 }
  0xa7   : > { %3666 = vmatmul.mubr.msk.f32.gmra.mrb[30].mxu0 %vm332_vm2, %v288_v4  ;;  %3714 = vmatmul.mubr.msk.f32.gmra.mrb[30].mxu1 %vm332_vm2, %v320_v6 }
 0x13e   : > { %v3622_v8 = vpop.f32.mrb[0].mxu0  ;;  %v3670_v14 = vpop.f32.mrb[0].mxu1 }
 0x13f   : > { %v601_v9 = vadd.f32 %v3622_v8, %v4170_v7  ;;  %v595_v10 = vpop.f32.mrb[1].mxu0  ;;  %v4186_v18 = vadd.f32 %v3670_v14, %v4170_v7  ;;  %v755_v19 = vpop.f32.mrb[1].mxu1 }
 0x140   : > { %v596_v11 = vadd.f32 %v4170_v7, %v595_v10  ;;  %v4191_v24 = vadd.f32 %v4170_v7, %v755_v19 }
 0x141   : > { %v917_v12 = vsel %vm915_vm5, %v601_v9, 0.0  ;;  %v1054_v13 = vmul.f32 %v601_v9, %v601_v9  ;;  %1255 = vst.msk [vmem:[%s4175_s12 + $0x8] sm:$0xff] %vm915_vm5, %v601_v9  ;;  %1287 = vst.msk [vmem:[%s4175_s12 + $0x108] sm:$0xff] %vm915_vm5, %v4186_v18 }
 0x142   : > { %v916_v15 = vsel %vm915_vm5, %v596_v11, 0.0  ;;  %v1053_v16 = vmul.f32 %v596_v11, %v596_v11  ;;  %1254 = vst.msk [vmem:[%s4175_s12] sm:$0xff] %vm915_vm5, %v596_v11  ;;  %v3625_v17 = vpop.f32.mrb[2].mxu0  ;;  %1286 = vst.msk [vmem:[%s4175_s12 + $0x100] sm:$0xff] %vm915_vm5, %v4191_v24  ;;  %v3673_v28 = vpop.f32.mrb[2].mxu1 }
 0x143   : > { %v1118_v20 = vsel %vm915_vm5, %v1054_v13, 0.0  ;;  %v918_v21 = vadd.f32 %v917_v12, %v916_v15  ;;  %v611_v22 = vadd.f32 %v3625_v17, %v4170_v7  ;;  %v605_v23 = vpop.f32.mrb[3].mxu0  ;;  %v765_v33 = vpop.f32.mrb[3].mxu1  ;;  %v4208_v37 = vadd.f32 %v3673_v28, %v4170_v7 }
 0x144   : > { %v1117_v25 = vsel %vm915_vm5, %v1053_v16, 0.0  ;;  %v606_v26 = vadd.f32 %v4170_v7, %v605_v23  ;;  %v4214_v41 = vadd.f32 %v4170_v7, %v765_v33 }
 0x145   : > { %v1119_v27 = vadd.f32 %v1118_v20, %v1117_v25  ;;  %1257 = vst.msk [vmem:[%s4175_s12 + $0x18] sm:$0xff] %vm915_vm5, %v611_v22  ;;  %v1056_v29 = vmul.f32 %v611_v22, %v611_v22  ;;  %v921_v38 = vsel %vm915_vm5, %v611_v22, 0.0  ;;  %1289 = vst.msk [vmem:[%s4175_s12 + $0x118] sm:$0xff] %vm915_vm5, %v4208_v37 }
 0x146   : > { %v919_v30 = vsel %vm915_vm5, %v606_v26, 0.0  ;;  %v1055_v31 = vmul.f32 %v606_v26, %v606_v26  ;;  %1256 = vst.msk [vmem:[%s4175_s12 + $0x10] sm:$0xff] %vm915_vm5, %v606_v26  ;;  %v3628_v32 = vpop.f32.mrb[4].mxu0  ;;  %v3676_v45 = vpop.f32.mrb[4].mxu1  ;;  %1288 = vst.msk [vmem:[%s4175_s12 + $0x110] sm:$0xff] %vm915_vm5, %v4214_v41 }
 0x147   : > { %v920_v34 = vadd.f32 %v919_v30, %v918_v21  ;;  %v621_v35 = vadd.f32 %v3628_v32, %v4170_v7  ;;  %v615_v36 = vpop.f32.mrb[5].mxu0  ;;  %v1122_v46 = vsel %vm915_vm5, %v1056_v29, 0.0  ;;  %v775_v50 = vpop.f32.mrb[5].mxu1  ;;  %v4239_v2 = vadd.f32 %v3676_v45, %v4170_v7 }
 0x148   : > { %v1120_v39 = vsel %vm915_vm5, %v1055_v31, 0.0  ;;  %v616_v40 = vadd.f32 %v4170_v7, %v615_v36  ;;  %v4257_v21 = vadd.f32 %v4170_v7, %v775_v50 }
 0x149   : > { %v1121_v42 = vadd.f32 %v1120_v39, %v1119_v27  ;;  %v1058_v43 = vmul.f32 %v621_v35, %v621_v35  ;;  %1259 = vst.msk [vmem:[%s4175_s12 + $0x28] sm:$0xff] %vm915_vm5, %v621_v35  ;;  %v922_v44 = vadd.f32 %v921_v38, %v920_v34  ;;  %v925_v55 = vsel %vm915_vm5, %v621_v35, 0.0  ;;  %1291 = vst.msk [vmem:[%s4175_s12 + $0x128] sm:$0xff] %vm915_vm5, %v4239_v2 }
 0x14a   : > { %v923_v47 = vsel %vm915_vm5, %v616_v40, 0.0  ;;  %v1057_v48 = vmul.f32 %v616_v40, %v616_v40  ;;  %1258 = vst.msk [vmem:[%s4175_s12 + $0x20] sm:$0xff] %vm915_vm5, %v616_v40  ;;  %v3631_v49 = vpop.f32.mrb[6].mxu0  ;;  %v3679_v61 = vpop.f32.mrb[6].mxu1  ;;  %1290 = vst.msk [vmem:[%s4175_s12 + $0x120] sm:$0xff] %vm915_vm5, %v4257_v21 }
 0x14b   : > { %v924_v51 = vadd.f32 %v923_v47, %v922_v44  ;;  %v1123_v52 = vadd.f32 %v1122_v46, %v1121_v42  ;;  %v631_v53 = vadd.f32 %v3631_v49, %v4170_v7  ;;  %v625_v54 = vpop.f32.mrb[7].mxu0  ;;  %v1126_v58 = vsel %vm915_vm5, %v1058_v43, 0.0  ;;  %v785_v3 = vpop.f32.mrb[7].mxu1 }
 0x14c   : > { %v1124_v56 = vsel %vm915_vm5, %v1057_v48, 0.0  ;;  %v626_v57 = vadd.f32 %v4170_v7, %v625_v54  ;;  %v4277_v40 = vadd.f32 %v3679_v61, %v4170_v7 }
 0x14d   : > { %v1125_v59 = vadd.f32 %v1124_v56, %v1123_v52  ;;  %1261 = vst.msk [vmem:[%s4175_s12 + $0x38] sm:$0xff] %vm915_vm5, %v631_v53  ;;  %v926_v60 = vadd.f32 %v925_v55, %v924_v51  ;;  %v1060_v62 = vmul.f32 %v631_v53, %v631_v53  ;;  %v929_v9 = vsel %vm915_vm5, %v631_v53, 0.0 }
 0x14e   : > { %v927_v63 = vsel %vm915_vm5, %v626_v57, 0.0  ;;  %v1059_v0 = vmul.f32 %v626_v57, %v626_v57  ;;  %1260 = vst.msk [vmem:[%s4175_s12 + $0x30] sm:$0xff] %vm915_vm5, %v626_v57  ;;  %v3634_v1 = vpop.f32.mrb[8].mxu0  ;;  %v4250_v15 = vpop.f32.mrb[8].mxu1  ;;  %1293 = vst.msk [vmem:[%s4175_s12 + $0x138] sm:$0xff] %vm915_vm5, %v4277_v40 }
 0x14f   : > { %v928_v4 = vadd.f32 %v927_v63, %v926_v60  ;;  %v1127_v5 = vadd.f32 %v1126_v58, %v1125_v59  ;;  %v641_v6 = vadd.f32 %v3634_v1, %v4170_v7  ;;  %v635_v8 = vpop.f32.mrb[9].mxu0  ;;  %v1130_v16 = vsel %vm915_vm5, %v1060_v62, 0.0  ;;  %v4259_v22 = vpop.f32.mrb[9].mxu1 }
 0x150   : > { %v1128_v10 = vsel %vm915_vm5, %v1059_v0, 0.0  ;;  %v636_v11 = vadd.f32 %v4170_v7, %v635_v8  ;;  %v4297_v58 = vadd.f32 %v4170_v7, %v785_v3 }
 0x151   : > { %v1129_v12 = vadd.f32 %v1128_v10, %v1127_v5  ;;  %v1062_v13 = vmul.f32 %v641_v6, %v641_v6  ;;  %1263 = vst.msk [vmem:[%s4175_s12 + $0x48] sm:$0xff] %vm915_vm5, %v641_v6  ;;  %v930_v14 = vadd.f32 %v929_v9, %v928_v4  ;;  %v933_v28 = vsel %vm915_vm5, %v641_v6, 0.0 }
 0x152   : > { %v931_v17 = vsel %vm915_vm5, %v636_v11, 0.0  ;;  %v1061_v19 = vmul.f32 %v636_v11, %v636_v11  ;;  %1262 = vst.msk [vmem:[%s4175_s12 + $0x40] sm:$0xff] %vm915_vm5, %v636_v11  ;;  %v3637_v20 = vpop.f32.mrb[10].mxu0  ;;  %v4271_v34 = vpop.f32.mrb[10].mxu1  ;;  %1292 = vst.msk [vmem:[%s4175_s12 + $0x130] sm:$0xff] %vm915_vm5, %v4297_v58 }
 0x153   : > { %v932_v23 = vadd.f32 %v931_v17, %v930_v14  ;;  %v1131_v25 = vadd.f32 %v1130_v16, %v1129_v12  ;;  %v651_v26 = vadd.f32 %v3637_v20, %v4170_v7  ;;  %v645_v27 = vpop.f32.mrb[11].mxu0  ;;  %v1134_v31 = vsel %vm915_vm5, %v1062_v13, 0.0  ;;  %v4279_v42 = vpop.f32.mrb[11].mxu1 }
 0x154   : > { %v1132_v29 = vsel %vm915_vm5, %v1061_v19, 0.0  ;;  %v646_v30 = vadd.f32 %v4170_v7, %v645_v27  ;;  %v4318_v13 = vadd.f32 %v4250_v15, %v4170_v7 }
 0x155   : > { %v1133_v32 = vadd.f32 %v1132_v29, %v1131_v25  ;;  %1265 = vst.msk [vmem:[%s4175_s12 + $0x58] sm:$0xff] %vm915_vm5, %v651_v26  ;;  %v934_v33 = vadd.f32 %v933_v28, %v932_v23  ;;  %v1064_v35 = vmul.f32 %v651_v26, %v651_v26  ;;  %v937_v47 = vsel %vm915_vm5, %v651_v26, 0.0 }
 0x156   : > { %v935_v36 = vsel %vm915_vm5, %v646_v30, 0.0  ;;  %v1063_v38 = vmul.f32 %v646_v30, %v646_v30  ;;  %1264 = vst.msk [vmem:[%s4175_s12 + $0x50] sm:$0xff] %vm915_vm5, %v646_v30  ;;  %v3640_v39 = vpop.f32.mrb[12].mxu0  ;;  %v4290_v53 = vpop.f32.mrb[12].mxu1  ;;  %1295 = vst.msk [vmem:[%s4175_s12 + $0x148] sm:$0xff] %vm915_vm5, %v4318_v13 }
 0x157   : > { %v936_v43 = vadd.f32 %v935_v36, %v934_v33  ;;  %v1135_v44 = vadd.f32 %v1134_v31, %v1133_v32  ;;  %v661_v45 = vadd.f32 %v3640_v39, %v4170_v7  ;;  %v655_v46 = vpop.f32.mrb[13].mxu0  ;;  %v1138_v54 = vsel %vm915_vm5, %v1064_v35, 0.0  ;;  %v4299_v59 = vpop.f32.mrb[13].mxu1 }
 0x158   : > { %v1136_v48 = vsel %vm915_vm5, %v1063_v38, 0.0  ;;  %v656_v49 = vadd.f32 %v4170_v7, %v655_v46  ;;  %v4339_v35 = vadd.f32 %v4170_v7, %v4259_v22 }
 0x159   : > { %v1137_v50 = vadd.f32 %v1136_v48, %v1135_v44  ;;  %v1066_v51 = vmul.f32 %v661_v45, %v661_v45  ;;  %1267 = vst.msk [vmem:[%s4175_s12 + $0x68] sm:$0xff] %vm915_vm5, %v661_v45  ;;  %v938_v52 = vadd.f32 %v937_v47, %v936_v43  ;;  %v941_v0 = vsel %vm915_vm5, %v661_v45, 0.0 }
 0x15a   : > { %v939_v55 = vsel %vm915_vm5, %v656_v49, 0.0  ;;  %v1065_v56 = vmul.f32 %v656_v49, %v656_v49  ;;  %1266 = vst.msk [vmem:[%s4175_s12 + $0x60] sm:$0xff] %vm915_vm5, %v656_v49  ;;  %v3643_v57 = vpop.f32.mrb[14].mxu0  ;;  %v4311_v8 = vpop.f32.mrb[14].mxu1  ;;  %1294 = vst.msk [vmem:[%s4175_s12 + $0x140] sm:$0xff] %vm915_vm5, %v4339_v35 }
 0x15b   : > { %v940_v60 = vadd.f32 %v939_v55, %v938_v52  ;;  %v1139_v61 = vadd.f32 %v1138_v54, %v1137_v50  ;;  %v671_v62 = vadd.f32 %v3643_v57, %v4170_v7  ;;  %v665_v63 = vpop.f32.mrb[15].mxu0  ;;  %v1142_v3 = vsel %vm915_vm5, %v1066_v51, 0.0  ;;  %v4320_v14 = vpop.f32.mrb[15].mxu1 }
 0x15c   : > { %v1140_v1 = vsel %vm915_vm5, %v1065_v56, 0.0  ;;  %v666_v4 = vadd.f32 %v4170_v7, %v665_v63  ;;  %v4360_v56 = vadd.f32 %v4271_v34, %v4170_v7 }
 0x15d   : > { %v1141_v5 = vadd.f32 %v1140_v1, %v1139_v61  ;;  %1269 = vst.msk [vmem:[%s4175_s12 + $0x78] sm:$0xff] %vm915_vm5, %v671_v62  ;;  %v942_v6 = vadd.f32 %v941_v0, %v940_v60  ;;  %v1068_v9 = vmul.f32 %v671_v62, %v671_v62  ;;  %v945_v23 = vsel %vm915_vm5, %v671_v62, 0.0 }
 0x15e   : > { %v943_v10 = vsel %vm915_vm5, %v666_v4, 0.0  ;;  %v1067_v11 = vmul.f32 %v666_v4, %v666_v4  ;;  %1268 = vst.msk [vmem:[%s4175_s12 + $0x70] sm:$0xff] %vm915_vm5, %v666_v4  ;;  %v3646_v12 = vpop.f32.mrb[16].mxu0  ;;  %v4331_v29 = vpop.f32.mrb[16].mxu1  ;;  %1297 = vst.msk [vmem:[%s4175_s12 + $0x158] sm:$0xff] %vm915_vm5, %v4360_v56 }
 0x15f   : > { %v944_v16 = vadd.f32 %v943_v10, %v942_v6  ;;  %v1143_v17 = vadd.f32 %v1142_v3, %v1141_v5  ;;  %v681_v19 = vadd.f32 %v3646_v12, %v4170_v7  ;;  %v675_v20 = vpop.f32.mrb[17].mxu0  ;;  %v1146_v30 = vsel %vm915_vm5, %v1068_v9, 0.0  ;;  %v4341_v36 = vpop.f32.mrb[17].mxu1 }
 0x160   : > { %v1144_v25 = vsel %vm915_vm5, %v1067_v11, 0.0  ;;  %v676_v26 = vadd.f32 %v4170_v7, %v675_v20 }
 0x161   : > { %v1145_v27 = vadd.f32 %v1144_v25, %v1143_v17  ;;  %v1070_v15 = vmul.f32 %v681_v19, %v681_v19  ;;  %1271 = vst.msk [vmem:[%s4175_s12 + $0x88] sm:$0xff] %vm915_vm5, %v681_v19  ;;  %v946_v28 = vadd.f32 %v945_v23, %v944_v16  ;;  %v949_v45 = vsel %vm915_vm5, %v681_v19, 0.0 }
 0x162   : > { %v947_v31 = vsel %vm915_vm5, %v676_v26, 0.0  ;;  %v1069_v32 = vmul.f32 %v676_v26, %v676_v26  ;;  %1270 = vst.msk [vmem:[%s4175_s12 + $0x80] sm:$0xff] %vm915_vm5, %v676_v26  ;;  %v3649_v33 = vpop.f32.mrb[18].mxu0  ;;  %v4353_v50 = vpop.f32.mrb[18].mxu1  ;;  %v4381_v16 = vadd.f32 %v4170_v7, %v4279_v42 }
 0x163   : > { %v948_v38 = vadd.f32 %v947_v31, %v946_v28  ;;  %v1147_v39 = vadd.f32 %v1146_v30, %v1145_v27  ;;  %v691_v43 = vadd.f32 %v3649_v33, %v4170_v7  ;;  %v685_v44 = vpop.f32.mrb[19].mxu0  ;;  %v1150_v22 = vsel %vm915_vm5, %v1070_v15, 0.0  ;;  %v4362_v57 = vpop.f32.mrb[19].mxu1 }
 0x164   : > { %v1148_v46 = vsel %vm915_vm5, %v1069_v32, 0.0  ;;  %v686_v47 = vadd.f32 %v4170_v7, %v685_v44  ;;  %1296 = vst.msk [vmem:[%s4175_s12 + $0x150] sm:$0xff] %vm915_vm5, %v4381_v16 }
 0x165   : > { %v1149_v48 = vadd.f32 %v1148_v46, %v1147_v39  ;;  %1273 = vst.msk [vmem:[%s4175_s12 + $0x98] sm:$0xff] %vm915_vm5, %v691_v43  ;;  %v950_v49 = vadd.f32 %v949_v45, %v948_v38  ;;  %v1072_v51 = vmul.f32 %v691_v43, %v691_v43  ;;  %v953_v0 = vsel %vm915_vm5, %v691_v43, 0.0 }
 0x166   : > { %v951_v52 = vsel %vm915_vm5, %v686_v47, 0.0  ;;  %v1071_v54 = vmul.f32 %v686_v47, %v686_v47  ;;  %1272 = vst.msk [vmem:[%s4175_s12 + $0x90] sm:$0xff] %vm915_vm5, %v686_v47  ;;  %v3652_v55 = vpop.f32.mrb[20].mxu0  ;;  %v4373_v6 = vpop.f32.mrb[20].mxu1  ;;  %v4402_v43 = vadd.f32 %v4290_v53, %v4170_v7 }
 0x167   : > { %v952_v60 = vadd.f32 %v951_v52, %v950_v49  ;;  %v1151_v61 = vadd.f32 %v1150_v22, %v1149_v48  ;;  %v701_v62 = vadd.f32 %v3652_v55, %v4170_v7  ;;  %v695_v63 = vpop.f32.mrb[21].mxu0  ;;  %v1154_v9 = vsel %vm915_vm5, %v1072_v51, 0.0  ;;  %v4383_v17 = vpop.f32.mrb[21].mxu1 }
 0x168   : > { %v1152_v1 = vsel %vm915_vm5, %v1071_v54, 0.0  ;;  %v696_v4 = vadd.f32 %v4170_v7, %v695_v63  ;;  %1299 = vst.msk [vmem:[%s4175_s12 + $0x168] sm:$0xff] %vm915_vm5, %v4402_v43 }
 0x169   : > { %v1153_v3 = vadd.f32 %v1152_v1, %v1151_v61  ;;  %v1074_v34 = vmul.f32 %v701_v62, %v701_v62  ;;  %1275 = vst.msk [vmem:[%s4175_s12 + $0xa8] sm:$0xff] %vm915_vm5, %v701_v62  ;;  %v954_v5 = vadd.f32 %v953_v0, %v952_v60  ;;  %v957_v26 = vsel %vm915_vm5, %v701_v62, 0.0 }
 0x16a   : > { %v955_v10 = vsel %vm915_vm5, %v696_v4, 0.0  ;;  %v1073_v11 = vmul.f32 %v696_v4, %v696_v4  ;;  %1274 = vst.msk [vmem:[%s4175_s12 + $0xa0] sm:$0xff] %vm915_vm5, %v696_v4  ;;  %v3655_v12 = vpop.f32.mrb[22].mxu0  ;;  %v4395_v31 = vpop.f32.mrb[22].mxu1  ;;  %v4423_v0 = vadd.f32 %v4170_v7, %v4299_v59 }
 0x16b   : > { %v956_v19 = vadd.f32 %v955_v10, %v954_v5  ;;  %v1155_v20 = vadd.f32 %v1154_v9, %v1153_v3  ;;  %v711_v23 = vadd.f32 %v3655_v12, %v4170_v7  ;;  %v705_v25 = vpop.f32.mrb[23].mxu0  ;;  %v1158_v42 = vsel %vm915_vm5, %v1074_v34, 0.0  ;;  %v4404_v44 = vpop.f32.mrb[23].mxu1 }
 0x16c   : > { %v1156_v27 = vsel %vm915_vm5, %v1073_v11, 0.0  ;;  %v706_v15 = vadd.f32 %v4170_v7, %v705_v25  ;;  %1298 = vst.msk [vmem:[%s4175_s12 + $0x160] sm:$0xff] %vm915_vm5, %v4423_v0 }
 0x16d   : > { %v1157_v28 = vadd.f32 %v1156_v27, %v1155_v20  ;;  %1277 = vst.msk [vmem:[%s4175_s12 + $0xb8] sm:$0xff] %vm915_vm5, %v711_v23  ;;  %v958_v30 = vadd.f32 %v957_v26, %v956_v19  ;;  %v1076_v32 = vmul.f32 %v711_v23, %v711_v23  ;;  %v961_v48 = vsel %vm915_vm5, %v711_v23, 0.0 }
 0x16e   : > { %v959_v33 = vsel %vm915_vm5, %v706_v15, 0.0  ;;  %v1075_v38 = vmul.f32 %v706_v15, %v706_v15  ;;  %1276 = vst.msk [vmem:[%s4175_s12 + $0xb0] sm:$0xff] %vm915_vm5, %v706_v15  ;;  %v3658_v39 = vpop.f32.mrb[24].mxu0  ;;  %v4415_v55 = vpop.f32.mrb[24].mxu1  ;;  %v4444_v15 = vadd.f32 %v4311_v8, %v4170_v7 }
 0x16f   : > { %v960_v45 = vadd.f32 %v959_v33, %v958_v30  ;;  %v1159_v46 = vadd.f32 %v1158_v42, %v1157_v28  ;;  %v721_v47 = vadd.f32 %v3658_v39, %v4170_v7  ;;  %v715_v22 = vpop.f32.mrb[25].mxu0  ;;  %v1162_v60 = vsel %vm915_vm5, %v1076_v32, 0.0  ;;  %v4425_v1 = vpop.f32.mrb[25].mxu1 }
 0x170   : > { %v1160_v49 = vsel %vm915_vm5, %v1075_v38, 0.0  ;;  %v716_v51 = vadd.f32 %v4170_v7, %v715_v22  ;;  %1301 = vst.msk [vmem:[%s4175_s12 + $0x178] sm:$0xff] %vm915_vm5, %v4444_v15 }
 0x171   : > { %v1161_v52 = vadd.f32 %v1160_v49, %v1159_v46  ;;  %v1078_v53 = vmul.f32 %v721_v47, %v721_v47  ;;  %1279 = vst.msk [vmem:[%s4175_s12 + $0xc8] sm:$0xff] %vm915_vm5, %v721_v47  ;;  %v962_v54 = vadd.f32 %v961_v48, %v960_v45  ;;  %v965_v9 = vsel %vm915_vm5, %v721_v47, 0.0 }
 0x172   : > { %v963_v61 = vsel %vm915_vm5, %v716_v51, 0.0  ;;  %v1077_v62 = vmul.f32 %v716_v51, %v716_v51  ;;  %1278 = vst.msk [vmem:[%s4175_s12 + $0xc0] sm:$0xff] %vm915_vm5, %v716_v51  ;;  %v3661_v63 = vpop.f32.mrb[26].mxu0  ;;  %v4437_v20 = vpop.f32.mrb[26].mxu1 }
 0x173   : > { %v964_v4 = vadd.f32 %v963_v61, %v962_v54  ;;  %v1163_v3 = vadd.f32 %v1162_v60, %v1161_v52  ;;  %v731_v34 = vadd.f32 %v3661_v63, %v4170_v7  ;;  %v725_v5 = vpop.f32.mrb[27].mxu0  ;;  %v1166_v59 = vsel %vm915_vm5, %v1078_v53, 0.0  ;;  %v4446_v42 = vpop.f32.mrb[27].mxu1 }
 0x174   : > { %v1164_v10 = vsel %vm915_vm5, %v1077_v62, 0.0  ;;  %v726_v11 = vadd.f32 %v4170_v7, %v725_v5  ;;  %v4465_v53 = vadd.f32 %v4170_v7, %v4320_v14 }
 0x175   : > { %v1165_v12 = vadd.f32 %v1164_v10, %v1163_v3  ;;  %1281 = vst.msk [vmem:[%s4175_s12 + $0xd8] sm:$0xff] %vm915_vm5, %v731_v34  ;;  %v966_v19 = vadd.f32 %v965_v9, %v964_v4  ;;  %v1080_v23 = vmul.f32 %v731_v34, %v731_v34  ;;  %v969_v38 = vsel %vm915_vm5, %v731_v34, 0.0 }
 0x176   : > { %v967_v25 = vsel %vm915_vm5, %v726_v11, 0.0  ;;  %v1079_v26 = vmul.f32 %v726_v11, %v726_v11  ;;  %1280 = vst.msk [vmem:[%s4175_s12 + $0xd0] sm:$0xff] %vm915_vm5, %v726_v11  ;;  %v3664_v27 = vpop.f32.mrb[28].mxu0  ;;  %v4457_v22 = vpop.f32.mrb[28].mxu1  ;;  %1300 = vst.msk [vmem:[%s4175_s12 + $0x170] sm:$0xff] %vm915_vm5, %v4465_v53  ;;  %v1085_v10 = vmul.f32 %v4191_v24, %v4191_v24 }
 0x177   : > { %v968_v28 = vadd.f32 %v967_v25, %v966_v19  ;;  %v1167_v30 = vadd.f32 %v1166_v59, %v1165_v12  ;;  %v741_v32 = vadd.f32 %v3664_v27, %v4170_v7  ;;  %v735_v33 = vpop.f32.mrb[29].mxu0  ;;  %v1170_v48 = vsel %vm915_vm5, %v1080_v23, 0.0  ;;  %v4467_v54 = vpop.f32.mrb[29].mxu1 }
 0x178   : > { %v1168_v39 = vsel %vm915_vm5, %v1079_v26, 0.0  ;;  %v736_v45 = vadd.f32 %v4170_v7, %v735_v33  ;;  %v4488_v23 = vadd.f32 %v4331_v29, %v4170_v7  ;;  %v1086_v33 = vmul.f32 %v4186_v18, %v4186_v18 }
 0x179   : > { %v1169_v46 = vadd.f32 %v1168_v39, %v1167_v30  ;;  %v1082_v8 = vmul.f32 %v741_v32, %v741_v32  ;;  %1283 = vst.msk [vmem:[%s4175_s12 + $0xe8] sm:$0xff] %vm915_vm5, %v741_v32  ;;  %v970_v47 = vadd.f32 %v969_v38, %v968_v28  ;;  %v973_v4 = vsel %vm915_vm5, %v741_v32, 0.0 }
 0x17a   : > { %v971_v49 = vsel %vm915_vm5, %v736_v45, 0.0  ;;  %v1081_v51 = vmul.f32 %v736_v45, %v736_v45  ;;  %1282 = vst.msk [vmem:[%s4175_s12 + $0xe0] sm:$0xff] %vm915_vm5, %v736_v45  ;;  %v3667_v52 = vpop.f32.mrb[30].mxu0  ;;  %v4481_v11 = vpop.f32.mrb[30].mxu1  ;;  %v4494_v28 = vadd.f32 %v4170_v7, %v4341_v36  ;;  %v979_v38 = vsel %vm915_vm5, %v4191_v24, 0.0  ;;  %1303 = vst.msk [vmem:[%s4175_s12 + $0x188] sm:$0xff] %vm915_vm5, %v4488_v23 }
 0x17b   : > { %v972_v60 = vadd.f32 %v971_v49, %v970_v47  ;;  %v1171_v61 = vadd.f32 %v1170_v48, %v1169_v46  ;;  %v751_v62 = vadd.f32 %v3667_v52, %v4170_v7  ;;  %v745_v63 = vpop.f32.mrb[31].mxu0  ;;  %v1174_v14 = vsel %vm915_vm5, %v1082_v8, 0.0  ;;  %v4490_v25 = vpop.f32.mrb[31].mxu1 }
 0x17c   : > { %v1172_v3 = vsel %vm915_vm5, %v1081_v51, 0.0  ;;  %v746_v34 = vadd.f32 %v4170_v7, %v745_v63  ;;  %v1180_v36 = vsel %vm915_vm5, %v1085_v10, 0.0  ;;  %v1087_v45 = vmul.f32 %v4214_v41, %v4214_v41  ;;  %1302 = vst.msk [vmem:[%s4175_s12 + $0x180] sm:$0xff] %vm915_vm5, %v4494_v28 }
 0x17d   : > { %v1173_v5 = vadd.f32 %v1172_v3, %v1171_v61  ;;  %1285 = vst.msk [vmem:[%s4175_s12 + $0xf8] sm:$0xff] %vm915_vm5, %v751_v62  ;;  %v974_v9 = vadd.f32 %v973_v4, %v972_v60  ;;  %v1084_v59 = vmul.f32 %v751_v62, %v751_v62  ;;  %v977_v30 = vsel %vm915_vm5, %v751_v62, 0.0 }
 0x17e   : > { %v975_v12 = vsel %vm915_vm5, %v746_v34, 0.0  ;;  %v1083_v19 = vmul.f32 %v746_v34, %v746_v34  ;;  %1284 = vst.msk [vmem:[%s4175_s12 + $0xf0] sm:$0xff] %vm915_vm5, %v746_v34  ;;  %v4514_v24 = vadd.f32 %v4353_v50, %v4170_v7  ;;  %v4518_v8 = vadd.f32 %v4170_v7, %v4362_v57 }
 0x17f   : > { %v976_v26 = vadd.f32 %v975_v12, %v974_v9  ;;  %v1175_v27 = vadd.f32 %v1174_v14, %v1173_v5  ;;  %v1178_v46 = vsel %vm915_vm5, %v1084_v59, 0.0  ;;  %v4522_v47 = vadd.f32 %v4373_v6, %v4170_v7 }
 0x180   : > { %v1176_v32 = vsel %vm915_vm5, %v1083_v19, 0.0  ;;  %v4526_v51 = vadd.f32 %v4170_v7, %v4383_v17  ;;  %v981_v52 = vsel %vm915_vm5, %v4186_v18, 0.0  ;;  %v983_v50 = vsel %vm915_vm5, %v4214_v41, 0.0  ;;  %1305 = vst.msk [vmem:[%s4175_s12 + $0x198] sm:$0xff] %vm915_vm5, %v4514_v24  ;;  %1304 = vst.msk [vmem:[%s4175_s12 + $0x190] sm:$0xff] %vm915_vm5, %v4518_v8 }
 0x181   : > { %v1177_v29 = vadd.f32 %v1176_v32, %v1175_v27  ;;  %v978_v39 = vadd.f32 %v977_v30, %v976_v26  ;;  %1307 = vst.msk [vmem:[%s4175_s12 + $0x1a8] sm:$0xff] %vm915_vm5, %v4522_v47  ;;  %v1182_v18 = vsel %vm915_vm5, %v1086_v33, 0.0  ;;  %v1088_v41 = vmul.f32 %v4208_v37, %v4208_v37 }
 0x182   : > { %1306 = vst.msk [vmem:[%s4175_s12 + $0x1a0] sm:$0xff] %vm915_vm5, %v4526_v51  ;;  %v1184_v17 = vsel %vm915_vm5, %v1087_v45, 0.0  ;;  %v1089_v60 = vmul.f32 %v4257_v21, %v4257_v21  ;;  %v985_v61 = vsel %vm915_vm5, %v4208_v37, 0.0  ;;  %v4554_v4 = vadd.f32 %v4395_v31, %v4170_v7 }
 0x183   : > { %v980_v48 = vadd.f32 %v979_v38, %v978_v39  ;;  %v1179_v49 = vadd.f32 %v1178_v46, %v1177_v29  ;;  %v987_v3 = vsel %vm915_vm5, %v4257_v21, 0.0  ;;  %v4560_v34 = vadd.f32 %v4170_v7, %v4404_v44 }
 0x184   : > { %v4564_v14 = vadd.f32 %v4415_v55, %v4170_v7  ;;  %v4568_v37 = vadd.f32 %v4170_v7, %v4425_v1  ;;  %1309 = vst.msk [vmem:[%s4175_s12 + $0x1b8] sm:$0xff] %vm915_vm5, %v4554_v4  ;;  %v1186_v31 = vsel %vm915_vm5, %v1088_v41, 0.0  ;;  %v1090_v21 = vmul.f32 %v4239_v2, %v4239_v2 }
 0x185   : > { %v1181_v57 = vadd.f32 %v1180_v36, %v1179_v49  ;;  %v982_v6 = vadd.f32 %v981_v52, %v980_v48  ;;  %v1188_v44 = vsel %vm915_vm5, %v1089_v60, 0.0  ;;  %v1091_v55 = vmul.f32 %v4297_v58, %v4297_v58  ;;  %1308 = vst.msk [vmem:[%s4175_s12 + $0x1b0] sm:$0xff] %vm915_vm5, %v4560_v34 }
 0x186   : > { %1311 = vst.msk [vmem:[%s4175_s12 + $0x1c8] sm:$0xff] %vm915_vm5, %v4564_v14  ;;  %1310 = vst.msk [vmem:[%s4175_s12 + $0x1c0] sm:$0xff] %vm915_vm5, %v4568_v37  ;;  %v989_v59 = vsel %vm915_vm5, %v4239_v2, 0.0  ;;  %v1092_v12 = vmul.f32 %v4277_v40, %v4277_v40  ;;  %v991_v19 = vsel %vm915_vm5, %v4297_v58, 0.0  ;;  %v4596_v26 = vadd.f32 %v4437_v20, %v4170_v7 }
 0x187   : > { %v984_v62 = vadd.f32 %v983_v50, %v982_v6  ;;  %v1183_v63 = vadd.f32 %v1182_v18, %v1181_v57  ;;  %v4600_v32 = vadd.f32 %v4170_v7, %v4446_v42  ;;  %v4604_v2 = vadd.f32 %v4457_v22, %v4170_v7 }
 0x188   : > { %v1190_v33 = vsel %vm915_vm5, %v1090_v21, 0.0  ;;  %v1192_v38 = vsel %vm915_vm5, %v1091_v55, 0.0  ;;  %v1093_v58 = vmul.f32 %v4339_v35, %v4339_v35  ;;  %1313 = vst.msk [vmem:[%s4175_s12 + $0x1d8] sm:$0xff] %vm915_vm5, %v4596_v26  ;;  %v4615_v20 = vadd.f32 %v4170_v7, %v4467_v54 }
 0x189   : > { %v1185_v5 = vadd.f32 %v1184_v17, %v1183_v63  ;;  %v986_v9 = vadd.f32 %v985_v61, %v984_v62  ;;  %1312 = vst.msk [vmem:[%s4175_s12 + $0x1d0] sm:$0xff] %vm915_vm5, %v4600_v32  ;;  %1315 = vst.msk [vmem:[%s4175_s12 + $0x1e8] sm:$0xff] %vm915_vm5, %v4604_v2  ;;  %v993_v22 = vsel %vm915_vm5, %v4277_v40, 0.0  ;;  %v995_v39 = vsel %vm915_vm5, %v4339_v35, 0.0 }
 0x18a   : > { %1314 = vst.msk [vmem:[%s4175_s12 + $0x1e0] sm:$0xff] %vm915_vm5, %v4615_v20  ;;  %v1194_v54 = vsel %vm915_vm5, %v1092_v12, 0.0  ;;  %v1094_v45 = vmul.f32 %v4318_v13, %v4318_v13  ;;  %v1196_v48 = vsel %vm915_vm5, %v1093_v58, 0.0  ;;  %v1095_v49 = vmul.f32 %v4381_v16, %v4381_v16 }
 0x18b   : > { %v988_v1 = vadd.f32 %v987_v3, %v986_v9  ;;  %v1187_v10 = vadd.f32 %v1186_v31, %v1185_v5  ;;  %v4638_v40 = vadd.f32 %v4481_v11, %v4170_v7  ;;  %v4642_v35 = vadd.f32 %v4170_v7, %v4490_v25 }
 0x18c   : > { %v997_v57 = vsel %vm915_vm5, %v4318_v13, 0.0  ;;  %v999_v6 = vsel %vm915_vm5, %v4381_v16, 0.0  ;;  %v1198_v41 = vsel %vm915_vm5, %v1094_v45, 0.0  ;;  %v1096_v7 = vmul.f32 %v4360_v56, %v4360_v56 }
 0x18d   : > { %v1189_v27 = vadd.f32 %v1188_v44, %v1187_v10  ;;  %v990_v30 = vadd.f32 %v989_v59, %v988_v1  ;;  %1317 = vst.msk [vmem:[%s4175_s12 + $0x1f8] sm:$0xff] %vm915_vm5, %v4638_v40  ;;  %1316 = vst.msk [vmem:[%s4175_s12 + $0x1f0] sm:$0xff] %vm915_vm5, %v4642_v35  ;;  %v1200_v25 = vsel %vm915_vm5, %v1095_v49, 0.0  ;;  %v1097_v13 = vmul.f32 %v4423_v0, %v4423_v0 }
 0x18e   : > { %v1001_v60 = vsel %vm915_vm5, %v4360_v56, 0.0  ;;  %v1003_v61 = vsel %vm915_vm5, %v4423_v0, 0.0  ;;  %v1202_v3 = vsel %vm915_vm5, %v1096_v7, 0.0  ;;  %v1098_v5 = vmul.f32 %v4402_v43, %v4402_v43 }
 0x18f   : > { %v992_v42 = vadd.f32 %v991_v19, %v990_v30  ;;  %v1191_v29 = vadd.f32 %v1190_v33, %v1189_v27  ;;  %v1204_v9 = vsel %vm915_vm5, %v1097_v13, 0.0  ;;  %v1099_v31 = vmul.f32 %v4465_v53, %v4465_v53 }
 0x190   : > { %v1005_v56 = vsel %vm915_vm5, %v4402_v43, 0.0  ;;  %v1007_v0 = vsel %vm915_vm5, %v4465_v53, 0.0  ;;  %v1206_v10 = vsel %vm915_vm5, %v1098_v5, 0.0  ;;  %v1100_v59 = vmul.f32 %v4444_v15, %v4444_v15 }
 0x191   : > { %v1193_v36 = vadd.f32 %v1192_v38, %v1191_v29  ;;  %v994_v46 = vadd.f32 %v993_v22, %v992_v42  ;;  %v1208_v12 = vsel %vm915_vm5, %v1099_v31, 0.0  ;;  %v1101_v19 = vmul.f32 %v4494_v28, %v4494_v28 }
 0x192   : > { %v1009_v43 = vsel %vm915_vm5, %v4444_v15, 0.0  ;;  %v1011_v53 = vsel %vm915_vm5, %v4494_v28, 0.0  ;;  %v1210_v58 = vsel %vm915_vm5, %v1100_v59, 0.0  ;;  %v1102_v42 = vmul.f32 %v4488_v23, %v4488_v23 }
 0x193   : > { %v996_v52 = vadd.f32 %v995_v39, %v994_v46  ;;  %v1195_v50 = vadd.f32 %v1194_v54, %v1193_v36  ;;  %v1212_v29 = vsel %vm915_vm5, %v1101_v19, 0.0  ;;  %v1103_v22 = vmul.f32 %v4518_v8, %v4518_v8 }
 0x194   : > { %v1013_v15 = vsel %vm915_vm5, %v4488_v23, 0.0  ;;  %v1015_v28 = vsel %vm915_vm5, %v4518_v8, 0.0  ;;  %v1214_v46 = vsel %vm915_vm5, %v1102_v42, 0.0  ;;  %v1017_v23 = vsel %vm915_vm5, %v4514_v24, 0.0 }
 0x195   : > { %v1197_v11 = vadd.f32 %v1196_v48, %v1195_v50  ;;  %v998_v18 = vadd.f32 %v997_v57, %v996_v52  ;;  %v1104_v48 = vmul.f32 %v4514_v24, %v4514_v24  ;;  %v1216_v49 = vsel %vm915_vm5, %v1103_v22, 0.0 }
 0x196   : > { %v1105_v52 = vmul.f32 %v4526_v51, %v4526_v51  ;;  %v1019_v8 = vsel %vm915_vm5, %v4526_v51, 0.0  ;;  %v1021_v24 = vsel %vm915_vm5, %v4522_v47, 0.0  ;;  %v1023_v51 = vsel %vm915_vm5, %v4560_v34, 0.0 }
 0x197   : > { %v1000_v17 = vadd.f32 %v999_v6, %v998_v18  ;;  %v1199_v16 = vadd.f32 %v1198_v41, %v1197_v11  ;;  %v1218_v18 = vsel %vm915_vm5, %v1104_v48, 0.0  ;;  %v1106_v41 = vmul.f32 %v4522_v47, %v4522_v47 }
 0x198   : > { %v1220_v7 = vsel %vm915_vm5, %v1105_v52, 0.0  ;;  %v1025_v47 = vsel %vm915_vm5, %v4554_v4, 0.0 }
 0x199   : > { %v1201_v62 = vadd.f32 %v1200_v25, %v1199_v16  ;;  %v1002_v63 = vadd.f32 %v1001_v60, %v1000_v17  ;;  %v1107_v25 = vmul.f32 %v4560_v34, %v4560_v34  ;;  %v1027_v34 = vsel %vm915_vm5, %v4568_v37, 0.0 }
 0x19b   : > { %v1004_v21 = vadd.f32 %v1003_v61, %v1002_v63  ;;  %v1203_v44 = vadd.f32 %v1202_v3, %v1201_v62  ;;  %v1222_v61 = vsel %vm915_vm5, %v1106_v41, 0.0  ;;  %v1108_v62 = vmul.f32 %v4554_v4, %v4554_v4 }
 0x19c   : > { %v1224_v63 = vsel %vm915_vm5, %v1107_v25, 0.0  ;;  %v1109_v3 = vmul.f32 %v4568_v37, %v4568_v37  ;;  %v1029_v4 = vsel %vm915_vm5, %v4564_v14, 0.0  ;;  %v1031_v37 = vsel %vm915_vm5, %v4600_v32, 0.0 }
 0x19d   : > { %v1205_v55 = vadd.f32 %v1204_v9, %v1203_v44  ;;  %v1006_v1 = vadd.f32 %v1005_v56, %v1004_v21  ;;  %v1226_v44 = vsel %vm915_vm5, %v1108_v62, 0.0  ;;  %v1110_v56 = vmul.f32 %v4564_v14, %v4564_v14 }
 0x19e   : > { %v1033_v14 = vsel %vm915_vm5, %v4596_v26, 0.0 }
 0x19f   : > { %v1008_v27 = vadd.f32 %v1007_v0, %v1006_v1  ;;  %v1207_v30 = vadd.f32 %v1206_v10, %v1205_v55  ;;  %v1228_v0 = vsel %vm915_vm5, %v1109_v3, 0.0  ;;  %v1111_v55 = vmul.f32 %v4600_v32, %v4600_v32 }
 0x1a0   : > { %v1230_v19 = vsel %vm915_vm5, %v1110_v56, 0.0  ;;  %v1035_v32 = vsel %vm915_vm5, %v4615_v20, 0.0 }
 0x1a1   : > { %v1209_v33 = vadd.f32 %v1208_v12, %v1207_v30  ;;  %v1010_v38 = vadd.f32 %v1009_v43, %v1008_v27  ;;  %v1112_v27 = vmul.f32 %v4596_v26, %v4596_v26  ;;  %v1232_v30 = vsel %vm915_vm5, %v1111_v55, 0.0 }
 0x1a2   : > { %v1113_v43 = vmul.f32 %v4615_v20, %v4615_v20  ;;  %v1037_v26 = vsel %vm915_vm5, %v4604_v2, 0.0  ;;  %v1039_v20 = vsel %vm915_vm5, %v4642_v35, 0.0 }
 0x1a3   : > { %v1012_v39 = vadd.f32 %v1011_v53, %v1010_v38  ;;  %v1211_v54 = vadd.f32 %v1210_v58, %v1209_v33  ;;  %v1234_v42 = vsel %vm915_vm5, %v1112_v27, 0.0 }
 0x1a4   : > { %v1236_v22 = vsel %vm915_vm5, %v1113_v43, 0.0 }
 0x1a5   : > { %v1213_v36 = vadd.f32 %v1212_v29, %v1211_v54  ;;  %v1014_v45 = vadd.f32 %v1013_v15, %v1012_v39  ;;  %v1114_v29 = vmul.f32 %v4604_v2, %v4604_v2  ;;  %v1115_v39 = vmul.f32 %v4642_v35, %v4642_v35 }
 0x1a7   : > { %v1016_v50 = vadd.f32 %v1015_v28, %v1014_v45  ;;  %v1215_v57 = vadd.f32 %v1214_v46, %v1213_v36  ;;  %v1238_v45 = vsel %vm915_vm5, %v1114_v29, 0.0  ;;  %v1116_v46 = vmul.f32 %v4638_v40, %v4638_v40 }
 0x1a8   : > { %v1240_v48 = vsel %vm915_vm5, %v1115_v39, 0.0 }
 0x1a9   : > { %v1217_v6 = vadd.f32 %v1216_v49, %v1215_v57  ;;  %v1018_v11 = vadd.f32 %v1017_v23, %v1016_v50  ;;  %v1041_v50 = vsel %vm915_vm5, %v4638_v40, 0.0  ;;  %v1242_v2 = vsel %vm915_vm5, %v1116_v46, 0.0 }
 0x1ab   : > { %v1020_v13 = vadd.f32 %v1019_v8, %v1018_v11  ;;  %v1219_v17 = vadd.f32 %v1218_v18, %v1217_v6 }
 0x1ad   : > { %v1221_v16 = vadd.f32 %v1220_v7, %v1219_v17  ;;  %v1022_v60 = vadd.f32 %v1021_v24, %v1020_v13  ;;  %v914_v24 = vld [vmem:[#allocation2] sm:$0x1] }
 0x1af   : > { %v1024_v5 = vadd.f32 %v1023_v51, %v1022_v60  ;;  %v1223_v9 = vadd.f32 %v1222_v61, %v1221_v16  ;;  %v1052_v60 = vld [vmem:[#allocation3] sm:$0x1] }
 0x1b1   : > { %v1225_v31 = vadd.f32 %v1224_v63, %v1223_v9  ;;  %v1026_v21 = vadd.f32 %v1025_v47, %v1024_v5 }
 0x1b3   : > { %v1028_v1 = vadd.f32 %v1027_v34, %v1026_v21  ;;  %v1227_v10 = vadd.f32 %v1226_v44, %v1225_v31 }
 0x1b5   : > { %v1229_v59 = vadd.f32 %v1228_v0, %v1227_v10  ;;  %v1030_v12 = vadd.f32 %v1029_v4, %v1028_v1 }
 0x1b7   : > { %v1032_v53 = vadd.f32 %v1031_v37, %v1030_v12  ;;  %v1231_v33 = vadd.f32 %v1230_v19, %v1229_v59 }
 0x1b9   : > { %v1233_v38 = vadd.f32 %v1232_v30, %v1231_v33  ;;  %v1034_v58 = vadd.f32 %v1033_v14, %v1032_v53 }
 0x1bb   : > { %v1036_v54 = vadd.f32 %v1035_v32, %v1034_v58  ;;  %v1235_v15 = vadd.f32 %v1234_v42, %v1233_v38 }
 0x1bd   : > { %v1237_v28 = vadd.f32 %v1236_v22, %v1235_v15  ;;  %v1038_v36 = vadd.f32 %v1037_v26, %v1036_v54 }
 0x1bf   : > { %v1040_v49 = vadd.f32 %v1039_v20, %v1038_v36  ;;  %v1239_v52 = vadd.f32 %v1238_v45, %v1237_v28 }
 0x1c1   : > { %v1042_v57 = vadd.f32 %v1041_v50, %v1040_v49  ;;  %v1241_v23 = vadd.f32 %v1240_v48, %v1239_v52 }
 0x1c3   : > { %v1043_v8 = vrot.slane %v1042_v57, 4  ;;  %v1243_v35 = vadd.f32 %v1242_v2, %v1241_v23 }
 0x1c5   : > { %v1044_v6 = vadd.f32 %v1043_v8, %v1042_v57  ;;  %v1244_v11 = vrot.slane %v1243_v35, 4 }
 0x1c7   : > { %v1045_v18 = vrot.slane %v1044_v6, 2  ;;  %v1245_v41 = vadd.f32 %v1244_v11, %v1243_v35 }
 0x1c9   : > { %v1046_v7 = vadd.f32 %v1045_v18, %v1044_v6  ;;  %v1246_v25 = vrot.slane %v1245_v41, 2 }
 0x1cb   : > { %v1047_v13 = vrot.slane %v1046_v7, 1  ;;  %v1247_v17 = vadd.f32 %v1246_v25, %v1245_v41 }
 0x1cd   : > { %v1048_v51 = vadd.f32 %v1047_v13, %v1046_v7  ;;  %v1248_v16 = vrot.slane %v1247_v17, 1  ;;  %1321 = sbr.rel (%p3540_p10) target bundleno = 885 (0x375), region = 60 }
 0x1cf   : > { %v1049_v40 = vadd.f32 %v1048_v51, %v914_v24  ;;  %v1249_v61 = vadd.f32 %v1248_v16, %v1247_v17 }
 0x1d1   : > { %1051 = vst.msk [vmem:[#allocation2] sm:$0x1] %vm1050_vm6, %v1049_v40  ;;  %v1250_v62 = vadd.f32 %v1249_v61, %v1052_v60 }
 0x1d3   : > { %1251 = vst.msk [vmem:[#allocation3] sm:$0x1] %vm1050_vm6, %v1250_v62 }
 0x1d4   : > { %v1587_v5 = vlaneseq  ;;  %v4767_v21 = vld [vmem:[%s7717_s5] sm:$0xff]  ;;  %v4772_v44 = vld [vmem:[%s7717_s5 + $0x8] sm:$0xff]  ;;  %v4777_v56 = vld [vmem:[%s7717_s5 + $0x10] sm:$0xff] }
 0x1d5   : > { %v4782_v0 = vld [vmem:[%s7717_s5 + $0x18] sm:$0xff]  ;;  %v4788_v1 = vld [vmem:[%s7717_s5 + $0x20] sm:$0xff]  ;;  %v4793_v10 = vld [vmem:[%s7717_s5 + $0x28] sm:$0xff] }
 0x1d6   : > { %v4762_v34 = vshrl.u32 %v1587_v5, 7  ;;  %v4798_v4 = vld [vmem:[%s7717_s5 + $0x30] sm:$0xff]  ;;  %v4803_v59 = vld [vmem:[%s7717_s5 + $0x38] sm:$0xff]  ;;  %v4808_v12 = vld [vmem:[%s7717_s5 + $0x40] sm:$0xff] }
 0x1d7   : > { %v4813_v19 = vld [vmem:[%s7717_s5 + $0x48] sm:$0xff]  ;;  %v4818_v27 = vld [vmem:[%s7717_s5 + $0x50] sm:$0xff]  ;;  %v4827_v43 = vld [vmem:[%s7717_s5 + $0x58] sm:$0xff] }
 0x1d8   : > { %v1322_v63 = vld [vmem:[#allocation2] sm:$0x1]  ;;  %v7720_v55 = vsub.s32 0, %v4762_v34  ;;  %v4837_v33 = vld [vmem:[%s7717_s5 + $0x68] sm:$0xff]  ;;  %v4842_v14 = vld [vmem:[%s7717_s5 + $0x70] sm:$0xff]  ;;  %v7752_v15 = vsub.s32 0, %v4762_v34 }
 0x1d9   : > { %v1323_v9 = vmul.f32 0.00048828125, %v1322_v63  ;;  %v4832_v53 = vld [vmem:[%s7717_s5 + $0x60] sm:$0xff]  ;;  %v4847_v38 = vld [vmem:[%s7717_s5 + $0x78] sm:$0xff]  ;;  %v4857_v42 = vld [vmem:[%s7717_s5 + $0x88] sm:$0xff] }
 0x1da   : > { %v1324_v3 = vld [vmem:[#allocation3] sm:$0x1]  ;;  %v4862_v29 = vld [vmem:[%s7717_s5 + $0x90] sm:$0xff]  ;;  %v4875_v26 = vld [vmem:[%s7717_s5 + $0x98] sm:$0xff] }
 0x1db   : > { %v1325_v47 = vmul.f32 0.00048828125, %v1324_v3  ;;  %v1326_v31 = vmul.f32 %v1323_v9, %v1323_v9  ;;  %v4822_v30 = vrot.slane %v1323_v9, %v7720_v55  ;;  %v4852_v58 = vld [vmem:[%s7717_s5 + $0x80] sm:$0xff]  ;;  %v4885_v28 = vld [vmem:[%s7717_s5 + $0xa8] sm:$0xff]  ;;  %v4896_v48 = vld [vmem:[%s7717_s5 + $0xb0] sm:$0xff] }
 0x1dc   : > { %v4880_v20 = vld [vmem:[%s7717_s5 + $0xa0] sm:$0xff]  ;;  %v4901_v49 = vld [vmem:[%s7717_s5 + $0xb8] sm:$0xff]  ;;  %v4919_v8 = vld [vmem:[%s7717_s5 + $0xc8] sm:$0xff] }
 0x1dd   : > { %v1327_v37 = vsub.f32 %v1325_v47, %v1326_v31  ;;  %v4906_v52 = vld [vmem:[%s7717_s5 + $0xc0] sm:$0xff]  ;;  %v4924_v35 = vld [vmem:[%s7717_s5 + $0xd0] sm:$0xff]  ;;  %v4929_v6 = vld [vmem:[%s7717_s5 + $0xd8] sm:$0xff]  ;;  %v7756_v34 = vsub.f32 %v4782_v0, %v4822_v30  ;;  %v7760_v0 = vsub.f32 %v4803_v59, %v4822_v30 }
 0x1de   : > { %v4942_v25 = vld [vmem:[%s7717_s5 + $0xe0] sm:$0xff]  ;;  %v4947_v13 = vld [vmem:[%s7717_s5 + $0xe8] sm:$0xff]  ;;  %v4952_v17 = vld [vmem:[%s7717_s5 + $0xf0] sm:$0xff] }
 0x1df   : > { %v1328_v32 = vadd.f32 1e-05, %v1327_v37  ;;  %v4965_v40 = vld [vmem:[%s7717_s5 + $0xf8] sm:$0xff]  ;;  %v4970_v61 = vld [vmem:[%s7717_s5 + $0x100] sm:$0xff]  ;;  %v4975_v62 = vld [vmem:[%s7717_s5 + $0x108] sm:$0xff] }
 0x1e0   : > { %v4988_v47 = vld [vmem:[%s7717_s5 + $0x110] sm:$0xff]  ;;  %v4993_v31 = vld [vmem:[%s7717_s5 + $0x118] sm:$0xff]  ;;  %v4998_v37 = vld [vmem:[%s7717_s5 + $0x120] sm:$0xff] }
 0x1e1   : > { %3771 = vrsqrt.f32 %v1328_v32  ;;  %v5011_v63 = vld [vmem:[%s7717_s5 + $0x128] sm:$0xff]  ;;  %v5016_v60 = vld [vmem:[%s7717_s5 + $0x130] sm:$0xff]  ;;  %v5021_v9 = vld [vmem:[%s7717_s5 + $0x138] sm:$0xff] }
 0x1e2   : > { %v1848_v32 = vld [vmem:[#allocation6] sm:$0x1]  ;;  %v5039_v7 = vld [vmem:[%s7717_s5 + $0x148] sm:$0xff]  ;;  %v5044_v3 = vld [vmem:[%s7717_s5 + $0x150] sm:$0xff] }
 0x1e3   : > { %v5034_v24 = vld [vmem:[%s7717_s5 + $0x140] sm:$0xff]  ;;  %v5057_v18 = vld [vmem:[%s7717_s5 + $0x158] sm:$0xff]  ;;  %v5067_v51 = vld [vmem:[%s7717_s5 + $0x168] sm:$0xff] }
 0x1e4   : > { %v5062_v11 = vld [vmem:[%s7717_s5 + $0x160] sm:$0xff]  ;;  %v5080_v23 = vld [vmem:[%s7717_s5 + $0x170] sm:$0xff]  ;;  %v5085_v57 = vld [vmem:[%s7717_s5 + $0x178] sm:$0xff] }
 0x1e5   : > { %7741 = vst [vmem:[#allocation11_spill] sm:$0xff] %v5080_v23  ;;  %7742 = vst [vmem:[#allocation12_spill] sm:$0xff] %v5085_v57  ;;  %v5090_v41 = vld [vmem:[%s7717_s5 + $0x180] sm:$0xff]  ;;  %v5103_v46 = vld [vmem:[%s7717_s5 + $0x188] sm:$0xff] }
 0x1e6   : > { %7743 = vst [vmem:[#allocation13_spill] sm:$0xff] %v5090_v41  ;;  %7744 = vst [vmem:[#allocation14_spill] sm:$0xff] %v5103_v46  ;;  %v5108_v45 = vld [vmem:[%s7717_s5 + $0x190] sm:$0xff]  ;;  %v5113_v2 = vld [vmem:[%s7717_s5 + $0x198] sm:$0xff] }
 0x1e7   : > { %7745 = vst [vmem:[#allocation15_spill] sm:$0xff] %v5108_v45  ;;  %7746 = vst [vmem:[#allocation16_spill] sm:$0xff] %v5113_v2  ;;  %v5126_v54 = vld [vmem:[%s7717_s5 + $0x1a0] sm:$0xff]  ;;  %v5131_v39 = vld [vmem:[%s7717_s5 + $0x1a8] sm:$0xff]  ;;  %v7755_v45 = vsub.f32 %v4777_v56, %v4822_v30  ;;  %v7759_v56 = vsub.f32 %v4798_v4, %v4822_v30 }
 0x1e8   : > { %7747 = vst [vmem:[#allocation17_spill] sm:$0xff] %v5126_v54  ;;  %7748 = vst [vmem:[#allocation18_spill] sm:$0xff] %v5131_v39  ;;  %v5136_v50 = vld [vmem:[%s7717_s5 + $0x1b0] sm:$0xff]  ;;  %v5147_v55 = vld [vmem:[%s7717_s5 + $0x1b8] sm:$0xff]  ;;  %v7754_v54 = vsub.f32 %v4772_v44, %v4822_v30  ;;  %v7758_v44 = vsub.f32 %v4793_v10, %v4822_v30 }
 0x1e9   : > { %v5152_v23 = vld [vmem:[%s7717_s5 + $0x1c0] sm:$0xff]  ;;  %v5170_v46 = vld [vmem:[%s7717_s5 + $0x1d0] sm:$0xff]  ;;  %v5175_v41 = vld [vmem:[%s7717_s5 + $0x1d8] sm:$0xff] }
 0x1ea   : > { %7749 = vst [vmem:[#allocation19_spill] sm:$0xff] %v5170_v46  ;;  %7750 = vst [vmem:[#allocation20_spill] sm:$0xff] %v5175_v41  ;;  %v5180_v22 = vld [vmem:[%s7717_s5 + $0x1e0] sm:$0xff] }
 0x1eb   : > { %v3772_v16 = vpop.eup %3771  ;;  %7751 = vst [vmem:[#allocation21_spill] sm:$0xff] %v5180_v22  ;;  %v5192_v2 = vld [vmem:[#allocation8] ss:$0 sm:$0xff] }
 0x1ec   : > { %v1849_v5 = vmul.f32 %v3772_v16, %v1848_v32  ;;  %v5157_v16 = vld [vmem:[%s7717_s5 + $0x1c8] sm:$0xff] }
 0x1ee   : > { %v5184_v32 = vrot.slane %v1849_v5, %v7752_v15  ;;  %v7753_v5 = vsub.f32 %v4767_v21, %v4822_v30  ;;  %v7757_v21 = vsub.f32 %v4788_v1, %v4822_v30 }
 0x1f0   : > { %v1856_v39 = vmul.f32 %v5184_v32, %v7753_v5  ;;  %v1857_v36 = vmul.f32 %v5184_v32, %v7754_v54  ;;  %v1858_v57 = vmul.f32 %v5184_v32, %v7755_v45  ;;  %v1859_v15 = vmul.f32 %v5184_v32, %v7756_v34 }
 0x1f1   : > { %v1860_v5 = vmul.f32 %v5184_v32, %v7757_v21  ;;  %v1861_v54 = vmul.f32 %v5184_v32, %v7758_v44  ;;  %v1862_v45 = vmul.f32 %v5184_v32, %v7759_v56  ;;  %v1863_v34 = vmul.f32 %v5184_v32, %v7760_v0 }
 0x1f2   : > { %v2119_v22 = vadd.f32 %v5192_v2, %v1856_v39  ;;  %v2120_v1 = vadd.f32 %v5192_v2, %v1857_v36  ;;  %v2121_v21 = vadd.f32 %v5192_v2, %v1858_v57  ;;  %v2122_v10 = vadd.f32 %v5192_v2, %v1859_v15 }
 0x1f3   : > { %v2123_v44 = vadd.f32 %v5192_v2, %v1860_v5  ;;  %v2124_v41 = vadd.f32 %v5192_v2, %v1861_v54  ;;  %v2125_v4 = vadd.f32 %v5192_v2, %v1862_v45  ;;  %v2126_v56 = vadd.f32 %v5192_v2, %v1863_v34 }
 0x1f4   : > { %vm2375_vm7 = vcmp.ge.f32.partialorder %v2119_v22, 0.0  ;;  %v2631_v59 = vmul.f32 0.01, %v2119_v22  ;;  %vm2376_vm8 = vcmp.ge.f32.partialorder %v2120_v1, 0.0  ;;  %v2632_v0 = vmul.f32 0.01, %v2120_v1 }
 0x1f5   : > { %vm2377_vm9 = vcmp.ge.f32.partialorder %v2121_v21, 0.0  ;;  %v2633_v39 = vmul.f32 0.01, %v2121_v21  ;;  %vm2378_vm10 = vcmp.ge.f32.partialorder %v2122_v10, 0.0  ;;  %v2634_v36 = vmul.f32 0.01, %v2122_v10 }
 0x1f6   : > { %v2887_v46 = vsel %vm2375_vm7, %v2119_v22, %v2631_v59  ;;  %v2888_v57 = vsel %vm2376_vm8, %v2120_v1, %v2632_v0  ;;  %vm2379_vm11 = vcmp.ge.f32.partialorder %v2123_v44, 0.0  ;;  %v2635_v15 = vmul.f32 0.01, %v2123_v44 }
 0x1f7   : > { %3143 = vst.msk [vmem:[%s7717_s5] sm:$0xff] %vm915_vm5, %v2887_v46  ;;  %3144 = vst.msk [vmem:[%s7717_s5 + $0x8] sm:$0xff] %vm915_vm5, %v2888_v57  ;;  %v2889_v5 = vsel %vm2377_vm9, %v2121_v21, %v2633_v39  ;;  %v2890_v54 = vsel %vm2378_vm10, %v2122_v10, %v2634_v36  ;;  %vm2380_vm12 = vcmp.ge.f32.partialorder %v2124_v41, 0.0  ;;  %v2636_v45 = vmul.f32 0.01, %v2124_v41 }
 0x1f8   : > { %3145 = vst.msk [vmem:[%s7717_s5 + $0x10] sm:$0xff] %vm915_vm5, %v2889_v5  ;;  %3146 = vst.msk [vmem:[%s7717_s5 + $0x18] sm:$0xff] %vm915_vm5, %v2890_v54  ;;  %v2891_v22 = vsel %vm2379_vm11, %v2123_v44, %v2635_v15  ;;  %vm2381_vm13 = vcmp.ge.f32.partialorder %v2125_v4, 0.0  ;;  %v2637_v46 = vmul.f32 0.01, %v2125_v4  ;;  %vm2382_vm14 = vcmp.ge.f32.partialorder %v2126_v56, 0.0 }
 0x1f9   : > { %3147 = vst.msk [vmem:[%s7717_s5 + $0x20] sm:$0xff] %vm915_vm5, %v2891_v22  ;;  %v2892_v34 = vsel %vm2380_vm12, %v2124_v41, %v2636_v45  ;;  %v2638_v1 = vmul.f32 0.01, %v2126_v56  ;;  %v7761_v21 = vsub.f32 %v4808_v12, %v4822_v30  ;;  %v7762_v59 = vsub.f32 %v4813_v19, %v4822_v30 }
 0x1fa   : > { %3148 = vst.msk [vmem:[%s7717_s5 + $0x28] sm:$0xff] %vm915_vm5, %v2892_v34  ;;  %v2893_v0 = vsel %vm2381_vm13, %v2125_v4, %v2637_v46  ;;  %v7763_v41 = vsub.f32 %v4818_v27, %v4822_v30  ;;  %v7764_v12 = vsub.f32 %v4827_v43, %v4822_v30  ;;  %v7765_v19 = vsub.f32 %v4832_v53, %v4822_v30 }
 0x1fb   : > { %v1864_v10 = vmul.f32 %v5184_v32, %v7761_v21  ;;  %v1865_v44 = vmul.f32 %v5184_v32, %v7762_v59  ;;  %3149 = vst.msk [vmem:[%s7717_s5 + $0x30] sm:$0xff] %vm915_vm5, %v2893_v0  ;;  %v2894_v4 = vsel %vm2382_vm14, %v2126_v56, %v2638_v1  ;;  %v7766_v43 = vsub.f32 %v4837_v33, %v4822_v30 }
 0x1fc   : > { %v1866_v39 = vmul.f32 %v5184_v32, %v7763_v41  ;;  %v1867_v36 = vmul.f32 %v5184_v32, %v7764_v12  ;;  %v1868_v57 = vmul.f32 %v5184_v32, %v7765_v19  ;;  %3150 = vst.msk [vmem:[%s7717_s5 + $0x38] sm:$0xff] %vm915_vm5, %v2894_v4  ;;  %v7767_v45 = vsub.f32 %v4842_v14, %v4822_v30 }
 0x1fd   : > { %v2127_v27 = vadd.f32 %v5192_v2, %v1864_v10  ;;  %v2128_v15 = vadd.f32 %v5192_v2, %v1865_v44  ;;  %v1869_v5 = vmul.f32 %v5184_v32, %v7766_v43  ;;  %v7768_v12 = vsub.f32 %v4847_v38, %v4822_v30 }
 0x1fe   : > { %v2129_v53 = vadd.f32 %v5192_v2, %v1866_v39  ;;  %v2130_v54 = vadd.f32 %v5192_v2, %v1867_v36  ;;  %v2131_v56 = vadd.f32 %v5192_v2, %v1868_v57  ;;  %v1870_v22 = vmul.f32 %v5184_v32, %v7767_v45 }
 0x1ff   : > { %vm2383_vm15 = vcmp.ge.f32.partialorder %v2127_v27, 0.0  ;;  %v2639_v33 = vmul.f32 0.01, %v2127_v27  ;;  %vm2384_vm0 = vcmp.ge.f32.partialorder %v2128_v15, 0.0  ;;  %v2640_v46 = vmul.f32 0.01, %v2128_v15 }
 0x200   : > { %vm2385_vm1 = vcmp.ge.f32.partialorder %v2129_v53, 0.0  ;;  %v2641_v34 = vmul.f32 0.01, %v2129_v53  ;;  %vm2386_vm2 = vcmp.ge.f32.partialorder %v2130_v54, 0.0  ;;  %v2642_v1 = vmul.f32 0.01, %v2130_v54 }
 0x201   : > { %v2895_v21 = vsel %vm2383_vm15, %v2127_v27, %v2639_v33  ;;  %v2896_v10 = vsel %vm2384_vm0, %v2128_v15, %v2640_v46  ;;  %vm2387_vm3 = vcmp.ge.f32.partialorder %v2131_v56, 0.0  ;;  %v2643_v59 = vmul.f32 0.01, %v2131_v56 }
 0x202   : > { %3151 = vst.msk [vmem:[%s7717_s5 + $0x40] sm:$0xff] %vm915_vm5, %v2895_v21  ;;  %3152 = vst.msk [vmem:[%s7717_s5 + $0x48] sm:$0xff] %vm915_vm5, %v2896_v10  ;;  %v2897_v14 = vsel %vm2385_vm1, %v2129_v53, %v2641_v34  ;;  %v2898_v44 = vsel %vm2386_vm2, %v2130_v54, %v2642_v1  ;;  %v2132_v0 = vadd.f32 %v5192_v2, %v1869_v5 }
 0x203   : > { %v2133_v41 = vadd.f32 %v5192_v2, %v1870_v22  ;;  %3153 = vst.msk [vmem:[%s7717_s5 + $0x50] sm:$0xff] %vm915_vm5, %v2897_v14  ;;  %3154 = vst.msk [vmem:[%s7717_s5 + $0x58] sm:$0xff] %vm915_vm5, %v2898_v44  ;;  %v2899_v39 = vsel %vm2387_vm3, %v2131_v56, %v2643_v59  ;;  %v1871_v36 = vmul.f32 %v5184_v32, %v7768_v12 }
 0x204   : > { %v7769_v19 = vsub.f32 %v4852_v58, %v4822_v30  ;;  %v7770_v4 = vsub.f32 %v4857_v42, %v4822_v30  ;;  %3155 = vst.msk [vmem:[%s7717_s5 + $0x60] sm:$0xff] %vm915_vm5, %v2899_v39  ;;  %vm2388_vm4 = vcmp.ge.f32.partialorder %v2132_v0, 0.0  ;;  %v2644_v15 = vmul.f32 0.01, %v2132_v0 }
 0x205   : > { %vm2389_vm6 = vcmp.ge.f32.partialorder %v2133_v41, 0.0  ;;  %v2645_v38 = vmul.f32 0.01, %v2133_v41  ;;  %v2134_v43 = vadd.f32 %v5192_v2, %v1871_v36  ;;  %v7771_v42 = vsub.f32 %v4862_v29, %v4822_v30 }
 0x206   : > { %v1872_v57 = vmul.f32 %v5184_v32, %v7769_v19  ;;  %v1873_v27 = vmul.f32 %v5184_v32, %v7770_v4  ;;  %v2900_v54 = vsel %vm2388_vm4, %v2132_v0, %v2644_v15  ;;  %v7772_v45 = vsub.f32 %v4875_v26, %v4822_v30 }
 0x207   : > { %v1874_v53 = vmul.f32 %v5184_v32, %v7771_v42  ;;  %v2901_v56 = vsel %vm2389_vm6, %v2133_v41, %v2645_v38  ;;  %v7773_v33 = vsub.f32 %v4880_v20, %v4822_v30  ;;  %3156 = vst.msk [vmem:[%s7717_s5 + $0x68] sm:$0xff] %vm915_vm5, %v2900_v54  ;;  %vm2390_vm7 = vcmp.ge.f32.partialorder %v2134_v43, 0.0 }
 0x208   : > { %v2135_v58 = vadd.f32 %v5192_v2, %v1872_v57  ;;  %v2136_v5 = vadd.f32 %v5192_v2, %v1873_v27  ;;  %v1875_v22 = vmul.f32 %v5184_v32, %v7772_v45  ;;  %3157 = vst.msk [vmem:[%s7717_s5 + $0x70] sm:$0xff] %vm915_vm5, %v2901_v56  ;;  %v2646_v29 = vmul.f32 0.01, %v2134_v43 }
 0x209   : > { %v1876_v46 = vmul.f32 %v5184_v32, %v7773_v33  ;;  %v2137_v20 = vadd.f32 %v5192_v2, %v1874_v53  ;;  %v7774_v14 = vsub.f32 %v4885_v28, %v4822_v30  ;;  %v7775_v19 = vsub.f32 %v4896_v48, %v4822_v30 }
 0x20a   : > { %vm2391_vm8 = vcmp.ge.f32.partialorder %v2135_v58, 0.0  ;;  %v2647_v26 = vmul.f32 0.01, %v2135_v58  ;;  %vm2392_vm9 = vcmp.ge.f32.partialorder %v2136_v5, 0.0  ;;  %v2648_v34 = vmul.f32 0.01, %v2136_v5 }
 0x20b   : > { %v2138_v1 = vadd.f32 %v5192_v2, %v1875_v22  ;;  %v2902_v21 = vsel %vm2390_vm7, %v2134_v43, %v2646_v29  ;;  %v2139_v59 = vadd.f32 %v5192_v2, %v1876_v46  ;;  %v1877_v44 = vmul.f32 %v5184_v32, %v7774_v14 }
 0x20c   : > { %v2903_v10 = vsel %vm2391_vm8, %v2135_v58, %v2647_v26  ;;  %3158 = vst.msk [vmem:[%s7717_s5 + $0x78] sm:$0xff] %vm915_vm5, %v2902_v21  ;;  %v2904_v0 = vsel %vm2392_vm9, %v2136_v5, %v2648_v34  ;;  %vm2393_vm10 = vcmp.ge.f32.partialorder %v2137_v20, 0.0  ;;  %v2649_v41 = vmul.f32 0.01, %v2137_v20 }
 0x20d   : > { %3159 = vst.msk [vmem:[%s7717_s5 + $0x80] sm:$0xff] %vm915_vm5, %v2903_v10  ;;  %vm2394_vm11 = vcmp.ge.f32.partialorder %v2138_v1, 0.0  ;;  %3160 = vst.msk [vmem:[%s7717_s5 + $0x88] sm:$0xff] %vm915_vm5, %v2904_v0  ;;  %v2650_v28 = vmul.f32 0.01, %v2138_v1  ;;  %vm2395_vm12 = vcmp.ge.f32.partialorder %v2139_v59, 0.0  ;;  %v2140_v12 = vadd.f32 %v5192_v2, %v1877_v44 }
 0x20e   : > { %v2651_v39 = vmul.f32 0.01, %v2139_v59  ;;  %v2905_v36 = vsel %vm2393_vm10, %v2137_v20, %v2649_v41  ;;  %v1878_v57 = vmul.f32 %v5184_v32, %v7775_v19  ;;  %v7776_v4 = vsub.f32 %v4901_v49, %v4822_v30 }
 0x20f   : > { %v7777_v15 = vsub.f32 %v4906_v52, %v4822_v30  ;;  %3161 = vst.msk [vmem:[%s7717_s5 + $0x90] sm:$0xff] %vm915_vm5, %v2905_v36  ;;  %v2906_v43 = vsel %vm2394_vm11, %v2138_v1, %v2650_v28  ;;  %vm2396_vm13 = vcmp.ge.f32.partialorder %v2140_v12, 0.0  ;;  %v2652_v48 = vmul.f32 0.01, %v2140_v12 }
 0x210   : > { %v1879_v27 = vmul.f32 %v5184_v32, %v7776_v4  ;;  %v2907_v58 = vsel %vm2395_vm12, %v2139_v59, %v2651_v39  ;;  %3162 = vst.msk [vmem:[%s7717_s5 + $0x98] sm:$0xff] %vm915_vm5, %v2906_v43  ;;  %v2141_v49 = vadd.f32 %v5192_v2, %v1878_v57  ;;  %v7778_v42 = vsub.f32 %v4919_v8, %v4822_v30 }
 0x211   : > { %v1880_v38 = vmul.f32 %v5184_v32, %v7777_v15  ;;  %3163 = vst.msk [vmem:[%s7717_s5 + $0xa0] sm:$0xff] %vm915_vm5, %v2907_v58  ;;  %v2908_v54 = vsel %vm2396_vm13, %v2140_v12, %v2652_v48  ;;  %v7779_v56 = vsub.f32 %v4924_v35, %v4822_v30  ;;  %v7780_v22 = vsub.f32 %v4929_v6, %v4822_v30 }
 0x212   : > { %v2142_v52 = vadd.f32 %v5192_v2, %v1879_v27  ;;  %v1881_v53 = vmul.f32 %v5184_v32, %v7778_v42  ;;  %v7781_v46 = vsub.f32 %v4942_v25, %v4822_v30  ;;  %3164 = vst.msk [vmem:[%s7717_s5 + $0xa8] sm:$0xff] %vm915_vm5, %v2908_v54  ;;  %vm2397_vm14 = vcmp.ge.f32.partialorder %v2141_v49, 0.0 }
 0x213   : > { %v2143_v5 = vadd.f32 %v5192_v2, %v1880_v38  ;;  %v1882_v45 = vmul.f32 %v5184_v32, %v7779_v56  ;;  %v1883_v33 = vmul.f32 %v5184_v32, %v7780_v22  ;;  %v2653_v8 = vmul.f32 0.01, %v2141_v49 }
 0x214   : > { %v1884_v29 = vmul.f32 %v5184_v32, %v7781_v46  ;;  %vm2398_vm15 = vcmp.ge.f32.partialorder %v2142_v52, 0.0  ;;  %v2654_v35 = vmul.f32 0.01, %v2142_v52  ;;  %v2144_v6 = vadd.f32 %v5192_v2, %v1881_v53 }
 0x215   : > { %vm2399_vm0 = vcmp.ge.f32.partialorder %v2143_v5, 0.0  ;;  %v2655_v26 = vmul.f32 0.01, %v2143_v5  ;;  %v2145_v34 = vadd.f32 %v5192_v2, %v1882_v45  ;;  %v2909_v20 = vsel %vm2397_vm14, %v2141_v49, %v2653_v8 }
 0x216   : > { %v2910_v1 = vsel %vm2398_vm15, %v2142_v52, %v2654_v35  ;;  %v2146_v25 = vadd.f32 %v5192_v2, %v1883_v33  ;;  %v2147_v21 = vadd.f32 %v5192_v2, %v1884_v29  ;;  %3165 = vst.msk [vmem:[%s7717_s5 + $0xb0] sm:$0xff] %vm915_vm5, %v2909_v20  ;;  %vm2400_vm1 = vcmp.ge.f32.partialorder %v2144_v6, 0.0 }
 0x217   : > { %3166 = vst.msk [vmem:[%s7717_s5 + $0xb8] sm:$0xff] %vm915_vm5, %v2910_v1  ;;  %v2911_v10 = vsel %vm2399_vm0, %v2143_v5, %v2655_v26  ;;  %v2656_v59 = vmul.f32 0.01, %v2144_v6  ;;  %vm2401_vm2 = vcmp.ge.f32.partialorder %v2145_v34, 0.0  ;;  %v2657_v14 = vmul.f32 0.01, %v2145_v34 }
 0x218   : > { %3167 = vst.msk [vmem:[%s7717_s5 + $0xc0] sm:$0xff] %vm915_vm5, %v2911_v10  ;;  %vm2402_vm3 = vcmp.ge.f32.partialorder %v2146_v25, 0.0  ;;  %v2658_v44 = vmul.f32 0.01, %v2146_v25  ;;  %vm2403_vm4 = vcmp.ge.f32.partialorder %v2147_v21, 0.0  ;;  %v7782_v28 = vsub.f32 %v4947_v13, %v4822_v30 }
 0x219   : > { %v2912_v0 = vsel %vm2400_vm1, %v2144_v6, %v2656_v59  ;;  %v2659_v41 = vmul.f32 0.01, %v2147_v21  ;;  %v7783_v12 = vsub.f32 %v4952_v17, %v4822_v30  ;;  %v2913_v19 = vsel %vm2401_vm2, %v2145_v34, %v2657_v14 }
 0x21a   : > { %v1885_v39 = vmul.f32 %v5184_v32, %v7782_v28  ;;  %3168 = vst.msk [vmem:[%s7717_s5 + $0xc8] sm:$0xff] %vm915_vm5, %v2912_v0  ;;  %v2914_v57 = vsel %vm2402_vm3, %v2146_v25, %v2658_v44  ;;  %v7784_v4 = vsub.f32 %v4965_v40, %v4822_v30  ;;  %v7785_v13 = vsub.f32 %v4970_v61, %v4822_v30 }
 0x21b   : > { %v1886_v36 = vmul.f32 %v5184_v32, %v7783_v12  ;;  %3169 = vst.msk [vmem:[%s7717_s5 + $0xd0] sm:$0xff] %vm915_vm5, %v2913_v19  ;;  %3170 = vst.msk [vmem:[%s7717_s5 + $0xd8] sm:$0xff] %vm915_vm5, %v2914_v57  ;;  %v2915_v17 = vsel %vm2403_vm4, %v2147_v21, %v2659_v41  ;;  %v7786_v61 = vsub.f32 %v4975_v62, %v4822_v30 }
 0x21c   : > { %v1887_v27 = vmul.f32 %v5184_v32, %v7784_v4  ;;  %v1888_v15 = vmul.f32 %v5184_v32, %v7785_v13  ;;  %v2148_v40 = vadd.f32 %v5192_v2, %v1885_v39  ;;  %3171 = vst.msk [vmem:[%s7717_s5 + $0xe0] sm:$0xff] %vm915_vm5, %v2915_v17  ;;  %v7787_v49 = vsub.f32 %v4988_v47, %v4822_v30 }
 0x21d   : > { %v2149_v38 = vadd.f32 %v5192_v2, %v1886_v36  ;;  %v1889_v43 = vmul.f32 %v5184_v32, %v7786_v61  ;;  %v7788_v5 = vsub.f32 %v4993_v31, %v4822_v30  ;;  %v7789_v8 = vsub.f32 %v4998_v37, %v4822_v30 }
 0x21e   : > { %v2150_v58 = vadd.f32 %v5192_v2, %v1887_v27  ;;  %v2151_v48 = vadd.f32 %v5192_v2, %v1888_v15  ;;  %v1890_v52 = vmul.f32 %v5184_v32, %v7787_v49  ;;  %vm2404_vm6 = vcmp.ge.f32.partialorder %v2148_v40, 0.0 }
 0x21f   : > { %v1891_v62 = vmul.f32 %v5184_v32, %v7788_v5  ;;  %v2660_v42 = vmul.f32 0.01, %v2148_v40  ;;  %vm2405_vm7 = vcmp.ge.f32.partialorder %v2149_v38, 0.0  ;;  %v2661_v53 = vmul.f32 0.01, %v2149_v38 }
 0x220   : > { %vm2406_vm8 = vcmp.ge.f32.partialorder %v2150_v58, 0.0  ;;  %v2662_v54 = vmul.f32 0.01, %v2150_v58  ;;  %vm2407_vm9 = vcmp.ge.f32.partialorder %v2151_v48, 0.0  ;;  %v2663_v56 = vmul.f32 0.01, %v2151_v48 }
 0x221   : > { %v2916_v45 = vsel %vm2404_vm6, %v2148_v40, %v2660_v42  ;;  %v2917_v22 = vsel %vm2405_vm7, %v2149_v38, %v2661_v53  ;;  %v2152_v33 = vadd.f32 %v5192_v2, %v1889_v43  ;;  %v2153_v47 = vadd.f32 %v5192_v2, %v1890_v52 }
 0x222   : > { %3172 = vst.msk [vmem:[%s7717_s5 + $0xe8] sm:$0xff] %vm915_vm5, %v2916_v45  ;;  %3173 = vst.msk [vmem:[%s7717_s5 + $0xf0] sm:$0xff] %vm915_vm5, %v2917_v22  ;;  %v2918_v31 = vsel %vm2406_vm8, %v2150_v58, %v2662_v54  ;;  %v2919_v46 = vsel %vm2407_vm9, %v2151_v48, %v2663_v56  ;;  %v2154_v29 = vadd.f32 %v5192_v2, %v1891_v62  ;;  %v7799_v56 = vld [vmem:[#allocation11_spill] sm:$0xff] }
 0x223   : > { %v1892_v35 = vmul.f32 %v5184_v32, %v7789_v8  ;;  %3174 = vst.msk [vmem:[%s7717_s5 + $0xf8] sm:$0xff] %vm915_vm5, %v2918_v31  ;;  %3175 = vst.msk [vmem:[%s7717_s5 + $0x100] sm:$0xff] %vm915_vm5, %v2919_v46  ;;  %vm2408_vm10 = vcmp.ge.f32.partialorder %v2152_v33, 0.0  ;;  %v2664_v26 = vmul.f32 0.01, %v2152_v33  ;;  %vm2409_vm11 = vcmp.ge.f32.partialorder %v2153_v47, 0.0 }
 0x224   : > { %v2665_v6 = vmul.f32 0.01, %v2153_v47  ;;  %vm2410_vm12 = vcmp.ge.f32.partialorder %v2154_v29, 0.0  ;;  %v2666_v34 = vmul.f32 0.01, %v2154_v29  ;;  %v7790_v20 = vsub.f32 %v5011_v63, %v4822_v30 }
 0x225   : > { %v2155_v37 = vadd.f32 %v5192_v2, %v1892_v35  ;;  %v2920_v25 = vsel %vm2408_vm10, %v2152_v33, %v2664_v26  ;;  %v7791_v10 = vsub.f32 %v5016_v60, %v4822_v30  ;;  %v7792_v14 = vsub.f32 %v5021_v9, %v4822_v30 }
 0x226   : > { %v1893_v1 = vmul.f32 %v5184_v32, %v7790_v20  ;;  %v2921_v21 = vsel %vm2409_vm11, %v2153_v47, %v2665_v6  ;;  %3176 = vst.msk [vmem:[%s7717_s5 + $0x108] sm:$0xff] %vm915_vm5, %v2920_v25  ;;  %v2922_v63 = vsel %vm2410_vm12, %v2154_v29, %v2666_v34  ;;  %v7793_v28 = vsub.f32 %v5034_v24, %v4822_v30  ;;  %v7801_v29 = vld [vmem:[#allocation12_spill] sm:$0xff]  ;;  %v7803_v6 = vld [vmem:[#allocation13_spill] sm:$0xff]  ;;  %v7805_v20 = vld [vmem:[#allocation14_spill] sm:$0xff] }
 0x227   : > { %v1894_v59 = vmul.f32 %v5184_v32, %v7791_v10  ;;  %v1895_v44 = vmul.f32 %v5184_v32, %v7792_v14  ;;  %3177 = vst.msk [vmem:[%s7717_s5 + $0x110] sm:$0xff] %vm915_vm5, %v2921_v21  ;;  %vm2411_vm13 = vcmp.ge.f32.partialorder %v2155_v37, 0.0  ;;  %v2667_v60 = vmul.f32 0.01, %v2155_v37  ;;  %3178 = vst.msk [vmem:[%s7717_s5 + $0x118] sm:$0xff] %vm915_vm5, %v2922_v63  ;;  %v7807_v21 = vld [vmem:[#allocation15_spill] sm:$0xff] }
 0x228   : > { %v2156_v0 = vadd.f32 %v5192_v2, %v1893_v1  ;;  %v1896_v39 = vmul.f32 %v5184_v32, %v7793_v28  ;;  %v7794_v12 = vsub.f32 %v5039_v7, %v4822_v30  ;;  %v7795_v4 = vsub.f32 %v5044_v3, %v4822_v30 }
 0x229   : > { %v2157_v9 = vadd.f32 %v5192_v2, %v1894_v59  ;;  %v2158_v41 = vadd.f32 %v5192_v2, %v1895_v44  ;;  %v2923_v19 = vsel %vm2411_vm13, %v2155_v37, %v2667_v60  ;;  %v7796_v61 = vsub.f32 %v5057_v18, %v4822_v30 }
 0x22a   : > { %v1897_v36 = vmul.f32 %v5184_v32, %v7794_v12  ;;  %vm2412_vm14 = vcmp.ge.f32.partialorder %v2156_v0, 0.0  ;;  %v2668_v57 = vmul.f32 0.01, %v2156_v0  ;;  %v1898_v27 = vmul.f32 %v5184_v32, %v7795_v4  ;;  %3179 = vst.msk [vmem:[%s7717_s5 + $0x120] sm:$0xff] %vm915_vm5, %v2923_v19  ;;  %v7811_v19 = vld [vmem:[#allocation17_spill] sm:$0xff] }
 0x22b   : > { %vm2413_vm15 = vcmp.ge.f32.partialorder %v2157_v9, 0.0  ;;  %v2669_v24 = vmul.f32 0.01, %v2157_v9  ;;  %vm2414_vm0 = vcmp.ge.f32.partialorder %v2158_v41, 0.0  ;;  %v2670_v13 = vmul.f32 0.01, %v2158_v41 }
 0x22c   : > { %v2924_v7 = vsel %vm2412_vm14, %v2156_v0, %v2668_v57  ;;  %v2159_v15 = vadd.f32 %v5192_v2, %v1896_v39  ;;  %v2160_v17 = vadd.f32 %v5192_v2, %v1897_v36  ;;  %v2161_v40 = vadd.f32 %v5192_v2, %v1898_v27  ;;  %v7809_v39 = vld [vmem:[#allocation16_spill] sm:$0xff] }
 0x22d   : > { %3180 = vst.msk [vmem:[%s7717_s5 + $0x128] sm:$0xff] %vm915_vm5, %v2924_v7  ;;  %v2925_v3 = vsel %vm2413_vm15, %v2157_v9, %v2669_v24  ;;  %v2926_v38 = vsel %vm2414_vm0, %v2158_v41, %v2670_v13  ;;  %v1899_v43 = vmul.f32 %v5184_v32, %v7796_v61  ;;  %v7797_v58 = vsub.f32 %v5062_v11, %v4822_v30 }
 0x22e   : > { %3181 = vst.msk [vmem:[%s7717_s5 + $0x130] sm:$0xff] %vm915_vm5, %v2925_v3  ;;  %3182 = vst.msk [vmem:[%s7717_s5 + $0x138] sm:$0xff] %vm915_vm5, %v2926_v38  ;;  %vm2415_vm1 = vcmp.ge.f32.partialorder %v2159_v15, 0.0  ;;  %v2671_v49 = vmul.f32 0.01, %v2159_v15  ;;  %vm2416_vm2 = vcmp.ge.f32.partialorder %v2160_v17, 0.0  ;;  %v7798_v53 = vsub.f32 %v5067_v51, %v4822_v30 }
 0x22f   : > { %v1900_v48 = vmul.f32 %v5184_v32, %v7797_v58  ;;  %v2672_v18 = vmul.f32 0.01, %v2160_v17  ;;  %vm2417_vm3 = vcmp.ge.f32.partialorder %v2161_v40, 0.0  ;;  %v2673_v52 = vmul.f32 0.01, %v2161_v40 }
 0x230   : > { %v2162_v11 = vadd.f32 %v5192_v2, %v1899_v43  ;;  %v2927_v62 = vsel %vm2415_vm1, %v2159_v15, %v2671_v49  ;;  %v1901_v54 = vmul.f32 %v5184_v32, %v7798_v53  ;;  %v7800_v45 = vsub.f32 %v7799_v56, %v4822_v30  ;;  %v7813_v43 = vld [vmem:[#allocation18_spill] sm:$0xff] }
 0x231   : > { %v2163_v5 = vadd.f32 %v5192_v2, %v1900_v48  ;;  %v2928_v42 = vsel %vm2416_vm2, %v2160_v17, %v2672_v18  ;;  %3183 = vst.msk [vmem:[%s7717_s5 + $0x140] sm:$0xff] %vm915_vm5, %v2927_v62  ;;  %v2929_v33 = vsel %vm2417_vm3, %v2161_v40, %v2673_v52  ;;  %v7802_v8 = vsub.f32 %v7801_v29, %v4822_v30 }
 0x232   : > { %v1902_v22 = vmul.f32 %v5184_v32, %v7800_v45  ;;  %3184 = vst.msk [vmem:[%s7717_s5 + $0x148] sm:$0xff] %vm915_vm5, %v2928_v42  ;;  %vm2418_vm4 = vcmp.ge.f32.partialorder %v2162_v11, 0.0  ;;  %v2674_v51 = vmul.f32 0.01, %v2162_v11  ;;  %3185 = vst.msk [vmem:[%s7717_s5 + $0x150] sm:$0xff] %vm915_vm5, %v2929_v33  ;;  %v2164_v31 = vadd.f32 %v5192_v2, %v1901_v54 }
 0x233   : > { %vm2419_vm6 = vcmp.ge.f32.partialorder %v2163_v5, 0.0  ;;  %v2675_v47 = vmul.f32 0.01, %v2163_v5  ;;  %v1903_v35 = vmul.f32 %v5184_v32, %v7802_v8  ;;  %v7804_v34 = vsub.f32 %v7803_v6, %v4822_v30  ;;  %v7821_v6 = vld [vmem:[#allocation20_spill] sm:$0xff] }
 0x234   : > { %v2165_v46 = vadd.f32 %v5192_v2, %v1902_v22  ;;  %v2930_v26 = vsel %vm2418_vm4, %v2162_v11, %v2674_v51  ;;  %v7806_v1 = vsub.f32 %v7805_v20, %v4822_v30  ;;  %v7808_v10 = vsub.f32 %v7807_v21, %v4822_v30  ;;  %v7819_v51 = vld [vmem:[#allocation19_spill] sm:$0xff]  ;;  %v7823_v20 = vld [vmem:[#allocation21_spill] sm:$0xff] }
 0x235   : > { %v1904_v37 = vmul.f32 %v5184_v32, %v7804_v34  ;;  %3186 = vst.msk [vmem:[%s7717_s5 + $0x158] sm:$0xff] %vm915_vm5, %v2930_v26  ;;  %v2931_v14 = vsel %vm2419_vm6, %v2163_v5, %v2675_v47  ;;  %vm2420_vm7 = vcmp.ge.f32.partialorder %v2164_v31, 0.0  ;;  %v2676_v44 = vmul.f32 0.01, %v2164_v31 }
 0x236   : > { %v1905_v25 = vmul.f32 %v5184_v32, %v7806_v1  ;;  %v1906_v59 = vmul.f32 %v5184_v32, %v7808_v10  ;;  %vm2421_vm8 = vcmp.ge.f32.partialorder %v2165_v46, 0.0  ;;  %3187 = vst.msk [vmem:[%s7717_s5 + $0x160] sm:$0xff] %vm915_vm5, %v2931_v14  ;;  %v2677_v63 = vmul.f32 0.01, %v2165_v46  ;;  %v1392_v14 = vld [vmem:[%s7717_s5 + $0x1f0] sm:$0xff] }
 0x237   : > { %v2166_v60 = vadd.f32 %v5192_v2, %v1903_v35  ;;  %v2167_v0 = vadd.f32 %v5192_v2, %v1904_v37  ;;  %v2932_v41 = vsel %vm2420_vm7, %v2164_v31, %v2676_v44  ;;  %v7810_v12 = vsub.f32 %v7809_v39, %v4822_v30 }
 0x238   : > { %v2168_v9 = vadd.f32 %v5192_v2, %v1905_v25  ;;  %v2169_v28 = vadd.f32 %v5192_v2, %v1906_v59  ;;  %v7812_v57 = vsub.f32 %v7811_v19, %v4822_v30  ;;  %3188 = vst.msk [vmem:[%s7717_s5 + $0x168] sm:$0xff] %vm915_vm5, %v2932_v41  ;;  %v2933_v27 = vsel %vm2421_vm8, %v2165_v46, %v2677_v63  ;;  %v1391_v59 = vld [vmem:[%s7717_s5 + $0x1e8] sm:$0xff] }
 0x239   : > { %v1907_v36 = vmul.f32 %v5184_v32, %v7810_v12  ;;  %vm2422_vm9 = vcmp.ge.f32.partialorder %v2166_v60, 0.0  ;;  %v2678_v24 = vmul.f32 0.01, %v2166_v60  ;;  %vm2423_vm10 = vcmp.ge.f32.partialorder %v2167_v0, 0.0  ;;  %3189 = vst.msk [vmem:[%s7717_s5 + $0x170] sm:$0xff] %vm915_vm5, %v2933_v27  ;;  %v1396_v27 = vld [vmem:[%s7717_s5 + $0x210] sm:$0xff] }
 0x23a   : > { %v1908_v4 = vmul.f32 %v5184_v32, %v7812_v57  ;;  %v2679_v13 = vmul.f32 0.01, %v2167_v0  ;;  %vm2424_vm11 = vcmp.ge.f32.partialorder %v2168_v9, 0.0  ;;  %v2680_v7 = vmul.f32 0.01, %v2168_v9  ;;  %v1394_v57 = vld [vmem:[%s7717_s5 + $0x200] sm:$0xff] }
 0x23b   : > { %vm2425_vm12 = vcmp.ge.f32.partialorder %v2169_v28, 0.0  ;;  %v2934_v15 = vsel %vm2422_vm9, %v2166_v60, %v2678_v24  ;;  %v2681_v17 = vmul.f32 0.01, %v2169_v28  ;;  %v2170_v40 = vadd.f32 %v5192_v2, %v1907_v36 }
 0x23c   : > { %v2171_v3 = vadd.f32 %v5192_v2, %v1908_v4  ;;  %3190 = vst.msk [vmem:[%s7717_s5 + $0x178] sm:$0xff] %vm915_vm5, %v2934_v15  ;;  %v2935_v38 = vsel %vm2423_vm10, %v2167_v0, %v2679_v13  ;;  %v2936_v61 = vsel %vm2424_vm11, %v2168_v9, %v2680_v7  ;;  %v7814_v58 = vsub.f32 %v7813_v43, %v4822_v30  ;;  %v1395_v4 = vld [vmem:[%s7717_s5 + $0x208] sm:$0xff] }
 0x23d   : > { %v7815_v49 = vsub.f32 %v5136_v50, %v4822_v30  ;;  %3191 = vst.msk [vmem:[%s7717_s5 + $0x180] sm:$0xff] %vm915_vm5, %v2935_v38  ;;  %3192 = vst.msk [vmem:[%s7717_s5 + $0x188] sm:$0xff] %vm915_vm5, %v2936_v61  ;;  %v2937_v52 = vsel %vm2425_vm12, %v2169_v28, %v2681_v17  ;;  %vm2426_vm13 = vcmp.ge.f32.partialorder %v2170_v40, 0.0  ;;  %v2682_v11 = vmul.f32 0.01, %v2170_v40  ;;  %v1393_v28 = vld [vmem:[%s7717_s5 + $0x1f8] sm:$0xff] }
 0x23e   : > { %v1909_v48 = vmul.f32 %v5184_v32, %v7814_v58  ;;  %vm2427_vm14 = vcmp.ge.f32.partialorder %v2171_v3, 0.0  ;;  %3193 = vst.msk [vmem:[%s7717_s5 + $0x190] sm:$0xff] %vm915_vm5, %v2937_v52  ;;  %v2683_v50 = vmul.f32 0.01, %v2171_v3  ;;  %v7816_v42 = vsub.f32 %v5147_v55, %v4822_v30 }
 0x23f   : > { %v1910_v18 = vmul.f32 %v5184_v32, %v7815_v49  ;;  %v2938_v54 = vsel %vm2426_vm13, %v2170_v40, %v2682_v11  ;;  %v7817_v56 = vsub.f32 %v5152_v23, %v4822_v30  ;;  %v7818_v22 = vsub.f32 %v5157_v16, %v4822_v30 }
 0x240   : > { %v2172_v5 = vadd.f32 %v5192_v2, %v1909_v48  ;;  %v1911_v53 = vmul.f32 %v5184_v32, %v7816_v42  ;;  %v7820_v47 = vsub.f32 %v7819_v51, %v4822_v30  ;;  %3194 = vst.msk [vmem:[%s7717_s5 + $0x198] sm:$0xff] %vm915_vm5, %v2938_v54  ;;  %v2939_v55 = vsel %vm2427_vm14, %v2171_v3, %v2683_v50  ;;  %v1397_v3 = vld [vmem:[%s7717_s5 + $0x218] sm:$0xff]  ;;  %v1398_v42 = vld [vmem:[%s7717_s5 + $0x220] sm:$0xff] }
 0x241   : > { %v2173_v62 = vadd.f32 %v5192_v2, %v1910_v18  ;;  %v1912_v45 = vmul.f32 %v5184_v32, %v7817_v56  ;;  %v1913_v33 = vmul.f32 %v5184_v32, %v7818_v22  ;;  %3195 = vst.msk [vmem:[%s7717_s5 + $0x1a0] sm:$0xff] %vm915_vm5, %v2939_v55  ;;  %v7822_v34 = vsub.f32 %v7821_v6, %v4822_v30 }
 0x242   : > { %v1914_v31 = vmul.f32 %v5184_v32, %v7820_v47  ;;  %vm2428_vm15 = vcmp.ge.f32.partialorder %v2172_v5, 0.0  ;;  %v2684_v23 = vmul.f32 0.01, %v2172_v5  ;;  %v2174_v46 = vadd.f32 %v5192_v2, %v1911_v53 }
 0x243   : > { %vm2429_vm0 = vcmp.ge.f32.partialorder %v2173_v62, 0.0  ;;  %v2685_v16 = vmul.f32 0.01, %v2173_v62  ;;  %v2175_v29 = vadd.f32 %v5192_v2, %v1912_v45  ;;  %v2176_v8 = vadd.f32 %v5192_v2, %v1913_v33 }
 0x244   : > { %v2940_v35 = vsel %vm2428_vm15, %v2172_v5, %v2684_v23  ;;  %v2177_v26 = vadd.f32 %v5192_v2, %v1914_v31  ;;  %v1915_v37 = vmul.f32 %v5184_v32, %v7822_v34  ;;  %v7824_v1 = vsub.f32 %v7823_v20, %v4822_v30  ;;  %v1399_v23 = vld [vmem:[%s7717_s5 + $0x228] sm:$0xff] }
 0x245   : > { %3196 = vst.msk [vmem:[%s7717_s5 + $0x1a8] sm:$0xff] %vm915_vm5, %v2940_v35  ;;  %v2941_v21 = vsel %vm2429_vm0, %v2173_v62, %v2685_v16  ;;  %vm2430_vm1 = vcmp.ge.f32.partialorder %v2174_v46, 0.0  ;;  %v2686_v10 = vmul.f32 0.01, %v2174_v46  ;;  %vm2431_vm2 = vcmp.ge.f32.partialorder %v2175_v29, 0.0  ;;  %v1400_v16 = vld [vmem:[%s7717_s5 + $0x230] sm:$0xff] }
 0x246   : > { %v1916_v25 = vmul.f32 %v5184_v32, %v7824_v1  ;;  %3197 = vst.msk [vmem:[%s7717_s5 + $0x1b0] sm:$0xff] %vm915_vm5, %v2941_v21  ;;  %v2687_v44 = vmul.f32 0.01, %v2175_v29  ;;  %vm2432_vm3 = vcmp.ge.f32.partialorder %v2176_v8, 0.0  ;;  %v2688_v63 = vmul.f32 0.01, %v2176_v8 }
 0x247   : > { %vm2433_vm4 = vcmp.ge.f32.partialorder %v2177_v26, 0.0  ;;  %v2942_v60 = vsel %vm2430_vm1, %v2174_v46, %v2686_v10  ;;  %v2689_v0 = vmul.f32 0.01, %v2177_v26  ;;  %v2178_v9 = vadd.f32 %v5192_v2, %v1915_v37  ;;  %v1401_v46 = vld [vmem:[%s7717_s5 + $0x238] sm:$0xff]  ;;  %v1402_v1 = vld [vmem:[%s7717_s5 + $0x240] sm:$0xff] }
 0x248   : > { %v2179_v41 = vadd.f32 %v5192_v2, %v1916_v25  ;;  %3198 = vst.msk [vmem:[%s7717_s5 + $0x1b8] sm:$0xff] %vm915_vm5, %v2942_v60  ;;  %v2943_v39 = vsel %vm2431_vm2, %v2175_v29, %v2687_v44  ;;  %v2944_v12 = vsel %vm2432_vm3, %v2176_v8, %v2688_v63  ;;  %v1653_v36 = vsub.f32 %v1391_v59, %v4822_v30  ;;  %v1403_v25 = vld [vmem:[%s7717_s5 + $0x248] sm:$0xff] }
 0x249   : > { %v1654_v19 = vsub.f32 %v1392_v14, %v4822_v30  ;;  %3199 = vst.msk [vmem:[%s7717_s5 + $0x1c0] sm:$0xff] %vm915_vm5, %v2943_v39  ;;  %3200 = vst.msk [vmem:[%s7717_s5 + $0x1c8] sm:$0xff] %vm915_vm5, %v2944_v12  ;;  %v2945_v24 = vsel %vm2433_vm4, %v2177_v26, %v2689_v0  ;;  %vm2434_vm6 = vcmp.ge.f32.partialorder %v2178_v9, 0.0  ;;  %v2690_v13 = vmul.f32 0.01, %v2178_v9  ;;  %v1404_v39 = vld [vmem:[%s7717_s5 + $0x250] sm:$0xff] }
 0x24a   : > { %vm2435_vm7 = vcmp.ge.f32.partialorder %v2179_v41, 0.0  ;;  %3201 = vst.msk [vmem:[%s7717_s5 + $0x1d0] sm:$0xff] %vm915_vm5, %v2945_v24  ;;  %v2691_v7 = vmul.f32 0.01, %v2179_v41  ;;  %v1917_v15 = vmul.f32 %v5184_v32, %v1653_v36  ;;  %v1655_v40 = vsub.f32 %v1393_v28, %v4822_v30  ;;  %v1405_v12 = vld [vmem:[%s7717_s5 + $0x258] sm:$0xff] }
 0x24b   : > { %v1918_v17 = vmul.f32 %v5184_v32, %v1654_v19  ;;  %v2946_v38 = vsel %vm2434_vm6, %v2178_v9, %v2690_v13  ;;  %v1656_v61 = vsub.f32 %v1394_v57, %v4822_v30  ;;  %v1657_v43 = vsub.f32 %v1395_v4, %v4822_v30 }
 0x24c   : > { %v1658_v58 = vsub.f32 %v1396_v27, %v4822_v30  ;;  %3202 = vst.msk [vmem:[%s7717_s5 + $0x1d8] sm:$0xff] %vm915_vm5, %v2946_v38  ;;  %v2947_v48 = vsel %vm2435_vm7, %v2179_v41, %v2691_v7  ;;  %v2180_v49 = vadd.f32 %v5192_v2, %v1917_v15  ;;  %v1919_v52 = vmul.f32 %v5184_v32, %v1655_v40 }
 0x24d   : > { %v2181_v18 = vadd.f32 %v5192_v2, %v1918_v17  ;;  %3203 = vst.msk [vmem:[%s7717_s5 + $0x1e0] sm:$0xff] %vm915_vm5, %v2947_v48  ;;  %v1920_v11 = vmul.f32 %v5184_v32, %v1656_v61  ;;  %v1921_v50 = vmul.f32 %v5184_v32, %v1657_v43  ;;  %v1659_v62 = vsub.f32 %v1397_v3, %v4822_v30  ;;  %v1406_v48 = vld [vmem:[%s7717_s5 + $0x260] sm:$0xff] }
 0x24e   : > { %v1922_v5 = vmul.f32 %v5184_v32, %v1658_v58  ;;  %vm2436_vm8 = vcmp.ge.f32.partialorder %v2180_v49, 0.0  ;;  %v2692_v53 = vmul.f32 0.01, %v2180_v49  ;;  %v2182_v56 = vadd.f32 %v5192_v2, %v1919_v52 }
 0x24f   : > { %vm2437_vm9 = vcmp.ge.f32.partialorder %v2181_v18, 0.0  ;;  %v2693_v54 = vmul.f32 0.01, %v2181_v18  ;;  %v2183_v45 = vadd.f32 %v5192_v2, %v1920_v11  ;;  %v2184_v22 = vadd.f32 %v5192_v2, %v1921_v50  ;;  %v1407_v50 = vld [vmem:[%s7717_s5 + $0x268] sm:$0xff] }
 0x250   : > { %v2185_v33 = vadd.f32 %v5192_v2, %v1922_v5  ;;  %v2948_v51 = vsel %vm2436_vm8, %v2180_v49, %v2692_v53  ;;  %v1923_v31 = vmul.f32 %v5184_v32, %v1659_v62  ;;  %v1660_v55 = vsub.f32 %v1398_v42, %v4822_v30  ;;  %v1408_v5 = vld [vmem:[%s7717_s5 + $0x270] sm:$0xff]  ;;  %v1409_v62 = vld [vmem:[%s7717_s5 + $0x278] sm:$0xff] }
 0x251   : > { %v2949_v47 = vsel %vm2437_vm9, %v2181_v18, %v2693_v54  ;;  %3204 = vst.msk [vmem:[%s7717_s5 + $0x1e8] sm:$0xff] %vm915_vm5, %v2948_v51  ;;  %vm2438_vm10 = vcmp.ge.f32.partialorder %v2182_v56, 0.0  ;;  %v2694_v29 = vmul.f32 0.01, %v2182_v56  ;;  %vm2439_vm11 = vcmp.ge.f32.partialorder %v2183_v45, 0.0 }
 0x252   : > { %3205 = vst.msk [vmem:[%s7717_s5 + $0x1f0] sm:$0xff] %vm915_vm5, %v2949_v47  ;;  %v2695_v8 = vmul.f32 0.01, %v2183_v45  ;;  %vm2440_vm12 = vcmp.ge.f32.partialorder %v2184_v22, 0.0  ;;  %v2696_v35 = vmul.f32 0.01, %v2184_v22  ;;  %v2186_v37 = vadd.f32 %v5192_v2, %v1923_v31 }
 0x253   : > { %vm2441_vm13 = vcmp.ge.f32.partialorder %v2185_v33, 0.0  ;;  %v2697_v26 = vmul.f32 0.01, %v2185_v33  ;;  %v2950_v6 = vsel %vm2438_vm10, %v2182_v56, %v2694_v29  ;;  %v1924_v20 = vmul.f32 %v5184_v32, %v1660_v55  ;;  %v1410_v55 = vld [vmem:[%s7717_s5 + $0x280] sm:$0xff] }
 0x254   : > { %v2951_v34 = vsel %vm2439_vm11, %v2183_v45, %v2695_v8  ;;  %3206 = vst.msk [vmem:[%s7717_s5 + $0x1f8] sm:$0xff] %vm915_vm5, %v2950_v6  ;;  %v2952_v21 = vsel %vm2440_vm12, %v2184_v22, %v2696_v35  ;;  %v1661_v59 = vsub.f32 %v1399_v23, %v4822_v30  ;;  %v1662_v14 = vsub.f32 %v1400_v16, %v4822_v30  ;;  %v1411_v23 = vld [vmem:[%s7717_s5 + $0x288] sm:$0xff]  ;;  %v1412_v6 = vld [vmem:[%s7717_s5 + $0x290] sm:$0xff] }
 0x255   : > { %3207 = vst.msk [vmem:[%s7717_s5 + $0x200] sm:$0xff] %vm915_vm5, %v2951_v34  ;;  %v2953_v10 = vsel %vm2441_vm13, %v2185_v33, %v2697_v26  ;;  %3208 = vst.msk [vmem:[%s7717_s5 + $0x208] sm:$0xff] %vm915_vm5, %v2952_v21  ;;  %vm2442_vm14 = vcmp.ge.f32.partialorder %v2186_v37, 0.0  ;;  %v2698_v44 = vmul.f32 0.01, %v2186_v37  ;;  %v2187_v63 = vadd.f32 %v5192_v2, %v1924_v20 }
 0x256   : > { %3209 = vst.msk [vmem:[%s7717_s5 + $0x210] sm:$0xff] %vm915_vm5, %v2953_v10  ;;  %v1663_v60 = vsub.f32 %v1401_v46, %v4822_v30  ;;  %v1925_v0 = vmul.f32 %v5184_v32, %v1661_v59  ;;  %v1926_v9 = vmul.f32 %v5184_v32, %v1662_v14  ;;  %v1664_v41 = vsub.f32 %v1402_v1, %v4822_v30 }
 0x257   : > { %v1665_v28 = vsub.f32 %v1403_v25, %v4822_v30  ;;  %v2954_v36 = vsel %vm2442_vm14, %v2186_v37, %v2698_v44  ;;  %vm2443_vm15 = vcmp.ge.f32.partialorder %v2187_v63, 0.0  ;;  %v2699_v19 = vmul.f32 0.01, %v2187_v63 }
 0x258   : > { %v1927_v57 = vmul.f32 %v5184_v32, %v1663_v60  ;;  %3210 = vst.msk [vmem:[%s7717_s5 + $0x218] sm:$0xff] %vm915_vm5, %v2954_v36  ;;  %v2188_v4 = vadd.f32 %v5192_v2, %v1925_v0  ;;  %v2189_v27 = vadd.f32 %v5192_v2, %v1926_v9  ;;  %v1928_v24 = vmul.f32 %v5184_v32, %v1664_v41  ;;  %v1413_v0 = vld [vmem:[%s7717_s5 + $0x298] sm:$0xff]  ;;  %v5943_v36 = vld [vmem:[#allocation8] ss:$0 sm:$0xff] }
 0x259   : > { %v1929_v13 = vmul.f32 %v5184_v32, %v1665_v28  ;;  %v2955_v7 = vsel %vm2443_vm15, %v2187_v63, %v2699_v19  ;;  %v1666_v17 = vsub.f32 %v1404_v39, %v4822_v30  ;;  %v1667_v40 = vsub.f32 %v1405_v12, %v4822_v30 }
 0x25a   : > { %v2190_v15 = vadd.f32 %v5192_v2, %v1927_v57  ;;  %3211 = vst.msk [vmem:[%s7717_s5 + $0x220] sm:$0xff] %vm915_vm5, %v2955_v7  ;;  %vm2444_vm0 = vcmp.ge.f32.partialorder %v2188_v4, 0.0  ;;  %v2700_v3 = vmul.f32 0.01, %v2188_v4  ;;  %vm2445_vm1 = vcmp.ge.f32.partialorder %v2189_v27, 0.0 }
 0x25b   : > { %v2701_v38 = vmul.f32 0.01, %v2189_v27  ;;  %v2191_v43 = vadd.f32 %v5192_v2, %v1928_v24  ;;  %v2192_v58 = vadd.f32 %v5192_v2, %v1929_v13  ;;  %v1930_v52 = vmul.f32 %v5184_v32, %v1666_v17  ;;  %v1416_v17 = vld [vmem:[%s7717_s5 + $0x2b0] sm:$0xff] }
 0x25c   : > { %vm2446_vm2 = vcmp.ge.f32.partialorder %v2190_v15, 0.0  ;;  %v2702_v61 = vmul.f32 0.01, %v2190_v15  ;;  %v2956_v49 = vsel %vm2444_vm0, %v2188_v4, %v2700_v3  ;;  %v1931_v11 = vmul.f32 %v5184_v32, %v1667_v40  ;;  %v1414_v4 = vld [vmem:[%s7717_s5 + $0x2a0] sm:$0xff]  ;;  %v1417_v40 = vld [vmem:[%s7717_s5 + $0x2b8] sm:$0xff] }
 0x25d   : > { %v2957_v18 = vsel %vm2445_vm1, %v2189_v27, %v2701_v38  ;;  %3212 = vst.msk [vmem:[%s7717_s5 + $0x228] sm:$0xff] %vm915_vm5, %v2956_v49  ;;  %vm2447_vm3 = vcmp.ge.f32.partialorder %v2191_v43, 0.0  ;;  %v2703_v53 = vmul.f32 0.01, %v2191_v43  ;;  %vm2448_vm4 = vcmp.ge.f32.partialorder %v2192_v58, 0.0  ;;  %v1415_v27 = vld [vmem:[%s7717_s5 + $0x2a8] sm:$0xff] }
 0x25e   : > { %3213 = vst.msk [vmem:[%s7717_s5 + $0x230] sm:$0xff] %vm915_vm5, %v2957_v18  ;;  %v2958_v42 = vsel %vm2446_vm2, %v2190_v15, %v2702_v61  ;;  %v2704_v54 = vmul.f32 0.01, %v2192_v58  ;;  %v2193_v56 = vadd.f32 %v5192_v2, %v1930_v52  ;;  %v2194_v45 = vadd.f32 %v5192_v2, %v1931_v11  ;;  %v1418_v49 = vld [vmem:[%s7717_s5 + $0x2c0] sm:$0xff] }
 0x25f   : > { %3214 = vst.msk [vmem:[%s7717_s5 + $0x238] sm:$0xff] %vm915_vm5, %v2958_v42  ;;  %v1668_v22 = vsub.f32 %v1406_v48, %v4822_v30  ;;  %v2959_v33 = vsel %vm2447_vm3, %v2191_v43, %v2703_v53  ;;  %v1669_v51 = vsub.f32 %v1407_v50, %v4822_v30  ;;  %v1670_v47 = vsub.f32 %v1408_v5, %v4822_v30 }
 0x260   : > { %v1671_v31 = vsub.f32 %v1409_v62, %v4822_v30  ;;  %3215 = vst.msk [vmem:[%s7717_s5 + $0x240] sm:$0xff] %vm915_vm5, %v2959_v33  ;;  %v2960_v16 = vsel %vm2448_vm4, %v2192_v58, %v2704_v54  ;;  %vm2449_vm6 = vcmp.ge.f32.partialorder %v2193_v56, 0.0  ;;  %v2705_v46 = vmul.f32 0.01, %v2193_v56 }
 0x261   : > { %vm2450_vm7 = vcmp.ge.f32.partialorder %v2194_v45, 0.0  ;;  %3216 = vst.msk [vmem:[%s7717_s5 + $0x248] sm:$0xff] %vm915_vm5, %v2960_v16  ;;  %v2706_v29 = vmul.f32 0.01, %v2194_v45  ;;  %v1932_v8 = vmul.f32 %v5184_v32, %v1668_v22  ;;  %v1933_v35 = vmul.f32 %v5184_v32, %v1669_v51  ;;  %v1419_v22 = vld [vmem:[%s7717_s5 + $0x2c8] sm:$0xff] }
 0x262   : > { %v1934_v26 = vmul.f32 %v5184_v32, %v1670_v47  ;;  %v2961_v34 = vsel %vm2449_vm6, %v2193_v56, %v2705_v46  ;;  %v1935_v37 = vmul.f32 %v5184_v32, %v1671_v31  ;;  %v1672_v20 = vsub.f32 %v1410_v55, %v4822_v30 }
 0x263   : > { %v1673_v1 = vsub.f32 %v1411_v23, %v4822_v30  ;;  %3217 = vst.msk [vmem:[%s7717_s5 + $0x250] sm:$0xff] %vm915_vm5, %v2961_v34  ;;  %v2962_v25 = vsel %vm2450_vm7, %v2194_v45, %v2706_v29  ;;  %v2195_v21 = vadd.f32 %v5192_v2, %v1932_v8  ;;  %v2196_v10 = vadd.f32 %v5192_v2, %v1933_v35  ;;  %v1420_v35 = vld [vmem:[%s7717_s5 + $0x2d0] sm:$0xff] }
 0x264   : > { %v2197_v59 = vadd.f32 %v5192_v2, %v1934_v26  ;;  %3218 = vst.msk [vmem:[%s7717_s5 + $0x258] sm:$0xff] %vm915_vm5, %v2962_v25  ;;  %v2198_v14 = vadd.f32 %v5192_v2, %v1935_v37  ;;  %v1936_v44 = vmul.f32 %v5184_v32, %v1672_v20  ;;  %v1674_v60 = vsub.f32 %v1412_v6, %v4822_v30  ;;  %v1421_v26 = vld [vmem:[%s7717_s5 + $0x2d8] sm:$0xff]  ;;  %v1422_v25 = vld [vmem:[%s7717_s5 + $0x2e0] sm:$0xff] }
 0x265   : > { %v1937_v63 = vmul.f32 %v5184_v32, %v1673_v1  ;;  %vm2451_vm8 = vcmp.ge.f32.partialorder %v2195_v21, 0.0  ;;  %v2707_v9 = vmul.f32 0.01, %v2195_v21  ;;  %vm2452_vm9 = vcmp.ge.f32.partialorder %v2196_v10, 0.0 }
 0x266   : > { %v2708_v41 = vmul.f32 0.01, %v2196_v10  ;;  %vm2453_vm10 = vcmp.ge.f32.partialorder %v2197_v59, 0.0  ;;  %v2709_v28 = vmul.f32 0.01, %v2197_v59  ;;  %vm2454_vm11 = vcmp.ge.f32.partialorder %v2198_v14, 0.0 }
 0x267   : > { %v2710_v39 = vmul.f32 0.01, %v2198_v14  ;;  %v2963_v12 = vsel %vm2451_vm8, %v2195_v21, %v2707_v9  ;;  %v2199_v19 = vadd.f32 %v5943_v36, %v1936_v44  ;;  %v2200_v57 = vadd.f32 %v5943_v36, %v1937_v63  ;;  %v1423_v21 = vld [vmem:[%s7717_s5 + $0x2e8] sm:$0xff]  ;;  %v1424_v63 = vld [vmem:[%s7717_s5 + $0x2f0] sm:$0xff] }
 0x268   : > { %v2964_v2 = vsel %vm2452_vm9, %v2196_v10, %v2708_v41  ;;  %3219 = vst.msk [vmem:[%s7717_s5 + $0x260] sm:$0xff] %vm915_vm5, %v2963_v12  ;;  %v2965_v24 = vsel %vm2453_vm10, %v2197_v59, %v2709_v28  ;;  %v1938_v7 = vmul.f32 %v5184_v32, %v1674_v60  ;;  %v1675_v15 = vsub.f32 %v1413_v0, %v4822_v30  ;;  %v1425_v60 = vld [vmem:[%s7717_s5 + $0x2f8] sm:$0xff] }
 0x269   : > { %3220 = vst.msk [vmem:[%s7717_s5 + $0x268] sm:$0xff] %vm915_vm5, %v2964_v2  ;;  %v2966_v13 = vsel %vm2454_vm11, %v2198_v14, %v2710_v39  ;;  %3221 = vst.msk [vmem:[%s7717_s5 + $0x270] sm:$0xff] %vm915_vm5, %v2965_v24  ;;  %vm2455_vm12 = vcmp.ge.f32.partialorder %v2199_v19, 0.0  ;;  %v2711_v3 = vmul.f32 0.01, %v2199_v19  ;;  %vm2456_vm13 = vcmp.ge.f32.partialorder %v2200_v57, 0.0 }
 0x26a   : > { %3222 = vst.msk [vmem:[%s7717_s5 + $0x278] sm:$0xff] %vm915_vm5, %v2966_v13  ;;  %v2712_v38 = vmul.f32 0.01, %v2200_v57  ;;  %v2201_v61 = vadd.f32 %v5943_v36, %v1938_v7  ;;  %v1939_v43 = vmul.f32 %v5184_v32, %v1675_v15  ;;  %v1676_v58 = vsub.f32 %v1414_v4, %v4822_v30 }
 0x26b   : > { %v1677_v48 = vsub.f32 %v1415_v27, %v4822_v30  ;;  %v2967_v18 = vsel %vm2455_vm12, %v2199_v19, %v2711_v3  ;;  %v1678_v11 = vsub.f32 %v1416_v17, %v4822_v30  ;;  %v1679_v50 = vsub.f32 %v1417_v40, %v4822_v30 }
 0x26c   : > { %v2968_v52 = vsel %vm2456_vm13, %v2200_v57, %v2712_v38  ;;  %3223 = vst.msk [vmem:[%s7717_s5 + $0x280] sm:$0xff] %vm915_vm5, %v2967_v18  ;;  %vm2457_vm14 = vcmp.ge.f32.partialorder %v2201_v61, 0.0  ;;  %v2713_v5 = vmul.f32 0.01, %v2201_v61  ;;  %v2202_v62 = vadd.f32 %v5943_v36, %v1939_v43 }
 0x26d   : > { %3224 = vst.msk [vmem:[%s7717_s5 + $0x288] sm:$0xff] %vm915_vm5, %v2968_v52  ;;  %v1940_v42 = vmul.f32 %v5184_v32, %v1676_v58  ;;  %v1941_v53 = vmul.f32 %v5184_v32, %v1677_v48  ;;  %v1942_v54 = vmul.f32 %v5184_v32, %v1678_v11  ;;  %v1943_v56 = vmul.f32 %v5184_v32, %v1679_v50  ;;  %v1426_v50 = vld [vmem:[%s7717_s5 + $0x300] sm:$0xff] }
 0x26e   : > { %v1680_v45 = vsub.f32 %v1418_v49, %v4822_v30  ;;  %v2969_v33 = vsel %vm2457_vm14, %v2201_v61, %v2713_v5  ;;  %vm2458_vm15 = vcmp.ge.f32.partialorder %v2202_v62, 0.0  ;;  %v2714_v51 = vmul.f32 0.01, %v2202_v62  ;;  %v1427_v5 = vld [vmem:[%s7717_s5 + $0x308] sm:$0xff] }
 0x26f   : > { %v2203_v47 = vadd.f32 %v5943_v36, %v1940_v42  ;;  %3225 = vst.msk [vmem:[%s7717_s5 + $0x290] sm:$0xff] %vm915_vm5, %v2969_v33  ;;  %v2204_v31 = vadd.f32 %v5943_v36, %v1941_v53  ;;  %v2205_v55 = vadd.f32 %v5943_v36, %v1942_v54  ;;  %v2206_v23 = vadd.f32 %v5943_v36, %v1943_v56  ;;  %v1429_v54 = vld [vmem:[%s7717_s5 + $0x318] sm:$0xff]  ;;  %v1430_v56 = vld [vmem:[%s7717_s5 + $0x320] sm:$0xff] }
 0x270   : > { %v1944_v16 = vmul.f32 %v5184_v32, %v1680_v45  ;;  %v2970_v46 = vsel %vm2458_vm15, %v2202_v62, %v2714_v51  ;;  %v1681_v8 = vsub.f32 %v1419_v22, %v4822_v30  ;;  %v1682_v44 = vsub.f32 %v1420_v35, %v4822_v30  ;;  %v1428_v62 = vld [vmem:[%s7717_s5 + $0x310] sm:$0xff]  ;;  %v1431_v51 = vld [vmem:[%s7717_s5 + $0x328] sm:$0xff] }
 0x271   : > { %vm2459_vm0 = vcmp.ge.f32.partialorder %v2203_v47, 0.0  ;;  %v2715_v29 = vmul.f32 0.01, %v2203_v47  ;;  %3226 = vst.msk [vmem:[%s7717_s5 + $0x298] sm:$0xff] %vm915_vm5, %v2970_v46  ;;  %vm2460_vm1 = vcmp.ge.f32.partialorder %v2204_v31, 0.0  ;;  %vm2461_vm2 = vcmp.ge.f32.partialorder %v2205_v55, 0.0 }
 0x272   : > { %v2716_v6 = vmul.f32 0.01, %v2204_v31  ;;  %v2717_v34 = vmul.f32 0.01, %v2205_v55  ;;  %vm2462_vm3 = vcmp.ge.f32.partialorder %v2206_v23, 0.0  ;;  %v2207_v1 = vadd.f32 %v5943_v36, %v1944_v16  ;;  %v1432_v16 = vld [vmem:[%s7717_s5 + $0x330] sm:$0xff] }
 0x273   : > { %v2971_v37 = vsel %vm2459_vm0, %v2203_v47, %v2715_v29  ;;  %v2718_v20 = vmul.f32 0.01, %v2206_v23  ;;  %v1945_v14 = vmul.f32 %v5184_v32, %v1681_v8  ;;  %v1683_v41 = vsub.f32 %v1421_v26, %v4822_v30  ;;  %v1433_v46 = vld [vmem:[%s7717_s5 + $0x338] sm:$0xff] }
 0x274   : > { %3227 = vst.msk [vmem:[%s7717_s5 + $0x2a0] sm:$0xff] %vm915_vm5, %v2971_v37  ;;  %v2972_v10 = vsel %vm2460_vm1, %v2204_v31, %v2716_v6  ;;  %v2973_v59 = vsel %vm2461_vm2, %v2205_v55, %v2717_v34  ;;  %vm2463_vm4 = vcmp.ge.f32.partialorder %v2207_v1, 0.0  ;;  %v2719_v9 = vmul.f32 0.01, %v2207_v1 }
 0x275   : > { %3228 = vst.msk [vmem:[%s7717_s5 + $0x2a8] sm:$0xff] %vm915_vm5, %v2972_v10  ;;  %3229 = vst.msk [vmem:[%s7717_s5 + $0x2b0] sm:$0xff] %vm915_vm5, %v2973_v59  ;;  %v2974_v0 = vsel %vm2462_vm3, %v2206_v23, %v2718_v20  ;;  %v2208_v28 = vadd.f32 %v5943_v36, %v1945_v14  ;;  %v1946_v39 = vmul.f32 %v5184_v32, %v1682_v44 }
 0x276   : > { %3230 = vst.msk [vmem:[%s7717_s5 + $0x2b8] sm:$0xff] %vm915_vm5, %v2974_v0  ;;  %v1684_v12 = vsub.f32 %v1422_v25, %v4822_v30  ;;  %v1685_v2 = vsub.f32 %v1423_v21, %v4822_v30  ;;  %v2975_v19 = vsel %vm2463_vm4, %v2207_v1, %v2719_v9  ;;  %v1947_v57 = vmul.f32 %v5184_v32, %v1683_v41 }
 0x277   : > { %v1686_v4 = vsub.f32 %v1424_v63, %v4822_v30  ;;  %v1687_v27 = vsub.f32 %v1425_v60, %v4822_v30  ;;  %3231 = vst.msk [vmem:[%s7717_s5 + $0x2c0] sm:$0xff] %vm915_vm5, %v2975_v19  ;;  %vm2464_vm6 = vcmp.ge.f32.partialorder %v2208_v28, 0.0  ;;  %v2720_v24 = vmul.f32 0.01, %v2208_v28 }
 0x278   : > { %v2209_v13 = vadd.f32 %v5943_v36, %v1946_v39  ;;  %v1948_v7 = vmul.f32 %v5184_v32, %v1684_v12  ;;  %v2210_v15 = vadd.f32 %v5943_v36, %v1947_v57  ;;  %v1949_v17 = vmul.f32 %v5184_v32, %v1685_v2  ;;  %v1435_v39 = vld [vmem:[%s7717_s5 + $0x348] sm:$0xff] }
 0x279   : > { %v1950_v40 = vmul.f32 %v5184_v32, %v1686_v4  ;;  %v1951_v3 = vmul.f32 %v5184_v32, %v1687_v27  ;;  %v2976_v38 = vsel %vm2464_vm6, %v2208_v28, %v2720_v24  ;;  %v1688_v31 = vsub.f32 %v1426_v50, %v4822_v30  ;;  %v1434_v28 = vld [vmem:[%s7717_s5 + $0x340] sm:$0xff] }
 0x27a   : > { %vm2465_vm7 = vcmp.ge.f32.partialorder %v2209_v13, 0.0  ;;  %v2721_v61 = vmul.f32 0.01, %v2209_v13  ;;  %v2211_v43 = vadd.f32 %v5943_v36, %v1948_v7  ;;  %3232 = vst.msk [vmem:[%s7717_s5 + $0x2c8] sm:$0xff] %vm915_vm5, %v2976_v38  ;;  %vm2466_vm8 = vcmp.ge.f32.partialorder %v2210_v15, 0.0 }
 0x27b   : > { %v2722_v58 = vmul.f32 0.01, %v2210_v15  ;;  %v2212_v48 = vadd.f32 %v5943_v36, %v1949_v17  ;;  %v2213_v49 = vadd.f32 %v5943_v36, %v1950_v40  ;;  %v2214_v11 = vadd.f32 %v5943_v36, %v1951_v3 }
 0x27c   : > { %v2977_v18 = vsel %vm2465_vm7, %v2209_v13, %v2721_v61  ;;  %vm2467_vm9 = vcmp.ge.f32.partialorder %v2211_v43, 0.0  ;;  %v2723_v52 = vmul.f32 0.01, %v2211_v43  ;;  %v1689_v55 = vsub.f32 %v1427_v5, %v4822_v30  ;;  %v1439_v5 = vld [vmem:[%s7717_s5 + $0x368] sm:$0xff] }
 0x27d   : > { %3233 = vst.msk [vmem:[%s7717_s5 + $0x2d0] sm:$0xff] %vm915_vm5, %v2977_v18  ;;  %v2978_v42 = vsel %vm2466_vm8, %v2210_v15, %v2722_v58  ;;  %vm2468_vm10 = vcmp.ge.f32.partialorder %v2212_v48, 0.0  ;;  %v2724_v53 = vmul.f32 0.01, %v2212_v48  ;;  %vm2469_vm11 = vcmp.ge.f32.partialorder %v2213_v49, 0.0  ;;  %v1437_v58 = vld [vmem:[%s7717_s5 + $0x358] sm:$0xff] }
 0x27e   : > { %3234 = vst.msk [vmem:[%s7717_s5 + $0x2d8] sm:$0xff] %vm915_vm5, %v2978_v42  ;;  %v2979_v45 = vsel %vm2467_vm9, %v2211_v43, %v2723_v52  ;;  %v2725_v22 = vmul.f32 0.01, %v2213_v49  ;;  %vm2470_vm12 = vcmp.ge.f32.partialorder %v2214_v11, 0.0  ;;  %v2726_v33 = vmul.f32 0.01, %v2214_v11 }
 0x27f   : > { %3235 = vst.msk [vmem:[%s7717_s5 + $0x2e0] sm:$0xff] %vm915_vm5, %v2979_v45  ;;  %v2980_v47 = vsel %vm2468_vm10, %v2212_v48, %v2724_v53  ;;  %v1690_v23 = vsub.f32 %v1428_v62, %v4822_v30  ;;  %v1691_v35 = vsub.f32 %v1429_v54, %v4822_v30  ;;  %v1692_v26 = vsub.f32 %v1430_v56, %v4822_v30  ;;  %v1436_v43 = vld [vmem:[%s7717_s5 + $0x350] sm:$0xff]  ;;  %v1438_v48 = vld [vmem:[%s7717_s5 + $0x360] sm:$0xff] }
 0x280   : > { %3236 = vst.msk [vmem:[%s7717_s5 + $0x2e8] sm:$0xff] %vm915_vm5, %v2980_v47  ;;  %v2981_v29 = vsel %vm2469_vm11, %v2213_v49, %v2725_v22  ;;  %v2982_v8 = vsel %vm2470_vm12, %v2214_v11, %v2726_v33  ;;  %v1952_v6 = vmul.f32 %v5184_v32, %v1688_v31  ;;  %v1953_v34 = vmul.f32 %v5184_v32, %v1689_v55  ;;  %v1440_v62 = vld [vmem:[%s7717_s5 + $0x370] sm:$0xff] }
 0x281   : > { %3237 = vst.msk [vmem:[%s7717_s5 + $0x2f0] sm:$0xff] %vm915_vm5, %v2981_v29  ;;  %3238 = vst.msk [vmem:[%s7717_s5 + $0x2f8] sm:$0xff] %vm915_vm5, %v2982_v8  ;;  %v1954_v37 = vmul.f32 %v5184_v32, %v1690_v23  ;;  %v1693_v20 = vsub.f32 %v1431_v51, %v4822_v30  ;;  %v1955_v1 = vmul.f32 %v5184_v32, %v1691_v35 }
 0x282   : > { %v1956_v25 = vmul.f32 %v5184_v32, %v1692_v26  ;;  %v1694_v21 = vsub.f32 %v1432_v16, %v4822_v30  ;;  %v1695_v10 = vsub.f32 %v1433_v46, %v4822_v30  ;;  %v2215_v59 = vadd.f32 %v5943_v36, %v1952_v6  ;;  %v1441_v16 = vld [vmem:[%s7717_s5 + $0x378] sm:$0xff] }
 0x283   : > { %v2216_v14 = vadd.f32 %v5943_v36, %v1953_v34  ;;  %v2217_v44 = vadd.f32 %v5943_v36, %v1954_v37  ;;  %v1957_v63 = vmul.f32 %v5184_v32, %v1693_v20  ;;  %v2218_v60 = vadd.f32 %v5943_v36, %v1955_v1 }
 0x284   : > { %v2219_v0 = vadd.f32 %v5943_v36, %v1956_v25  ;;  %v1958_v9 = vmul.f32 %v5184_v32, %v1694_v21  ;;  %v1959_v41 = vmul.f32 %v5184_v32, %v1695_v10  ;;  %vm2471_vm13 = vcmp.ge.f32.partialorder %v2215_v59, 0.0  ;;  %v1442_v25 = vld [vmem:[%s7717_s5 + $0x380] sm:$0xff]  ;;  %v1443_v21 = vld [vmem:[%s7717_s5 + $0x388] sm:$0xff] }
 0x285   : > { %v2727_v12 = vmul.f32 0.01, %v2215_v59  ;;  %vm2472_vm14 = vcmp.ge.f32.partialorder %v2216_v14, 0.0  ;;  %v2728_v2 = vmul.f32 0.01, %v2216_v14  ;;  %vm2473_vm15 = vcmp.ge.f32.partialorder %v2217_v44, 0.0 }
 0x286   : > { %v2729_v19 = vmul.f32 0.01, %v2217_v44  ;;  %vm2474_vm0 = vcmp.ge.f32.partialorder %v2218_v60, 0.0  ;;  %v2730_v57 = vmul.f32 0.01, %v2218_v60  ;;  %vm2475_vm1 = vcmp.ge.f32.partialorder %v2219_v0, 0.0 }
 0x287   : > { %v2983_v4 = vsel %vm2471_vm13, %v2215_v59, %v2727_v12  ;;  %v2984_v27 = vsel %vm2472_vm14, %v2216_v14, %v2728_v2  ;;  %v2731_v24 = vmul.f32 0.01, %v2219_v0  ;;  %v2220_v15 = vadd.f32 %v5943_v36, %v1957_v63 }
 0x288   : > { %3239 = vst.msk [vmem:[%s7717_s5 + $0x300] sm:$0xff] %vm915_vm5, %v2983_v4  ;;  %3240 = vst.msk [vmem:[%s7717_s5 + $0x308] sm:$0xff] %vm915_vm5, %v2984_v27  ;;  %v2985_v13 = vsel %vm2473_vm15, %v2217_v44, %v2729_v19  ;;  %v2986_v7 = vsel %vm2474_vm0, %v2218_v60, %v2730_v57  ;;  %v2221_v17 = vadd.f32 %v5943_v36, %v1958_v9  ;;  %v1445_v27 = vld [vmem:[%s7717_s5 + $0x398] sm:$0xff] }
 0x289   : > { %3241 = vst.msk [vmem:[%s7717_s5 + $0x310] sm:$0xff] %vm915_vm5, %v2985_v13  ;;  %3242 = vst.msk [vmem:[%s7717_s5 + $0x318] sm:$0xff] %vm915_vm5, %v2986_v7  ;;  %v2987_v40 = vsel %vm2475_vm1, %v2219_v0, %v2731_v24  ;;  %v2222_v3 = vadd.f32 %v5943_v36, %v1959_v41  ;;  %v1696_v38 = vsub.f32 %v1434_v28, %v4822_v30  ;;  %vm2476_vm2 = vcmp.ge.f32.partialorder %v2220_v15, 0.0  ;;  %v1446_v24 = vld [vmem:[%s7717_s5 + $0x3a0] sm:$0xff] }
 0x28a   : > { %v1697_v61 = vsub.f32 %v1435_v39, %v4822_v30  ;;  %3243 = vst.msk [vmem:[%s7717_s5 + $0x320] sm:$0xff] %vm915_vm5, %v2987_v40  ;;  %v2732_v49 = vmul.f32 0.01, %v2220_v15  ;;  %vm2477_vm3 = vcmp.ge.f32.partialorder %v2221_v17, 0.0  ;;  %v2733_v18 = vmul.f32 0.01, %v2221_v17 }
 0x28b   : > { %vm2478_vm4 = vcmp.ge.f32.partialorder %v2222_v3, 0.0  ;;  %v2734_v52 = vmul.f32 0.01, %v2222_v3  ;;  %v1960_v11 = vmul.f32 %v5184_v32, %v1696_v38  ;;  %v1698_v54 = vsub.f32 %v1436_v43, %v4822_v30  ;;  %v1444_v39 = vld [vmem:[%s7717_s5 + $0x390] sm:$0xff]  ;;  %v1447_v40 = vld [vmem:[%s7717_s5 + $0x3a8] sm:$0xff] }
 0x28c   : > { %v1961_v50 = vmul.f32 %v5184_v32, %v1697_v61  ;;  %v2988_v42 = vsel %vm2476_vm2, %v2220_v15, %v2732_v49  ;;  %v2989_v53 = vsel %vm2477_vm3, %v2221_v17, %v2733_v18  ;;  %v1699_v56 = vsub.f32 %v1437_v58, %v4822_v30  ;;  %v1448_v18 = vld [vmem:[%s7717_s5 + $0x3b0] sm:$0xff] }
 0x28d   : > { %3244 = vst.msk [vmem:[%s7717_s5 + $0x328] sm:$0xff] %vm915_vm5, %v2988_v42  ;;  %3245 = vst.msk [vmem:[%s7717_s5 + $0x330] sm:$0xff] %vm915_vm5, %v2989_v53  ;;  %v2990_v45 = vsel %vm2478_vm4, %v2222_v3, %v2734_v52  ;;  %v2223_v22 = vadd.f32 %v5943_v36, %v1960_v11  ;;  %v1700_v51 = vsub.f32 %v1438_v48, %v4822_v30  ;;  %v1449_v53 = vld [vmem:[%s7717_s5 + $0x3b8] sm:$0xff] }
 0x28e   : > { %v2224_v33 = vadd.f32 %v5943_v36, %v1961_v50  ;;  %3246 = vst.msk [vmem:[%s7717_s5 + $0x338] sm:$0xff] %vm915_vm5, %v2990_v45  ;;  %v1962_v47 = vmul.f32 %v5184_v32, %v1698_v54  ;;  %v1963_v31 = vmul.f32 %v5184_v32, %v1699_v56  ;;  %v1701_v55 = vsub.f32 %v1439_v5, %v4822_v30 }
 0x28f   : > { %v1702_v23 = vsub.f32 %v1440_v62, %v4822_v30  ;;  %vm2479_vm6 = vcmp.ge.f32.partialorder %v2223_v22, 0.0  ;;  %v2735_v46 = vmul.f32 0.01, %v2223_v22  ;;  %v1964_v26 = vmul.f32 %v5184_v32, %v1700_v51 }
 0x290   : > { %vm2480_vm7 = vcmp.ge.f32.partialorder %v2224_v33, 0.0  ;;  %v2736_v29 = vmul.f32 0.01, %v2224_v33  ;;  %v2225_v8 = vadd.f32 %v5943_v36, %v1962_v47  ;;  %v2226_v35 = vadd.f32 %v5943_v36, %v1963_v31 }
 0x291   : > { %v1965_v6 = vmul.f32 %v5184_v32, %v1701_v55  ;;  %v2991_v34 = vsel %vm2479_vm6, %v2223_v22, %v2735_v46  ;;  %v1966_v20 = vmul.f32 %v5184_v32, %v1702_v23  ;;  %v1703_v1 = vsub.f32 %v1441_v16, %v4822_v30 }
 0x292   : > { %v2992_v37 = vsel %vm2480_vm7, %v2224_v33, %v2736_v29  ;;  %3247 = vst.msk [vmem:[%s7717_s5 + $0x340] sm:$0xff] %vm915_vm5, %v2991_v34  ;;  %vm2481_vm8 = vcmp.ge.f32.partialorder %v2225_v8, 0.0  ;;  %v2737_v10 = vmul.f32 0.01, %v2225_v8  ;;  %vm2482_vm9 = vcmp.ge.f32.partialorder %v2226_v35, 0.0  ;;  %v1450_v33 = vld [vmem:[%s7717_s5 + $0x3c0] sm:$0xff] }
 0x293   : > { %3248 = vst.msk [vmem:[%s7717_s5 + $0x348] sm:$0xff] %vm915_vm5, %v2992_v37  ;;  %v2738_v59 = vmul.f32 0.01, %v2226_v35  ;;  %v2227_v14 = vadd.f32 %v5943_v36, %v1964_v26  ;;  %v2228_v44 = vadd.f32 %v5943_v36, %v1965_v6  ;;  %v2229_v63 = vadd.f32 %v5943_v36, %v1966_v20  ;;  %v1451_v26 = vld [vmem:[%s7717_s5 + $0x3c8] sm:$0xff]  ;;  %v1452_v6 = vld [vmem:[%s7717_s5 + $0x3d0] sm:$0xff] }
 0x294   : > { %v1967_v60 = vmul.f32 %v5184_v32, %v1703_v1  ;;  %v2993_v0 = vsel %vm2481_vm8, %v2225_v8, %v2737_v10  ;;  %v1704_v41 = vsub.f32 %v1442_v25, %v4822_v30  ;;  %v1705_v28 = vsub.f32 %v1443_v21, %v4822_v30  ;;  %v1453_v10 = vld [vmem:[%s7717_s5 + $0x3d8] sm:$0xff] }
 0x295   : > { %v2994_v9 = vsel %vm2482_vm9, %v2226_v35, %v2738_v59  ;;  %3249 = vst.msk [vmem:[%s7717_s5 + $0x350] sm:$0xff] %vm915_vm5, %v2993_v0  ;;  %vm2483_vm10 = vcmp.ge.f32.partialorder %v2227_v14, 0.0  ;;  %v2739_v12 = vmul.f32 0.01, %v2227_v14  ;;  %vm2484_vm11 = vcmp.ge.f32.partialorder %v2228_v44, 0.0  ;;  %v1454_v59 = vld [vmem:[%s7717_s5 + $0x3e0] sm:$0xff] }
 0x296   : > { %3250 = vst.msk [vmem:[%s7717_s5 + $0x358] sm:$0xff] %vm915_vm5, %v2994_v9  ;;  %v2740_v2 = vmul.f32 0.01, %v2228_v44  ;;  %vm2485_vm12 = vcmp.ge.f32.partialorder %v2229_v63, 0.0  ;;  %v2741_v19 = vmul.f32 0.01, %v2229_v63  ;;  %v2230_v57 = vadd.f32 %v5943_v36, %v1967_v60 }
 0x297   : > { %v1968_v4 = vmul.f32 %v5184_v32, %v1704_v41  ;;  %v2995_v13 = vsel %vm2483_vm10, %v2227_v14, %v2739_v12  ;;  %v1969_v15 = vmul.f32 %v5184_v32, %v1705_v28  ;;  %v1706_v17 = vsub.f32 %v1444_v39, %v4822_v30 }
 0x298   : > { %v2996_v7 = vsel %vm2484_vm11, %v2228_v44, %v2740_v2  ;;  %3251 = vst.msk [vmem:[%s7717_s5 + $0x360] sm:$0xff] %vm915_vm5, %v2995_v13  ;;  %v2997_v3 = vsel %vm2485_vm12, %v2229_v63, %v2741_v19  ;;  %vm2486_vm13 = vcmp.ge.f32.partialorder %v2230_v57, 0.0  ;;  %v2742_v38 = vmul.f32 0.01, %v2230_v57  ;;  %v1455_v19 = vld [vmem:[%s7717_s5 + $0x3e8] sm:$0xff] }
 0x299   : > { %3252 = vst.msk [vmem:[%s7717_s5 + $0x368] sm:$0xff] %vm915_vm5, %v2996_v7  ;;  %v2231_v61 = vadd.f32 %v5943_v36, %v1968_v4  ;;  %3253 = vst.msk [vmem:[%s7717_s5 + $0x370] sm:$0xff] %vm915_vm5, %v2997_v3  ;;  %v2232_v43 = vadd.f32 %v5943_v36, %v1969_v15  ;;  %v1970_v58 = vmul.f32 %v5184_v32, %v1706_v17 }
 0x29a   : > { %v1707_v48 = vsub.f32 %v1445_v27, %v4822_v30  ;;  %v1708_v49 = vsub.f32 %v1446_v24, %v4822_v30  ;;  %v2998_v52 = vsel %vm2486_vm13, %v2230_v57, %v2742_v38  ;;  %v1709_v50 = vsub.f32 %v1447_v40, %v4822_v30  ;;  %v1456_v57 = vld [vmem:[%s7717_s5 + $0x3f0] sm:$0xff] }
 0x29b   : > { %vm2487_vm14 = vcmp.ge.f32.partialorder %v2231_v61, 0.0  ;;  %v2743_v11 = vmul.f32 0.01, %v2231_v61  ;;  %3254 = vst.msk [vmem:[%s7717_s5 + $0x378] sm:$0xff] %vm915_vm5, %v2998_v52  ;;  %vm2488_vm15 = vcmp.ge.f32.partialorder %v2232_v43, 0.0  ;;  %v2233_v62 = vadd.f32 %v5943_v36, %v1970_v58 }
 0x29c   : > { %v2744_v5 = vmul.f32 0.01, %v2232_v43  ;;  %v1971_v42 = vmul.f32 %v5184_v32, %v1707_v48  ;;  %v1972_v56 = vmul.f32 %v5184_v32, %v1708_v49  ;;  %v1973_v45 = vmul.f32 %v5184_v32, %v1709_v50 }
 0x29d   : > { %v2999_v54 = vsel %vm2487_vm14, %v2231_v61, %v2743_v11  ;;  %v1710_v22 = vsub.f32 %v1448_v18, %v4822_v30  ;;  %vm2489_vm0 = vcmp.ge.f32.partialorder %v2233_v62, 0.0  ;;  %v2745_v47 = vmul.f32 0.01, %v2233_v62  ;;  %v1457_v61 = vld [vmem:[%s7717_s5 + $0x3f8] sm:$0xff] }
 0x29e   : > { %3255 = vst.msk [vmem:[%s7717_s5 + $0x380] sm:$0xff] %vm915_vm5, %v2999_v54  ;;  %v3000_v51 = vsel %vm2488_vm15, %v2232_v43, %v2744_v5  ;;  %v2234_v31 = vadd.f32 %v5943_v36, %v1971_v42  ;;  %v2235_v55 = vadd.f32 %v5943_v36, %v1972_v56  ;;  %v2236_v23 = vadd.f32 %v5943_v36, %v1973_v45  ;;  %v1458_v43 = vld [vmem:[%s7717_s5 + $0x400] sm:$0xff]  ;;  %v1460_v54 = vld [vmem:[%s7717_s5 + $0x410] sm:$0xff] }
 0x29f   : > { %3256 = vst.msk [vmem:[%s7717_s5 + $0x388] sm:$0xff] %vm915_vm5, %v3000_v51  ;;  %v1974_v16 = vmul.f32 %v5184_v32, %v1710_v22  ;;  %v1711_v46 = vsub.f32 %v1449_v53, %v4822_v30  ;;  %v3001_v29 = vsel %vm2489_vm0, %v2233_v62, %v2745_v47  ;;  %v1712_v35 = vsub.f32 %v1450_v33, %v4822_v30  ;;  %v1459_v53 = vld [vmem:[%s7717_s5 + $0x408] sm:$0xff] }
 0x2a0   : > { %vm2490_vm1 = vcmp.ge.f32.partialorder %v2234_v31, 0.0  ;;  %v2746_v8 = vmul.f32 0.01, %v2234_v31  ;;  %3257 = vst.msk [vmem:[%s7717_s5 + $0x390] sm:$0xff] %vm915_vm5, %v3001_v29  ;;  %vm2491_vm2 = vcmp.ge.f32.partialorder %v2235_v55, 0.0  ;;  %vm2492_vm3 = vcmp.ge.f32.partialorder %v2236_v23, 0.0 }
 0x2a1   : > { %v2747_v34 = vmul.f32 0.01, %v2235_v55  ;;  %v2748_v37 = vmul.f32 0.01, %v2236_v23  ;;  %v2237_v1 = vadd.f32 %v5943_v36, %v1974_v16  ;;  %v1975_v25 = vmul.f32 %v5184_v32, %v1711_v46  ;;  %v1461_v46 = vld [vmem:[%s7717_s5 + $0x418] sm:$0xff]  ;;  %v1462_v29 = vld [vmem:[%s7717_s5 + $0x420] sm:$0xff] }
 0x2a2   : > { %v3002_v20 = vsel %vm2490_vm1, %v2234_v31, %v2746_v8  ;;  %v1976_v21 = vmul.f32 %v5184_v32, %v1712_v35  ;;  %v1713_v63 = vsub.f32 %v1451_v26, %v4822_v30  ;;  %v1714_v60 = vsub.f32 %v1452_v6, %v4822_v30 }
 0x2a3   : > { %3258 = vst.msk [vmem:[%s7717_s5 + $0x398] sm:$0xff] %vm915_vm5, %v3002_v20  ;;  %v3003_v14 = vsel %vm2491_vm2, %v2235_v55, %v2747_v34  ;;  %v3004_v44 = vsel %vm2492_vm3, %v2236_v23, %v2748_v37  ;;  %vm2493_vm4 = vcmp.ge.f32.partialorder %v2237_v1, 0.0  ;;  %v2749_v0 = vmul.f32 0.01, %v2237_v1 }
 0x2a4   : > { %3259 = vst.msk [vmem:[%s7717_s5 + $0x3a0] sm:$0xff] %vm915_vm5, %v3003_v14  ;;  %3260 = vst.msk [vmem:[%s7717_s5 + $0x3a8] sm:$0xff] %vm915_vm5, %v3004_v44  ;;  %v2238_v9 = vadd.f32 %v5943_v36, %v1975_v25  ;;  %v2239_v41 = vadd.f32 %v5943_v36, %v1976_v21  ;;  %v1977_v28 = vmul.f32 %v5184_v32, %v1713_v63 }
 0x2a5   : > { %v1978_v39 = vmul.f32 %v5184_v32, %v1714_v60  ;;  %v1715_v12 = vsub.f32 %v1453_v10, %v4822_v30  ;;  %v1716_v2 = vsub.f32 %v1454_v59, %v4822_v30  ;;  %v3005_v4 = vsel %vm2493_vm4, %v2237_v1, %v2749_v0  ;;  %v1463_v10 = vld [vmem:[%s7717_s5 + $0x428] sm:$0xff]  ;;  %v1464_v59 = vld [vmem:[%s7717_s5 + $0x430] sm:$0xff] }
 0x2a6   : > { %vm2494_vm6 = vcmp.ge.f32.partialorder %v2238_v9, 0.0  ;;  %v2750_v27 = vmul.f32 0.01, %v2238_v9  ;;  %vm2495_vm7 = vcmp.ge.f32.partialorder %v2239_v41, 0.0  ;;  %3261 = vst.msk [vmem:[%s7717_s5 + $0x3b0] sm:$0xff] %vm915_vm5, %v3005_v4  ;;  %v2240_v13 = vadd.f32 %v5943_v36, %v1977_v28 }
 0x2a7   : > { %v2751_v24 = vmul.f32 0.01, %v2239_v41  ;;  %v2241_v7 = vadd.f32 %v5943_v36, %v1978_v39  ;;  %v1979_v15 = vmul.f32 %v5184_v32, %v1715_v12  ;;  %v1980_v40 = vmul.f32 %v5184_v32, %v1716_v2  ;;  %v1465_v2 = vld [vmem:[%s7717_s5 + $0x438] sm:$0xff] }
 0x2a8   : > { %v3006_v17 = vsel %vm2494_vm6, %v2238_v9, %v2750_v27  ;;  %v1717_v3 = vsub.f32 %v1455_v19, %v4822_v30  ;;  %v1718_v38 = vsub.f32 %v1456_v57, %v4822_v30  ;;  %vm2496_vm8 = vcmp.ge.f32.partialorder %v2240_v13, 0.0  ;;  %v1466_v19 = vld [vmem:[%s7717_s5 + $0x440] sm:$0xff] }
 0x2a9   : > { %3262 = vst.msk [vmem:[%s7717_s5 + $0x3b8] sm:$0xff] %vm915_vm5, %v3006_v17  ;;  %v3007_v58 = vsel %vm2495_vm7, %v2239_v41, %v2751_v24  ;;  %v2752_v48 = vmul.f32 0.01, %v2240_v13  ;;  %vm2497_vm9 = vcmp.ge.f32.partialorder %v2241_v7, 0.0  ;;  %v2753_v49 = vmul.f32 0.01, %v2241_v7 }
 0x2aa   : > { %3263 = vst.msk [vmem:[%s7717_s5 + $0x3c0] sm:$0xff] %vm915_vm5, %v3007_v58  ;;  %v2242_v18 = vadd.f32 %v5943_v36, %v1979_v15  ;;  %v2243_v52 = vadd.f32 %v5943_v36, %v1980_v40  ;;  %v1981_v11 = vmul.f32 %v5184_v32, %v1717_v3  ;;  %v1982_v5 = vmul.f32 %v5184_v32, %v1718_v38  ;;  %v1467_v38 = vld [vmem:[%s7717_s5 + $0x448] sm:$0xff] }
 0x2ab   : > { %v3008_v50 = vsel %vm2496_vm8, %v2240_v13, %v2752_v48  ;;  %v1719_v62 = vsub.f32 %v1457_v61, %v4822_v30  ;;  %v1720_v42 = vsub.f32 %v1458_v43, %v4822_v30  ;;  %v3009_v56 = vsel %vm2497_vm9, %v2241_v7, %v2753_v49  ;;  %v1468_v61 = vld [vmem:[%s7717_s5 + $0x450] sm:$0xff] }
 0x2ac   : > { %3264 = vst.msk [vmem:[%s7717_s5 + $0x3c8] sm:$0xff] %vm915_vm5, %v3008_v50  ;;  %vm2498_vm10 = vcmp.ge.f32.partialorder %v2242_v18, 0.0  ;;  %v2754_v45 = vmul.f32 0.01, %v2242_v18  ;;  %vm2499_vm11 = vcmp.ge.f32.partialorder %v2243_v52, 0.0  ;;  %3265 = vst.msk [vmem:[%s7717_s5 + $0x3d0] sm:$0xff] %vm915_vm5, %v3009_v56  ;;  %v2244_v33 = vadd.f32 %v5943_v36, %v1981_v11 }
 0x2ad   : > { %v2755_v22 = vmul.f32 0.01, %v2243_v52  ;;  %v2245_v51 = vadd.f32 %v5943_v36, %v1982_v5  ;;  %v1983_v47 = vmul.f32 %v5184_v32, %v1719_v62  ;;  %v1984_v55 = vmul.f32 %v5184_v32, %v1720_v42  ;;  %v1469_v42 = vld [vmem:[%s7717_s5 + $0x458] sm:$0xff] }
 0x2ae   : > { %v3010_v31 = vsel %vm2498_vm10, %v2242_v18, %v2754_v45  ;;  %v1721_v23 = vsub.f32 %v1459_v53, %v4822_v30  ;;  %v1722_v16 = vsub.f32 %v1460_v54, %v4822_v30  ;;  %vm2500_vm12 = vcmp.ge.f32.partialorder %v2244_v33, 0.0  ;;  %v1470_v53 = vld [vmem:[%s7717_s5 + $0x460] sm:$0xff] }
 0x2af   : > { %3266 = vst.msk [vmem:[%s7717_s5 + $0x3d8] sm:$0xff] %vm915_vm5, %v3010_v31  ;;  %v3011_v8 = vsel %vm2499_vm11, %v2243_v52, %v2755_v22  ;;  %v2756_v35 = vmul.f32 0.01, %v2244_v33  ;;  %vm2501_vm13 = vcmp.ge.f32.partialorder %v2245_v51, 0.0  ;;  %v2757_v26 = vmul.f32 0.01, %v2245_v51 }
 0x2b0   : > { %3267 = vst.msk [vmem:[%s7717_s5 + $0x3e0] sm:$0xff] %vm915_vm5, %v3011_v8  ;;  %v2246_v6 = vadd.f32 %v5943_v36, %v1983_v47  ;;  %v2247_v34 = vadd.f32 %v5943_v36, %v1984_v55  ;;  %v1985_v37 = vmul.f32 %v5184_v32, %v1721_v23  ;;  %v1986_v1 = vmul.f32 %v5184_v32, %v1722_v16  ;;  %v1471_v16 = vld [vmem:[%s7717_s5 + $0x468] sm:$0xff] }
 0x2b1   : > { %v3012_v20 = vsel %vm2500_vm12, %v2244_v33, %v2756_v35  ;;  %v1723_v25 = vsub.f32 %v1461_v46, %v4822_v30  ;;  %v1724_v21 = vsub.f32 %v1462_v29, %v4822_v30  ;;  %v3013_v14 = vsel %vm2501_vm13, %v2245_v51, %v2757_v26  ;;  %v1472_v46 = vld [vmem:[%s7717_s5 + $0x470] sm:$0xff] }
 0x2b2   : > { %3268 = vst.msk [vmem:[%s7717_s5 + $0x3e8] sm:$0xff] %vm915_vm5, %v3012_v20  ;;  %vm2502_vm14 = vcmp.ge.f32.partialorder %v2246_v6, 0.0  ;;  %v2758_v44 = vmul.f32 0.01, %v2246_v6  ;;  %vm2503_vm15 = vcmp.ge.f32.partialorder %v2247_v34, 0.0  ;;  %3269 = vst.msk [vmem:[%s7717_s5 + $0x3f0] sm:$0xff] %vm915_vm5, %v3013_v14  ;;  %v2248_v60 = vadd.f32 %v5943_v36, %v1985_v37 }
 0x2b3   : > { %v2759_v63 = vmul.f32 0.01, %v2247_v34  ;;  %v2249_v0 = vadd.f32 %v5943_v36, %v1986_v1  ;;  %v1987_v9 = vmul.f32 %v5184_v32, %v1723_v25  ;;  %v1988_v28 = vmul.f32 %v5184_v32, %v1724_v21  ;;  %v1473_v21 = vld [vmem:[%s7717_s5 + $0x478] sm:$0xff] }
 0x2b4   : > { %v3014_v41 = vsel %vm2502_vm14, %v2246_v6, %v2758_v44  ;;  %v1725_v39 = vsub.f32 %v1463_v10, %v4822_v30  ;;  %v1726_v12 = vsub.f32 %v1464_v59, %v4822_v30  ;;  %vm2504_vm0 = vcmp.ge.f32.partialorder %v2248_v60, 0.0  ;;  %v1474_v10 = vld [vmem:[%s7717_s5 + $0x480] sm:$0xff] }
 0x2b5   : > { %3270 = vst.msk [vmem:[%s7717_s5 + $0x3f8] sm:$0xff] %vm915_vm5, %v3014_v41  ;;  %v3015_v57 = vsel %vm2503_vm15, %v2247_v34, %v2759_v63  ;;  %v2760_v4 = vmul.f32 0.01, %v2248_v60  ;;  %vm2505_vm1 = vcmp.ge.f32.partialorder %v2249_v0, 0.0  ;;  %v2761_v27 = vmul.f32 0.01, %v2249_v0 }
 0x2b6   : > { %3271 = vst.msk [vmem:[%s7717_s5 + $0x400] sm:$0xff] %vm915_vm5, %v3015_v57  ;;  %v2250_v24 = vadd.f32 %v5943_v36, %v1987_v9  ;;  %v2251_v13 = vadd.f32 %v5943_v36, %v1988_v28  ;;  %v1989_v7 = vmul.f32 %v5184_v32, %v1725_v39  ;;  %v1990_v17 = vmul.f32 %v5184_v32, %v1726_v12  ;;  %v1475_v12 = vld [vmem:[%s7717_s5 + $0x488] sm:$0xff] }
 0x2b7   : > { %v3016_v15 = vsel %vm2504_vm0, %v2248_v60, %v2760_v4  ;;  %v1727_v40 = vsub.f32 %v1465_v2, %v4822_v30  ;;  %v1728_v3 = vsub.f32 %v1466_v19, %v4822_v30  ;;  %v3017_v43 = vsel %vm2505_vm1, %v2249_v0, %v2761_v27  ;;  %v1476_v2 = vld [vmem:[%s7717_s5 + $0x490] sm:$0xff] }
 0x2b8   : > { %3272 = vst.msk [vmem:[%s7717_s5 + $0x408] sm:$0xff] %vm915_vm5, %v3016_v15  ;;  %vm2506_vm2 = vcmp.ge.f32.partialorder %v2250_v24, 0.0  ;;  %v2762_v58 = vmul.f32 0.01, %v2250_v24  ;;  %vm2507_vm3 = vcmp.ge.f32.partialorder %v2251_v13, 0.0  ;;  %3273 = vst.msk [vmem:[%s7717_s5 + $0x410] sm:$0xff] %vm915_vm5, %v3017_v43  ;;  %v2252_v49 = vadd.f32 %v5943_v36, %v1989_v7 }
 0x2b9   : > { %v2763_v48 = vmul.f32 0.01, %v2251_v13  ;;  %v2253_v18 = vadd.f32 %v5943_v36, %v1990_v17  ;;  %v1991_v52 = vmul.f32 %v5184_v32, %v1727_v40  ;;  %v1992_v50 = vmul.f32 %v5184_v32, %v1728_v3  ;;  %v1477_v3 = vld [vmem:[%s7717_s5 + $0x498] sm:$0xff] }
 0x2ba   : > { %v3018_v11 = vsel %vm2506_vm2, %v2250_v24, %v2762_v58  ;;  %v1729_v5 = vsub.f32 %v1467_v38, %v4822_v30  ;;  %v1730_v62 = vsub.f32 %v1468_v61, %v4822_v30  ;;  %vm2508_vm4 = vcmp.ge.f32.partialorder %v2252_v49, 0.0  ;;  %v1478_v38 = vld [vmem:[%s7717_s5 + $0x4a0] sm:$0xff] }
 0x2bb   : > { %3274 = vst.msk [vmem:[%s7717_s5 + $0x418] sm:$0xff] %vm915_vm5, %v3018_v11  ;;  %v3019_v54 = vsel %vm2507_vm3, %v2251_v13, %v2763_v48  ;;  %v2764_v56 = vmul.f32 0.01, %v2252_v49  ;;  %vm2509_vm6 = vcmp.ge.f32.partialorder %v2253_v18, 0.0  ;;  %v2765_v45 = vmul.f32 0.01, %v2253_v18 }
 0x2bc   : > { %3275 = vst.msk [vmem:[%s7717_s5 + $0x420] sm:$0xff] %vm915_vm5, %v3019_v54  ;;  %v2254_v22 = vadd.f32 %v5943_v36, %v1991_v52  ;;  %v2255_v33 = vadd.f32 %v5943_v36, %v1992_v50  ;;  %v1993_v51 = vmul.f32 %v5184_v32, %v1729_v5  ;;  %v1994_v31 = vmul.f32 %v5184_v32, %v1730_v62  ;;  %v1479_v62 = vld [vmem:[%s7717_s5 + $0x4a8] sm:$0xff] }
 0x2bd   : > { %v3020_v47 = vsel %vm2508_vm4, %v2252_v49, %v2764_v56  ;;  %v1731_v55 = vsub.f32 %v1469_v42, %v4822_v30  ;;  %v1732_v23 = vsub.f32 %v1470_v53, %v4822_v30  ;;  %v3021_v29 = vsel %vm2509_vm6, %v2253_v18, %v2765_v45  ;;  %v1480_v42 = vld [vmem:[%s7717_s5 + $0x4b0] sm:$0xff]  ;;  %v6611_v56 = vld [vmem:[#allocation8] ss:$0 sm:$0xff] }
 0x2be   : > { %3276 = vst.msk [vmem:[%s7717_s5 + $0x428] sm:$0xff] %vm915_vm5, %v3020_v47  ;;  %vm2510_vm7 = vcmp.ge.f32.partialorder %v2254_v22, 0.0  ;;  %v2766_v8 = vmul.f32 0.01, %v2254_v22  ;;  %vm2511_vm8 = vcmp.ge.f32.partialorder %v2255_v33, 0.0  ;;  %3277 = vst.msk [vmem:[%s7717_s5 + $0x430] sm:$0xff] %vm915_vm5, %v3021_v29  ;;  %v2256_v26 = vadd.f32 %v5943_v36, %v1993_v51 }
 0x2bf   : > { %v2767_v35 = vmul.f32 0.01, %v2255_v33  ;;  %v2257_v6 = vadd.f32 %v5943_v36, %v1994_v31  ;;  %v1995_v34 = vmul.f32 %v5184_v32, %v1731_v55  ;;  %v1996_v20 = vmul.f32 %v5184_v32, %v1732_v23  ;;  %v1481_v23 = vld [vmem:[%s7717_s5 + $0x4b8] sm:$0xff] }
 0x2c0   : > { %v3022_v37 = vsel %vm2510_vm7, %v2254_v22, %v2766_v8  ;;  %v1733_v1 = vsub.f32 %v1471_v16, %v4822_v30  ;;  %v1734_v25 = vsub.f32 %v1472_v46, %v4822_v30  ;;  %vm2512_vm9 = vcmp.ge.f32.partialorder %v2256_v26, 0.0  ;;  %v1482_v16 = vld [vmem:[%s7717_s5 + $0x4c0] sm:$0xff] }
 0x2c1   : > { %3278 = vst.msk [vmem:[%s7717_s5 + $0x438] sm:$0xff] %vm915_vm5, %v3022_v37  ;;  %v3023_v59 = vsel %vm2511_vm8, %v2255_v33, %v2767_v35  ;;  %v2768_v14 = vmul.f32 0.01, %v2256_v26  ;;  %vm2513_vm10 = vcmp.ge.f32.partialorder %v2257_v6, 0.0  ;;  %v2769_v44 = vmul.f32 0.01, %v2257_v6 }
 0x2c2   : > { %3279 = vst.msk [vmem:[%s7717_s5 + $0x440] sm:$0xff] %vm915_vm5, %v3023_v59  ;;  %v2258_v63 = vadd.f32 %v5943_v36, %v1995_v34  ;;  %v2259_v60 = vadd.f32 %v5943_v36, %v1996_v20  ;;  %v1997_v0 = vmul.f32 %v5184_v32, %v1733_v1  ;;  %v1998_v41 = vmul.f32 %v5184_v32, %v1734_v25  ;;  %v1483_v25 = vld [vmem:[%s7717_s5 + $0x4c8] sm:$0xff] }
 0x2c3   : > { %v3024_v9 = vsel %vm2512_vm9, %v2256_v26, %v2768_v14  ;;  %v1735_v28 = vsub.f32 %v1473_v21, %v4822_v30  ;;  %v1736_v39 = vsub.f32 %v1474_v10, %v4822_v30  ;;  %v3025_v19 = vsel %vm2513_vm10, %v2257_v6, %v2769_v44  ;;  %v1484_v21 = vld [vmem:[%s7717_s5 + $0x4d0] sm:$0xff] }
 0x2c4   : > { %3280 = vst.msk [vmem:[%s7717_s5 + $0x448] sm:$0xff] %vm915_vm5, %v3024_v9  ;;  %vm2514_vm11 = vcmp.ge.f32.partialorder %v2258_v63, 0.0  ;;  %v2770_v57 = vmul.f32 0.01, %v2258_v63  ;;  %vm2515_vm12 = vcmp.ge.f32.partialorder %v2259_v60, 0.0  ;;  %3281 = vst.msk [vmem:[%s7717_s5 + $0x450] sm:$0xff] %vm915_vm5, %v3025_v19  ;;  %v2260_v27 = vadd.f32 %v5943_v36, %v1997_v0 }
 0x2c5   : > { %v2771_v4 = vmul.f32 0.01, %v2259_v60  ;;  %v2261_v24 = vadd.f32 %v5943_v36, %v1998_v41  ;;  %v1999_v13 = vmul.f32 %v5184_v32, %v1735_v28  ;;  %v2000_v15 = vmul.f32 %v5184_v32, %v1736_v39  ;;  %v1485_v39 = vld [vmem:[%s7717_s5 + $0x4d8] sm:$0xff] }
 0x2c6   : > { %v3026_v7 = vsel %vm2514_vm11, %v2258_v63, %v2770_v57  ;;  %v1737_v17 = vsub.f32 %v1475_v12, %v4822_v30  ;;  %v1738_v40 = vsub.f32 %v1476_v2, %v4822_v30  ;;  %vm2516_vm13 = vcmp.ge.f32.partialorder %v2260_v27, 0.0  ;;  %v1486_v12 = vld [vmem:[%s7717_s5 + $0x4e0] sm:$0xff] }
 0x2c7   : > { %3282 = vst.msk [vmem:[%s7717_s5 + $0x458] sm:$0xff] %vm915_vm5, %v3026_v7  ;;  %v3027_v61 = vsel %vm2515_vm12, %v2259_v60, %v2771_v4  ;;  %v2772_v43 = vmul.f32 0.01, %v2260_v27  ;;  %vm2517_vm14 = vcmp.ge.f32.partialorder %v2261_v24, 0.0  ;;  %v2773_v58 = vmul.f32 0.01, %v2261_v24 }
 0x2c8   : > { %3283 = vst.msk [vmem:[%s7717_s5 + $0x460] sm:$0xff] %vm915_vm5, %v3027_v61  ;;  %v2262_v48 = vadd.f32 %v5943_v36, %v1999_v13  ;;  %v2263_v49 = vadd.f32 %v5943_v36, %v2000_v15  ;;  %v2001_v18 = vmul.f32 %v5184_v32, %v1737_v17  ;;  %v2002_v11 = vmul.f32 %v5184_v32, %v1738_v40  ;;  %v1487_v40 = vld [vmem:[%s7717_s5 + $0x4e8] sm:$0xff] }
 0x2c9   : > { %v3028_v52 = vsel %vm2516_vm13, %v2260_v27, %v2772_v43  ;;  %v1739_v50 = vsub.f32 %v1477_v3, %v4822_v30  ;;  %v1740_v5 = vsub.f32 %v1478_v38, %v4822_v30  ;;  %v3029_v36 = vsel %vm2517_vm14, %v2261_v24, %v2773_v58  ;;  %v1488_v3 = vld [vmem:[%s7717_s5 + $0x4f0] sm:$0xff] }
 0x2ca   : > { %3284 = vst.msk [vmem:[%s7717_s5 + $0x468] sm:$0xff] %vm915_vm5, %v3028_v52  ;;  %vm2518_vm15 = vcmp.ge.f32.partialorder %v2262_v48, 0.0  ;;  %v2774_v53 = vmul.f32 0.01, %v2262_v48  ;;  %vm2519_vm0 = vcmp.ge.f32.partialorder %v2263_v49, 0.0  ;;  %3285 = vst.msk [vmem:[%s7717_s5 + $0x470] sm:$0xff] %vm915_vm5, %v3029_v36  ;;  %v2264_v45 = vadd.f32 %v6611_v56, %v2001_v18 }
 0x2cb   : > { %v2775_v54 = vmul.f32 0.01, %v2263_v49  ;;  %v2265_v22 = vadd.f32 %v6611_v56, %v2002_v11  ;;  %v2003_v33 = vmul.f32 %v5184_v32, %v1739_v50  ;;  %v2004_v47 = vmul.f32 %v5184_v32, %v1740_v5  ;;  %v1489_v5 = vld [vmem:[%s7717_s5 + $0x4f8] sm:$0xff] }
 0x2cc   : > { %v3030_v51 = vsel %vm2518_vm15, %v2262_v48, %v2774_v53  ;;  %v1741_v31 = vsub.f32 %v1479_v62, %v4822_v30  ;;  %v1742_v55 = vsub.f32 %v1480_v42, %v4822_v30  ;;  %vm2520_vm1 = vcmp.ge.f32.partialorder %v2264_v45, 0.0  ;;  %v1490_v62 = vld [vmem:[%s7717_s5 + $0x500] sm:$0xff] }
 0x2cd   : > { %3286 = vst.msk [vmem:[%s7717_s5 + $0x478] sm:$0xff] %vm915_vm5, %v3030_v51  ;;  %v3031_v46 = vsel %vm2519_vm0, %v2263_v49, %v2775_v54  ;;  %v2776_v29 = vmul.f32 0.01, %v2264_v45  ;;  %vm2521_vm2 = vcmp.ge.f32.partialorder %v2265_v22, 0.0  ;;  %v2777_v8 = vmul.f32 0.01, %v2265_v22 }
 0x2ce   : > { %3287 = vst.msk [vmem:[%s7717_s5 + $0x480] sm:$0xff] %vm915_vm5, %v3031_v46  ;;  %v2266_v35 = vadd.f32 %v6611_v56, %v2003_v33  ;;  %v2267_v26 = vadd.f32 %v6611_v56, %v2004_v47  ;;  %v2005_v6 = vmul.f32 %v5184_v32, %v1741_v31  ;;  %v2006_v37 = vmul.f32 %v5184_v32, %v1742_v55  ;;  %v1491_v55 = vld [vmem:[%s7717_s5 + $0x508] sm:$0xff] }
 0x2cf   : > { %v3032_v34 = vsel %vm2520_vm1, %v2264_v45, %v2776_v29  ;;  %v1743_v20 = vsub.f32 %v1481_v23, %v4822_v30  ;;  %v1744_v1 = vsub.f32 %v1482_v16, %v4822_v30  ;;  %v3033_v10 = vsel %vm2521_vm2, %v2265_v22, %v2777_v8  ;;  %v1492_v23 = vld [vmem:[%s7717_s5 + $0x510] sm:$0xff] }
 0x2d0   : > { %3288 = vst.msk [vmem:[%s7717_s5 + $0x488] sm:$0xff] %vm915_vm5, %v3032_v34  ;;  %vm2522_vm3 = vcmp.ge.f32.partialorder %v2266_v35, 0.0  ;;  %v2778_v59 = vmul.f32 0.01, %v2266_v35  ;;  %vm2523_vm4 = vcmp.ge.f32.partialorder %v2267_v26, 0.0  ;;  %3289 = vst.msk [vmem:[%s7717_s5 + $0x490] sm:$0xff] %vm915_vm5, %v3033_v10  ;;  %v2268_v44 = vadd.f32 %v6611_v56, %v2005_v6 }
 0x2d1   : > { %v2779_v14 = vmul.f32 0.01, %v2267_v26  ;;  %v2269_v63 = vadd.f32 %v6611_v56, %v2006_v37  ;;  %v2007_v60 = vmul.f32 %v5184_v32, %v1743_v20  ;;  %v2008_v9 = vmul.f32 %v5184_v32, %v1744_v1  ;;  %v1493_v1 = vld [vmem:[%s7717_s5 + $0x518] sm:$0xff] }
 0x2d2   : > { %v3034_v0 = vsel %vm2522_vm3, %v2266_v35, %v2778_v59  ;;  %v1745_v41 = vsub.f32 %v1483_v25, %v4822_v30  ;;  %v1746_v28 = vsub.f32 %v1484_v21, %v4822_v30  ;;  %vm2524_vm6 = vcmp.ge.f32.partialorder %v2268_v44, 0.0  ;;  %v1494_v25 = vld [vmem:[%s7717_s5 + $0x520] sm:$0xff] }
 0x2d3   : > { %3290 = vst.msk [vmem:[%s7717_s5 + $0x498] sm:$0xff] %vm915_vm5, %v3034_v0  ;;  %v3035_v2 = vsel %vm2523_vm4, %v2267_v26, %v2779_v14  ;;  %v2780_v19 = vmul.f32 0.01, %v2268_v44  ;;  %vm2525_vm7 = vcmp.ge.f32.partialorder %v2269_v63, 0.0  ;;  %v2781_v57 = vmul.f32 0.01, %v2269_v63 }
 0x2d4   : > { %3291 = vst.msk [vmem:[%s7717_s5 + $0x4a0] sm:$0xff] %vm915_vm5, %v3035_v2  ;;  %v2270_v4 = vadd.f32 %v6611_v56, %v2007_v60  ;;  %v2271_v27 = vadd.f32 %v6611_v56, %v2008_v9  ;;  %v2009_v24 = vmul.f32 %v5184_v32, %v1745_v41  ;;  %v2010_v7 = vmul.f32 %v5184_v32, %v1746_v28  ;;  %v1495_v28 = vld [vmem:[%s7717_s5 + $0x528] sm:$0xff] }
 0x2d5   : > { %v3036_v13 = vsel %vm2524_vm6, %v2268_v44, %v2780_v19  ;;  %v1747_v15 = vsub.f32 %v1485_v39, %v4822_v30  ;;  %v1748_v17 = vsub.f32 %v1486_v12, %v4822_v30  ;;  %v3037_v38 = vsel %vm2525_vm7, %v2269_v63, %v2781_v57  ;;  %v1496_v39 = vld [vmem:[%s7717_s5 + $0x530] sm:$0xff] }
 0x2d6   : > { %3292 = vst.msk [vmem:[%s7717_s5 + $0x4a8] sm:$0xff] %vm915_vm5, %v3036_v13  ;;  %vm2526_vm8 = vcmp.ge.f32.partialorder %v2270_v4, 0.0  ;;  %v2782_v61 = vmul.f32 0.01, %v2270_v4  ;;  %vm2527_vm9 = vcmp.ge.f32.partialorder %v2271_v27, 0.0  ;;  %3293 = vst.msk [vmem:[%s7717_s5 + $0x4b0] sm:$0xff] %vm915_vm5, %v3037_v38  ;;  %v2272_v58 = vadd.f32 %v6611_v56, %v2009_v24 }
 0x2d7   : > { %v2783_v43 = vmul.f32 0.01, %v2271_v27  ;;  %v2273_v48 = vadd.f32 %v6611_v56, %v2010_v7  ;;  %v2011_v49 = vmul.f32 %v5184_v32, %v1747_v15  ;;  %v2012_v52 = vmul.f32 %v5184_v32, %v1748_v17  ;;  %v1497_v17 = vld [vmem:[%s7717_s5 + $0x538] sm:$0xff] }
 0x2d8   : > { %v3038_v18 = vsel %vm2526_vm8, %v2270_v4, %v2782_v61  ;;  %v1749_v11 = vsub.f32 %v1487_v40, %v4822_v30  ;;  %v1750_v50 = vsub.f32 %v1488_v3, %v4822_v30  ;;  %vm2528_vm10 = vcmp.ge.f32.partialorder %v2272_v58, 0.0  ;;  %v1498_v40 = vld [vmem:[%s7717_s5 + $0x540] sm:$0xff] }
 0x2d9   : > { %3294 = vst.msk [vmem:[%s7717_s5 + $0x4b8] sm:$0xff] %vm915_vm5, %v3038_v18  ;;  %v3039_v42 = vsel %vm2527_vm9, %v2271_v27, %v2783_v43  ;;  %v2784_v36 = vmul.f32 0.01, %v2272_v58  ;;  %vm2529_vm11 = vcmp.ge.f32.partialorder %v2273_v48, 0.0  ;;  %v2785_v53 = vmul.f32 0.01, %v2273_v48 }
 0x2da   : > { %3295 = vst.msk [vmem:[%s7717_s5 + $0x4c0] sm:$0xff] %vm915_vm5, %v3039_v42  ;;  %v2274_v54 = vadd.f32 %v6611_v56, %v2011_v49  ;;  %v2275_v45 = vadd.f32 %v6611_v56, %v2012_v52  ;;  %v2013_v22 = vmul.f32 %v5184_v32, %v1749_v11  ;;  %v2014_v51 = vmul.f32 %v5184_v32, %v1750_v50  ;;  %v1499_v50 = vld [vmem:[%s7717_s5 + $0x548] sm:$0xff] }
 0x2db   : > { %v3040_v33 = vsel %vm2528_vm10, %v2272_v58, %v2784_v36  ;;  %v1751_v47 = vsub.f32 %v1489_v5, %v4822_v30  ;;  %v1752_v31 = vsub.f32 %v1490_v62, %v4822_v30  ;;  %v3041_v16 = vsel %vm2529_vm11, %v2273_v48, %v2785_v53  ;;  %v1500_v5 = vld [vmem:[%s7717_s5 + $0x550] sm:$0xff] }
 0x2dc   : > { %3296 = vst.msk [vmem:[%s7717_s5 + $0x4c8] sm:$0xff] %vm915_vm5, %v3040_v33  ;;  %vm2530_vm12 = vcmp.ge.f32.partialorder %v2274_v54, 0.0  ;;  %v2786_v46 = vmul.f32 0.01, %v2274_v54  ;;  %vm2531_vm13 = vcmp.ge.f32.partialorder %v2275_v45, 0.0  ;;  %3297 = vst.msk [vmem:[%s7717_s5 + $0x4d0] sm:$0xff] %vm915_vm5, %v3041_v16  ;;  %v2276_v8 = vadd.f32 %v6611_v56, %v2013_v22 }
 0x2dd   : > { %v2787_v29 = vmul.f32 0.01, %v2275_v45  ;;  %v2277_v35 = vadd.f32 %v6611_v56, %v2014_v51  ;;  %v2015_v26 = vmul.f32 %v5184_v32, %v1751_v47  ;;  %v2016_v34 = vmul.f32 %v5184_v32, %v1752_v31  ;;  %v1501_v31 = vld [vmem:[%s7717_s5 + $0x558] sm:$0xff] }
 0x2de   : > { %v3042_v6 = vsel %vm2530_vm12, %v2274_v54, %v2786_v46  ;;  %v1753_v37 = vsub.f32 %v1491_v55, %v4822_v30  ;;  %v1754_v20 = vsub.f32 %v1492_v23, %v4822_v30  ;;  %vm2532_vm14 = vcmp.ge.f32.partialorder %v2276_v8, 0.0  ;;  %v1502_v55 = vld [vmem:[%s7717_s5 + $0x560] sm:$0xff] }
 0x2df   : > { %3298 = vst.msk [vmem:[%s7717_s5 + $0x4d8] sm:$0xff] %vm915_vm5, %v3042_v6  ;;  %v3043_v21 = vsel %vm2531_vm13, %v2275_v45, %v2787_v29  ;;  %v2788_v10 = vmul.f32 0.01, %v2276_v8  ;;  %vm2533_vm15 = vcmp.ge.f32.partialorder %v2277_v35, 0.0  ;;  %v2789_v59 = vmul.f32 0.01, %v2277_v35 }
 0x2e0   : > { %3299 = vst.msk [vmem:[%s7717_s5 + $0x4e0] sm:$0xff] %vm915_vm5, %v3043_v21  ;;  %v2278_v14 = vadd.f32 %v6611_v56, %v2015_v26  ;;  %v2279_v44 = vadd.f32 %v6611_v56, %v2016_v34  ;;  %v2017_v63 = vmul.f32 %v5184_v32, %v1753_v37  ;;  %v2018_v0 = vmul.f32 %v5184_v32, %v1754_v20  ;;  %v1503_v20 = vld [vmem:[%s7717_s5 + $0x568] sm:$0xff] }
 0x2e1   : > { %v3044_v60 = vsel %vm2532_vm14, %v2276_v8, %v2788_v10  ;;  %v1755_v9 = vsub.f32 %v1493_v1, %v4822_v30  ;;  %v1756_v41 = vsub.f32 %v1494_v25, %v4822_v30  ;;  %v3045_v12 = vsel %vm2533_vm15, %v2277_v35, %v2789_v59  ;;  %v1504_v1 = vld [vmem:[%s7717_s5 + $0x570] sm:$0xff] }
 0x2e2   : > { %3300 = vst.msk [vmem:[%s7717_s5 + $0x4e8] sm:$0xff] %vm915_vm5, %v3044_v60  ;;  %vm2534_vm0 = vcmp.ge.f32.partialorder %v2278_v14, 0.0  ;;  %v2790_v2 = vmul.f32 0.01, %v2278_v14  ;;  %vm2535_vm1 = vcmp.ge.f32.partialorder %v2279_v44, 0.0  ;;  %3301 = vst.msk [vmem:[%s7717_s5 + $0x4f0] sm:$0xff] %vm915_vm5, %v3045_v12  ;;  %v2280_v57 = vadd.f32 %v6611_v56, %v2017_v63 }
 0x2e3   : > { %v2791_v19 = vmul.f32 0.01, %v2279_v44  ;;  %v2281_v4 = vadd.f32 %v6611_v56, %v2018_v0  ;;  %v2019_v27 = vmul.f32 %v5184_v32, %v1755_v9  ;;  %v2020_v13 = vmul.f32 %v5184_v32, %v1756_v41  ;;  %v1505_v41 = vld [vmem:[%s7717_s5 + $0x578] sm:$0xff] }
 0x2e4   : > { %v3046_v24 = vsel %vm2534_vm0, %v2278_v14, %v2790_v2  ;;  %v1757_v7 = vsub.f32 %v1495_v28, %v4822_v30  ;;  %v1758_v15 = vsub.f32 %v1496_v39, %v4822_v30  ;;  %vm2536_vm2 = vcmp.ge.f32.partialorder %v2280_v57, 0.0  ;;  %v1506_v28 = vld [vmem:[%s7717_s5 + $0x580] sm:$0xff] }
 0x2e5   : > { %3302 = vst.msk [vmem:[%s7717_s5 + $0x4f8] sm:$0xff] %vm915_vm5, %v3046_v24  ;;  %v3047_v3 = vsel %vm2535_vm1, %v2279_v44, %v2791_v19  ;;  %v2792_v38 = vmul.f32 0.01, %v2280_v57  ;;  %vm2537_vm3 = vcmp.ge.f32.partialorder %v2281_v4, 0.0  ;;  %v2793_v61 = vmul.f32 0.01, %v2281_v4 }
 0x2e6   : > { %3303 = vst.msk [vmem:[%s7717_s5 + $0x500] sm:$0xff] %vm915_vm5, %v3047_v3  ;;  %v2282_v43 = vadd.f32 %v6611_v56, %v2019_v27  ;;  %v2283_v58 = vadd.f32 %v6611_v56, %v2020_v13  ;;  %v2021_v48 = vmul.f32 %v5184_v32, %v1757_v7  ;;  %v2022_v18 = vmul.f32 %v5184_v32, %v1758_v15  ;;  %v1507_v15 = vld [vmem:[%s7717_s5 + $0x588] sm:$0xff] }
 0x2e7   : > { %v3048_v49 = vsel %vm2536_vm2, %v2280_v57, %v2792_v38  ;;  %v1759_v52 = vsub.f32 %v1497_v17, %v4822_v30  ;;  %v1760_v11 = vsub.f32 %v1498_v40, %v4822_v30  ;;  %v3049_v62 = vsel %vm2537_vm3, %v2281_v4, %v2793_v61  ;;  %v1508_v17 = vld [vmem:[%s7717_s5 + $0x590] sm:$0xff] }
 0x2e8   : > { %3304 = vst.msk [vmem:[%s7717_s5 + $0x508] sm:$0xff] %vm915_vm5, %v3048_v49  ;;  %vm2538_vm4 = vcmp.ge.f32.partialorder %v2282_v43, 0.0  ;;  %v2794_v42 = vmul.f32 0.01, %v2282_v43  ;;  %vm2539_vm6 = vcmp.ge.f32.partialorder %v2283_v58, 0.0  ;;  %3305 = vst.msk [vmem:[%s7717_s5 + $0x510] sm:$0xff] %vm915_vm5, %v3049_v62  ;;  %v2284_v53 = vadd.f32 %v6611_v56, %v2021_v48 }
 0x2e9   : > { %v2795_v36 = vmul.f32 0.01, %v2283_v58  ;;  %v2285_v54 = vadd.f32 %v6611_v56, %v2022_v18  ;;  %v2023_v45 = vmul.f32 %v5184_v32, %v1759_v52  ;;  %v2024_v33 = vmul.f32 %v5184_v32, %v1760_v11  ;;  %v1509_v11 = vld [vmem:[%s7717_s5 + $0x598] sm:$0xff] }
 0x2ea   : > { %v3050_v22 = vsel %vm2538_vm4, %v2282_v43, %v2794_v42  ;;  %v1761_v51 = vsub.f32 %v1499_v50, %v4822_v30  ;;  %v1762_v47 = vsub.f32 %v1500_v5, %v4822_v30  ;;  %vm2540_vm7 = vcmp.ge.f32.partialorder %v2284_v53, 0.0  ;;  %v1510_v50 = vld [vmem:[%s7717_s5 + $0x5a0] sm:$0xff] }
 0x2eb   : > { %3306 = vst.msk [vmem:[%s7717_s5 + $0x518] sm:$0xff] %vm915_vm5, %v3050_v22  ;;  %v3051_v23 = vsel %vm2539_vm6, %v2283_v58, %v2795_v36  ;;  %v2796_v16 = vmul.f32 0.01, %v2284_v53  ;;  %vm2541_vm8 = vcmp.ge.f32.partialorder %v2285_v54, 0.0  ;;  %v2797_v46 = vmul.f32 0.01, %v2285_v54 }
 0x2ec   : > { %3307 = vst.msk [vmem:[%s7717_s5 + $0x520] sm:$0xff] %vm915_vm5, %v3051_v23  ;;  %v2286_v29 = vadd.f32 %v6611_v56, %v2023_v45  ;;  %v2287_v8 = vadd.f32 %v6611_v56, %v2024_v33  ;;  %v2025_v35 = vmul.f32 %v5184_v32, %v1761_v51  ;;  %v2026_v6 = vmul.f32 %v5184_v32, %v1762_v47  ;;  %v1511_v47 = vld [vmem:[%s7717_s5 + $0x5a8] sm:$0xff] }
 0x2ed   : > { %v3052_v26 = vsel %vm2540_vm7, %v2284_v53, %v2796_v16  ;;  %v1763_v34 = vsub.f32 %v1501_v31, %v4822_v30  ;;  %v1764_v37 = vsub.f32 %v1502_v55, %v4822_v30  ;;  %v3053_v25 = vsel %vm2541_vm8, %v2285_v54, %v2797_v46  ;;  %v1512_v31 = vld [vmem:[%s7717_s5 + $0x5b0] sm:$0xff] }
 0x2ee   : > { %3308 = vst.msk [vmem:[%s7717_s5 + $0x528] sm:$0xff] %vm915_vm5, %v3052_v26  ;;  %vm2542_vm9 = vcmp.ge.f32.partialorder %v2286_v29, 0.0  ;;  %v2798_v21 = vmul.f32 0.01, %v2286_v29  ;;  %vm2543_vm10 = vcmp.ge.f32.partialorder %v2287_v8, 0.0  ;;  %3309 = vst.msk [vmem:[%s7717_s5 + $0x530] sm:$0xff] %vm915_vm5, %v3053_v25  ;;  %v2288_v59 = vadd.f32 %v6611_v56, %v2025_v35 }
 0x2ef   : > { %v2799_v10 = vmul.f32 0.01, %v2287_v8  ;;  %v2289_v14 = vadd.f32 %v6611_v56, %v2026_v6  ;;  %v2027_v44 = vmul.f32 %v5184_v32, %v1763_v34  ;;  %v2028_v60 = vmul.f32 %v5184_v32, %v1764_v37  ;;  %v1513_v37 = vld [vmem:[%s7717_s5 + $0x5b8] sm:$0xff] }
 0x2f0   : > { %v3054_v63 = vsel %vm2542_vm9, %v2286_v29, %v2798_v21  ;;  %v1765_v0 = vsub.f32 %v1503_v20, %v4822_v30  ;;  %v1766_v9 = vsub.f32 %v1504_v1, %v4822_v30  ;;  %vm2544_vm11 = vcmp.ge.f32.partialorder %v2288_v59, 0.0  ;;  %v1514_v20 = vld [vmem:[%s7717_s5 + $0x5c0] sm:$0xff] }
 0x2f1   : > { %3310 = vst.msk [vmem:[%s7717_s5 + $0x538] sm:$0xff] %vm915_vm5, %v3054_v63  ;;  %v3055_v39 = vsel %vm2543_vm10, %v2287_v8, %v2799_v10  ;;  %v2800_v12 = vmul.f32 0.01, %v2288_v59  ;;  %vm2545_vm12 = vcmp.ge.f32.partialorder %v2289_v14, 0.0  ;;  %v2801_v2 = vmul.f32 0.01, %v2289_v14 }
 0x2f2   : > { %3311 = vst.msk [vmem:[%s7717_s5 + $0x540] sm:$0xff] %vm915_vm5, %v3055_v39  ;;  %v2290_v19 = vadd.f32 %v6611_v56, %v2027_v44  ;;  %v2291_v57 = vadd.f32 %v6611_v56, %v2028_v60  ;;  %v2029_v4 = vmul.f32 %v5184_v32, %v1765_v0  ;;  %v2030_v24 = vmul.f32 %v5184_v32, %v1766_v9  ;;  %v1515_v9 = vld [vmem:[%s7717_s5 + $0x5c8] sm:$0xff] }
 0x2f3   : > { %v3056_v27 = vsel %vm2544_vm11, %v2288_v59, %v2800_v12  ;;  %v1767_v13 = vsub.f32 %v1505_v41, %v4822_v30  ;;  %v1768_v7 = vsub.f32 %v1506_v28, %v4822_v30  ;;  %v3057_v40 = vsel %vm2545_vm12, %v2289_v14, %v2801_v2  ;;  %v1516_v41 = vld [vmem:[%s7717_s5 + $0x5d0] sm:$0xff] }
 0x2f4   : > { %3312 = vst.msk [vmem:[%s7717_s5 + $0x548] sm:$0xff] %vm915_vm5, %v3056_v27  ;;  %vm2546_vm13 = vcmp.ge.f32.partialorder %v2290_v19, 0.0  ;;  %v2802_v3 = vmul.f32 0.01, %v2290_v19  ;;  %vm2547_vm14 = vcmp.ge.f32.partialorder %v2291_v57, 0.0  ;;  %3313 = vst.msk [vmem:[%s7717_s5 + $0x550] sm:$0xff] %vm915_vm5, %v3057_v40  ;;  %v2292_v61 = vadd.f32 %v6611_v56, %v2029_v4 }
 0x2f5   : > { %v2803_v38 = vmul.f32 0.01, %v2291_v57  ;;  %v2293_v43 = vadd.f32 %v6611_v56, %v2030_v24  ;;  %v2031_v58 = vmul.f32 %v5184_v32, %v1767_v13  ;;  %v2032_v49 = vmul.f32 %v5184_v32, %v1768_v7  ;;  %v1517_v7 = vld [vmem:[%s7717_s5 + $0x5d8] sm:$0xff] }
 0x2f6   : > { %v3058_v48 = vsel %vm2546_vm13, %v2290_v19, %v2802_v3  ;;  %v1769_v18 = vsub.f32 %v1507_v15, %v4822_v30  ;;  %v1770_v52 = vsub.f32 %v1508_v17, %v4822_v30  ;;  %vm2548_vm15 = vcmp.ge.f32.partialorder %v2292_v61, 0.0  ;;  %v1518_v15 = vld [vmem:[%s7717_s5 + $0x5e0] sm:$0xff] }
 0x2f7   : > { %3314 = vst.msk [vmem:[%s7717_s5 + $0x558] sm:$0xff] %vm915_vm5, %v3058_v48  ;;  %v3059_v5 = vsel %vm2547_vm14, %v2291_v57, %v2803_v38  ;;  %v2804_v62 = vmul.f32 0.01, %v2292_v61  ;;  %vm2549_vm0 = vcmp.ge.f32.partialorder %v2293_v43, 0.0  ;;  %v2805_v42 = vmul.f32 0.01, %v2293_v43 }
 0x2f8   : > { %3315 = vst.msk [vmem:[%s7717_s5 + $0x560] sm:$0xff] %vm915_vm5, %v3059_v5  ;;  %v2294_v36 = vadd.f32 %v6611_v56, %v2031_v58  ;;  %v2295_v53 = vadd.f32 %v6611_v56, %v2032_v49  ;;  %v2033_v54 = vmul.f32 %v5184_v32, %v1769_v18  ;;  %v2034_v22 = vmul.f32 %v5184_v32, %v1770_v52  ;;  %v1519_v52 = vld [vmem:[%s7717_s5 + $0x5e8] sm:$0xff] }
 0x2f9   : > { %v3060_v45 = vsel %vm2548_vm15, %v2292_v61, %v2804_v62  ;;  %v1771_v33 = vsub.f32 %v1509_v11, %v4822_v30  ;;  %v1772_v51 = vsub.f32 %v1510_v50, %v4822_v30  ;;  %v3061_v55 = vsel %vm2549_vm0, %v2293_v43, %v2805_v42  ;;  %v1520_v11 = vld [vmem:[%s7717_s5 + $0x5f0] sm:$0xff] }
 0x2fa   : > { %3316 = vst.msk [vmem:[%s7717_s5 + $0x568] sm:$0xff] %vm915_vm5, %v3060_v45  ;;  %vm2550_vm1 = vcmp.ge.f32.partialorder %v2294_v36, 0.0  ;;  %v2806_v23 = vmul.f32 0.01, %v2294_v36  ;;  %vm2551_vm2 = vcmp.ge.f32.partialorder %v2295_v53, 0.0  ;;  %3317 = vst.msk [vmem:[%s7717_s5 + $0x570] sm:$0xff] %vm915_vm5, %v3061_v55  ;;  %v2296_v46 = vadd.f32 %v6611_v56, %v2033_v54 }
 0x2fb   : > { %v2807_v16 = vmul.f32 0.01, %v2295_v53  ;;  %v2297_v29 = vadd.f32 %v6611_v56, %v2034_v22  ;;  %v2035_v8 = vmul.f32 %v5184_v32, %v1771_v33  ;;  %v2036_v26 = vmul.f32 %v5184_v32, %v1772_v51  ;;  %v1521_v51 = vld [vmem:[%s7717_s5 + $0x5f8] sm:$0xff] }
 0x2fc   : > { %v3062_v35 = vsel %vm2550_vm1, %v2294_v36, %v2806_v23  ;;  %v1773_v6 = vsub.f32 %v1511_v47, %v4822_v30  ;;  %v1774_v34 = vsub.f32 %v1512_v31, %v4822_v30  ;;  %vm2552_vm3 = vcmp.ge.f32.partialorder %v2296_v46, 0.0  ;;  %v1522_v47 = vld [vmem:[%s7717_s5 + $0x600] sm:$0xff] }
 0x2fd   : > { %3318 = vst.msk [vmem:[%s7717_s5 + $0x578] sm:$0xff] %vm915_vm5, %v3062_v35  ;;  %v3063_v1 = vsel %vm2551_vm2, %v2295_v53, %v2807_v16  ;;  %v2808_v25 = vmul.f32 0.01, %v2296_v46  ;;  %vm2553_vm4 = vcmp.ge.f32.partialorder %v2297_v29, 0.0  ;;  %v2809_v21 = vmul.f32 0.01, %v2297_v29 }
 0x2fe   : > { %3319 = vst.msk [vmem:[%s7717_s5 + $0x580] sm:$0xff] %vm915_vm5, %v3063_v1  ;;  %v2298_v10 = vadd.f32 %v6611_v56, %v2035_v8  ;;  %v2299_v59 = vadd.f32 %v6611_v56, %v2036_v26  ;;  %v2037_v14 = vmul.f32 %v5184_v32, %v1773_v6  ;;  %v2038_v63 = vmul.f32 %v5184_v32, %v1774_v34  ;;  %v1523_v34 = vld [vmem:[%s7717_s5 + $0x608] sm:$0xff] }
 0x2ff   : > { %v3064_v44 = vsel %vm2552_vm3, %v2296_v46, %v2808_v25  ;;  %v1775_v60 = vsub.f32 %v1513_v37, %v4822_v30  ;;  %v1776_v0 = vsub.f32 %v1514_v20, %v4822_v30  ;;  %v3065_v28 = vsel %vm2553_vm4, %v2297_v29, %v2809_v21  ;;  %v1524_v37 = vld [vmem:[%s7717_s5 + $0x610] sm:$0xff] }
 0x300   : > { %3320 = vst.msk [vmem:[%s7717_s5 + $0x588] sm:$0xff] %vm915_vm5, %v3064_v44  ;;  %vm2554_vm6 = vcmp.ge.f32.partialorder %v2298_v10, 0.0  ;;  %v2810_v39 = vmul.f32 0.01, %v2298_v10  ;;  %vm2555_vm7 = vcmp.ge.f32.partialorder %v2299_v59, 0.0  ;;  %3321 = vst.msk [vmem:[%s7717_s5 + $0x590] sm:$0xff] %vm915_vm5, %v3065_v28  ;;  %v2300_v2 = vadd.f32 %v6611_v56, %v2037_v14 }
 0x301   : > { %v2811_v12 = vmul.f32 0.01, %v2299_v59  ;;  %v2301_v19 = vadd.f32 %v6611_v56, %v2038_v63  ;;  %v2039_v57 = vmul.f32 %v5184_v32, %v1775_v60  ;;  %v2040_v27 = vmul.f32 %v5184_v32, %v1776_v0  ;;  %v1525_v0 = vld [vmem:[%s7717_s5 + $0x618] sm:$0xff] }
 0x302   : > { %v3066_v4 = vsel %vm2554_vm6, %v2298_v10, %v2810_v39  ;;  %v1777_v24 = vsub.f32 %v1515_v9, %v4822_v30  ;;  %v1778_v13 = vsub.f32 %v1516_v41, %v4822_v30  ;;  %vm2556_vm8 = vcmp.ge.f32.partialorder %v2300_v2, 0.0  ;;  %v1526_v9 = vld [vmem:[%s7717_s5 + $0x620] sm:$0xff] }
 0x303   : > { %3322 = vst.msk [vmem:[%s7717_s5 + $0x598] sm:$0xff] %vm915_vm5, %v3066_v4  ;;  %v3067_v17 = vsel %vm2555_vm7, %v2299_v59, %v2811_v12  ;;  %v2812_v40 = vmul.f32 0.01, %v2300_v2  ;;  %vm2557_vm9 = vcmp.ge.f32.partialorder %v2301_v19, 0.0  ;;  %v2813_v3 = vmul.f32 0.01, %v2301_v19 }
 0x304   : > { %3323 = vst.msk [vmem:[%s7717_s5 + $0x5a0] sm:$0xff] %vm915_vm5, %v3067_v17  ;;  %v2302_v38 = vadd.f32 %v6611_v56, %v2039_v57  ;;  %v2303_v61 = vadd.f32 %v6611_v56, %v2040_v27  ;;  %v2041_v43 = vmul.f32 %v5184_v32, %v1777_v24  ;;  %v2042_v48 = vmul.f32 %v5184_v32, %v1778_v13  ;;  %v1527_v13 = vld [vmem:[%s7717_s5 + $0x628] sm:$0xff] }
 0x305   : > { %v3068_v58 = vsel %vm2556_vm8, %v2300_v2, %v2812_v40  ;;  %v1779_v49 = vsub.f32 %v1517_v7, %v4822_v30  ;;  %v1780_v18 = vsub.f32 %v1518_v15, %v4822_v30  ;;  %v3069_v50 = vsel %vm2557_vm9, %v2301_v19, %v2813_v3  ;;  %v1528_v7 = vld [vmem:[%s7717_s5 + $0x630] sm:$0xff] }
 0x306   : > { %3324 = vst.msk [vmem:[%s7717_s5 + $0x5a8] sm:$0xff] %vm915_vm5, %v3068_v58  ;;  %vm2558_vm10 = vcmp.ge.f32.partialorder %v2302_v38, 0.0  ;;  %v2814_v5 = vmul.f32 0.01, %v2302_v38  ;;  %vm2559_vm11 = vcmp.ge.f32.partialorder %v2303_v61, 0.0  ;;  %3325 = vst.msk [vmem:[%s7717_s5 + $0x5b0] sm:$0xff] %vm915_vm5, %v3069_v50  ;;  %v2304_v42 = vadd.f32 %v6611_v56, %v2041_v43 }
 0x307   : > { %v2815_v62 = vmul.f32 0.01, %v2303_v61  ;;  %v2305_v36 = vadd.f32 %v6611_v56, %v2042_v48  ;;  %v2043_v53 = vmul.f32 %v5184_v32, %v1779_v49  ;;  %v2044_v45 = vmul.f32 %v5184_v32, %v1780_v18  ;;  %v1529_v18 = vld [vmem:[%s7717_s5 + $0x638] sm:$0xff] }
 0x308   : > { %v3070_v54 = vsel %vm2558_vm10, %v2302_v38, %v2814_v5  ;;  %v1781_v22 = vsub.f32 %v1519_v52, %v4822_v30  ;;  %v1782_v33 = vsub.f32 %v1520_v11, %v4822_v30  ;;  %vm2560_vm12 = vcmp.ge.f32.partialorder %v2304_v42, 0.0  ;;  %v1530_v52 = vld [vmem:[%s7717_s5 + $0x640] sm:$0xff] }
 0x309   : > { %3326 = vst.msk [vmem:[%s7717_s5 + $0x5b8] sm:$0xff] %vm915_vm5, %v3070_v54  ;;  %v3071_v31 = vsel %vm2559_vm11, %v2303_v61, %v2815_v62  ;;  %v2816_v55 = vmul.f32 0.01, %v2304_v42  ;;  %vm2561_vm13 = vcmp.ge.f32.partialorder %v2305_v36, 0.0  ;;  %v2817_v23 = vmul.f32 0.01, %v2305_v36 }
 0x30a   : > { %3327 = vst.msk [vmem:[%s7717_s5 + $0x5c0] sm:$0xff] %vm915_vm5, %v3071_v31  ;;  %v2306_v16 = vadd.f32 %v6611_v56, %v2043_v53  ;;  %v2307_v46 = vadd.f32 %v6611_v56, %v2044_v45  ;;  %v2045_v29 = vmul.f32 %v5184_v32, %v1781_v22  ;;  %v2046_v35 = vmul.f32 %v5184_v32, %v1782_v33  ;;  %v1531_v33 = vld [vmem:[%s7717_s5 + $0x648] sm:$0xff] }
 0x30b   : > { %v3072_v8 = vsel %vm2560_vm12, %v2304_v42, %v2816_v55  ;;  %v1783_v26 = vsub.f32 %v1521_v51, %v4822_v30  ;;  %v1784_v6 = vsub.f32 %v1522_v47, %v4822_v30  ;;  %v3073_v20 = vsel %vm2561_vm13, %v2305_v36, %v2817_v23  ;;  %v1532_v51 = vld [vmem:[%s7717_s5 + $0x650] sm:$0xff] }
 0x30c   : > { %3328 = vst.msk [vmem:[%s7717_s5 + $0x5c8] sm:$0xff] %vm915_vm5, %v3072_v8  ;;  %vm2562_vm14 = vcmp.ge.f32.partialorder %v2306_v16, 0.0  ;;  %v2818_v1 = vmul.f32 0.01, %v2306_v16  ;;  %vm2563_vm15 = vcmp.ge.f32.partialorder %v2307_v46, 0.0  ;;  %3329 = vst.msk [vmem:[%s7717_s5 + $0x5d0] sm:$0xff] %vm915_vm5, %v3073_v20  ;;  %v2308_v21 = vadd.f32 %v6611_v56, %v2045_v29 }
 0x30d   : > { %v2819_v25 = vmul.f32 0.01, %v2307_v46  ;;  %v2309_v10 = vadd.f32 %v6611_v56, %v2046_v35  ;;  %v2047_v59 = vmul.f32 %v5184_v32, %v1783_v26  ;;  %v2048_v44 = vmul.f32 %v5184_v32, %v1784_v6  ;;  %v1533_v6 = vld [vmem:[%s7717_s5 + $0x658] sm:$0xff] }
 0x30e   : > { %v3074_v14 = vsel %vm2562_vm14, %v2306_v16, %v2818_v1  ;;  %v1785_v63 = vsub.f32 %v1523_v34, %v4822_v30  ;;  %v1786_v60 = vsub.f32 %v1524_v37, %v4822_v30  ;;  %vm2564_vm0 = vcmp.ge.f32.partialorder %v2308_v21, 0.0  ;;  %v1534_v34 = vld [vmem:[%s7717_s5 + $0x660] sm:$0xff] }
 0x30f   : > { %3330 = vst.msk [vmem:[%s7717_s5 + $0x5d8] sm:$0xff] %vm915_vm5, %v3074_v14  ;;  %v3075_v41 = vsel %vm2563_vm15, %v2307_v46, %v2819_v25  ;;  %v2820_v28 = vmul.f32 0.01, %v2308_v21  ;;  %vm2565_vm1 = vcmp.ge.f32.partialorder %v2309_v10, 0.0  ;;  %v2821_v39 = vmul.f32 0.01, %v2309_v10 }
 0x310   : > { %3331 = vst.msk [vmem:[%s7717_s5 + $0x5e0] sm:$0xff] %vm915_vm5, %v3075_v41  ;;  %v2310_v12 = vadd.f32 %v6611_v56, %v2047_v59  ;;  %v2311_v2 = vadd.f32 %v6611_v56, %v2048_v44  ;;  %v2049_v19 = vmul.f32 %v5184_v32, %v1785_v63  ;;  %v2050_v4 = vmul.f32 %v5184_v32, %v1786_v60  ;;  %v1535_v60 = vld [vmem:[%s7717_s5 + $0x668] sm:$0xff] }
 0x311   : > { %v3076_v57 = vsel %vm2564_vm0, %v2308_v21, %v2820_v28  ;;  %v1787_v27 = vsub.f32 %v1525_v0, %v4822_v30  ;;  %v1788_v24 = vsub.f32 %v1526_v9, %v4822_v30  ;;  %v3077_v15 = vsel %vm2565_vm1, %v2309_v10, %v2821_v39  ;;  %v1536_v0 = vld [vmem:[%s7717_s5 + $0x670] sm:$0xff] }
 0x312   : > { %3332 = vst.msk [vmem:[%s7717_s5 + $0x5e8] sm:$0xff] %vm915_vm5, %v3076_v57  ;;  %vm2566_vm2 = vcmp.ge.f32.partialorder %v2310_v12, 0.0  ;;  %v2822_v17 = vmul.f32 0.01, %v2310_v12  ;;  %vm2567_vm3 = vcmp.ge.f32.partialorder %v2311_v2, 0.0  ;;  %3333 = vst.msk [vmem:[%s7717_s5 + $0x5f0] sm:$0xff] %vm915_vm5, %v3077_v15  ;;  %v2312_v3 = vadd.f32 %v6611_v56, %v2049_v19 }
 0x313   : > { %v2823_v40 = vmul.f32 0.01, %v2311_v2  ;;  %v2313_v38 = vadd.f32 %v6611_v56, %v2050_v4  ;;  %v2051_v61 = vmul.f32 %v5184_v32, %v1787_v27  ;;  %v2052_v58 = vmul.f32 %v5184_v32, %v1788_v24  ;;  %v1537_v24 = vld [vmem:[%s7717_s5 + $0x678] sm:$0xff] }
 0x314   : > { %v3078_v43 = vsel %vm2566_vm2, %v2310_v12, %v2822_v17  ;;  %v1789_v48 = vsub.f32 %v1527_v13, %v4822_v30  ;;  %v1790_v49 = vsub.f32 %v1528_v7, %v4822_v30  ;;  %vm2568_vm4 = vcmp.ge.f32.partialorder %v2312_v3, 0.0  ;;  %v1538_v13 = vld [vmem:[%s7717_s5 + $0x680] sm:$0xff] }
 0x315   : > { %3334 = vst.msk [vmem:[%s7717_s5 + $0x5f8] sm:$0xff] %vm915_vm5, %v3078_v43  ;;  %v3079_v11 = vsel %vm2567_vm3, %v2311_v2, %v2823_v40  ;;  %v2824_v50 = vmul.f32 0.01, %v2312_v3  ;;  %vm2569_vm6 = vcmp.ge.f32.partialorder %v2313_v38, 0.0  ;;  %v2825_v5 = vmul.f32 0.01, %v2313_v38 }
 0x316   : > { %3335 = vst.msk [vmem:[%s7717_s5 + $0x600] sm:$0xff] %vm915_vm5, %v3079_v11  ;;  %v2314_v62 = vadd.f32 %v6611_v56, %v2051_v61  ;;  %v2315_v42 = vadd.f32 %v6611_v56, %v2052_v58  ;;  %v2053_v36 = vmul.f32 %v5184_v32, %v1789_v48  ;;  %v2054_v54 = vmul.f32 %v5184_v32, %v1790_v49  ;;  %v1539_v49 = vld [vmem:[%s7717_s5 + $0x688] sm:$0xff] }
 0x317   : > { %v3080_v53 = vsel %vm2568_vm4, %v2312_v3, %v2824_v50  ;;  %v1791_v45 = vsub.f32 %v1529_v18, %v4822_v30  ;;  %v1792_v22 = vsub.f32 %v1530_v52, %v4822_v30  ;;  %v3081_v47 = vsel %vm2569_vm6, %v2313_v38, %v2825_v5  ;;  %v1540_v18 = vld [vmem:[%s7717_s5 + $0x690] sm:$0xff] }
 0x318   : > { %3336 = vst.msk [vmem:[%s7717_s5 + $0x608] sm:$0xff] %vm915_vm5, %v3080_v53  ;;  %vm2570_vm7 = vcmp.ge.f32.partialorder %v2314_v62, 0.0  ;;  %v2826_v31 = vmul.f32 0.01, %v2314_v62  ;;  %vm2571_vm8 = vcmp.ge.f32.partialorder %v2315_v42, 0.0  ;;  %3337 = vst.msk [vmem:[%s7717_s5 + $0x610] sm:$0xff] %vm915_vm5, %v3081_v47  ;;  %v2316_v23 = vadd.f32 %v6611_v56, %v2053_v36 }
 0x319   : > { %v2827_v55 = vmul.f32 0.01, %v2315_v42  ;;  %v2317_v16 = vadd.f32 %v6611_v56, %v2054_v54  ;;  %v2055_v46 = vmul.f32 %v5184_v32, %v1791_v45  ;;  %v2056_v8 = vmul.f32 %v5184_v32, %v1792_v22  ;;  %v1541_v22 = vld [vmem:[%s7717_s5 + $0x698] sm:$0xff] }
 0x31a   : > { %v3082_v29 = vsel %vm2570_vm7, %v2314_v62, %v2826_v31  ;;  %v1793_v35 = vsub.f32 %v1531_v33, %v4822_v30  ;;  %v1794_v26 = vsub.f32 %v1532_v51, %v4822_v30  ;;  %vm2572_vm9 = vcmp.ge.f32.partialorder %v2316_v23, 0.0  ;;  %v1542_v33 = vld [vmem:[%s7717_s5 + $0x6a0] sm:$0xff] }
 0x31b   : > { %3338 = vst.msk [vmem:[%s7717_s5 + $0x618] sm:$0xff] %vm915_vm5, %v3082_v29  ;;  %v3083_v37 = vsel %vm2571_vm8, %v2315_v42, %v2827_v55  ;;  %v2828_v20 = vmul.f32 0.01, %v2316_v23  ;;  %vm2573_vm10 = vcmp.ge.f32.partialorder %v2317_v16, 0.0  ;;  %v2829_v1 = vmul.f32 0.01, %v2317_v16 }
 0x31c   : > { %3339 = vst.msk [vmem:[%s7717_s5 + $0x620] sm:$0xff] %vm915_vm5, %v3083_v37  ;;  %v2318_v25 = vadd.f32 %v6611_v56, %v2055_v46  ;;  %v2319_v21 = vadd.f32 %v6611_v56, %v2056_v8  ;;  %v2057_v10 = vmul.f32 %v5184_v32, %v1793_v35  ;;  %v2058_v14 = vmul.f32 %v5184_v32, %v1794_v26  ;;  %v1543_v26 = vld [vmem:[%s7717_s5 + $0x6a8] sm:$0xff] }
 0x31d   : > { %v3084_v59 = vsel %vm2572_vm9, %v2316_v23, %v2828_v20  ;;  %v1795_v44 = vsub.f32 %v1533_v6, %v4822_v30  ;;  %v1796_v63 = vsub.f32 %v1534_v34, %v4822_v30  ;;  %v3085_v9 = vsel %vm2573_vm10, %v2317_v16, %v2829_v1  ;;  %v1544_v6 = vld [vmem:[%s7717_s5 + $0x6b0] sm:$0xff]  ;;  %v7253_v20 = vld [vmem:[#allocation8] ss:$0 sm:$0xff] }
 0x31e   : > { %3340 = vst.msk [vmem:[%s7717_s5 + $0x628] sm:$0xff] %vm915_vm5, %v3084_v59  ;;  %vm2574_vm11 = vcmp.ge.f32.partialorder %v2318_v25, 0.0  ;;  %v2830_v41 = vmul.f32 0.01, %v2318_v25  ;;  %vm2575_vm12 = vcmp.ge.f32.partialorder %v2319_v21, 0.0  ;;  %3341 = vst.msk [vmem:[%s7717_s5 + $0x630] sm:$0xff] %vm915_vm5, %v3085_v9  ;;  %v2320_v39 = vadd.f32 %v6611_v56, %v2057_v10 }
 0x31f   : > { %v2831_v28 = vmul.f32 0.01, %v2319_v21  ;;  %v2321_v12 = vadd.f32 %v6611_v56, %v2058_v14  ;;  %v2059_v2 = vmul.f32 %v5184_v32, %v1795_v44  ;;  %v2060_v57 = vmul.f32 %v5184_v32, %v1796_v63  ;;  %v1545_v63 = vld [vmem:[%s7717_s5 + $0x6b8] sm:$0xff] }
 0x320   : > { %v3086_v19 = vsel %vm2574_vm11, %v2318_v25, %v2830_v41  ;;  %v1797_v4 = vsub.f32 %v1535_v60, %v4822_v30  ;;  %v1798_v27 = vsub.f32 %v1536_v0, %v4822_v30  ;;  %vm2576_vm13 = vcmp.ge.f32.partialorder %v2320_v39, 0.0  ;;  %v1546_v60 = vld [vmem:[%s7717_s5 + $0x6c0] sm:$0xff] }
 0x321   : > { %3342 = vst.msk [vmem:[%s7717_s5 + $0x638] sm:$0xff] %vm915_vm5, %v3086_v19  ;;  %v3087_v7 = vsel %vm2575_vm12, %v2319_v21, %v2831_v28  ;;  %v2832_v15 = vmul.f32 0.01, %v2320_v39  ;;  %vm2577_vm14 = vcmp.ge.f32.partialorder %v2321_v12, 0.0  ;;  %v2833_v17 = vmul.f32 0.01, %v2321_v12 }
 0x322   : > { %3343 = vst.msk [vmem:[%s7717_s5 + $0x640] sm:$0xff] %vm915_vm5, %v3087_v7  ;;  %v2322_v40 = vadd.f32 %v6611_v56, %v2059_v2  ;;  %v2323_v3 = vadd.f32 %v6611_v56, %v2060_v57  ;;  %v2061_v38 = vmul.f32 %v5184_v32, %v1797_v4  ;;  %v2062_v43 = vmul.f32 %v5184_v32, %v1798_v27  ;;  %v1547_v27 = vld [vmem:[%s7717_s5 + $0x6c8] sm:$0xff] }
 0x323   : > { %v3088_v61 = vsel %vm2576_vm13, %v2320_v39, %v2832_v15  ;;  %v1799_v58 = vsub.f32 %v1537_v24, %v4822_v30  ;;  %v1800_v48 = vsub.f32 %v1538_v13, %v4822_v30  ;;  %v3089_v52 = vsel %vm2577_vm14, %v2321_v12, %v2833_v17  ;;  %v1548_v24 = vld [vmem:[%s7717_s5 + $0x6d0] sm:$0xff] }
 0x324   : > { %3344 = vst.msk [vmem:[%s7717_s5 + $0x648] sm:$0xff] %vm915_vm5, %v3088_v61  ;;  %vm2578_vm15 = vcmp.ge.f32.partialorder %v2322_v40, 0.0  ;;  %v2834_v11 = vmul.f32 0.01, %v2322_v40  ;;  %vm2579_vm0 = vcmp.ge.f32.partialorder %v2323_v3, 0.0  ;;  %3345 = vst.msk [vmem:[%s7717_s5 + $0x650] sm:$0xff] %vm915_vm5, %v3089_v52  ;;  %v2324_v5 = vadd.f32 %v6611_v56, %v2061_v38 }
 0x325   : > { %v2835_v50 = vmul.f32 0.01, %v2323_v3  ;;  %v2325_v62 = vadd.f32 %v6611_v56, %v2062_v43  ;;  %v2063_v42 = vmul.f32 %v5184_v32, %v1799_v58  ;;  %v2064_v53 = vmul.f32 %v5184_v32, %v1800_v48  ;;  %v1549_v48 = vld [vmem:[%s7717_s5 + $0x6d8] sm:$0xff] }
 0x326   : > { %v3090_v36 = vsel %vm2578_vm15, %v2322_v40, %v2834_v11  ;;  %v1801_v54 = vsub.f32 %v1539_v49, %v4822_v30  ;;  %v1802_v45 = vsub.f32 %v1540_v18, %v4822_v30  ;;  %vm2580_vm1 = vcmp.ge.f32.partialorder %v2324_v5, 0.0  ;;  %v1550_v49 = vld [vmem:[%s7717_s5 + $0x6e0] sm:$0xff] }
 0x327   : > { %3346 = vst.msk [vmem:[%s7717_s5 + $0x658] sm:$0xff] %vm915_vm5, %v3090_v36  ;;  %v3091_v51 = vsel %vm2579_vm0, %v2323_v3, %v2835_v50  ;;  %v2836_v47 = vmul.f32 0.01, %v2324_v5  ;;  %vm2581_vm2 = vcmp.ge.f32.partialorder %v2325_v62, 0.0  ;;  %v2837_v31 = vmul.f32 0.01, %v2325_v62 }
 0x328   : > { %3347 = vst.msk [vmem:[%s7717_s5 + $0x660] sm:$0xff] %vm915_vm5, %v3091_v51  ;;  %v2326_v55 = vadd.f32 %v6611_v56, %v2063_v42  ;;  %v2327_v23 = vadd.f32 %v6611_v56, %v2064_v53  ;;  %v2065_v16 = vmul.f32 %v5184_v32, %v1801_v54  ;;  %v2066_v29 = vmul.f32 %v5184_v32, %v1802_v45  ;;  %v1551_v45 = vld [vmem:[%s7717_s5 + $0x6e8] sm:$0xff] }
 0x329   : > { %v3092_v46 = vsel %vm2580_vm1, %v2324_v5, %v2836_v47  ;;  %v1803_v8 = vsub.f32 %v1541_v22, %v4822_v30  ;;  %v1804_v35 = vsub.f32 %v1542_v33, %v4822_v30  ;;  %v3093_v56 = vsel %vm2581_vm2, %v2325_v62, %v2837_v31  ;;  %v1552_v22 = vld [vmem:[%s7717_s5 + $0x6f0] sm:$0xff] }
 0x32a   : > { %3348 = vst.msk [vmem:[%s7717_s5 + $0x668] sm:$0xff] %vm915_vm5, %v3092_v46  ;;  %vm2582_vm3 = vcmp.ge.f32.partialorder %v2326_v55, 0.0  ;;  %v2838_v34 = vmul.f32 0.01, %v2326_v55  ;;  %vm2583_vm4 = vcmp.ge.f32.partialorder %v2327_v23, 0.0  ;;  %3349 = vst.msk [vmem:[%s7717_s5 + $0x670] sm:$0xff] %vm915_vm5, %v3093_v56  ;;  %v2328_v1 = vadd.f32 %v7253_v20, %v2065_v16 }
 0x32b   : > { %v2839_v37 = vmul.f32 0.01, %v2327_v23  ;;  %v2329_v25 = vadd.f32 %v7253_v20, %v2066_v29  ;;  %v2067_v21 = vmul.f32 %v5184_v32, %v1803_v8  ;;  %v2068_v59 = vmul.f32 %v5184_v32, %v1804_v35  ;;  %v1553_v35 = vld [vmem:[%s7717_s5 + $0x6f8] sm:$0xff] }
 0x32c   : > { %v3094_v10 = vsel %vm2582_vm3, %v2326_v55, %v2838_v34  ;;  %v1805_v14 = vsub.f32 %v1543_v26, %v4822_v30  ;;  %v1806_v44 = vsub.f32 %v1544_v6, %v4822_v30  ;;  %vm2584_vm6 = vcmp.ge.f32.partialorder %v2328_v1, 0.0  ;;  %v1554_v26 = vld [vmem:[%s7717_s5 + $0x700] sm:$0xff] }
 0x32d   : > { %3350 = vst.msk [vmem:[%s7717_s5 + $0x678] sm:$0xff] %vm915_vm5, %v3094_v10  ;;  %v3095_v0 = vsel %vm2583_vm4, %v2327_v23, %v2839_v37  ;;  %v2840_v9 = vmul.f32 0.01, %v2328_v1  ;;  %vm2585_vm7 = vcmp.ge.f32.partialorder %v2329_v25, 0.0  ;;  %v2841_v41 = vmul.f32 0.01, %v2329_v25 }
 0x32e   : > { %3351 = vst.msk [vmem:[%s7717_s5 + $0x680] sm:$0xff] %vm915_vm5, %v3095_v0  ;;  %v2330_v28 = vadd.f32 %v7253_v20, %v2067_v21  ;;  %v2331_v39 = vadd.f32 %v7253_v20, %v2068_v59  ;;  %v2069_v12 = vmul.f32 %v5184_v32, %v1805_v14  ;;  %v2070_v19 = vmul.f32 %v5184_v32, %v1806_v44  ;;  %v1555_v44 = vld [vmem:[%s7717_s5 + $0x708] sm:$0xff] }
 0x32f   : > { %v3096_v2 = vsel %vm2584_vm6, %v2328_v1, %v2840_v9  ;;  %v1807_v57 = vsub.f32 %v1545_v63, %v4822_v30  ;;  %v1808_v4 = vsub.f32 %v1546_v60, %v4822_v30  ;;  %v3097_v13 = vsel %vm2585_vm7, %v2329_v25, %v2841_v41  ;;  %v1556_v63 = vld [vmem:[%s7717_s5 + $0x710] sm:$0xff] }
 0x330   : > { %3352 = vst.msk [vmem:[%s7717_s5 + $0x688] sm:$0xff] %vm915_vm5, %v3096_v2  ;;  %vm2586_vm8 = vcmp.ge.f32.partialorder %v2330_v28, 0.0  ;;  %v2842_v7 = vmul.f32 0.01, %v2330_v28  ;;  %vm2587_vm9 = vcmp.ge.f32.partialorder %v2331_v39, 0.0  ;;  %3353 = vst.msk [vmem:[%s7717_s5 + $0x690] sm:$0xff] %vm915_vm5, %v3097_v13  ;;  %v2332_v17 = vadd.f32 %v7253_v20, %v2069_v12 }
 0x331   : > { %v2843_v15 = vmul.f32 0.01, %v2331_v39  ;;  %v2333_v40 = vadd.f32 %v7253_v20, %v2070_v19  ;;  %v2071_v3 = vmul.f32 %v5184_v32, %v1807_v57  ;;  %v2072_v61 = vmul.f32 %v5184_v32, %v1808_v4  ;;  %v1557_v4 = vld [vmem:[%s7717_s5 + $0x718] sm:$0xff] }
 0x332   : > { %v3098_v38 = vsel %vm2586_vm8, %v2330_v28, %v2842_v7  ;;  %v1809_v43 = vsub.f32 %v1547_v27, %v4822_v30  ;;  %v1810_v58 = vsub.f32 %v1548_v24, %v4822_v30  ;;  %vm2588_vm10 = vcmp.ge.f32.partialorder %v2332_v17, 0.0  ;;  %v1558_v27 = vld [vmem:[%s7717_s5 + $0x720] sm:$0xff] }
 0x333   : > { %3354 = vst.msk [vmem:[%s7717_s5 + $0x698] sm:$0xff] %vm915_vm5, %v3098_v38  ;;  %v3099_v18 = vsel %vm2587_vm9, %v2331_v39, %v2843_v15  ;;  %v2844_v52 = vmul.f32 0.01, %v2332_v17  ;;  %vm2589_vm11 = vcmp.ge.f32.partialorder %v2333_v40, 0.0  ;;  %v2845_v11 = vmul.f32 0.01, %v2333_v40 }
 0x334   : > { %3355 = vst.msk [vmem:[%s7717_s5 + $0x6a0] sm:$0xff] %vm915_vm5, %v3099_v18  ;;  %v2334_v50 = vadd.f32 %v7253_v20, %v2071_v3  ;;  %v2335_v5 = vadd.f32 %v7253_v20, %v2072_v61  ;;  %v2073_v62 = vmul.f32 %v5184_v32, %v1809_v43  ;;  %v2074_v36 = vmul.f32 %v5184_v32, %v1810_v58  ;;  %v1559_v58 = vld [vmem:[%s7717_s5 + $0x728] sm:$0xff] }
 0x335   : > { %v3100_v42 = vsel %vm2588_vm10, %v2332_v17, %v2844_v52  ;;  %v1811_v53 = vsub.f32 %v1549_v48, %v4822_v30  ;;  %v1812_v54 = vsub.f32 %v1550_v49, %v4822_v30  ;;  %v3101_v33 = vsel %vm2589_vm11, %v2333_v40, %v2845_v11  ;;  %v1560_v48 = vld [vmem:[%s7717_s5 + $0x730] sm:$0xff] }
 0x336   : > { %3356 = vst.msk [vmem:[%s7717_s5 + $0x6a8] sm:$0xff] %vm915_vm5, %v3100_v42  ;;  %vm2590_vm12 = vcmp.ge.f32.partialorder %v2334_v50, 0.0  ;;  %v2846_v51 = vmul.f32 0.01, %v2334_v50  ;;  %vm2591_vm13 = vcmp.ge.f32.partialorder %v2335_v5, 0.0  ;;  %3357 = vst.msk [vmem:[%s7717_s5 + $0x6b0] sm:$0xff] %vm915_vm5, %v3101_v33  ;;  %v2336_v31 = vadd.f32 %v7253_v20, %v2073_v62 }
 0x337   : > { %v2847_v47 = vmul.f32 0.01, %v2335_v5  ;;  %v2337_v55 = vadd.f32 %v7253_v20, %v2074_v36  ;;  %v2075_v23 = vmul.f32 %v5184_v32, %v1811_v53  ;;  %v2076_v46 = vmul.f32 %v5184_v32, %v1812_v54  ;;  %v1561_v54 = vld [vmem:[%s7717_s5 + $0x738] sm:$0xff] }
 0x338   : > { %v3102_v16 = vsel %vm2590_vm12, %v2334_v50, %v2846_v51  ;;  %v1813_v29 = vsub.f32 %v1551_v45, %v4822_v30  ;;  %v1814_v8 = vsub.f32 %v1552_v22, %v4822_v30  ;;  %vm2592_vm14 = vcmp.ge.f32.partialorder %v2336_v31, 0.0  ;;  %v1562_v45 = vld [vmem:[%s7717_s5 + $0x740] sm:$0xff] }
 0x339   : > { %3358 = vst.msk [vmem:[%s7717_s5 + $0x6b8] sm:$0xff] %vm915_vm5, %v3102_v16  ;;  %v3103_v6 = vsel %vm2591_vm13, %v2335_v5, %v2847_v47  ;;  %v2848_v56 = vmul.f32 0.01, %v2336_v31  ;;  %vm2593_vm15 = vcmp.ge.f32.partialorder %v2337_v55, 0.0  ;;  %v2849_v34 = vmul.f32 0.01, %v2337_v55 }
 0x33a   : > { %3359 = vst.msk [vmem:[%s7717_s5 + $0x6c0] sm:$0xff] %vm915_vm5, %v3103_v6  ;;  %v2338_v37 = vadd.f32 %v7253_v20, %v2075_v23  ;;  %v2339_v1 = vadd.f32 %v7253_v20, %v2076_v46  ;;  %v2077_v25 = vmul.f32 %v5184_v32, %v1813_v29  ;;  %v2078_v10 = vmul.f32 %v5184_v32, %v1814_v8  ;;  %v1563_v8 = vld [vmem:[%s7717_s5 + $0x748] sm:$0xff] }
 0x33b   : > { %v3104_v21 = vsel %vm2592_vm14, %v2336_v31, %v2848_v56  ;;  %v1815_v59 = vsub.f32 %v1553_v35, %v4822_v30  ;;  %v1816_v14 = vsub.f32 %v1554_v26, %v4822_v30  ;;  %v3105_v60 = vsel %vm2593_vm15, %v2337_v55, %v2849_v34  ;;  %v1564_v35 = vld [vmem:[%s7717_s5 + $0x750] sm:$0xff] }
 0x33c   : > { %3360 = vst.msk [vmem:[%s7717_s5 + $0x6c8] sm:$0xff] %vm915_vm5, %v3104_v21  ;;  %vm2594_vm0 = vcmp.ge.f32.partialorder %v2338_v37, 0.0  ;;  %v2850_v0 = vmul.f32 0.01, %v2338_v37  ;;  %vm2595_vm1 = vcmp.ge.f32.partialorder %v2339_v1, 0.0  ;;  %3361 = vst.msk [vmem:[%s7717_s5 + $0x6d0] sm:$0xff] %vm915_vm5, %v3105_v60  ;;  %v2340_v41 = vadd.f32 %v7253_v20, %v2077_v25 }
 0x33d   : > { %v2851_v9 = vmul.f32 0.01, %v2339_v1  ;;  %v2341_v28 = vadd.f32 %v7253_v20, %v2078_v10  ;;  %v2079_v39 = vmul.f32 %v5184_v32, %v1815_v59  ;;  %v2080_v2 = vmul.f32 %v5184_v32, %v1816_v14  ;;  %v1565_v14 = vld [vmem:[%s7717_s5 + $0x758] sm:$0xff] }
 0x33e   : > { %v3106_v12 = vsel %vm2594_vm0, %v2338_v37, %v2850_v0  ;;  %v1817_v19 = vsub.f32 %v1555_v44, %v4822_v30  ;;  %v1818_v57 = vsub.f32 %v1556_v63, %v4822_v30  ;;  %vm2596_vm2 = vcmp.ge.f32.partialorder %v2340_v41, 0.0  ;;  %v1566_v44 = vld [vmem:[%s7717_s5 + $0x760] sm:$0xff] }
 0x33f   : > { %3362 = vst.msk [vmem:[%s7717_s5 + $0x6d8] sm:$0xff] %vm915_vm5, %v3106_v12  ;;  %v3107_v24 = vsel %vm2595_vm1, %v2339_v1, %v2851_v9  ;;  %v2852_v13 = vmul.f32 0.01, %v2340_v41  ;;  %vm2597_vm3 = vcmp.ge.f32.partialorder %v2341_v28, 0.0  ;;  %v2853_v7 = vmul.f32 0.01, %v2341_v28 }
 0x340   : > { %3363 = vst.msk [vmem:[%s7717_s5 + $0x6e0] sm:$0xff] %vm915_vm5, %v3107_v24  ;;  %v2342_v15 = vadd.f32 %v7253_v20, %v2079_v39  ;;  %v2343_v17 = vadd.f32 %v7253_v20, %v2080_v2  ;;  %v2081_v40 = vmul.f32 %v5184_v32, %v1817_v19  ;;  %v2082_v38 = vmul.f32 %v5184_v32, %v1818_v57  ;;  %v1567_v57 = vld [vmem:[%s7717_s5 + $0x768] sm:$0xff] }
 0x341   : > { %v3108_v3 = vsel %vm2596_vm2, %v2340_v41, %v2852_v13  ;;  %v1819_v61 = vsub.f32 %v1557_v4, %v4822_v30  ;;  %v1820_v43 = vsub.f32 %v1558_v27, %v4822_v30  ;;  %v3109_v49 = vsel %vm2597_vm3, %v2341_v28, %v2853_v7  ;;  %v1568_v4 = vld [vmem:[%s7717_s5 + $0x770] sm:$0xff] }
 0x342   : > { %3364 = vst.msk [vmem:[%s7717_s5 + $0x6e8] sm:$0xff] %vm915_vm5, %v3108_v3  ;;  %vm2598_vm4 = vcmp.ge.f32.partialorder %v2342_v15, 0.0  ;;  %v2854_v18 = vmul.f32 0.01, %v2342_v15  ;;  %vm2599_vm6 = vcmp.ge.f32.partialorder %v2343_v17, 0.0  ;;  %3365 = vst.msk [vmem:[%s7717_s5 + $0x6f0] sm:$0xff] %vm915_vm5, %v3109_v49  ;;  %v2344_v11 = vadd.f32 %v7253_v20, %v2081_v40 }
 0x343   : > { %v2855_v52 = vmul.f32 0.01, %v2343_v17  ;;  %v2345_v50 = vadd.f32 %v7253_v20, %v2082_v38  ;;  %v2083_v5 = vmul.f32 %v5184_v32, %v1819_v61  ;;  %v2084_v42 = vmul.f32 %v5184_v32, %v1820_v43  ;;  %v1569_v43 = vld [vmem:[%s7717_s5 + $0x778] sm:$0xff] }
 0x344   : > { %v3110_v62 = vsel %vm2598_vm4, %v2342_v15, %v2854_v18  ;;  %v1821_v36 = vsub.f32 %v1559_v58, %v4822_v30  ;;  %v1822_v53 = vsub.f32 %v1560_v48, %v4822_v30  ;;  %vm2600_vm7 = vcmp.ge.f32.partialorder %v2344_v11, 0.0  ;;  %v1570_v58 = vld [vmem:[%s7717_s5 + $0x780] sm:$0xff] }
 0x345   : > { %3366 = vst.msk [vmem:[%s7717_s5 + $0x6f8] sm:$0xff] %vm915_vm5, %v3110_v62  ;;  %v3111_v22 = vsel %vm2599_vm6, %v2343_v17, %v2855_v52  ;;  %v2856_v33 = vmul.f32 0.01, %v2344_v11  ;;  %vm2601_vm8 = vcmp.ge.f32.partialorder %v2345_v50, 0.0  ;;  %v2857_v51 = vmul.f32 0.01, %v2345_v50 }
 0x346   : > { %3367 = vst.msk [vmem:[%s7717_s5 + $0x700] sm:$0xff] %vm915_vm5, %v3111_v22  ;;  %v2346_v47 = vadd.f32 %v7253_v20, %v2083_v5  ;;  %v2347_v31 = vadd.f32 %v7253_v20, %v2084_v42  ;;  %v2085_v55 = vmul.f32 %v5184_v32, %v1821_v36  ;;  %v2086_v16 = vmul.f32 %v5184_v32, %v1822_v53  ;;  %v1571_v53 = vld [vmem:[%s7717_s5 + $0x788] sm:$0xff] }
 0x347   : > { %v3112_v23 = vsel %vm2600_vm7, %v2344_v11, %v2856_v33  ;;  %v1823_v46 = vsub.f32 %v1561_v54, %v4822_v30  ;;  %v1824_v29 = vsub.f32 %v1562_v45, %v4822_v30  ;;  %v3113_v26 = vsel %vm2601_vm8, %v2345_v50, %v2857_v51  ;;  %v1572_v54 = vld [vmem:[%s7717_s5 + $0x790] sm:$0xff] }
 0x348   : > { %3368 = vst.msk [vmem:[%s7717_s5 + $0x708] sm:$0xff] %vm915_vm5, %v3112_v23  ;;  %vm2602_vm9 = vcmp.ge.f32.partialorder %v2346_v47, 0.0  ;;  %v2858_v6 = vmul.f32 0.01, %v2346_v47  ;;  %vm2603_vm10 = vcmp.ge.f32.partialorder %v2347_v31, 0.0  ;;  %3369 = vst.msk [vmem:[%s7717_s5 + $0x710] sm:$0xff] %vm915_vm5, %v3113_v26  ;;  %v2348_v34 = vadd.f32 %v7253_v20, %v2085_v55 }
 0x349   : > { %v2859_v56 = vmul.f32 0.01, %v2347_v31  ;;  %v2349_v37 = vadd.f32 %v7253_v20, %v2086_v16  ;;  %v2087_v1 = vmul.f32 %v5184_v32, %v1823_v46  ;;  %v2088_v21 = vmul.f32 %v5184_v32, %v1824_v29  ;;  %v1573_v29 = vld [vmem:[%s7717_s5 + $0x798] sm:$0xff] }
 0x34a   : > { %v3114_v25 = vsel %vm2602_vm9, %v2346_v47, %v2858_v6  ;;  %v1825_v10 = vsub.f32 %v1563_v8, %v4822_v30  ;;  %v1826_v59 = vsub.f32 %v1564_v35, %v4822_v30  ;;  %vm2604_vm11 = vcmp.ge.f32.partialorder %v2348_v34, 0.0  ;;  %v1574_v8 = vld [vmem:[%s7717_s5 + $0x7a0] sm:$0xff] }
 0x34b   : > { %3370 = vst.msk [vmem:[%s7717_s5 + $0x718] sm:$0xff] %vm915_vm5, %v3114_v25  ;;  %v3115_v63 = vsel %vm2603_vm10, %v2347_v31, %v2859_v56  ;;  %v2860_v60 = vmul.f32 0.01, %v2348_v34  ;;  %vm2605_vm12 = vcmp.ge.f32.partialorder %v2349_v37, 0.0  ;;  %v2861_v0 = vmul.f32 0.01, %v2349_v37 }
 0x34c   : > { %3371 = vst.msk [vmem:[%s7717_s5 + $0x720] sm:$0xff] %vm915_vm5, %v3115_v63  ;;  %v2350_v9 = vadd.f32 %v7253_v20, %v2087_v1  ;;  %v2351_v41 = vadd.f32 %v7253_v20, %v2088_v21  ;;  %v2089_v28 = vmul.f32 %v5184_v32, %v1825_v10  ;;  %v2090_v12 = vmul.f32 %v5184_v32, %v1826_v59  ;;  %v1575_v59 = vld [vmem:[%s7717_s5 + $0x7a8] sm:$0xff] }
 0x34d   : > { %v3116_v39 = vsel %vm2604_vm11, %v2348_v34, %v2860_v60  ;;  %v1827_v2 = vsub.f32 %v1565_v14, %v4822_v30  ;;  %v1828_v19 = vsub.f32 %v1566_v44, %v4822_v30  ;;  %v3117_v27 = vsel %vm2605_vm12, %v2349_v37, %v2861_v0  ;;  %v1576_v14 = vld [vmem:[%s7717_s5 + $0x7b0] sm:$0xff] }
 0x34e   : > { %3372 = vst.msk [vmem:[%s7717_s5 + $0x728] sm:$0xff] %vm915_vm5, %v3116_v39  ;;  %vm2606_vm13 = vcmp.ge.f32.partialorder %v2350_v9, 0.0  ;;  %v2862_v24 = vmul.f32 0.01, %v2350_v9  ;;  %vm2607_vm14 = vcmp.ge.f32.partialorder %v2351_v41, 0.0  ;;  %3373 = vst.msk [vmem:[%s7717_s5 + $0x730] sm:$0xff] %vm915_vm5, %v3117_v27  ;;  %v2352_v7 = vadd.f32 %v7253_v20, %v2089_v28 }
 0x34f   : > { %v2863_v13 = vmul.f32 0.01, %v2351_v41  ;;  %v2353_v15 = vadd.f32 %v7253_v20, %v2090_v12  ;;  %v2091_v17 = vmul.f32 %v5184_v32, %v1827_v2  ;;  %v2092_v3 = vmul.f32 %v5184_v32, %v1828_v19  ;;  %v1577_v19 = vld [vmem:[%s7717_s5 + $0x7b8] sm:$0xff] }
 0x350   : > { %v3118_v40 = vsel %vm2606_vm13, %v2350_v9, %v2862_v24  ;;  %v1829_v38 = vsub.f32 %v1567_v57, %v4822_v30  ;;  %v1830_v61 = vsub.f32 %v1568_v4, %v4822_v30  ;;  %vm2608_vm15 = vcmp.ge.f32.partialorder %v2352_v7, 0.0  ;;  %v1578_v57 = vld [vmem:[%s7717_s5 + $0x7c0] sm:$0xff] }
 0x351   : > { %3374 = vst.msk [vmem:[%s7717_s5 + $0x738] sm:$0xff] %vm915_vm5, %v3118_v40  ;;  %v3119_v48 = vsel %vm2607_vm14, %v2351_v41, %v2863_v13  ;;  %v2864_v49 = vmul.f32 0.01, %v2352_v7  ;;  %vm2609_vm0 = vcmp.ge.f32.partialorder %v2353_v15, 0.0  ;;  %v2865_v18 = vmul.f32 0.01, %v2353_v15 }
 0x352   : > { %3375 = vst.msk [vmem:[%s7717_s5 + $0x740] sm:$0xff] %vm915_vm5, %v3119_v48  ;;  %v2354_v52 = vadd.f32 %v7253_v20, %v2091_v17  ;;  %v2355_v11 = vadd.f32 %v7253_v20, %v2092_v3  ;;  %v2093_v50 = vmul.f32 %v5184_v32, %v1829_v38  ;;  %v2094_v62 = vmul.f32 %v5184_v32, %v1830_v61  ;;  %v1579_v61 = vld [vmem:[%s7717_s5 + $0x7c8] sm:$0xff] }
 0x353   : > { %v3120_v5 = vsel %vm2608_vm15, %v2352_v7, %v2864_v49  ;;  %v1831_v42 = vsub.f32 %v1569_v43, %v4822_v30  ;;  %v1832_v36 = vsub.f32 %v1570_v58, %v4822_v30  ;;  %v3121_v45 = vsel %vm2609_vm0, %v2353_v15, %v2865_v18  ;;  %v1580_v43 = vld [vmem:[%s7717_s5 + $0x7d0] sm:$0xff] }
 0x354   : > { %3376 = vst.msk [vmem:[%s7717_s5 + $0x748] sm:$0xff] %vm915_vm5, %v3120_v5  ;;  %vm2610_vm1 = vcmp.ge.f32.partialorder %v2354_v52, 0.0  ;;  %v2866_v22 = vmul.f32 0.01, %v2354_v52  ;;  %vm2611_vm2 = vcmp.ge.f32.partialorder %v2355_v11, 0.0  ;;  %3377 = vst.msk [vmem:[%s7717_s5 + $0x750] sm:$0xff] %vm915_vm5, %v3121_v45  ;;  %v2356_v51 = vadd.f32 %v7253_v20, %v2093_v50 }
 0x355   : > { %v2867_v33 = vmul.f32 0.01, %v2355_v11  ;;  %v2357_v47 = vadd.f32 %v7253_v20, %v2094_v62  ;;  %v2095_v31 = vmul.f32 %v5184_v32, %v1831_v42  ;;  %v2096_v23 = vmul.f32 %v5184_v32, %v1832_v36  ;;  %v1581_v36 = vld [vmem:[%s7717_s5 + $0x7d8] sm:$0xff] }
 0x356   : > { %v3122_v55 = vsel %vm2610_vm1, %v2354_v52, %v2866_v22  ;;  %v1833_v16 = vsub.f32 %v1571_v53, %v4822_v30  ;;  %v1834_v46 = vsub.f32 %v1572_v54, %v4822_v30  ;;  %vm2612_vm3 = vcmp.ge.f32.partialorder %v2356_v51, 0.0  ;;  %v1582_v53 = vld [vmem:[%s7717_s5 + $0x7e0] sm:$0xff] }
 0x357   : > { %3378 = vst.msk [vmem:[%s7717_s5 + $0x758] sm:$0xff] %vm915_vm5, %v3122_v55  ;;  %v3123_v35 = vsel %vm2611_vm2, %v2355_v11, %v2867_v33  ;;  %v2868_v26 = vmul.f32 0.01, %v2356_v51  ;;  %vm2613_vm4 = vcmp.ge.f32.partialorder %v2357_v47, 0.0  ;;  %v2869_v6 = vmul.f32 0.01, %v2357_v47 }
 0x358   : > { %3379 = vst.msk [vmem:[%s7717_s5 + $0x760] sm:$0xff] %vm915_vm5, %v3123_v35  ;;  %v2358_v56 = vadd.f32 %v7253_v20, %v2095_v31  ;;  %v2359_v34 = vadd.f32 %v7253_v20, %v2096_v23  ;;  %v2097_v37 = vmul.f32 %v5184_v32, %v1833_v16  ;;  %v2098_v25 = vmul.f32 %v5184_v32, %v1834_v46  ;;  %v1583_v46 = vld [vmem:[%s7717_s5 + $0x7e8] sm:$0xff] }
 0x359   : > { %v3124_v1 = vsel %vm2612_vm3, %v2356_v51, %v2868_v26  ;;  %v1835_v21 = vsub.f32 %v1573_v29, %v4822_v30  ;;  %v1836_v10 = vsub.f32 %v1574_v8, %v4822_v30  ;;  %v3125_v44 = vsel %vm2613_vm4, %v2357_v47, %v2869_v6  ;;  %v1584_v29 = vld [vmem:[%s7717_s5 + $0x7f0] sm:$0xff] }
 0x35a   : > { %3380 = vst.msk [vmem:[%s7717_s5 + $0x768] sm:$0xff] %vm915_vm5, %v3124_v1  ;;  %vm2614_vm6 = vcmp.ge.f32.partialorder %v2358_v56, 0.0  ;;  %v2870_v63 = vmul.f32 0.01, %v2358_v56  ;;  %vm2615_vm7 = vcmp.ge.f32.partialorder %v2359_v34, 0.0  ;;  %3381 = vst.msk [vmem:[%s7717_s5 + $0x770] sm:$0xff] %vm915_vm5, %v3125_v44  ;;  %v2360_v0 = vadd.f32 %v7253_v20, %v2097_v37 }
 0x35b   : > { %v2871_v60 = vmul.f32 0.01, %v2359_v34  ;;  %v2361_v9 = vadd.f32 %v7253_v20, %v2098_v25  ;;  %v2099_v41 = vmul.f32 %v5184_v32, %v1835_v21  ;;  %v2100_v39 = vmul.f32 %v5184_v32, %v1836_v10  ;;  %v1585_v10 = vld [vmem:[%s7717_s5 + $0x7f8] sm:$0xff] }
 0x35c   : > { %v3126_v28 = vsel %vm2614_vm6, %v2358_v56, %v2870_v63  ;;  %v1837_v12 = vsub.f32 %v1575_v59, %v4822_v30  ;;  %v1838_v2 = vsub.f32 %v1576_v14, %v4822_v30  ;;  %vm2616_vm8 = vcmp.ge.f32.partialorder %v2360_v0, 0.0 }
 0x35d   : > { %3382 = vst.msk [vmem:[%s7717_s5 + $0x778] sm:$0xff] %vm915_vm5, %v3126_v28  ;;  %v3127_v4 = vsel %vm2615_vm7, %v2359_v34, %v2871_v60  ;;  %v2872_v27 = vmul.f32 0.01, %v2360_v0  ;;  %vm2617_vm9 = vcmp.ge.f32.partialorder %v2361_v9, 0.0  ;;  %v2873_v24 = vmul.f32 0.01, %v2361_v9 }
 0x35e   : > { %3383 = vst.msk [vmem:[%s7717_s5 + $0x780] sm:$0xff] %vm915_vm5, %v3127_v4  ;;  %v2362_v13 = vadd.f32 %v7253_v20, %v2099_v41  ;;  %v2363_v7 = vadd.f32 %v7253_v20, %v2100_v39  ;;  %v2101_v15 = vmul.f32 %v5184_v32, %v1837_v12  ;;  %v2102_v40 = vmul.f32 %v5184_v32, %v1838_v2 }
 0x35f   : > { %v3128_v17 = vsel %vm2616_vm8, %v2360_v0, %v2872_v27  ;;  %v1839_v3 = vsub.f32 %v1577_v19, %v4822_v30  ;;  %v1840_v38 = vsub.f32 %v1578_v57, %v4822_v30  ;;  %v3129_v58 = vsel %vm2617_vm9, %v2361_v9, %v2873_v24 }
 0x360   : > { %3384 = vst.msk [vmem:[%s7717_s5 + $0x788] sm:$0xff] %vm915_vm5, %v3128_v17  ;;  %vm2618_vm10 = vcmp.ge.f32.partialorder %v2362_v13, 0.0  ;;  %v2874_v48 = vmul.f32 0.01, %v2362_v13  ;;  %vm2619_vm11 = vcmp.ge.f32.partialorder %v2363_v7, 0.0  ;;  %3385 = vst.msk [vmem:[%s7717_s5 + $0x790] sm:$0xff] %vm915_vm5, %v3129_v58  ;;  %v2364_v18 = vadd.f32 %v7253_v20, %v2101_v15 }
 0x361   : > { %v2875_v49 = vmul.f32 0.01, %v2363_v7  ;;  %v2365_v52 = vadd.f32 %v7253_v20, %v2102_v40  ;;  %v2103_v11 = vmul.f32 %v5184_v32, %v1839_v3  ;;  %v2104_v5 = vmul.f32 %v5184_v32, %v1840_v38 }
 0x362   : > { %v3130_v50 = vsel %vm2618_vm10, %v2362_v13, %v2874_v48  ;;  %v1841_v62 = vsub.f32 %v1579_v61, %v4822_v30  ;;  %v1842_v42 = vsub.f32 %v1580_v43, %v4822_v30  ;;  %vm2620_vm12 = vcmp.ge.f32.partialorder %v2364_v18, 0.0 }
 0x363   : > { %3386 = vst.msk [vmem:[%s7717_s5 + $0x798] sm:$0xff] %vm915_vm5, %v3130_v50  ;;  %v3131_v54 = vsel %vm2619_vm11, %v2363_v7, %v2875_v49  ;;  %v2876_v45 = vmul.f32 0.01, %v2364_v18  ;;  %vm2621_vm13 = vcmp.ge.f32.partialorder %v2365_v52, 0.0  ;;  %v2877_v22 = vmul.f32 0.01, %v2365_v52 }
 0x364   : > { %3387 = vst.msk [vmem:[%s7717_s5 + $0x7a0] sm:$0xff] %vm915_vm5, %v3131_v54  ;;  %v2366_v33 = vadd.f32 %v7253_v20, %v2103_v11  ;;  %v2367_v51 = vadd.f32 %v7253_v20, %v2104_v5  ;;  %v2105_v47 = vmul.f32 %v5184_v32, %v1841_v62  ;;  %v2106_v55 = vmul.f32 %v5184_v32, %v1842_v42 }
 0x365   : > { %v3132_v31 = vsel %vm2620_vm12, %v2364_v18, %v2876_v45  ;;  %v1843_v23 = vsub.f32 %v1581_v36, %v4822_v30  ;;  %v1844_v16 = vsub.f32 %v1582_v53, %v4822_v30  ;;  %v3133_v8 = vsel %vm2621_vm13, %v2365_v52, %v2877_v22 }
 0x366   : > { %3388 = vst.msk [vmem:[%s7717_s5 + $0x7a8] sm:$0xff] %vm915_vm5, %v3132_v31  ;;  %vm2622_vm14 = vcmp.ge.f32.partialorder %v2366_v33, 0.0  ;;  %v2878_v35 = vmul.f32 0.01, %v2366_v33  ;;  %vm2623_vm15 = vcmp.ge.f32.partialorder %v2367_v51, 0.0  ;;  %3389 = vst.msk [vmem:[%s7717_s5 + $0x7b0] sm:$0xff] %vm915_vm5, %v3133_v8  ;;  %v2368_v6 = vadd.f32 %v7253_v20, %v2105_v47 }
 0x367   : > { %v2879_v26 = vmul.f32 0.01, %v2367_v51  ;;  %v2369_v56 = vadd.f32 %v7253_v20, %v2106_v55  ;;  %v2107_v34 = vmul.f32 %v5184_v32, %v1843_v23  ;;  %v2108_v1 = vmul.f32 %v5184_v32, %v1844_v16 }
 0x368   : > { %v3134_v37 = vsel %vm2622_vm14, %v2366_v33, %v2878_v35  ;;  %v1845_v25 = vsub.f32 %v1583_v46, %v4822_v30  ;;  %v1846_v21 = vsub.f32 %v1584_v29, %v4822_v30  ;;  %vm2624_vm0 = vcmp.ge.f32.partialorder %v2368_v6, 0.0 }
 0x369   : > { %3390 = vst.msk [vmem:[%s7717_s5 + $0x7b8] sm:$0xff] %vm915_vm5, %v3134_v37  ;;  %v3135_v59 = vsel %vm2623_vm15, %v2367_v51, %v2879_v26  ;;  %v2880_v14 = vmul.f32 0.01, %v2368_v6  ;;  %vm2625_vm1 = vcmp.ge.f32.partialorder %v2369_v56, 0.0  ;;  %v2881_v44 = vmul.f32 0.01, %v2369_v56 }
 0x36a   : > { %3391 = vst.msk [vmem:[%s7717_s5 + $0x7c0] sm:$0xff] %vm915_vm5, %v3135_v59  ;;  %v2370_v63 = vadd.f32 %v7253_v20, %v2107_v34  ;;  %v2371_v60 = vadd.f32 %v7253_v20, %v2108_v1  ;;  %v2109_v0 = vmul.f32 %v5184_v32, %v1845_v25  ;;  %v2110_v41 = vmul.f32 %v5184_v32, %v1846_v21 }
 0x36b   : > { %v3136_v9 = vsel %vm2624_vm0, %v2368_v6, %v2880_v14  ;;  %v1847_v28 = vsub.f32 %v1585_v10, %v4822_v30  ;;  %v3137_v39 = vsel %vm2625_vm1, %v2369_v56, %v2881_v44 }
 0x36c   : > { %3392 = vst.msk [vmem:[%s7717_s5 + $0x7c8] sm:$0xff] %vm915_vm5, %v3136_v9  ;;  %vm2626_vm2 = vcmp.ge.f32.partialorder %v2370_v63, 0.0  ;;  %v2882_v12 = vmul.f32 0.01, %v2370_v63  ;;  %vm2627_vm3 = vcmp.ge.f32.partialorder %v2371_v60, 0.0  ;;  %3393 = vst.msk [vmem:[%s7717_s5 + $0x7d0] sm:$0xff] %vm915_vm5, %v3137_v39  ;;  %v2372_v19 = vadd.f32 %v7253_v20, %v2109_v0 }
 0x36d   : > { %v2883_v2 = vmul.f32 0.01, %v2371_v60  ;;  %v2373_v57 = vadd.f32 %v7253_v20, %v2110_v41  ;;  %v2111_v30 = vmul.f32 %v5184_v32, %v1847_v28 }
 0x36e   : > { %v3138_v4 = vsel %vm2626_vm2, %v2370_v63, %v2882_v12  ;;  %vm2628_vm4 = vcmp.ge.f32.partialorder %v2372_v19, 0.0  ;;  %v2884_v24 = vmul.f32 0.01, %v2372_v19 }
 0x36f   : > { %3394 = vst.msk [vmem:[%s7717_s5 + $0x7d8] sm:$0xff] %vm915_vm5, %v3138_v4  ;;  %v3139_v27 = vsel %vm2627_vm3, %v2371_v60, %v2883_v2  ;;  %vm2629_vm6 = vcmp.ge.f32.partialorder %v2373_v57, 0.0  ;;  %v2885_v13 = vmul.f32 0.01, %v2373_v57  ;;  %v2374_v7 = vadd.f32 %v7253_v20, %v2111_v30 }
 0x370   : > { %3395 = vst.msk [vmem:[%s7717_s5 + $0x7e0] sm:$0xff] %vm915_vm5, %v3139_v27  ;;  %v3140_v15 = vsel %vm2628_vm4, %v2372_v19, %v2884_v24 }
 0x371   : > { %3396 = vst.msk [vmem:[%s7717_s5 + $0x7e8] sm:$0xff] %vm915_vm5, %v3140_v15  ;;  %v3141_v32 = vsel %vm2629_vm6, %v2373_v57, %v2885_v13  ;;  %vm2630_vm7 = vcmp.ge.f32.partialorder %v2374_v7, 0.0  ;;  %v2886_v17 = vmul.f32 0.01, %v2374_v7 }
 0x372   : > { %3397 = vst.msk [vmem:[%s7717_s5 + $0x7f0] sm:$0xff] %vm915_vm5, %v3141_v32 }
 0x373   : > { %v3142_v40 = vsel %vm2630_vm7, %v2374_v7, %v2886_v17 }
 0x374   : > { %3398 = vst.msk [vmem:[%s7717_s5 + $0x7f8] sm:$0xff] %vm915_vm5, %v3142_v40 }
 0x375 PF: > { %s17_s18 = sadd.s32 1, %s3874_s18  }
 0x376   : > { %p14_p11 = scmp.ge.s32.totalorder %s17_s18, 6  }
 0x378   :  { %16 = sbr.rel (!%p14_p11) target bundleno = 2 (0x2), region = 88 }
 0x37f   :  { %3410 = vsyncpa [#allocation5], 1 }
 0x380   :  { %3412 = vsyncpa [#allocation5 + $0x1], 1 }
 0x381   :  { %3413 = vsyncpa [#allocation7], 1 }

// kernel: lenet5_forward.4
= control target key start
LH: loop header
LB: loop body
LE: loop exit
PB: predicated region body
PF: predicated region fallthrough
CT: control target
= control target key end

     0   :  { %vm24_vm0 = vcmask 122880   ;;  %v1133_v0 = vmov 0.0|0.0   ;;  %v1134_v4 = vmov 0.0   ;;  %vm125_vm1 = vcmask 179200   ;;  %s2491_s1 = inlined_call_operand.vmem [shape: f32[150,16], index: 1, kind: input, shape index: {}]   ;;  %s2492_s0 = inlined_call_operand.vmem [shape: f32[288,150], index: 0, kind: input, shape index: {}]   ;;  %s2493_s2 = inlined_call_operand.vmem [shape: f32[1,16], index: 2, kind: input, shape index: {}]   ;;  %s2494_s5 = inlined_call_operand.vmem [shape: f32[288,16], index: 5, kind: output, shape index: {}]   ;;  %s2495_s3 = inlined_call_operand.vmem [shape: f32[1,16], index: 3, kind: input, shape index: {}]   ;;  %s2496_s4 = inlined_call_operand.vmem [shape: f32[1,16], index: 4, kind: input, shape index: {}]  }
   0x1   :  { %1082 = vmatprep.subr.bf16.mxu0 %v1133_v0  ;;  %v99_v1 = vld [vmem:[%s2491_s1] sm:$0xff]  ;;  %v100_v2 = vld [vmem:[%s2491_s1 + $0x8] sm:$0xff]  ;;  %v101_v3 = vld [vmem:[%s2491_s1 + $0x10] sm:$0xff]  ;;  %1109 = vmatprep.subr.bf16.mxu1 %v1133_v0  ;;  %25 = vst.msk [vmem:[#allocation2] sm:$0x1] %vm24_vm0, %v1134_v4  ;;  %vm234_vm2 = vcmask 1045504  }
   0x2   :  { %26 = vst.msk [vmem:[#allocation3] sm:$0x1] %vm24_vm0, %v1134_v4  ;;  %v1083_v5 = vpack.c.bf16 %v100_v2, %v99_v1  ;;  %v102_v6 = vld [vmem:[%s2491_s1 + $0x18] sm:$0xff]  ;;  %v103_v8 = vld [vmem:[%s2491_s1 + $0x20] sm:$0xff]  ;;  %v104_v9 = vld [vmem:[%s2491_s1 + $0x28] sm:$0xff]  ;;  %vm484_vm3 = vcmask 130048  }
   0x3   :  { %v1086_v7 = vpack.c.bf16 %v102_v6, %v101_v3  ;;  %v28_v10 = vld [vmem:[%s2492_s0 + $0x8] sm:$0xff]  ;;  %v1089_v11 = vpack.c.bf16 %v104_v9, %v103_v8  ;;  %v105_v12 = vld [vmem:[%s2491_s1 + $0x30] sm:$0xff]  ;;  %v106_v13 = vld [vmem:[%s2491_s1 + $0x38] sm:$0xff] }
   0x4   :  { %1084 = vmatpush1.bf16.msra.mxu0 %v1083_v5  ;;  %1119 = vmatpush1.bf16.msra.mxu1 %v1083_v5  ;;  %v1092_v14 = vpack.c.bf16 %v106_v13, %v105_v12  ;;  %v107_v15 = vld [vmem:[%s2491_s1 + $0x40] sm:$0xff]  ;;  %v108_v16 = vld [vmem:[%s2491_s1 + $0x48] sm:$0xff]  ;;  %v109_v19 = vld [vmem:[%s2491_s1 + $0x50] sm:$0xff] }
   0x5   :  { %1085 = vmatprep.subr.bf16.mxu0 %v1133_v0  ;;  %1110 = vmatprep.subr.bf16.mxu1 %v1133_v0  ;;  %v64_v17 = vld [vmem:[%s2492_s0 + $0x128] sm:$0xff]  ;;  %v1095_v18 = vpack.c.bf16 %v108_v16, %v107_v15  ;;  %v110_v20 = vld [vmem:[%s2491_s1 + $0x58] sm:$0xff]  ;;  %v111_v22 = vld [vmem:[%s2491_s1 + $0x60] sm:$0xff] }
   0x6   :  { %1045 = vmatprep.mubr.msk.f32.mxu0 %vm125_vm1, %v28_v10  ;;  %1063 = vmatprep.mubr.msk.f32.mxu1 %vm125_vm1, %v64_v17  ;;  %v1098_v21 = vpack.c.bf16 %v110_v20, %v109_v19  ;;  %v112_v23 = vld [vmem:[%s2491_s1 + $0x68] sm:$0xff]  ;;  %v113_v25 = vld [vmem:[%s2491_s1 + $0x70] sm:$0xff]  ;;  %v114_v26 = vld [vmem:[%s2491_s1 + $0x78] sm:$0xff] }
   0x7   :  { %v1101_v24 = vpack.c.bf16 %v112_v23, %v111_v22  ;;  %v1104_v27 = vpack.c.bf16 %v114_v26, %v113_v25  ;;  %v115_v28 = vld [vmem:[%s2491_s1 + $0x80] sm:$0xff]  ;;  %v116_v29 = vld [vmem:[%s2491_s1 + $0x88] sm:$0xff]  ;;  %v117_v31 = vld [vmem:[%s2491_s1 + $0x90] sm:$0x3f] }
   0x8   :  { %1087 = vmatpush1.bf16.msra.mxu0 %v1086_v7  ;;  %1120 = vmatpush1.bf16.msra.mxu1 %v1086_v7  ;;  %v1107_v30 = vpack.c.bf16 %v116_v29, %v115_v28  ;;  %v27_v32 = vld [vmem:[%s2492_s0] sm:$0xff]  ;;  %v30_v33 = vld [vmem:[%s2492_s0 + $0x18] sm:$0xff]  ;;  %v29_v36 = vld [vmem:[%s2492_s0 + $0x10] sm:$0xff] }
   0x9   :  { %1088 = vmatprep.subr.bf16.mxu0 %v1133_v0  ;;  %1111 = vmatprep.subr.bf16.mxu1 %v1133_v0  ;;  %v63_v34 = vld [vmem:[%s2492_s0 + $0x120] sm:$0xff]  ;;  %v66_v35 = vld [vmem:[%s2492_s0 + $0x138] sm:$0xff]  ;;  %v32_v37 = vld [vmem:[%s2492_s0 + $0x28] sm:$0xff] }
   0xa   :  { %v65_v38 = vld [vmem:[%s2492_s0 + $0x130] sm:$0xff]  ;;  %v68_v39 = vld [vmem:[%s2492_s0 + $0x148] sm:$0xff]  ;;  %v31_v40 = vld [vmem:[%s2492_s0 + $0x20] sm:$0xff] }
   0xb   :  { %v34_v41 = vld [vmem:[%s2492_s0 + $0x38] sm:$0xff]  ;;  %v67_v42 = vld [vmem:[%s2492_s0 + $0x140] sm:$0xff]  ;;  %v33_v44 = vld [vmem:[%s2492_s0 + $0x30] sm:$0xff] }
   0xc   :  { %1090 = vmatpush1.bf16.msra.mxu0 %v1089_v11  ;;  %1121 = vmatpush1.bf16.msra.mxu1 %v1089_v11  ;;  %v70_v43 = vld [vmem:[%s2492_s0 + $0x158] sm:$0xff]  ;;  %v36_v45 = vld [vmem:[%s2492_s0 + $0x48] sm:$0xff]  ;;  %v69_v46 = vld [vmem:[%s2492_s0 + $0x150] sm:$0xff] }
   0xd   :  { %1091 = vmatprep.subr.bf16.mxu0 %v1133_v0  ;;  %1112 = vmatprep.subr.bf16.mxu1 %v1133_v0  ;;  %v72_v47 = vld [vmem:[%s2492_s0 + $0x168] sm:$0xff]  ;;  %v35_v48 = vld [vmem:[%s2492_s0 + $0x40] sm:$0xff]  ;;  %v38_v49 = vld [vmem:[%s2492_s0 + $0x58] sm:$0xff] }
   0xe   :  { %v71_v50 = vld [vmem:[%s2492_s0 + $0x160] sm:$0xff]  ;;  %v74_v51 = vld [vmem:[%s2492_s0 + $0x178] sm:$0xff]  ;;  %v37_v52 = vld [vmem:[%s2492_s0 + $0x50] sm:$0xff] }
   0xf   :  { %v40_v53 = vld [vmem:[%s2492_s0 + $0x68] sm:$0xff]  ;;  %v73_v54 = vld [vmem:[%s2492_s0 + $0x170] sm:$0xff]  ;;  %v39_v56 = vld [vmem:[%s2492_s0 + $0x60] sm:$0xff] }
  0x10   :  { %1093 = vmatpush1.bf16.msra.mxu0 %v1092_v14  ;;  %1122 = vmatpush1.bf16.msra.mxu1 %v1092_v14  ;;  %v76_v55 = vld [vmem:[%s2492_s0 + $0x188] sm:$0xff]  ;;  %v42_v57 = vld [vmem:[%s2492_s0 + $0x78] sm:$0xff]  ;;  %v75_v58 = vld [vmem:[%s2492_s0 + $0x180] sm:$0xff] }
  0x11   :  { %1094 = vmatprep.subr.bf16.mxu0 %v1133_v0  ;;  %1113 = vmatprep.subr.bf16.mxu1 %v1133_v0  ;;  %v78_v59 = vld [vmem:[%s2492_s0 + $0x198] sm:$0xff]  ;;  %v41_v60 = vld [vmem:[%s2492_s0 + $0x70] sm:$0xff]  ;;  %v44_v61 = vld [vmem:[%s2492_s0 + $0x88] sm:$0xff] }
  0x12   :  { %v77_v62 = vld [vmem:[%s2492_s0 + $0x190] sm:$0xff]  ;;  %v80_v63 = vld [vmem:[%s2492_s0 + $0x1a8] sm:$0xff]  ;;  %v46_v1 = vld [vmem:[%s2492_s0 + $0x98] sm:$0xff] }
  0x13   :  { %v79_v2 = vld [vmem:[%s2492_s0 + $0x1a0] sm:$0xff]  ;;  %v82_v3 = vld [vmem:[%s2492_s0 + $0x1b8] sm:$0xff]  ;;  %v48_v5 = vld [vmem:[%s2492_s0 + $0xa8] sm:$0xff] }
  0x14   :  { %1096 = vmatpush1.bf16.msra.mxu0 %v1095_v18  ;;  %1123 = vmatpush1.bf16.msra.mxu1 %v1095_v18  ;;  %v81_v6 = vld [vmem:[%s2492_s0 + $0x1b0] sm:$0xff]  ;;  %v84_v7 = vld [vmem:[%s2492_s0 + $0x1c8] sm:$0xff]  ;;  %v47_v8 = vld [vmem:[%s2492_s0 + $0xa0] sm:$0xff] }
  0x15   :  { %1097 = vmatprep.subr.bf16.mxu0 %v1133_v0  ;;  %1114 = vmatprep.subr.bf16.mxu1 %v1133_v0  ;;  %v50_v9 = vld [vmem:[%s2492_s0 + $0xb8] sm:$0xff]  ;;  %v83_v10 = vld [vmem:[%s2492_s0 + $0x1c0] sm:$0xff]  ;;  %v49_v12 = vld [vmem:[%s2492_s0 + $0xb0] sm:$0xff] }
  0x16   :  { %v86_v11 = vld [vmem:[%s2492_s0 + $0x1d8] sm:$0xff]  ;;  %v52_v13 = vld [vmem:[%s2492_s0 + $0xc8] sm:$0xff]  ;;  %v85_v14 = vld [vmem:[%s2492_s0 + $0x1d0] sm:$0xff] }
  0x17   :  { %v88_v15 = vld [vmem:[%s2492_s0 + $0x1e8] sm:$0xff]  ;;  %v51_v16 = vld [vmem:[%s2492_s0 + $0xc0] sm:$0xff]  ;;  %v54_v17 = vld [vmem:[%s2492_s0 + $0xd8] sm:$0xff] }
  0x18   :  { %1099 = vmatpush1.bf16.msra.mxu0 %v1098_v21  ;;  %1124 = vmatpush1.bf16.msra.mxu1 %v1098_v21  ;;  %v87_v18 = vld [vmem:[%s2492_s0 + $0x1e0] sm:$0xff]  ;;  %v90_v19 = vld [vmem:[%s2492_s0 + $0x1f8] sm:$0xff]  ;;  %v53_v20 = vld [vmem:[%s2492_s0 + $0xd0] sm:$0xff] }
  0x19   :  { %1100 = vmatprep.subr.bf16.mxu0 %v1133_v0  ;;  %1115 = vmatprep.subr.bf16.mxu1 %v1133_v0  ;;  %v56_v21 = vld [vmem:[%s2492_s0 + $0xe8] sm:$0xff]  ;;  %v89_v22 = vld [vmem:[%s2492_s0 + $0x1f0] sm:$0xff]  ;;  %v58_v25 = vld [vmem:[%s2492_s0 + $0xf8] sm:$0xff] }
  0x1a   :  { %v92_v23 = vld [vmem:[%s2492_s0 + $0x208] sm:$0xff]  ;;  %v91_v26 = vld [vmem:[%s2492_s0 + $0x200] sm:$0xff]  ;;  %v57_v28 = vld [vmem:[%s2492_s0 + $0xf0] sm:$0xff] }
  0x1b   :  { %v60_v29 = vld [vmem:[%s2492_s0 + $0x108] sm:$0xff] }
  0x1c   :  { %1102 = vmatpush1.bf16.msra.mxu0 %v1101_v24  ;;  %1125 = vmatpush1.bf16.msra.mxu1 %v1101_v24  ;;  %v55_v24 = vld [vmem:[%s2492_s0 + $0xe0] sm:$0xff] }
  0x1d   :  { %1103 = vmatprep.subr.bf16.mxu0 %v1133_v0  ;;  %1116 = vmatprep.subr.bf16.mxu1 %v1133_v0 }
  0x20   :  { %1105 = vmatpush1.bf16.msra.mxu0 %v1104_v27  ;;  %1126 = vmatpush1.bf16.msra.mxu1 %v1104_v27  ;;  %v94_v27 = vld [vmem:[%s2492_s0 + $0x218] sm:$0xff] }
  0x21   :  { %1106 = vmatprep.subr.bf16.mxu0 %v1133_v0  ;;  %1117 = vmatprep.subr.bf16.mxu1 %v1133_v0  ;;  %v43_v0 = vld [vmem:[%s2492_s0 + $0x80] sm:$0xff] }
  0x24   :  { %1108 = vmatpush1.bf16.msra.mxu0 %v1107_v30  ;;  %1127 = vmatpush1.bf16.msra.mxu1 %v1107_v30  ;;  %v93_v30 = vld [vmem:[%s2492_s0 + $0x210] sm:$0xff] }
  0x25   :  { %274 = vmatprep.subr.mxu0 %v1134_v4  ;;  %1118 = vmatprep.subr.mxu1 %v1134_v4  ;;  %v45_v4 = vld [vmem:[%s2492_s0 + $0x90] sm:$0xff] }
  0x28   :  { %1044 = vmatpush1.msk.msra.mxu0 %vm234_vm2, %v117_v31  ;;  %1128 = vmatpush1.msk.msra.mxu1 %vm234_vm2, %v117_v31  ;;  %v96_v31 = vld [vmem:[%s2492_s0 + $0x228] sm:$0xff] }
  0x29   :  { %303 = vmatmul.mubr.f32.vlgmr.msra.gmra.mrb[0].mxu0 %v27_v32  ;;  %393 = vmatmul.mubr.f32.vlgmr.msra.gmra.mrb[0].mxu1 %v63_v34  ;;  %v59_v32 = vld [vmem:[%s2492_s0 + $0x100] sm:$0xff] }
  0x2a   :  { %1046 = vmatprep.mubr.msk.f32.mxu0 %vm125_vm1, %v30_v33  ;;  %1064 = vmatprep.mubr.msk.f32.mxu1 %vm125_vm1, %v66_v35  ;;  %v62_v33 = vld [vmem:[%s2492_s0 + $0x118] sm:$0xff]  ;;  %v95_v34 = vld [vmem:[%s2492_s0 + $0x220] sm:$0xff] }
  0x2b   :  { %v98_v35 = vld [vmem:[%s2492_s0 + $0x238] sm:$0xff] }
  0x2d   :  { %308 = vmatmul.mubr.f32.gmra.mrb[2].mxu0 %v29_v36  ;;  %398 = vmatmul.mubr.f32.gmra.mrb[2].mxu1 %v65_v38  ;;  %v61_v36 = vld [vmem:[%s2492_s0 + $0x110] sm:$0xff]  ;;  %v1501_v38 = vld [vmem:[%s2493_s2] ss:$0 sm:$0xff] }
  0x2e   :  { %1047 = vmatprep.mubr.msk.f32.mxu0 %vm125_vm1, %v32_v37  ;;  %1065 = vmatprep.mubr.msk.f32.mxu1 %vm125_vm1, %v68_v39  ;;  %v97_v37 = vld [vmem:[%s2492_s0 + $0x230] sm:$0xff] }
  0x31   :  { %313 = vmatmul.mubr.f32.gmra.mrb[4].mxu0 %v31_v40  ;;  %403 = vmatmul.mubr.f32.gmra.mrb[4].mxu1 %v67_v42 }
  0x32   :  { %1048 = vmatprep.mubr.msk.f32.mxu0 %vm125_vm1, %v34_v41  ;;  %1066 = vmatprep.mubr.msk.f32.mxu1 %vm125_vm1, %v70_v43 }
  0x35   :  { %318 = vmatmul.mubr.f32.gmra.mrb[6].mxu0 %v33_v44  ;;  %408 = vmatmul.mubr.f32.gmra.mrb[6].mxu1 %v69_v46 }
  0x36   :  { %1049 = vmatprep.mubr.msk.f32.mxu0 %vm125_vm1, %v36_v45  ;;  %1067 = vmatprep.mubr.msk.f32.mxu1 %vm125_vm1, %v72_v47 }
  0x39   :  { %323 = vmatmul.mubr.f32.gmra.mrb[8].mxu0 %v35_v48  ;;  %413 = vmatmul.mubr.f32.gmra.mrb[8].mxu1 %v71_v50 }
  0x3a   :  { %1050 = vmatprep.mubr.msk.f32.mxu0 %vm125_vm1, %v38_v49  ;;  %1068 = vmatprep.mubr.msk.f32.mxu1 %vm125_vm1, %v74_v51 }
  0x3d   :  { %328 = vmatmul.mubr.f32.gmra.mrb[10].mxu0 %v37_v52  ;;  %418 = vmatmul.mubr.f32.gmra.mrb[10].mxu1 %v73_v54 }
  0x3e   :  { %1051 = vmatprep.mubr.msk.f32.mxu0 %vm125_vm1, %v40_v53  ;;  %1069 = vmatprep.mubr.msk.f32.mxu1 %vm125_vm1, %v76_v55 }
  0x41   :  { %333 = vmatmul.mubr.f32.gmra.mrb[12].mxu0 %v39_v56  ;;  %423 = vmatmul.mubr.f32.gmra.mrb[12].mxu1 %v75_v58 }
  0x42   :  { %1052 = vmatprep.mubr.msk.f32.mxu0 %vm125_vm1, %v42_v57  ;;  %1070 = vmatprep.mubr.msk.f32.mxu1 %vm125_vm1, %v78_v59 }
  0x45   :  { %338 = vmatmul.mubr.f32.gmra.mrb[14].mxu0 %v41_v60  ;;  %428 = vmatmul.mubr.f32.gmra.mrb[14].mxu1 %v77_v62 }
  0x46   :  { %1053 = vmatprep.mubr.msk.f32.mxu0 %vm125_vm1, %v44_v61  ;;  %1071 = vmatprep.mubr.msk.f32.mxu1 %vm125_vm1, %v80_v63 }
  0x49   :  { %343 = vmatmul.mubr.f32.gmra.mrb[16].mxu0 %v43_v0  ;;  %433 = vmatmul.mubr.f32.gmra.mrb[16].mxu1 %v79_v2 }
  0x4a   :  { %1054 = vmatprep.mubr.msk.f32.mxu0 %vm125_vm1, %v46_v1  ;;  %1072 = vmatprep.mubr.msk.f32.mxu1 %vm125_vm1, %v82_v3 }
  0x4d   :  { %348 = vmatmul.mubr.f32.gmra.mrb[18].mxu0 %v45_v4  ;;  %438 = vmatmul.mubr.f32.gmra.mrb[18].mxu1 %v81_v6 }
  0x4e   :  { %1055 = vmatprep.mubr.msk.f32.mxu0 %vm125_vm1, %v48_v5  ;;  %1073 = vmatprep.mubr.msk.f32.mxu1 %vm125_vm1, %v84_v7 }
  0x51   :  { %353 = vmatmul.mubr.f32.gmra.mrb[20].mxu0 %v47_v8  ;;  %443 = vmatmul.mubr.f32.gmra.mrb[20].mxu1 %v83_v10 }
  0x52   :  { %1056 = vmatprep.mubr.msk.f32.mxu0 %vm125_vm1, %v50_v9  ;;  %1074 = vmatprep.mubr.msk.f32.mxu1 %vm125_vm1, %v86_v11 }
  0x55   :  { %358 = vmatmul.mubr.f32.gmra.mrb[22].mxu0 %v49_v12  ;;  %448 = vmatmul.mubr.f32.gmra.mrb[22].mxu1 %v85_v14 }
  0x56   :  { %1057 = vmatprep.mubr.msk.f32.mxu0 %vm125_vm1, %v52_v13  ;;  %1075 = vmatprep.mubr.msk.f32.mxu1 %vm125_vm1, %v88_v15 }
  0x59   :  { %363 = vmatmul.mubr.f32.gmra.mrb[24].mxu0 %v51_v16  ;;  %453 = vmatmul.mubr.f32.gmra.mrb[24].mxu1 %v87_v18 }
  0x5a   :  { %1058 = vmatprep.mubr.msk.f32.mxu0 %vm125_vm1, %v54_v17  ;;  %1076 = vmatprep.mubr.msk.f32.mxu1 %vm125_vm1, %v90_v19 }
  0x5d   :  { %368 = vmatmul.mubr.f32.gmra.mrb[26].mxu0 %v53_v20  ;;  %458 = vmatmul.mubr.f32.gmra.mrb[26].mxu1 %v89_v22 }
  0x5e   :  { %1059 = vmatprep.mubr.msk.f32.mxu0 %vm125_vm1, %v56_v21  ;;  %1077 = vmatprep.mubr.msk.f32.mxu1 %vm125_vm1, %v92_v23 }
  0x61   :  { %373 = vmatmul.mubr.f32.gmra.mrb[28].mxu0 %v55_v24  ;;  %463 = vmatmul.mubr.f32.gmra.mrb[28].mxu1 %v91_v26 }
  0x62   :  { %1060 = vmatprep.mubr.msk.f32.mxu0 %vm125_vm1, %v58_v25  ;;  %1078 = vmatprep.mubr.msk.f32.mxu1 %vm125_vm1, %v94_v27 }
  0x65   :  { %378 = vmatmul.mubr.f32.gmra.mrb[30].mxu0 %v57_v28  ;;  %468 = vmatmul.mubr.f32.gmra.mrb[30].mxu1 %v93_v30 }
  0x66   :  { %1061 = vmatprep.mubr.msk.f32.mxu0 %vm125_vm1, %v60_v29  ;;  %1079 = vmatprep.mubr.msk.f32.mxu1 %vm125_vm1, %v96_v31 }
  0x69   :  { %383 = vmatmul.mubr.f32.gmra.mrb[32].mxu0 %v59_v32  ;;  %473 = vmatmul.mubr.f32.gmra.mrb[32].mxu1 %v95_v34 }
  0x6a   :  { %1062 = vmatprep.mubr.msk.f32.mxu0 %vm125_vm1, %v62_v33  ;;  %1080 = vmatprep.mubr.msk.f32.mxu1 %vm125_vm1, %v98_v35 }
  0x6d   :  { %388 = vmatmul.mubr.f32.gmra.mrb[34].mxu0 %v61_v36  ;;  %478 = vmatmul.mubr.f32.gmra.mrb[34].mxu1 %v97_v37 }
  0xfc   :  { %v304_v39 = vpop.f32.mrb[0].mxu0  ;;  %v394_v42 = vpop.f32.mrb[0].mxu1 }
  0xfd   :  { %v305_v40 = vadd.f32 %v1501_v38, %v304_v39  ;;  %v306_v41 = vpop.f32.mrb[1].mxu0  ;;  %v1505_v43 = vadd.f32 %v1501_v38, %v394_v42  ;;  %v396_v44 = vpop.f32.mrb[1].mxu1 }
  0xff   :  { %683 = vst.msk [vmem:[%s2494_s5] sm:$0xff] %vm484_vm3, %v305_v40  ;;  %701 = vst.msk [vmem:[%s2494_s5 + $0x90] sm:$0xff] %vm484_vm3, %v1505_v43  ;;  %v566_v46 = vmul.f32 %v305_v40, %v305_v40  ;;  %v485_v52 = vsel %vm484_vm3, %v305_v40, 0.0 }
 0x100   :  { %v309_v45 = vpop.f32.mrb[2].mxu0  ;;  %v399_v49 = vpop.f32.mrb[2].mxu1 }
 0x101   :  { %v310_v47 = vadd.f32 %v1501_v38, %v309_v45  ;;  %v311_v48 = vpop.f32.mrb[3].mxu0  ;;  %v1518_v50 = vadd.f32 %v1501_v38, %v399_v49  ;;  %v401_v51 = vpop.f32.mrb[3].mxu1  ;;  %v602_v57 = vsel %vm484_vm3, %v566_v46, 0.0 }
 0x103   :  { %v486_v53 = vsel %vm484_vm3, %v310_v47, 0.0  ;;  %v567_v54 = vmul.f32 %v310_v47, %v310_v47  ;;  %684 = vst.msk [vmem:[%s2494_s5 + $0x8] sm:$0xff] %vm484_vm3, %v310_v47  ;;  %702 = vst.msk [vmem:[%s2494_s5 + $0x98] sm:$0xff] %vm484_vm3, %v1518_v50 }
 0x104   :  { %v487_v55 = vadd.f32 %v486_v53, %v485_v52  ;;  %v314_v56 = vpop.f32.mrb[4].mxu0  ;;  %v404_v61 = vpop.f32.mrb[4].mxu1 }
 0x105   :  { %v603_v58 = vsel %vm484_vm3, %v567_v54, 0.0  ;;  %v315_v59 = vadd.f32 %v1501_v38, %v314_v56  ;;  %v316_v60 = vpop.f32.mrb[5].mxu0  ;;  %v1535_v63 = vadd.f32 %v1501_v38, %v404_v61  ;;  %v406_v0 = vpop.f32.mrb[5].mxu1 }
 0x106   :  { %v604_v62 = vadd.f32 %v603_v58, %v602_v57 }
 0x107   :  { %v488_v1 = vsel %vm484_vm3, %v315_v59, 0.0  ;;  %v568_v2 = vmul.f32 %v315_v59, %v315_v59  ;;  %685 = vst.msk [vmem:[%s2494_s5 + $0x10] sm:$0xff] %vm484_vm3, %v315_v59  ;;  %703 = vst.msk [vmem:[%s2494_s5 + $0xa0] sm:$0xff] %vm484_vm3, %v1535_v63 }
 0x108   :  { %v489_v3 = vadd.f32 %v488_v1, %v487_v55  ;;  %v319_v4 = vpop.f32.mrb[6].mxu0  ;;  %v409_v8 = vpop.f32.mrb[6].mxu1 }
 0x109   :  { %v605_v5 = vsel %vm484_vm3, %v568_v2, 0.0  ;;  %v320_v6 = vadd.f32 %v1501_v38, %v319_v4  ;;  %v321_v7 = vpop.f32.mrb[7].mxu0  ;;  %v1550_v10 = vadd.f32 %v1501_v38, %v409_v8  ;;  %v411_v11 = vpop.f32.mrb[7].mxu1 }
 0x10a   :  { %v606_v9 = vadd.f32 %v605_v5, %v604_v62 }
 0x10b   :  { %v490_v12 = vsel %vm484_vm3, %v320_v6, 0.0  ;;  %v569_v13 = vmul.f32 %v320_v6, %v320_v6  ;;  %686 = vst.msk [vmem:[%s2494_s5 + $0x18] sm:$0xff] %vm484_vm3, %v320_v6  ;;  %704 = vst.msk [vmem:[%s2494_s5 + $0xa8] sm:$0xff] %vm484_vm3, %v1550_v10 }
 0x10c   :  { %v491_v14 = vadd.f32 %v490_v12, %v489_v3  ;;  %v324_v15 = vpop.f32.mrb[8].mxu0  ;;  %v414_v19 = vpop.f32.mrb[8].mxu1 }
 0x10d   :  { %v607_v16 = vsel %vm484_vm3, %v569_v13, 0.0  ;;  %v325_v17 = vadd.f32 %v1501_v38, %v324_v15  ;;  %v326_v18 = vpop.f32.mrb[9].mxu0  ;;  %v1565_v21 = vadd.f32 %v1501_v38, %v414_v19  ;;  %v416_v22 = vpop.f32.mrb[9].mxu1 }
 0x10e   :  { %v608_v20 = vadd.f32 %v607_v16, %v606_v9 }
 0x10f   :  { %v492_v23 = vsel %vm484_vm3, %v325_v17, 0.0  ;;  %v570_v24 = vmul.f32 %v325_v17, %v325_v17  ;;  %687 = vst.msk [vmem:[%s2494_s5 + $0x20] sm:$0xff] %vm484_vm3, %v325_v17  ;;  %705 = vst.msk [vmem:[%s2494_s5 + $0xb0] sm:$0xff] %vm484_vm3, %v1565_v21 }
 0x110   :  { %v493_v25 = vadd.f32 %v492_v23, %v491_v14  ;;  %v329_v26 = vpop.f32.mrb[10].mxu0  ;;  %v419_v30 = vpop.f32.mrb[10].mxu1 }
 0x111   :  { %v609_v27 = vsel %vm484_vm3, %v570_v24, 0.0  ;;  %v330_v28 = vadd.f32 %v1501_v38, %v329_v26  ;;  %v331_v29 = vpop.f32.mrb[11].mxu0  ;;  %v1580_v32 = vadd.f32 %v1501_v38, %v419_v30  ;;  %v421_v33 = vpop.f32.mrb[11].mxu1 }
 0x112   :  { %v610_v31 = vadd.f32 %v609_v27, %v608_v20 }
 0x113   :  { %v494_v34 = vsel %vm484_vm3, %v330_v28, 0.0  ;;  %v571_v35 = vmul.f32 %v330_v28, %v330_v28  ;;  %688 = vst.msk [vmem:[%s2494_s5 + $0x28] sm:$0xff] %vm484_vm3, %v330_v28  ;;  %706 = vst.msk [vmem:[%s2494_s5 + $0xb8] sm:$0xff] %vm484_vm3, %v1580_v32 }
 0x114   :  { %v495_v36 = vadd.f32 %v494_v34, %v493_v25  ;;  %v334_v37 = vpop.f32.mrb[12].mxu0  ;;  %v424_v42 = vpop.f32.mrb[12].mxu1 }
 0x115   :  { %v611_v39 = vsel %vm484_vm3, %v571_v35, 0.0  ;;  %v335_v40 = vadd.f32 %v1501_v38, %v334_v37  ;;  %v336_v41 = vpop.f32.mrb[13].mxu0  ;;  %v1595_v45 = vadd.f32 %v1501_v38, %v424_v42  ;;  %v426_v46 = vpop.f32.mrb[13].mxu1 }
 0x116   :  { %v612_v44 = vadd.f32 %v611_v39, %v610_v31 }
 0x117   :  { %v496_v47 = vsel %vm484_vm3, %v335_v40, 0.0  ;;  %v572_v48 = vmul.f32 %v335_v40, %v335_v40  ;;  %689 = vst.msk [vmem:[%s2494_s5 + $0x30] sm:$0xff] %vm484_vm3, %v335_v40  ;;  %707 = vst.msk [vmem:[%s2494_s5 + $0xc0] sm:$0xff] %vm484_vm3, %v1595_v45 }
 0x118   :  { %v497_v49 = vadd.f32 %v496_v47, %v495_v36  ;;  %v339_v51 = vpop.f32.mrb[14].mxu0  ;;  %v429_v55 = vpop.f32.mrb[14].mxu1 }
 0x119   :  { %v613_v52 = vsel %vm484_vm3, %v572_v48, 0.0  ;;  %v340_v53 = vadd.f32 %v1501_v38, %v339_v51  ;;  %v341_v54 = vpop.f32.mrb[15].mxu0  ;;  %v1610_v57 = vadd.f32 %v1501_v38, %v429_v55  ;;  %v431_v58 = vpop.f32.mrb[15].mxu1 }
 0x11a   :  { %v614_v56 = vadd.f32 %v613_v52, %v612_v44 }
 0x11b   :  { %v498_v59 = vsel %vm484_vm3, %v340_v53, 0.0  ;;  %v573_v60 = vmul.f32 %v340_v53, %v340_v53  ;;  %690 = vst.msk [vmem:[%s2494_s5 + $0x38] sm:$0xff] %vm484_vm3, %v340_v53  ;;  %708 = vst.msk [vmem:[%s2494_s5 + $0xc8] sm:$0xff] %vm484_vm3, %v1610_v57 }
 0x11c   :  { %v499_v61 = vadd.f32 %v498_v59, %v497_v49  ;;  %v344_v62 = vpop.f32.mrb[16].mxu0  ;;  %v434_v3 = vpop.f32.mrb[16].mxu1 }
 0x11d   :  { %v615_v0 = vsel %vm484_vm3, %v573_v60, 0.0  ;;  %v345_v1 = vadd.f32 %v1501_v38, %v344_v62  ;;  %v346_v2 = vpop.f32.mrb[17].mxu0  ;;  %v1625_v5 = vadd.f32 %v1501_v38, %v434_v3  ;;  %v436_v6 = vpop.f32.mrb[17].mxu1 }
 0x11e   :  { %v616_v4 = vadd.f32 %v615_v0, %v614_v56 }
 0x11f   :  { %v500_v7 = vsel %vm484_vm3, %v345_v1, 0.0  ;;  %v574_v8 = vmul.f32 %v345_v1, %v345_v1  ;;  %691 = vst.msk [vmem:[%s2494_s5 + $0x40] sm:$0xff] %vm484_vm3, %v345_v1  ;;  %709 = vst.msk [vmem:[%s2494_s5 + $0xd0] sm:$0xff] %vm484_vm3, %v1625_v5 }
 0x120   :  { %v501_v9 = vadd.f32 %v500_v7, %v499_v61  ;;  %v349_v11 = vpop.f32.mrb[18].mxu0  ;;  %v439_v15 = vpop.f32.mrb[18].mxu1 }
 0x121   :  { %v617_v12 = vsel %vm484_vm3, %v574_v8, 0.0  ;;  %v350_v13 = vadd.f32 %v1501_v38, %v349_v11  ;;  %v351_v14 = vpop.f32.mrb[19].mxu0  ;;  %v1640_v17 = vadd.f32 %v1501_v38, %v439_v15  ;;  %v441_v18 = vpop.f32.mrb[19].mxu1 }
 0x122   :  { %v618_v16 = vadd.f32 %v617_v12, %v616_v4 }
 0x123   :  { %v502_v19 = vsel %vm484_vm3, %v350_v13, 0.0  ;;  %v575_v20 = vmul.f32 %v350_v13, %v350_v13  ;;  %692 = vst.msk [vmem:[%s2494_s5 + $0x48] sm:$0xff] %vm484_vm3, %v350_v13  ;;  %710 = vst.msk [vmem:[%s2494_s5 + $0xd8] sm:$0xff] %vm484_vm3, %v1640_v17 }
 0x124   :  { %v503_v22 = vadd.f32 %v502_v19, %v501_v9  ;;  %v354_v23 = vpop.f32.mrb[20].mxu0  ;;  %v444_v27 = vpop.f32.mrb[20].mxu1 }
 0x125   :  { %v619_v24 = vsel %vm484_vm3, %v575_v20, 0.0  ;;  %v355_v25 = vadd.f32 %v1501_v38, %v354_v23  ;;  %v356_v26 = vpop.f32.mrb[21].mxu0  ;;  %v1655_v29 = vadd.f32 %v1501_v38, %v444_v27  ;;  %v446_v30 = vpop.f32.mrb[21].mxu1 }
 0x126   :  { %v620_v28 = vadd.f32 %v619_v24, %v618_v16 }
 0x127   :  { %v504_v31 = vsel %vm484_vm3, %v355_v25, 0.0  ;;  %v576_v33 = vmul.f32 %v355_v25, %v355_v25  ;;  %693 = vst.msk [vmem:[%s2494_s5 + $0x50] sm:$0xff] %vm484_vm3, %v355_v25  ;;  %711 = vst.msk [vmem:[%s2494_s5 + $0xe0] sm:$0xff] %vm484_vm3, %v1655_v29 }
 0x128   :  { %v505_v34 = vadd.f32 %v504_v31, %v503_v22  ;;  %v359_v35 = vpop.f32.mrb[22].mxu0  ;;  %v449_v40 = vpop.f32.mrb[22].mxu1 }
 0x129   :  { %v621_v36 = vsel %vm484_vm3, %v576_v33, 0.0  ;;  %v360_v37 = vadd.f32 %v1501_v38, %v359_v35  ;;  %v361_v39 = vpop.f32.mrb[23].mxu0  ;;  %v1670_v42 = vadd.f32 %v1501_v38, %v449_v40  ;;  %v451_v44 = vpop.f32.mrb[23].mxu1 }
 0x12a   :  { %v622_v41 = vadd.f32 %v621_v36, %v620_v28 }
 0x12b   :  { %v506_v46 = vsel %vm484_vm3, %v360_v37, 0.0  ;;  %v577_v47 = vmul.f32 %v360_v37, %v360_v37  ;;  %694 = vst.msk [vmem:[%s2494_s5 + $0x58] sm:$0xff] %vm484_vm3, %v360_v37  ;;  %712 = vst.msk [vmem:[%s2494_s5 + $0xe8] sm:$0xff] %vm484_vm3, %v1670_v42 }
 0x12c   :  { %v507_v48 = vadd.f32 %v506_v46, %v505_v34  ;;  %v364_v49 = vpop.f32.mrb[24].mxu0  ;;  %v454_v54 = vpop.f32.mrb[24].mxu1 }
 0x12d   :  { %v623_v51 = vsel %vm484_vm3, %v577_v47, 0.0  ;;  %v365_v52 = vadd.f32 %v1501_v38, %v364_v49  ;;  %v366_v53 = vpop.f32.mrb[25].mxu0  ;;  %v1685_v56 = vadd.f32 %v1501_v38, %v454_v54  ;;  %v456_v58 = vpop.f32.mrb[25].mxu1 }
 0x12e   :  { %v624_v55 = vadd.f32 %v623_v51, %v622_v41 }
 0x12f   :  { %v508_v59 = vsel %vm484_vm3, %v365_v52, 0.0  ;;  %v578_v60 = vmul.f32 %v365_v52, %v365_v52  ;;  %695 = vst.msk [vmem:[%s2494_s5 + $0x60] sm:$0xff] %vm484_vm3, %v365_v52  ;;  %713 = vst.msk [vmem:[%s2494_s5 + $0xf0] sm:$0xff] %vm484_vm3, %v1685_v56 }
 0x130   :  { %v509_v61 = vadd.f32 %v508_v59, %v507_v48  ;;  %v369_v62 = vpop.f32.mrb[26].mxu0  ;;  %v459_v3 = vpop.f32.mrb[26].mxu1 }
 0x131   :  { %v625_v0 = vsel %vm484_vm3, %v578_v60, 0.0  ;;  %v370_v1 = vadd.f32 %v1501_v38, %v369_v62  ;;  %v371_v2 = vpop.f32.mrb[27].mxu0  ;;  %v1700_v6 = vadd.f32 %v1501_v38, %v459_v3  ;;  %v461_v7 = vpop.f32.mrb[27].mxu1 }
 0x132   :  { %v626_v4 = vadd.f32 %v625_v0, %v624_v55  ;;  %v585_v7 = vmul.f32 %v1518_v50, %v1518_v50 }
 0x133   :  { %v510_v8 = vsel %vm484_vm3, %v370_v1, 0.0  ;;  %v579_v9 = vmul.f32 %v370_v1, %v370_v1  ;;  %696 = vst.msk [vmem:[%s2494_s5 + $0x68] sm:$0xff] %vm484_vm3, %v370_v1  ;;  %714 = vst.msk [vmem:[%s2494_s5 + $0xf8] sm:$0xff] %vm484_vm3, %v1700_v6  ;;  %v584_v1 = vmul.f32 %v1505_v43, %v1505_v43 }
 0x134   :  { %v511_v11 = vadd.f32 %v510_v8, %v509_v61  ;;  %v374_v12 = vpop.f32.mrb[28].mxu0  ;;  %v464_v16 = vpop.f32.mrb[28].mxu1 }
 0x135   :  { %v627_v13 = vsel %vm484_vm3, %v579_v9, 0.0  ;;  %v375_v14 = vadd.f32 %v1501_v38, %v374_v12  ;;  %v376_v15 = vpop.f32.mrb[29].mxu0  ;;  %v1715_v19 = vadd.f32 %v1501_v38, %v464_v16  ;;  %v466_v20 = vpop.f32.mrb[29].mxu1  ;;  %v637_v12 = vsel %vm484_vm3, %v584_v1, 0.0 }
 0x136   :  { %v628_v18 = vadd.f32 %v627_v13, %v626_v4  ;;  %v522_v13 = vsel %vm484_vm3, %v1518_v50, 0.0  ;;  %v587_v20 = vmul.f32 %v1550_v10, %v1550_v10  ;;  %v526_v50 = vsel %vm484_vm3, %v1550_v10, 0.0 }
 0x137   :  { %v512_v22 = vsel %vm484_vm3, %v375_v14, 0.0  ;;  %v580_v23 = vmul.f32 %v375_v14, %v375_v14  ;;  %697 = vst.msk [vmem:[%s2494_s5 + $0x70] sm:$0xff] %vm484_vm3, %v375_v14  ;;  %715 = vst.msk [vmem:[%s2494_s5 + $0x100] sm:$0xff] %vm484_vm3, %v1715_v19  ;;  %v586_v14 = vmul.f32 %v1535_v63, %v1535_v63  ;;  %v530_v10 = vsel %vm484_vm3, %v1580_v32, 0.0 }
 0x138   :  { %v513_v24 = vadd.f32 %v512_v22, %v511_v11  ;;  %v379_v25 = vpop.f32.mrb[30].mxu0  ;;  %v469_v30 = vpop.f32.mrb[30].mxu1 }
 0x139   :  { %v629_v26 = vsel %vm484_vm3, %v580_v23, 0.0  ;;  %v380_v27 = vadd.f32 %v1501_v38, %v379_v25  ;;  %v381_v28 = vpop.f32.mrb[31].mxu0  ;;  %v1730_v33 = vadd.f32 %v1501_v38, %v469_v30  ;;  %v471_v34 = vpop.f32.mrb[31].mxu1  ;;  %v588_v25 = vmul.f32 %v1565_v21, %v1565_v21 }
 0x13a   :  { %v630_v31 = vadd.f32 %v629_v26, %v628_v18  ;;  %v639_v18 = vsel %vm484_vm3, %v585_v7, 0.0  ;;  %v643_v28 = vsel %vm484_vm3, %v587_v20, 0.0  ;;  %v589_v30 = vmul.f32 %v1580_v32, %v1580_v32 }
 0x13b   :  { %v514_v35 = vsel %vm484_vm3, %v380_v27, 0.0  ;;  %v581_v36 = vmul.f32 %v380_v27, %v380_v27  ;;  %698 = vst.msk [vmem:[%s2494_s5 + $0x78] sm:$0xff] %vm484_vm3, %v380_v27  ;;  %716 = vst.msk [vmem:[%s2494_s5 + $0x108] sm:$0xff] %vm484_vm3, %v1730_v33  ;;  %v534_v32 = vsel %vm484_vm3, %v1610_v57, 0.0  ;;  %v596_v7 = vmul.f32 %v1685_v56, %v1685_v56 }
 0x13c   :  { %v515_v37 = vadd.f32 %v514_v35, %v513_v24  ;;  %v384_v39 = vpop.f32.mrb[32].mxu0  ;;  %v474_v46 = vpop.f32.mrb[32].mxu1  ;;  %v641_v24 = vsel %vm484_vm3, %v586_v14, 0.0  ;;  %v645_v35 = vsel %vm484_vm3, %v588_v25, 0.0 }
 0x13d   :  { %v631_v40 = vsel %vm484_vm3, %v581_v36, 0.0  ;;  %v385_v41 = vadd.f32 %v1501_v38, %v384_v39  ;;  %v386_v44 = vpop.f32.mrb[33].mxu0  ;;  %v1745_v48 = vadd.f32 %v1501_v38, %v474_v46  ;;  %v476_v49 = vpop.f32.mrb[33].mxu1  ;;  %v590_v36 = vmul.f32 %v1595_v45, %v1595_v45 }
 0x13e   :  { %v632_v47 = vadd.f32 %v631_v40, %v630_v31  ;;  %v647_v40 = vsel %vm484_vm3, %v589_v30, 0.0  ;;  %v592_v49 = vmul.f32 %v1625_v5, %v1625_v5 }
 0x13f   :  { %v516_v51 = vsel %vm484_vm3, %v385_v41, 0.0  ;;  %v582_v52 = vmul.f32 %v385_v41, %v385_v41  ;;  %699 = vst.msk [vmem:[%s2494_s5 + $0x80] sm:$0xff] %vm484_vm3, %v385_v41  ;;  %717 = vst.msk [vmem:[%s2494_s5 + $0x110] sm:$0xff] %vm484_vm3, %v1745_v48  ;;  %v591_v41 = vmul.f32 %v1610_v57, %v1610_v57  ;;  %v538_v57 = vsel %vm484_vm3, %v1640_v17, 0.0 }
 0x140   :  { %v517_v53 = vadd.f32 %v516_v51, %v515_v37  ;;  %v389_v54 = vpop.f32.mrb[34].mxu0  ;;  %v479_v60 = vpop.f32.mrb[34].mxu1  ;;  %v600_v25 = vmul.f32 %v1745_v48, %v1745_v48 }
 0x141   :  { %v633_v55 = vsel %vm484_vm3, %v582_v52, 0.0  ;;  %v390_v58 = vadd.f32 %v1501_v38, %v389_v54  ;;  %v391_v59 = vpop.f32.mrb[35].mxu0  ;;  %v1760_v62 = vadd.f32 %v1501_v38, %v479_v60  ;;  %v481_v0 = vpop.f32.mrb[35].mxu1  ;;  %v520_v38 = vsel %vm484_vm3, %v1505_v43, 0.0 }
 0x142   :  { %v634_v61 = vadd.f32 %v633_v55, %v632_v47  ;;  %v524_v43 = vsel %vm484_vm3, %v1535_v63, 0.0  ;;  %v528_v63 = vsel %vm484_vm3, %v1565_v21, 0.0  ;;  %v532_v21 = vsel %vm484_vm3, %v1595_v45, 0.0 }
 0x143   :  { %v518_v2 = vsel %vm484_vm3, %v390_v58, 0.0  ;;  %v583_v3 = vmul.f32 %v390_v58, %v390_v58  ;;  %700 = vst.msk [vmem:[%s2494_s5 + $0x88] sm:$0xff] %vm484_vm3, %v390_v58  ;;  %718 = vst.msk [vmem:[%s2494_s5 + $0x118] sm:$0xff] %vm484_vm3, %v1760_v62  ;;  %v649_v47 = vsel %vm484_vm3, %v590_v36, 0.0  ;;  %v536_v45 = vsel %vm484_vm3, %v1625_v5, 0.0 }
 0x144   :  { %v519_v4 = vadd.f32 %v518_v2, %v517_v53  ;;  %v651_v53 = vsel %vm484_vm3, %v591_v41, 0.0  ;;  %v593_v54 = vmul.f32 %v1640_v17, %v1640_v17  ;;  %v653_v59 = vsel %vm484_vm3, %v592_v49, 0.0  ;;  %v483_v49 = vld [vmem:[#allocation2] sm:$0x1] }
 0x145   :  { %v635_v8 = vsel %vm484_vm3, %v583_v3, 0.0  ;;  %v594_v60 = vmul.f32 %v1655_v29, %v1655_v29  ;;  %v540_v5 = vsel %vm484_vm3, %v1655_v29, 0.0  ;;  %v595_v2 = vmul.f32 %v1670_v42, %v1670_v42 }
 0x146   :  { %v521_v9 = vadd.f32 %v520_v38, %v519_v4  ;;  %v636_v11 = vadd.f32 %v635_v8, %v634_v61  ;;  %v655_v1 = vsel %vm484_vm3, %v593_v54, 0.0  ;;  %v542_v17 = vsel %vm484_vm3, %v1670_v42, 0.0 }
 0x147   :  { %v657_v38 = vsel %vm484_vm3, %v594_v60, 0.0  ;;  %v544_v29 = vsel %vm484_vm3, %v1685_v56, 0.0  ;;  %v546_v42 = vsel %vm484_vm3, %v1700_v6, 0.0  ;;  %v548_v56 = vsel %vm484_vm3, %v1715_v19, 0.0 }
 0x148   :  { %v523_v15 = vadd.f32 %v522_v13, %v521_v9  ;;  %v638_v16 = vadd.f32 %v637_v12, %v636_v11  ;;  %v659_v11 = vsel %vm484_vm3, %v595_v2, 0.0  ;;  %v597_v12 = vmul.f32 %v1700_v6, %v1700_v6 }
 0x149   :  { %v550_v6 = vsel %vm484_vm3, %v1730_v33, 0.0  ;;  %v554_v30 = vsel %vm484_vm3, %v1760_v62, 0.0 }
 0x14a   :  { %v525_v22 = vadd.f32 %v524_v43, %v523_v15  ;;  %v640_v23 = vadd.f32 %v639_v18, %v638_v16  ;;  %v661_v15 = vsel %vm484_vm3, %v596_v7, 0.0  ;;  %v598_v16 = vmul.f32 %v1715_v19, %v1715_v19  ;;  %v1880_v7 = vld [vmem:[%s2494_s5 + $0x10] sm:$0xff] }
 0x14b   :  { %v663_v20 = vsel %vm484_vm3, %v597_v12, 0.0  ;;  %v1903_v12 = vld [vmem:[%s2494_s5 + $0x30] sm:$0xff] }
 0x14c   :  { %v527_v26 = vadd.f32 %v526_v50, %v525_v22  ;;  %v642_v27 = vadd.f32 %v641_v24, %v640_v23  ;;  %v599_v22 = vmul.f32 %v1730_v33, %v1730_v33  ;;  %v665_v50 = vsel %vm484_vm3, %v598_v16, 0.0 }
 0x14d   :  { %v669_v33 = vsel %vm484_vm3, %v600_v25, 0.0 }
 0x14e   :  { %v644_v31 = vadd.f32 %v643_v28, %v642_v27  ;;  %v529_v34 = vadd.f32 %v528_v63, %v527_v26  ;;  %v601_v26 = vmul.f32 %v1760_v62, %v1760_v62  ;;  %v667_v19 = vsel %vm484_vm3, %v599_v22, 0.0  ;;  %v1938_v22 = vld [vmem:[%s2494_s5 + $0x98] sm:$0xff] }
 0x14f   :  { %v552_v63 = vsel %vm484_vm3, %v1745_v48, 0.0 }
 0x150   :  { %v531_v37 = vadd.f32 %v530_v10, %v529_v34  ;;  %v646_v39 = vadd.f32 %v645_v35, %v644_v31  ;;  %v671_v35 = vsel %vm484_vm3, %v601_v26, 0.0 }
 0x152   :  { %v533_v44 = vadd.f32 %v532_v21, %v531_v37  ;;  %v648_v46 = vadd.f32 %v647_v40, %v646_v39 }
 0x154   :  { %v535_v51 = vadd.f32 %v534_v32, %v533_v44  ;;  %v650_v52 = vadd.f32 %v649_v47, %v648_v46 }
 0x156   :  { %v537_v55 = vadd.f32 %v536_v45, %v535_v51  ;;  %v652_v58 = vadd.f32 %v651_v53, %v650_v52  ;;  %v565_v52 = vld [vmem:[#allocation3] sm:$0x1] }
 0x158   :  { %v539_v61 = vadd.f32 %v538_v57, %v537_v55  ;;  %v654_v0 = vadd.f32 %v653_v59, %v652_v58 }
 0x15a   :  { %v656_v3 = vadd.f32 %v655_v1, %v654_v0  ;;  %v541_v4 = vadd.f32 %v540_v5, %v539_v61  ;;  %v767_v0 = vlaneseq }
 0x15c   :  { %v658_v8 = vadd.f32 %v657_v38, %v656_v3  ;;  %v543_v9 = vadd.f32 %v542_v17, %v541_v4  ;;  %v768_v5 = vshrl.u32 %v767_v0, 7  ;;  %v1870_v4 = vld [vmem:[%s2494_s5] sm:$0xff]  ;;  %v1875_v38 = vld [vmem:[%s2494_s5 + $0x8] sm:$0xff] }
 0x15e   :  { %v660_v13 = vadd.f32 %v659_v11, %v658_v8  ;;  %v545_v14 = vadd.f32 %v544_v29, %v543_v9  ;;  %v769_v2 = vsub.s32 0, %v768_v5  ;;  %v1885_v8 = vld [vmem:[%s2494_s5 + $0x18] sm:$0xff]  ;;  %v808_v9 = vld [vmem:[%s2495_s3] sm:$0x1]  ;;  %v1898_v29 = vld [vmem:[%s2494_s5 + $0x28] sm:$0xff] }
 0x15f   :  { %v1893_v11 = vld [vmem:[%s2494_s5 + $0x20] sm:$0xff] }
 0x160   :  { %v662_v18 = vadd.f32 %v661_v15, %v660_v13  ;;  %v547_v43 = vadd.f32 %v546_v42, %v545_v14  ;;  %v1910_v14 = vld [vmem:[%s2494_s5 + $0x38] sm:$0xff]  ;;  %v1915_v15 = vld [vmem:[%s2494_s5 + $0x40] sm:$0xff]  ;;  %v1920_v42 = vld [vmem:[%s2494_s5 + $0x48] sm:$0xff] }
 0x162   :  { %v664_v23 = vadd.f32 %v663_v20, %v662_v18  ;;  %v549_v24 = vadd.f32 %v548_v56, %v547_v43  ;;  %v1933_v56 = vld [vmem:[%s2494_s5 + $0x90] sm:$0xff] }
 0x164   :  { %v666_v27 = vadd.f32 %v665_v50, %v664_v23  ;;  %v551_v28 = vadd.f32 %v550_v6, %v549_v24  ;;  %v1943_v23 = vld [vmem:[%s2494_s5 + $0x50] sm:$0xff]  ;;  %v1948_v24 = vld [vmem:[%s2494_s5 + $0x58] sm:$0xff]  ;;  %v1953_v50 = vld [vmem:[%s2494_s5 + $0x60] sm:$0xff] }
 0x166   :  { %v668_v31 = vadd.f32 %v667_v19, %v666_v27  ;;  %v553_v34 = vadd.f32 %v552_v63, %v551_v28  ;;  %v1964_v28 = vld [vmem:[%s2494_s5 + $0xa0] sm:$0xff]  ;;  %v1969_v19 = vld [vmem:[%s2494_s5 + $0xa8] sm:$0xff] }
 0x167   :  { %v1974_v63 = vld [vmem:[%s2494_s5 + $0x68] sm:$0xff] }
 0x168   :  { %v670_v10 = vadd.f32 %v669_v33, %v668_v31  ;;  %v555_v36 = vadd.f32 %v554_v30, %v553_v34  ;;  %v1979_v30 = vld [vmem:[%s2494_s5 + $0x70] sm:$0xff]  ;;  %v1984_v31 = vld [vmem:[%s2494_s5 + $0x78] sm:$0xff] }
 0x16a   :  { %v556_v37 = vrot.slane %v555_v36, 4  ;;  %v672_v39 = vadd.f32 %v671_v35, %v670_v10 }
 0x16c   :  { %v557_v40 = vadd.f32 %v556_v37, %v555_v36  ;;  %v673_v21 = vrot.slane %v672_v39, 4  ;;  %v1997_v36 = vld [vmem:[%s2494_s5 + $0xb0] sm:$0xff]  ;;  %v746_v37 = vld [vmem:[%s2494_s5 + $0x80] sm:$0xff] }
 0x16e   :  { %v558_v41 = vrot.slane %v557_v40, 2  ;;  %v674_v44 = vadd.f32 %v673_v21, %v672_v39  ;;  %v747_v39 = vld [vmem:[%s2494_s5 + $0x88] sm:$0xff] }
 0x170   :  { %v559_v46 = vadd.f32 %v558_v41, %v557_v40  ;;  %v675_v47 = vrot.slane %v674_v44, 2 }
 0x172   :  { %v560_v48 = vrot.slane %v559_v46, 1  ;;  %v676_v32 = vadd.f32 %v675_v47, %v674_v44  ;;  %v754_v47 = vld [vmem:[%s2494_s5 + $0xc0] sm:$0xff] }
 0x174   :  { %v561_v62 = vadd.f32 %v560_v48, %v559_v46  ;;  %v677_v51 = vrot.slane %v676_v32, 1  ;;  %v753_v46 = vld [vmem:[%s2494_s5 + $0xb8] sm:$0xff]  ;;  %v755_v48 = vld [vmem:[%s2494_s5 + $0xc8] sm:$0xff] }
 0x176   :  { %v562_v53 = vadd.f32 %v561_v62, %v483_v49  ;;  %v678_v45 = vadd.f32 %v677_v51, %v676_v32 }
 0x178   :  { %564 = vst.msk [vmem:[#allocation2] sm:$0x1] %vm24_vm0, %v562_v53  ;;  %v679_v54 = vadd.f32 %v678_v45, %v565_v52  ;;  %v756_v52 = vld [vmem:[%s2494_s5 + $0xd0] sm:$0xff]  ;;  %v757_v53 = vld [vmem:[%s2494_s5 + $0xd8] sm:$0xff]  ;;  %v758_v45 = vld [vmem:[%s2494_s5 + $0xe0] sm:$0xff] }
 0x17a   :  { %680 = vst.msk [vmem:[#allocation3] sm:$0x1] %vm24_vm0, %v679_v54 }
 0x17f   :  { %v722_v55 = vld [vmem:[#allocation2] sm:$0x1] }
 0x180   :  { %v723_v58 = vmul.f32 0.0034722222, %v722_v55 }
 0x181   :  { %v724_v59 = vld [vmem:[#allocation3] sm:$0x1] }
 0x182   :  { %v725_v57 = vmul.f32 0.0034722222, %v724_v59  ;;  %v726_v60 = vmul.f32 %v723_v58, %v723_v58  ;;  %v1865_v3 = vrot.slane %v723_v58, %v769_v2 }
 0x184   :  { %v727_v61 = vsub.f32 %v725_v57, %v726_v60  ;;  %v772_v13 = vsub.f32 %v1870_v4, %v1865_v3  ;;  %v773_v16 = vsub.f32 %v1875_v38, %v1865_v3  ;;  %v774_v18 = vsub.f32 %v1880_v7, %v1865_v3  ;;  %v759_v57 = vld [vmem:[%s2494_s5 + $0xe8] sm:$0xff]  ;;  %v760_v60 = vld [vmem:[%s2494_s5 + $0xf0] sm:$0xff] }
 0x185   :  { %v775_v43 = vsub.f32 %v1885_v8, %v1865_v3  ;;  %v776_v20 = vsub.f32 %v1893_v11, %v1865_v3  ;;  %v777_v6 = vsub.f32 %v1898_v29, %v1865_v3  ;;  %v778_v25 = vsub.f32 %v1903_v12, %v1865_v3  ;;  %v764_v29 = vld [vmem:[%s2494_s5 + $0x110] sm:$0xff] }
 0x186   :  { %v728_v1 = vadd.f32 1e-05, %v727_v61  ;;  %v779_v26 = vsub.f32 %v1910_v14, %v1865_v3  ;;  %v780_v34 = vsub.f32 %v1915_v15, %v1865_v3  ;;  %v781_v33 = vsub.f32 %v1920_v42, %v1865_v3  ;;  %v761_v61 = vld [vmem:[%s2494_s5 + $0xf8] sm:$0xff] }
 0x187   :  { %v782_v35 = vsub.f32 %v1943_v23, %v1865_v3  ;;  %v783_v10 = vsub.f32 %v1948_v24, %v1865_v3  ;;  %v784_v40 = vsub.f32 %v1953_v50, %v1865_v3  ;;  %v785_v21 = vsub.f32 %v1974_v63, %v1865_v3 }
 0x188   :  { %1131 = vrsqrt.f32 %v728_v1  ;;  %v786_v41 = vsub.f32 %v1979_v30, %v1865_v3  ;;  %v787_v44 = vsub.f32 %v1984_v31, %v1865_v3  ;;  %v788_v32 = vsub.f32 %v746_v37, %v1865_v3 }
 0x189   :  { %v789_v49 = vsub.f32 %v747_v39, %v1865_v3  ;;  %v790_v62 = vsub.f32 %v1933_v56, %v1865_v3  ;;  %v791_v51 = vsub.f32 %v1938_v22, %v1865_v3  ;;  %v792_v54 = vsub.f32 %v1964_v28, %v1865_v3  ;;  %v765_v56 = vld [vmem:[%s2494_s5 + $0x118] sm:$0xff] }
 0x18a   :  { %v793_v55 = vsub.f32 %v1969_v19, %v1865_v3  ;;  %v794_v58 = vsub.f32 %v1997_v36, %v1865_v3  ;;  %v795_v0 = vsub.f32 %v753_v46, %v1865_v3  ;;  %v796_v1 = vsub.f32 %v754_v47, %v1865_v3 }
 0x18b   :  { %v797_v5 = vsub.f32 %v755_v48, %v1865_v3  ;;  %v799_v12 = vsub.f32 %v757_v53, %v1865_v3  ;;  %v800_v14 = vsub.f32 %v758_v45, %v1865_v3  ;;  %v801_v15 = vsub.f32 %v759_v57, %v1865_v3 }
 0x18c   :  { %v802_v42 = vsub.f32 %v760_v60, %v1865_v3  ;;  %v803_v22 = vsub.f32 %v761_v61, %v1865_v3  ;;  %v806_v50 = vsub.f32 %v764_v29, %v1865_v3 }
 0x192   :  { %v1132_v17 = vpop.eup %1131 }
 0x193   :  { %v809_v27 = vmul.f32 %v1132_v17, %v808_v9  ;;  %v762_v17 = vld [vmem:[%s2494_s5 + $0x100] sm:$0xff]  ;;  %v763_v9 = vld [vmem:[%s2494_s5 + $0x108] sm:$0xff] }
 0x194   :  { %v804_v23 = vsub.f32 %v762_v17, %v1865_v3  ;;  %v805_v24 = vsub.f32 %v763_v9, %v1865_v3 }
 0x195   :  { %v814_v59 = vrot.slane %v809_v27, %v769_v2  ;;  %v798_v2 = vsub.f32 %v756_v52, %v1865_v3  ;;  %v807_v27 = vsub.f32 %v765_v56, %v1865_v3 }
 0x197   :  { %v816_v28 = vmul.f32 %v814_v59, %v772_v13  ;;  %v817_v19 = vmul.f32 %v814_v59, %v773_v16  ;;  %v818_v63 = vmul.f32 %v814_v59, %v774_v18  ;;  %v819_v30 = vmul.f32 %v814_v59, %v775_v43 }
 0x198   :  { %v820_v31 = vmul.f32 %v814_v59, %v776_v20  ;;  %v821_v36 = vmul.f32 %v814_v59, %v777_v6  ;;  %v822_v37 = vmul.f32 %v814_v59, %v778_v25  ;;  %v823_v4 = vmul.f32 %v814_v59, %v779_v26  ;;  %v1081_v25 = vld [vmem:[%s2496_s4] ss:$0 sm:$0xff] }
 0x199   :  { %v824_v13 = vmul.f32 %v814_v59, %v780_v34  ;;  %v825_v39 = vmul.f32 %v814_v59, %v781_v33  ;;  %v826_v46 = vmul.f32 %v814_v59, %v782_v35  ;;  %v827_v38 = vmul.f32 %v814_v59, %v783_v10 }
 0x19a   :  { %v828_v16 = vmul.f32 %v814_v59, %v784_v40  ;;  %v829_v47 = vmul.f32 %v814_v59, %v785_v21  ;;  %v830_v48 = vmul.f32 %v814_v59, %v786_v41  ;;  %v831_v7 = vmul.f32 %v814_v59, %v787_v44 }
 0x19b   :  { %v832_v18 = vmul.f32 %v814_v59, %v788_v32  ;;  %v833_v52 = vmul.f32 %v814_v59, %v789_v49  ;;  %v834_v53 = vmul.f32 %v814_v59, %v790_v62  ;;  %v835_v8 = vmul.f32 %v814_v59, %v791_v51 }
 0x19c   :  { %v836_v43 = vmul.f32 %v814_v59, %v792_v54  ;;  %v837_v45 = vmul.f32 %v814_v59, %v793_v55  ;;  %v838_v57 = vmul.f32 %v814_v59, %v794_v58  ;;  %v839_v3 = vmul.f32 %v814_v59, %v795_v0 }
 0x19d   :  { %v840_v11 = vmul.f32 %v814_v59, %v796_v1  ;;  %v841_v20 = vmul.f32 %v814_v59, %v797_v5  ;;  %v842_v6 = vmul.f32 %v814_v59, %v798_v2  ;;  %v843_v26 = vmul.f32 %v814_v59, %v799_v12 }
 0x19e   :  { %v844_v34 = vmul.f32 %v814_v59, %v800_v14  ;;  %v845_v33 = vmul.f32 %v814_v59, %v801_v15  ;;  %v846_v35 = vmul.f32 %v814_v59, %v802_v42  ;;  %v847_v10 = vmul.f32 %v814_v59, %v803_v22 }
 0x19f   :  { %v848_v40 = vmul.f32 %v814_v59, %v804_v23  ;;  %v849_v21 = vmul.f32 %v814_v59, %v805_v24  ;;  %v850_v41 = vmul.f32 %v814_v59, %v806_v50  ;;  %v851_v44 = vmul.f32 %v814_v59, %v807_v27 }
 0x1a0   :  { %v2095_v32 = vadd.f32 %v1081_v25, %v816_v28  ;;  %v2097_v49 = vadd.f32 %v1081_v25, %v817_v19  ;;  %v2099_v62 = vadd.f32 %v1081_v25, %v818_v63  ;;  %v2101_v51 = vadd.f32 %v1081_v25, %v819_v30 }
 0x1a1   :  { %v2103_v54 = vadd.f32 %v1081_v25, %v820_v31  ;;  %v2105_v55 = vadd.f32 %v1081_v25, %v821_v36  ;;  %v2107_v58 = vadd.f32 %v1081_v25, %v822_v37  ;;  %v2109_v60 = vadd.f32 %v1081_v25, %v823_v4 }
 0x1a2   :  { %v2111_v61 = vadd.f32 %v1081_v25, %v824_v13  ;;  %v2113_v0 = vadd.f32 %v1081_v25, %v825_v39  ;;  %v2115_v59 = vadd.f32 %v1081_v25, %v826_v46  ;;  %v2117_v1 = vadd.f32 %v1081_v25, %v827_v38 }
 0x1a3   :  { %v2119_v5 = vadd.f32 %v1081_v25, %v828_v16  ;;  %v2121_v2 = vadd.f32 %v1081_v25, %v829_v47  ;;  %v2123_v17 = vadd.f32 %v1081_v25, %v830_v48  ;;  %v2125_v9 = vadd.f32 %v1081_v25, %v831_v7 }
 0x1a4   :  { %v2127_v29 = vadd.f32 %v1081_v25, %v832_v18  ;;  %v2129_v12 = vadd.f32 %v1081_v25, %v833_v52  ;;  %v2131_v14 = vadd.f32 %v1081_v25, %v834_v53  ;;  %v2133_v15 = vadd.f32 %v1081_v25, %v835_v8 }
 0x1a5   :  { %v2135_v42 = vadd.f32 %v1081_v25, %v836_v43  ;;  %v2137_v56 = vadd.f32 %v1081_v25, %v837_v45  ;;  %v2139_v22 = vadd.f32 %v1081_v25, %v838_v57  ;;  %v2141_v23 = vadd.f32 %v1081_v25, %v839_v3 }
 0x1a6   :  { %v2143_v24 = vadd.f32 %v1081_v25, %v840_v11  ;;  %v2145_v50 = vadd.f32 %v1081_v25, %v841_v20  ;;  %v2147_v27 = vadd.f32 %v1081_v25, %v842_v6  ;;  %v2149_v28 = vadd.f32 %v1081_v25, %v843_v26 }
 0x1a7   :  { %v2151_v19 = vadd.f32 %v1081_v25, %v844_v34  ;;  %v2153_v63 = vadd.f32 %v1081_v25, %v845_v33  ;;  %v2155_v30 = vadd.f32 %v1081_v25, %v846_v35  ;;  %v2157_v31 = vadd.f32 %v1081_v25, %v847_v10 }
 0x1a8   :  { %v2159_v36 = vadd.f32 %v1081_v25, %v848_v40  ;;  %v2161_v37 = vadd.f32 %v1081_v25, %v849_v21  ;;  %vm895_vm4 = vcmp.ge.f32.partialorder %v2095_v32, 0.0  ;;  %vm896_vm5 = vcmp.ge.f32.partialorder %v2097_v49, 0.0 }
 0x1a9   :  { %vm897_vm6 = vcmp.ge.f32.partialorder %v2099_v62, 0.0  ;;  %vm898_vm7 = vcmp.ge.f32.partialorder %v2101_v51, 0.0  ;;  %vm899_vm8 = vcmp.ge.f32.partialorder %v2103_v54, 0.0  ;;  %vm900_vm9 = vcmp.ge.f32.partialorder %v2105_v55, 0.0 }
 0x1aa   :  { %vm901_vm10 = vcmp.ge.f32.partialorder %v2107_v58, 0.0  ;;  %vm902_vm11 = vcmp.ge.f32.partialorder %v2109_v60, 0.0  ;;  %v2172_v4 = vadd.f32 %v1081_v25, %v850_v41  ;;  %v931_v13 = vmul.f32 0.01, %v2095_v32 }
 0x1ab   :  { %v932_v39 = vmul.f32 0.01, %v2097_v49  ;;  %v933_v46 = vmul.f32 0.01, %v2099_v62  ;;  %v2178_v38 = vadd.f32 %v1081_v25, %v851_v44  ;;  %vm906_vm15 = vcmp.ge.f32.partialorder %v2117_v1, 0.0 }
 0x1ac   :  { %vm907_vm0 = vcmp.ge.f32.partialorder %v2119_v5, 0.0  ;;  %v934_v16 = vmul.f32 0.01, %v2101_v51  ;;  %v935_v47 = vmul.f32 0.01, %v2103_v54  ;;  %vm912_vm14 = vcmp.ge.f32.partialorder %v2129_v12, 0.0 }
 0x1ad   :  { %v936_v48 = vmul.f32 0.01, %v2105_v55  ;;  %v937_v7 = vmul.f32 0.01, %v2107_v58  ;;  %v938_v18 = vmul.f32 0.01, %v2109_v60  ;;  %v967_v53 = vsel %vm895_vm4, %v2095_v32, %v931_v13 }
 0x1ae   :  { %v939_v52 = vmul.f32 0.01, %v2111_v61  ;;  %vm913_vm1 = vcmp.ge.f32.partialorder %v2131_v14, 0.0  ;;  %v940_v8 = vmul.f32 0.01, %v2113_v0  ;;  %v968_v57 = vsel %vm896_vm5, %v2097_v49, %v932_v39  ;;  %1003 = vst.msk [vmem:[%s2494_s5] sm:$0xff] %vm484_vm3, %v967_v53 }
 0x1af   :  { %v941_v43 = vmul.f32 0.01, %v2115_v59  ;;  %v942_v45 = vmul.f32 0.01, %v2117_v1  ;;  %vm917_vm4 = vcmp.ge.f32.partialorder %v2139_v22, 0.0  ;;  %v969_v6 = vsel %vm897_vm6, %v2099_v62, %v933_v46  ;;  %1004 = vst.msk [vmem:[%s2494_s5 + $0x8] sm:$0xff] %vm484_vm3, %v968_v57 }
 0x1b0   :  { %v943_v3 = vmul.f32 0.01, %v2119_v5  ;;  %v944_v11 = vmul.f32 0.01, %v2121_v2  ;;  %v945_v20 = vmul.f32 0.01, %v2123_v17  ;;  %v970_v33 = vsel %vm898_vm7, %v2101_v51, %v934_v16 }
 0x1b1   :  { %vm921_vm5 = vcmp.ge.f32.partialorder %v2147_v27, 0.0  ;;  %v946_v25 = vmul.f32 0.01, %v2125_v9  ;;  %v947_v26 = vmul.f32 0.01, %v2127_v29  ;;  %1005 = vst.msk [vmem:[%s2494_s5 + $0x10] sm:$0xff] %vm484_vm3, %v969_v6  ;;  %v971_v21 = vsel %vm899_vm8, %v2103_v54, %v935_v47 }
 0x1b2   :  { %v948_v34 = vmul.f32 0.01, %v2129_v12  ;;  %vm925_vm6 = vcmp.ge.f32.partialorder %v2155_v30, 0.0  ;;  %vm926_vm2 = vcmp.ge.f32.partialorder %v2157_v31, 0.0  ;;  %vm928_vm12 = vcmp.ge.f32.partialorder %v2161_v37, 0.0  ;;  %1006 = vst.msk [vmem:[%s2494_s5 + $0x18] sm:$0xff] %vm484_vm3, %v970_v33 }
 0x1b3   :  { %v949_v35 = vmul.f32 0.01, %v2131_v14  ;;  %v950_v10 = vmul.f32 0.01, %v2133_v15  ;;  %v951_v40 = vmul.f32 0.01, %v2135_v42  ;;  %v972_v49 = vsel %vm900_vm9, %v2105_v55, %v936_v48 }
 0x1b4   :  { %vm929_vm7 = vcmp.ge.f32.partialorder %v2172_v4, 0.0  ;;  %vm930_vm13 = vcmp.ge.f32.partialorder %v2178_v38, 0.0  ;;  %v952_v41 = vmul.f32 0.01, %v2137_v56  ;;  %v953_v44 = vmul.f32 0.01, %v2139_v22 }
 0x1b5   :  { %v954_v32 = vmul.f32 0.01, %v2141_v23  ;;  %1007 = vst.msk [vmem:[%s2494_s5 + $0x20] sm:$0xff] %vm484_vm3, %v971_v21  ;;  %v955_v62 = vmul.f32 0.01, %v2143_v24  ;;  %v973_v13 = vsel %vm901_vm10, %v2107_v58, %v937_v7  ;;  %1008 = vst.msk [vmem:[%s2494_s5 + $0x28] sm:$0xff] %vm484_vm3, %v972_v49  ;;  %v974_v16 = vsel %vm902_vm11, %v2109_v60, %v938_v18 }
 0x1b6   :  { %v956_v51 = vmul.f32 0.01, %v2145_v50  ;;  %v957_v54 = vmul.f32 0.01, %v2147_v27  ;;  %v958_v55 = vmul.f32 0.01, %v2149_v28  ;;  %v979_v6 = vsel %vm907_vm0, %v2119_v5, %v943_v3 }
 0x1b7   :  { %v959_v39 = vmul.f32 0.01, %v2151_v19  ;;  %v960_v46 = vmul.f32 0.01, %v2153_v63  ;;  %1009 = vst.msk [vmem:[%s2494_s5 + $0x30] sm:$0xff] %vm484_vm3, %v973_v13  ;;  %vm2497_vm8 = vcmp.ge.f32.partialorder %v2111_v61, 0.0 }
 0x1b8   :  { %v961_v58 = vmul.f32 0.01, %v2155_v30  ;;  %v962_v47 = vmul.f32 0.01, %v2157_v31  ;;  %v963_v48 = vmul.f32 0.01, %v2159_v36  ;;  %v975_v7 = vsel %vm2497_vm8, %v2111_v61, %v939_v52 }
 0x1b9   :  { %1010 = vst.msk [vmem:[%s2494_s5 + $0x38] sm:$0xff] %vm484_vm3, %v974_v16  ;;  %v964_v60 = vmul.f32 0.01, %v2161_v37  ;;  %v965_v18 = vmul.f32 0.01, %v2172_v4  ;;  %vm2498_vm9 = vcmp.ge.f32.partialorder %v2113_v0, 0.0  ;;  %v978_v52 = vsel %vm906_vm15, %v2117_v1, %v942_v45 }
 0x1ba   :  { %v966_v53 = vmul.f32 0.01, %v2178_v38  ;;  %v976_v57 = vsel %vm2498_vm9, %v2113_v0, %v940_v8  ;;  %1011 = vst.msk [vmem:[%s2494_s5 + $0x40] sm:$0xff] %vm484_vm3, %v975_v7  ;;  %vm2499_vm10 = vcmp.ge.f32.partialorder %v2115_v59, 0.0  ;;  %vm2500_vm11 = vcmp.ge.f32.partialorder %v2121_v2, 0.0  ;;  %1014 = vst.msk [vmem:[%s2494_s5 + $0x58] sm:$0xff] %vm484_vm3, %v978_v52 }
 0x1bb   :  { %v977_v61 = vsel %vm2499_vm10, %v2115_v59, %v941_v43  ;;  %v980_v0 = vsel %vm2500_vm11, %v2121_v2, %v944_v11  ;;  %1012 = vst.msk [vmem:[%s2494_s5 + $0x48] sm:$0xff] %vm484_vm3, %v976_v57  ;;  %vm2501_vm8 = vcmp.ge.f32.partialorder %v2123_v17, 0.0  ;;  %vm2502_vm15 = vcmp.ge.f32.partialorder %v2125_v9, 0.0  ;;  %1015 = vst.msk [vmem:[%s2494_s5 + $0x60] sm:$0xff] %vm484_vm3, %v979_v6 }
 0x1bc   :  { %v981_v59 = vsel %vm2501_vm8, %v2123_v17, %v945_v20  ;;  %v982_v1 = vsel %vm2502_vm15, %v2125_v9, %v946_v25  ;;  %vm2503_vm0 = vcmp.ge.f32.partialorder %v2127_v29, 0.0  ;;  %v984_v2 = vsel %vm912_vm14, %v2129_v12, %v948_v34  ;;  %1013 = vst.msk [vmem:[%s2494_s5 + $0x50] sm:$0xff] %vm484_vm3, %v977_v61  ;;  %1016 = vst.msk [vmem:[%s2494_s5 + $0x68] sm:$0xff] %vm484_vm3, %v980_v0 }
 0x1bd   :  { %v983_v5 = vsel %vm2503_vm0, %v2127_v29, %v947_v26  ;;  %v985_v17 = vsel %vm913_vm1, %v2131_v14, %v949_v35  ;;  %vm2504_vm14 = vcmp.ge.f32.partialorder %v2133_v15, 0.0  ;;  %vm2505_vm9 = vcmp.ge.f32.partialorder %v2135_v42, 0.0  ;;  %1017 = vst.msk [vmem:[%s2494_s5 + $0x70] sm:$0xff] %vm484_vm3, %v981_v59  ;;  %1018 = vst.msk [vmem:[%s2494_s5 + $0x78] sm:$0xff] %vm484_vm3, %v982_v1 }
 0x1be   :  { %v986_v9 = vsel %vm2504_vm14, %v2133_v15, %v950_v10  ;;  %v987_v29 = vsel %vm2505_vm9, %v2135_v42, %v951_v40  ;;  %vm2506_vm10 = vcmp.ge.f32.partialorder %v2137_v56, 0.0  ;;  %1019 = vst.msk [vmem:[%s2494_s5 + $0x80] sm:$0xff] %vm484_vm3, %v983_v5  ;;  %1020 = vst.msk [vmem:[%s2494_s5 + $0x88] sm:$0xff] %vm484_vm3, %v984_v2  ;;  %v989_v14 = vsel %vm917_vm4, %v2139_v22, %v953_v44 }
 0x1bf   :  { %v988_v12 = vsel %vm2506_vm10, %v2137_v56, %v952_v41  ;;  %vm2507_vm1 = vcmp.ge.f32.partialorder %v2141_v23, 0.0  ;;  %vm2508_vm11 = vcmp.ge.f32.partialorder %v2143_v24, 0.0  ;;  %vm2509_vm8 = vcmp.ge.f32.partialorder %v2145_v50, 0.0  ;;  %1021 = vst.msk [vmem:[%s2494_s5 + $0x90] sm:$0xff] %vm484_vm3, %v985_v17  ;;  %1022 = vst.msk [vmem:[%s2494_s5 + $0x98] sm:$0xff] %vm484_vm3, %v986_v9 }
 0x1c0   :  { %v990_v15 = vsel %vm2507_vm1, %v2141_v23, %v954_v32  ;;  %v991_v42 = vsel %vm2508_vm11, %v2143_v24, %v955_v62  ;;  %v992_v56 = vsel %vm2509_vm8, %v2145_v50, %v956_v51  ;;  %1023 = vst.msk [vmem:[%s2494_s5 + $0xa0] sm:$0xff] %vm484_vm3, %v987_v29  ;;  %1024 = vst.msk [vmem:[%s2494_s5 + $0xa8] sm:$0xff] %vm484_vm3, %v988_v12  ;;  %vm2510_vm4 = vcmp.ge.f32.partialorder %v2149_v28, 0.0 }
 0x1c1   :  { %v993_v22 = vsel %vm921_vm5, %v2147_v27, %v957_v54  ;;  %v994_v23 = vsel %vm2510_vm4, %v2149_v28, %v958_v55  ;;  %vm2511_vm15 = vcmp.ge.f32.partialorder %v2151_v19, 0.0  ;;  %vm2512_vm0 = vcmp.ge.f32.partialorder %v2153_v63, 0.0  ;;  %1025 = vst.msk [vmem:[%s2494_s5 + $0xb0] sm:$0xff] %vm484_vm3, %v989_v14  ;;  %1026 = vst.msk [vmem:[%s2494_s5 + $0xb8] sm:$0xff] %vm484_vm3, %v990_v15 }
 0x1c2   :  { %v995_v24 = vsel %vm2511_vm15, %v2151_v19, %v959_v39  ;;  %v996_v50 = vsel %vm2512_vm0, %v2153_v63, %v960_v46  ;;  %1027 = vst.msk [vmem:[%s2494_s5 + $0xc0] sm:$0xff] %vm484_vm3, %v991_v42  ;;  %1028 = vst.msk [vmem:[%s2494_s5 + $0xc8] sm:$0xff] %vm484_vm3, %v992_v56  ;;  %v997_v27 = vsel %vm925_vm6, %v2155_v30, %v961_v58  ;;  %vm2513_vm5 = vcmp.ge.f32.partialorder %v2159_v36, 0.0 }
 0x1c3   :  { %v998_v28 = vsel %vm926_vm2, %v2157_v31, %v962_v47  ;;  %v999_v19 = vsel %vm2513_vm5, %v2159_v36, %v963_v48  ;;  %v1000_v63 = vsel %vm928_vm12, %v2161_v37, %v964_v60  ;;  %1029 = vst.msk [vmem:[%s2494_s5 + $0xd0] sm:$0xff] %vm484_vm3, %v993_v22  ;;  %1030 = vst.msk [vmem:[%s2494_s5 + $0xd8] sm:$0xff] %vm484_vm3, %v994_v23 }
 0x1c4   :  { %1031 = vst.msk [vmem:[%s2494_s5 + $0xe0] sm:$0xff] %vm484_vm3, %v995_v24  ;;  %1032 = vst.msk [vmem:[%s2494_s5 + $0xe8] sm:$0xff] %vm484_vm3, %v996_v50  ;;  %v1001_v30 = vsel %vm929_vm7, %v2172_v4, %v965_v18  ;;  %v1002_v31 = vsel %vm930_vm13, %v2178_v38, %v966_v53 }
 0x1c5   :  { %1033 = vst.msk [vmem:[%s2494_s5 + $0xf0] sm:$0xff] %vm484_vm3, %v997_v27  ;;  %1034 = vst.msk [vmem:[%s2494_s5 + $0xf8] sm:$0xff] %vm484_vm3, %v998_v28 }
 0x1c6   :  { %1035 = vst.msk [vmem:[%s2494_s5 + $0x100] sm:$0xff] %vm484_vm3, %v999_v19  ;;  %1036 = vst.msk [vmem:[%s2494_s5 + $0x108] sm:$0xff] %vm484_vm3, %v1000_v63 }
 0x1c7   :  { %1037 = vst.msk [vmem:[%s2494_s5 + $0x110] sm:$0xff] %vm484_vm3, %v1001_v30  ;;  %1038 = vst.msk [vmem:[%s2494_s5 + $0x118] sm:$0xff] %vm484_vm3, %v1002_v31 }

// kernel: lenet5_forward.5
= control target key start
LH: loop header
LB: loop body
LE: loop exit
PB: predicated region body
PF: predicated region fallthrough
CT: control target
= control target key end

     0   :  { %v959_v43 = vmov 1983009808   ;;  %v127_v45 = vlaneseq  ;;  %vm961_vm0 = vmmov 0   ;;  %vm151_vm1 = vcmask 523264   ;;  %s1379_s1 = inlined_call_operand.vmem [shape: f32[576,120], index: 1, kind: input, shape index: {}]   ;;  %s1380_s0 = inlined_call_operand.vmem [shape: f32[2,576], index: 0, kind: input, shape index: {}]   ;;  %s1381_s5 = inlined_call_operand.vmem [shape: f32[120,84], index: 5, kind: input, shape index: {}]   ;;  %s1382_s2 = inlined_call_operand.vmem [shape: f32[1,120], index: 2, kind: input, shape index: {}]   ;;  %s1383_s3 = inlined_call_operand.vmem [shape: f32[1,120], index: 3, kind: input, shape index: {}]   ;;  %s1384_s4 = inlined_call_operand.vmem [shape: f32[1,120], index: 4, kind: input, shape index: {}]   ;;  %s1385_s9 = inlined_call_operand.vmem [shape: f32[84,1], index: 9, kind: input, shape index: {}]   ;;  %s1386_s10 = inlined_call_operand.<no memory space> [shape: f32[1,1], index: 10, kind: input, shape index: {}]   ;;  %s1387_s6 = inlined_call_operand.vmem [shape: f32[1,84], index: 6, kind: input, shape index: {}]   ;;  %s1388_s7 = inlined_call_operand.vmem [shape: f32[1,84], index: 7, kind: input, shape index: {}]   ;;  %s1389_s8 = inlined_call_operand.vmem [shape: f32[1,84], index: 8, kind: input, shape index: {}]   ;;  %s1390_s11 = inlined_call_operand.vmem [shape: f32[2,1], index: 11, kind: output, shape index: {}]  }
   0x1   :  { %v58_v0 = vld [vmem:[%s1379_s1 + $0x80] sm:$0xff]  ;;  %v59_v1 = vld [vmem:[%s1379_s1 + $0x88] sm:$0xff]  ;;  %v60_v11 = vld [vmem:[%s1379_s1 + $0x90] sm:$0xff]  ;;  %v125_v44 = vunpack.c.l.s4 %v959_v43  ;;  %vm366_vm2 = vcmask 975872   ;;  %vm427_vm4 = vcmask 982016   ;;  %vm564_vm5 = vcmask 1043456  }
   0x2   :  { %v42_v2 = vld [vmem:[%s1379_s1] sm:$0xff]  ;;  %v838_v3 = vpack.c.bf16 %v59_v1, %v58_v0  ;;  %v43_v4 = vld [vmem:[%s1379_s1 + $0x8] sm:$0xff]  ;;  %v61_v13 = vld [vmem:[%s1379_s1 + $0x98] sm:$0xff]  ;;  %v1140_v60 = vshrl.u32 %v127_v45, 7  ;;  %vm503_vm6 = vcmask 680960   ;;  %vm560_vm8 = vcmask 687104  }
   0x3   :  { %v90_v5 = vld [vmem:[%s1379_s1 + $0x180] sm:$0xff]  ;;  %v91_v6 = vld [vmem:[%s1379_s1 + $0x188] sm:$0xff]  ;;  %v840_v7 = vpack.c.bf16 %v43_v4, %v42_v2  ;;  %v44_v14 = vld [vmem:[%s1379_s1 + $0x10] sm:$0xff]  ;;  %v842_v16 = vpack.c.bf16 %v61_v13, %v60_v11  ;;  %v126_v59 = vunpack.c.0.s8 %v125_v44  ;;  %vm638_vm9 = vcmask 1024  }
   0x4   :  { %v870_v8 = vpack.c.bf16 %v91_v6, %v90_v5  ;;  %v74_v9 = vld [vmem:[%s1379_s1 + $0x100] sm:$0xff]  ;;  %v75_v10 = vld [vmem:[%s1379_s1 + $0x108] sm:$0xff]  ;;  %839 = vmatprep.subr.bf16.mxu0 %v838_v3  ;;  %v45_v15 = vld [vmem:[%s1379_s1 + $0x18] sm:$0xff] }
   0x5   :  { %v872_v12 = vpack.c.bf16 %v75_v10, %v74_v9  ;;  %841 = vmatpush3.bf16.msra.mxu0 %v840_v7  ;;  %v844_v17 = vpack.c.bf16 %v45_v15, %v44_v14  ;;  %v92_v18 = vld [vmem:[%s1379_s1 + $0x190] sm:$0xff]  ;;  %v93_v19 = vld [vmem:[%s1379_s1 + $0x198] sm:$0xff]  ;;  %v62_v23 = vld [vmem:[%s1379_s1 + $0xa0] sm:$0xff]  ;;  %v129_v10 = vsub.s32 %v126_v59, %v1140_v60 }
   0x6   :  { %871 = vmatprep.subr.bf16.mxu1 %v870_v8  ;;  %v76_v20 = vld [vmem:[%s1379_s1 + $0x110] sm:$0xff]  ;;  %v874_v21 = vpack.c.bf16 %v93_v19, %v92_v18  ;;  %v77_v22 = vld [vmem:[%s1379_s1 + $0x118] sm:$0xff]  ;;  %v63_v24 = vld [vmem:[%s1379_s1 + $0xa8] sm:$0xff]  ;;  %843 = vmatprep.subr.bf16.mxu0 %v842_v16 }
   0x7   :  { %873 = vmatpush3.bf16.msra.mxu1 %v872_v12  ;;  %v876_v25 = vpack.c.bf16 %v77_v22, %v76_v20  ;;  %v846_v26 = vpack.c.bf16 %v63_v24, %v62_v23  ;;  %v46_v27 = vld [vmem:[%s1379_s1 + $0x20] sm:$0xff]  ;;  %v47_v28 = vld [vmem:[%s1379_s1 + $0x28] sm:$0xff]  ;;  %v64_v35 = vld [vmem:[%s1379_s1 + $0xb0] sm:$0xff] }
   0x8   :  { %v94_v29 = vld [vmem:[%s1379_s1 + $0x1a0] sm:$0xff]  ;;  %875 = vmatprep.subr.bf16.mxu1 %v874_v21  ;;  %v95_v30 = vld [vmem:[%s1379_s1 + $0x1a8] sm:$0xff]  ;;  %v848_v33 = vpack.c.bf16 %v47_v28, %v46_v27  ;;  %v65_v36 = vld [vmem:[%s1379_s1 + $0xb8] sm:$0xff] }
   0x9   :  { %v78_v31 = vld [vmem:[%s1379_s1 + $0x120] sm:$0xff]  ;;  %v79_v32 = vld [vmem:[%s1379_s1 + $0x128] sm:$0xff]  ;;  %845 = vmatpush3.bf16.msra.mxu0 %v844_v17  ;;  %v878_v34 = vpack.c.bf16 %v95_v30, %v94_v29  ;;  %v48_v37 = vld [vmem:[%s1379_s1 + $0x30] sm:$0xff]  ;;  %v850_v39 = vpack.c.bf16 %v65_v36, %v64_v35 }
   0xa   :  { %847 = vmatprep.subr.bf16.mxu0 %v846_v26  ;;  %v880_v38 = vpack.c.bf16 %v79_v32, %v78_v31  ;;  %v49_v40 = vld [vmem:[%s1379_s1 + $0x38] sm:$0xff]  ;;  %v96_v41 = vld [vmem:[%s1379_s1 + $0x1b0] sm:$0xff]  ;;  %v66_v49 = vld [vmem:[%s1379_s1 + $0xc0] sm:$0xff] }
   0xb   :  { %877 = vmatpush3.bf16.msra.mxu1 %v876_v25  ;;  %v97_v42 = vld [vmem:[%s1379_s1 + $0x1b8] sm:$0xff]  ;;  %v80_v47 = vld [vmem:[%s1379_s1 + $0x130] sm:$0xff]  ;;  %v67_v50 = vld [vmem:[%s1379_s1 + $0xc8] sm:$0xff]  ;;  %v852_v51 = vpack.c.bf16 %v49_v40, %v48_v37 }
   0xc   :  { %879 = vmatprep.subr.bf16.mxu1 %v878_v34  ;;  %v882_v46 = vpack.c.bf16 %v97_v42, %v96_v41  ;;  %v81_v48 = vld [vmem:[%s1379_s1 + $0x138] sm:$0xff]  ;;  %v98_v52 = vld [vmem:[%s1379_s1 + $0x1c0] sm:$0xff]  ;;  %v99_v53 = vld [vmem:[%s1379_s1 + $0x1c8] sm:$0xff]  ;;  %v854_v55 = vpack.c.bf16 %v67_v50, %v66_v49 }
   0xd   :  { %849 = vmatpush3.bf16.msra.mxu0 %v848_v33  ;;  %v884_v54 = vpack.c.bf16 %v81_v48, %v80_v47  ;;  %v50_v56 = vld [vmem:[%s1379_s1 + $0x40] sm:$0xff]  ;;  %v51_v57 = vld [vmem:[%s1379_s1 + $0x48] sm:$0xff]  ;;  %v886_v61 = vpack.c.bf16 %v99_v53, %v98_v52  ;;  %v68_v63 = vld [vmem:[%s1379_s1 + $0xd0] sm:$0xff]  ;;  %v960_v47 = vmov 0.0|0.0   ;;  %v962_v53 = vmov 0.0  }
   0xe   :  { %851 = vmatprep.subr.bf16.mxu0 %v850_v39  ;;  %v82_v58 = vld [vmem:[%s1379_s1 + $0x140] sm:$0xff]  ;;  %v83_v62 = vld [vmem:[%s1379_s1 + $0x148] sm:$0xff]  ;;  %v69_v0 = vld [vmem:[%s1379_s1 + $0xd8] sm:$0xff]  ;;  %v856_v3 = vpack.c.bf16 %v51_v57, %v50_v56 }
   0xf   :  { %881 = vmatpush3.bf16.msra.mxu1 %v880_v38  ;;  %v100_v1 = vld [vmem:[%s1379_s1 + $0x1d0] sm:$0xff]  ;;  %v101_v2 = vld [vmem:[%s1379_s1 + $0x1d8] sm:$0xff]  ;;  %v888_v5 = vpack.c.bf16 %v83_v62, %v82_v58  ;;  %v858_v6 = vpack.c.bf16 %v69_v0, %v68_v63  ;;  %v70_v12 = vld [vmem:[%s1379_s1 + $0xe0] sm:$0xff] }
  0x10   :  { %883 = vmatprep.subr.bf16.mxu1 %v882_v46  ;;  %v52_v4 = vld [vmem:[%s1379_s1 + $0x50] sm:$0xff]  ;;  %v53_v7 = vld [vmem:[%s1379_s1 + $0x58] sm:$0xff]  ;;  %v890_v11 = vpack.c.bf16 %v101_v2, %v100_v1  ;;  %v71_v13 = vld [vmem:[%s1379_s1 + $0xe8] sm:$0xff] }
  0x11   :  { %853 = vmatpush3.bf16.msra.mxu0 %v852_v51  ;;  %v84_v8 = vld [vmem:[%s1379_s1 + $0x150] sm:$0xff]  ;;  %v85_v9 = vld [vmem:[%s1379_s1 + $0x158] sm:$0xff]  ;;  %v102_v14 = vld [vmem:[%s1379_s1 + $0x1e0] sm:$0xff]  ;;  %v860_v16 = vpack.c.bf16 %v53_v7, %v52_v4  ;;  %v862_v19 = vpack.c.bf16 %v71_v13, %v70_v12 }
  0x12   :  { %855 = vmatprep.subr.bf16.mxu0 %v854_v55  ;;  %v103_v15 = vld [vmem:[%s1379_s1 + $0x1e8] sm:$0xff]  ;;  %v892_v17 = vpack.c.bf16 %v85_v9, %v84_v8  ;;  %v40_v18 = vld [vmem:[%s1380_s0] sm:$0xff]  ;;  %v72_v27 = vld [vmem:[%s1379_s1 + $0xf0] sm:$0xff] }
  0x13   :  { %885 = vmatpush3.bf16.msra.mxu1 %v884_v54  ;;  %v54_v20 = vld [vmem:[%s1379_s1 + $0x60] sm:$0xff]  ;;  %v55_v21 = vld [vmem:[%s1379_s1 + $0x68] sm:$0xff]  ;;  %v130_v23 = vrot.slane %v40_v18, %v129_v10  ;;  %v123_v24 = vcombine.high %v40_v18, %v40_v18  ;;  %v894_v25 = vpack.c.bf16 %v103_v15, %v102_v14  ;;  %v73_v28 = vld [vmem:[%s1379_s1 + $0xf8] sm:$0xff] }
  0x14   :  { %887 = vmatprep.subr.bf16.mxu1 %v886_v61  ;;  %v86_v22 = vld [vmem:[%s1379_s1 + $0x160] sm:$0xff]  ;;  %v87_v26 = vld [vmem:[%s1379_s1 + $0x168] sm:$0xff]  ;;  %v104_v29 = vld [vmem:[%s1379_s1 + $0x1f0] sm:$0xff]  ;;  %v864_v33 = vpack.c.bf16 %v55_v21, %v54_v20  ;;  %v866_v35 = vpack.c.bf16 %v73_v28, %v72_v27 }
  0x15   :  { %857 = vmatpush3.bf16.msra.mxu0 %v856_v3  ;;  %v105_v30 = vld [vmem:[%s1379_s1 + $0x1f8] sm:$0xff]  ;;  %v138_v31 = vcombine.high %v130_v23, %v130_v23  ;;  %v137_v32 = vrot.slane %v123_v24, %v129_v10  ;;  %v896_v34 = vpack.c.bf16 %v87_v26, %v86_v22  ;;  %v56_v36 = vld [vmem:[%s1379_s1 + $0x70] sm:$0xff]  ;;  %v106_v44 = vld [vmem:[%s1379_s1 + $0x200] sm:$0xff] }
  0x16   :  { %859 = vmatprep.subr.bf16.mxu0 %v858_v6  ;;  %v57_v37 = vld [vmem:[%s1379_s1 + $0x78] sm:$0xff]  ;;  %v898_v39 = vpack.c.bf16 %v105_v30, %v104_v29  ;;  %v88_v40 = vld [vmem:[%s1379_s1 + $0x170] sm:$0xff]  ;;  %v107_v45 = vld [vmem:[%s1379_s1 + $0x208] sm:$0xff] }
  0x17   :  { %889 = vmatpush3.bf16.msra.mxu1 %v888_v5  ;;  %v139_v38 = vcombine.high %v137_v32, %v137_v32  ;;  %218 = vmatprep.mubr.f32.mxu0 %v138_v31  ;;  %v89_v41 = vld [vmem:[%s1379_s1 + $0x178] sm:$0xff]  ;;  %v868_v42 = vpack.c.bf16 %v57_v37, %v56_v36  ;;  %v903_v46 = vpack.c.bf16 %v107_v45, %v106_v44  ;;  %v108_v48 = vld [vmem:[%s1379_s1 + $0x210] sm:$0xff]  ;;  %v110_v51 = vld [vmem:[%s1379_s1 + $0x220] sm:$0xff] }
  0x18   :  { %891 = vmatprep.subr.bf16.mxu1 %v890_v11  ;;  %v900_v43 = vpack.c.bf16 %v89_v41, %v88_v40  ;;  %v109_v49 = vld [vmem:[%s1379_s1 + $0x218] sm:$0xff]  ;;  %v111_v52 = vld [vmem:[%s1379_s1 + $0x228] sm:$0xff]  ;;  %v112_v55 = vld [vmem:[%s1379_s1 + $0x230] sm:$0xff] }
  0x19   :  { %861 = vmatpush3.bf16.msra.mxu0 %v860_v16  ;;  %288 = vmatprep.mubr.f32.mxu1 %v139_v38  ;;  %v906_v50 = vpack.c.bf16 %v109_v49, %v108_v48  ;;  %v909_v54 = vpack.c.bf16 %v111_v52, %v110_v51  ;;  %v113_v56 = vld [vmem:[%s1379_s1 + $0x238] sm:$0xff]  ;;  %v645_v58 = vld.sshfl [vmem:[%s1380_s0 + $0x8] sm:$0x3 pattern:$0x76325410]  ;;  %v405_v59 = vld [vmem:[%s1381_s5] sm:$0xff] }
  0x1a   :  { %863 = vmatprep.subr.bf16.mxu0 %v862_v19  ;;  %v912_v57 = vpack.c.bf16 %v113_v56, %v112_v55  ;;  %v406_v61 = vld [vmem:[%s1381_s5 + $0x8] sm:$0xff]  ;;  %v407_v63 = vld [vmem:[%s1381_s5 + $0x10] sm:$0xff]  ;;  %v408_v0 = vld [vmem:[%s1381_s5 + $0x18] sm:$0xff]  ;;  %v392_v52 = vsub.s32 0, %v1140_v60 }
  0x1b   :  { %893 = vmatpush3.bf16.msra.mxu1 %v892_v17  ;;  %v915_v62 = vpack.c.bf16 %v406_v61, %v405_v59  ;;  %v918_v1 = vpack.c.bf16 %v408_v0, %v407_v63  ;;  %v409_v2 = vld [vmem:[%s1381_s5 + $0x20] sm:$0xff]  ;;  %v410_v3 = vld [vmem:[%s1381_s5 + $0x28] sm:$0xff]  ;;  %v411_v5 = vld [vmem:[%s1381_s5 + $0x30] sm:$0xff] }
  0x1c   :  { %895 = vmatprep.subr.bf16.mxu1 %v894_v25  ;;  %v921_v4 = vpack.c.bf16 %v410_v3, %v409_v2  ;;  %v412_v6 = vld [vmem:[%s1381_s5 + $0x38] sm:$0xff]  ;;  %v413_v8 = vld [vmem:[%s1381_s5 + $0x40] sm:$0xff]  ;;  %v414_v9 = vld [vmem:[%s1381_s5 + $0x48] sm:$0xff] }
  0x1d   :  { %865 = vmatpush3.bf16.msra.mxu0 %v864_v33  ;;  %v924_v7 = vpack.c.bf16 %v412_v6, %v411_v5  ;;  %v927_v10 = vpack.c.bf16 %v414_v9, %v413_v8  ;;  %v415_v11 = vld [vmem:[%s1381_s5 + $0x50] sm:$0xff]  ;;  %v416_v12 = vld [vmem:[%s1381_s5 + $0x58] sm:$0xff]  ;;  %v417_v14 = vld [vmem:[%s1381_s5 + $0x60] sm:$0xff] }
  0x1e   :  { %867 = vmatprep.subr.bf16.mxu0 %v866_v35  ;;  %v930_v13 = vpack.c.bf16 %v416_v12, %v415_v11  ;;  %v418_v15 = vld [vmem:[%s1381_s5 + $0x68] sm:$0xff]  ;;  %v419_v17 = vld [vmem:[%s1381_s5 + $0x70] sm:$0xff]  ;;  %v644_v19 = vld [vmem:[%s1382_s2] ss:$0 sm:$0xff] }
  0x1f   :  { %897 = vmatpush3.bf16.msra.mxu1 %v896_v34  ;;  %v933_v16 = vpack.c.bf16 %v418_v15, %v417_v14  ;;  %v364_v51 = vld [vmem:[%s1383_s3] sm:$0x1]  ;;  %v544_v3 = vld [vmem:[%s1385_s9 + $0x10] sm:$0xff] }
  0x20   :  { %899 = vmatprep.subr.bf16.mxu1 %v898_v39  ;;  %v542_v0 = vld [vmem:[%s1385_s9] sm:$0xff]  ;;  %v548_v9 = vld [vmem:[%s1385_s9 + $0x30] sm:$0xff] }
  0x21   :  { %869 = vmatpush3.bf16.msra.mxu0 %v868_v42  ;;  %v546_v6 = vld [vmem:[%s1385_s9 + $0x20] sm:$0xff]  ;;  %v552_v15 = vld [vmem:[%s1385_s9 + $0x50] sm:$0xf] }
  0x22   :  { %902 = vmatprep.subr.bf16.mxu0 %v960_v47  ;;  %v550_v12 = vld [vmem:[%s1385_s9 + $0x40] sm:$0xff] }
  0x23   :  { %901 = vmatpush3.bf16.msra.mxu1 %v900_v43 }
  0x24   :  { %914 = vmatprep.subr.bf16.mxu1 %v960_v47  ;;  %219 = vmatmul.mubr.f32.vlgmr.msra.gmra.mrb[0].mxu0 %v130_v23 }
  0x25   :  { %904 = vmatpush3.bf16.msra.mxu0 %v903_v46  ;;  %777 = vmatprep.mubr.msk.f32.mxu0 %vm961_vm0, %v962_v53 }
  0x26   :  { %289 = vmatmul.mubr.f32.vlgmr.msra.gmra.mrb[0].mxu1 %v137_v32  ;;  %905 = vmatprep.subr.bf16.mxu0 %v960_v47 }
  0x27   :  { %810 = vmatprep.mubr.msk.f32.mxu1 %vm961_vm0, %v962_v53  ;;  %916 = vmatpush3.bf16.msra.mxu1 %v915_v62 }
  0x28   :  { %917 = vmatprep.subr.bf16.mxu1 %v960_v47 }
  0x29   :  { %907 = vmatpush3.bf16.msra.mxu0 %v906_v50 }
  0x2a   :  { %908 = vmatprep.subr.bf16.mxu0 %v960_v47 }
  0x2b   :  { %919 = vmatpush3.bf16.msra.mxu1 %v918_v1  ;;  %v543_v1 = vld [vmem:[%s1385_s9 + $0x8] sm:$0xff] }
  0x2c   :  { %920 = vmatprep.subr.bf16.mxu1 %v960_v47  ;;  %v936_v2 = vpack.c.bf16 %v543_v1, %v542_v0 }
  0x2d   :  { %910 = vmatpush3.bf16.msra.mxu0 %v909_v54 }
  0x2e   :  { %911 = vmatprep.subr.bf16.mxu0 %v960_v47 }
  0x2f   :  { %922 = vmatpush3.bf16.msra.mxu1 %v921_v4  ;;  %v545_v4 = vld [vmem:[%s1385_s9 + $0x18] sm:$0xff] }
  0x30   :  { %923 = vmatprep.subr.bf16.mxu1 %v960_v47  ;;  %v939_v5 = vpack.c.bf16 %v545_v4, %v544_v3 }
  0x31   :  { %913 = vmatpush3.bf16.msra.mxu0 %v912_v57 }
  0x32   :  { %935 = vmatprep.subr.bf16.mxu0 %v960_v47 }
  0x33   :  { %925 = vmatpush3.bf16.msra.mxu1 %v924_v7  ;;  %v547_v7 = vld [vmem:[%s1385_s9 + $0x28] sm:$0xff] }
  0x34   :  { %778 = vmatmul.mubr.msk.f32.vlgmr.msra.gmra.mrb[2].mxu0 %vm151_vm1, %v645_v58  ;;  %926 = vmatprep.subr.bf16.mxu1 %v960_v47  ;;  %v647_v58 = vld [vmem:[%s1384_s4] ss:$0 sm:$0xff]  ;;  %v942_v8 = vpack.c.bf16 %v547_v7, %v546_v6 }
  0x35   :  { %835 = vmatprep.mubr.msk.f32.mxu0 %vm961_vm0, %v962_v53  ;;  %937 = vmatpush3.bf16.msra.mxu0 %v936_v2 }
  0x36   :  { %938 = vmatprep.subr.bf16.mxu0 %v960_v47 }
  0x37   :  { %928 = vmatpush3.bf16.msra.mxu1 %v927_v10  ;;  %v549_v10 = vld [vmem:[%s1385_s9 + $0x38] sm:$0xff] }
  0x38   :  { %929 = vmatprep.subr.bf16.mxu1 %v960_v47  ;;  %v945_v11 = vpack.c.bf16 %v549_v10, %v548_v9 }
  0x39   :  { %940 = vmatpush3.bf16.msra.mxu0 %v939_v5 }
  0x3a   :  { %941 = vmatprep.subr.bf16.mxu0 %v960_v47 }
  0x3b   :  { %931 = vmatpush3.bf16.msra.mxu1 %v930_v13  ;;  %v551_v13 = vld [vmem:[%s1385_s9 + $0x48] sm:$0xff] }
  0x3c   :  { %932 = vmatprep.subr.bf16.mxu1 %v960_v47  ;;  %v948_v14 = vpack.c.bf16 %v551_v13, %v550_v12 }
  0x3d   :  { %943 = vmatpush3.bf16.msra.mxu0 %v942_v8 }
  0x3e   :  { %944 = vmatprep.subr.bf16.mxu0 %v960_v47 }
  0x3f   :  { %934 = vmatpush3.bf16.msra.mxu1 %v933_v16  ;;  %v648_v16 = vld [vmem:[%s1387_s6] ss:$0 sm:$0xff] }
  0x40   :  { %808 = vmatprep.subr.mxu1 %v962_v53 }
  0x41   :  { %946 = vmatpush3.bf16.msra.mxu0 %v945_v11 }
  0x42   :  { %947 = vmatprep.subr.bf16.mxu0 %v960_v47  ;;  %v16_v47 = vstv %s1386_s10 }
  0x43   :  { %809 = vmatpush3.msra.mxu1 %v419_v17  ;;  %17 = vst [vmem:[#allocation2] sm:$0x1] %v16_v47 }
  0x45   :  { %949 = vmatpush3.bf16.msra.mxu0 %v948_v14 }
  0x46   :  { %833 = vmatprep.subr.mxu0 %v962_v53 }
  0x49   :  { %834 = vmatpush3.msk.msra.mxu0 %vm564_vm5, %v552_v15 }
  0xf7   :  { %v686_v18 = vpop.f32.mrb[0].mxu0 }
  0xf8   :  { %v687_v20 = vpop.f32.mrb[1].mxu0 }
  0xf9   :  { %v721_v21 = vpop.f32.mrb[0].mxu1  ;;  %v688_v22 = vadd.f32 %v687_v20, %v686_v18 }
  0xfa   :  { %v722_v23 = vpop.f32.mrb[1].mxu1 }
  0xfb   :  { %v723_v24 = vadd.f32 %v722_v23, %v721_v21  ;;  %v221_v25 = vadd.f32 %v688_v22, %v644_v19 }
  0xfd   :  { %v291_v26 = vadd.f32 %v723_v24, %v221_v25 }
 0x107   :  { %v360_v27 = vpop.f32.mrb[2].mxu0 }
 0x108   :  { %v361_v28 = vadd.f32 %v360_v27, %v291_v26  ;;  %v779_v29 = vpop.f32.mrb[3].mxu0 }
 0x10a   :  { %v367_v30 = vsel %vm366_vm2, %v361_v28, 0.0  ;;  %v375_v31 = vmul.f32 %v361_v28, %v361_v28 }
 0x10b   :  { %v368_v32 = vrot.slane %v367_v30, 4 }
 0x10c   :  { %v376_v33 = vsel %vm366_vm2, %v375_v31, 0.0 }
 0x10d   :  { %v369_v34 = vadd.f32 %v368_v32, %v367_v30  ;;  %v377_v35 = vrot.slane %v376_v33, 4 }
 0x10f   :  { %v370_v36 = vrot.slane %v369_v34, 2  ;;  %v378_v37 = vadd.f32 %v377_v35, %v376_v33 }
 0x111   :  { %v371_v38 = vadd.f32 %v370_v36, %v369_v34  ;;  %v379_v39 = vrot.slane %v378_v37, 2 }
 0x113   :  { %v372_v40 = vrot.slane %v371_v38, 1  ;;  %v380_v41 = vadd.f32 %v379_v39, %v378_v37  ;;  %v501_v39 = vld [vmem:[%s1388_s7] sm:$0x1] }
 0x115   :  { %v373_v42 = vadd.f32 %v372_v40, %v371_v38  ;;  %v381_v43 = vrot.slane %v380_v41, 1 }
 0x117   :  { %v374_v44 = vmul.f32 0.5, %v373_v42  ;;  %v382_v45 = vadd.f32 %v381_v43, %v380_v41 }
 0x119   :  { %v383_v46 = vmul.f32 0.5, %v382_v45  ;;  %v384_v48 = vmul.f32 %v374_v44, %v374_v44  ;;  %v388_v56 = vsub.f32 %v361_v28, %v374_v44  ;;  %v650_v44 = vld [vmem:[%s1389_s8] ss:$0 sm:$0xff] }
 0x11b   :  { %v385_v49 = vsub.f32 %v383_v46, %v384_v48 }
 0x11d   :  { %v386_v50 = vadd.f32 1e-05, %v385_v49 }
 0x11f   :  { %955 = vrsqrt.f32 %v386_v50  ;;  %v651_v50 = vld [vmem:[#allocation2] ss:$0 sm:$0xff] }
 0x129   :  { %v956_v54 = vpop.eup %955 }
 0x12a   :  { %v389_v55 = vmul.f32 %v956_v54, %v364_v51 }
 0x12c   :  { %v393_v57 = vrot.slane %v389_v55, %v392_v52 }
 0x12e   :  { %v394_v59 = vmul.f32 %v393_v57, %v388_v56 }
 0x130   :  { %v401_v61 = vadd.f32 %v647_v58, %v394_v59 }
 0x132   :  { %vm402_vm3 = vcmp.ge.f32.partialorder %v401_v61, 0.0  ;;  %v403_v62 = vmul.f32 0.01, %v401_v61 }
 0x134   :  { %v404_v63 = vsel %vm402_vm3, %v401_v61, %v403_v62 }
 0x135   :  { %811 = vmatmul.mubr.msk.f32.vlgmr.msra.gmra.mrb[2].mxu1 %vm427_vm4, %v404_v63 }
 0x208   :  { %v497_v17 = vpop.f32.mrb[2].mxu1 }
 0x209   :  { %v498_v18 = vadd.f32 %v648_v16, %v497_v17  ;;  %v812_v19 = vpop.f32.mrb[3].mxu1 }
 0x20b   :  { %v504_v53 = vsel %vm503_vm6, %v498_v18, 0.0  ;;  %v512_v20 = vmul.f32 %v498_v18, %v498_v18 }
 0x20c   :  { %v505_v21 = vrot.slane %v504_v53, 4 }
 0x20d   :  { %v513_v22 = vsel %vm503_vm6, %v512_v20, 0.0 }
 0x20e   :  { %v506_v23 = vadd.f32 %v505_v21, %v504_v53  ;;  %v514_v24 = vrot.slane %v513_v22, 4 }
 0x210   :  { %v507_v25 = vrot.slane %v506_v23, 2  ;;  %v515_v26 = vadd.f32 %v514_v24, %v513_v22 }
 0x212   :  { %v508_v27 = vadd.f32 %v507_v25, %v506_v23  ;;  %v516_v28 = vrot.slane %v515_v26, 2 }
 0x214   :  { %v509_v29 = vrot.slane %v508_v27, 1  ;;  %v517_v30 = vadd.f32 %v516_v28, %v515_v26 }
 0x216   :  { %v510_v31 = vadd.f32 %v509_v29, %v508_v27  ;;  %v518_v32 = vrot.slane %v517_v30, 1 }
 0x218   :  { %v511_v33 = vmul.f32 0.5, %v510_v31  ;;  %v519_v34 = vadd.f32 %v518_v32, %v517_v30 }
 0x21a   :  { %v520_v35 = vmul.f32 0.5, %v519_v34  ;;  %v521_v36 = vmul.f32 %v511_v33, %v511_v33  ;;  %v525_v42 = vsub.f32 %v498_v18, %v511_v33 }
 0x21c   :  { %v522_v37 = vsub.f32 %v520_v35, %v521_v36 }
 0x21e   :  { %v523_v38 = vadd.f32 1e-05, %v522_v37 }
 0x220   :  { %957 = vrsqrt.f32 %v523_v38 }
 0x22a   :  { %v958_v40 = vpop.eup %957 }
 0x22b   :  { %v526_v41 = vmul.f32 %v958_v40, %v501_v39 }
 0x22d   :  { %v530_v43 = vrot.slane %v526_v41, %v392_v52 }
 0x22f   :  { %v531_v45 = vmul.f32 %v530_v43, %v525_v42 }
 0x231   :  { %v538_v46 = vadd.f32 %v650_v44, %v531_v45 }
 0x233   :  { %vm539_vm7 = vcmp.ge.f32.partialorder %v538_v46, 0.0  ;;  %v540_v48 = vmul.f32 0.01, %v538_v46 }
 0x235   :  { %v541_v49 = vsel %vm539_vm7, %v538_v46, %v540_v48 }
 0x236   :  { %836 = vmatmul.mubr.msk.f32.vlgmr.msra.gmra.mrb[4].mxu0 %vm560_vm8, %v541_v49 }
 0x309   :  { %v634_v51 = vpop.f32.mrb[4].mxu0 }
 0x30a   :  { %v635_v54 = vadd.f32 %v651_v50, %v634_v51  ;;  %v837_v55 = vpop.f32.mrb[5].mxu0 }
 0x30c   :  { %639 = vst.msk [vmem:[%s1390_s11] sm:$0x3] %vm638_vm9, %v635_v54 }

</bundles_post_ra>
